<compile_context>
chip_gen: v7x
topology: tpu7x:2x2x1
jax: 0.10.0
libtpu: 0.0.40
codegen_flags: <defaults>
</compile_context>

<pallas_src>
import jax
import jax.numpy as jnp
from jax import lax
from jax.experimental import pallas as pl
from jax.experimental.pallas import tpu as pltpu


def _round_up(x, m):
    return ((x + m - 1) // m) * m


# ----------------------------- Pallas kernels ------------------------------

def _conv_matmul_relu_kernel(a_ref, w_ref, b_ref, o_ref):
    # a: (TM, Kp) bf16 patches; w: (Kp, Coutp) bf16; b: (1, Coutp) f32
    # o: (TM, Coutp) bf16 -- f32 accumulation on the MXU, bf16 store.
    acc = jnp.dot(a_ref[...], w_ref[...], preferred_element_type=jnp.float32)
    acc = acc + b_ref[...]
    o_ref[...] = jnp.maximum(acc, 0.0).astype(o_ref.dtype)


def conv_matmul_relu(patches, w, b, tm):
    """ReLU((Mp,Kp)@(Kp,Coutp) + b), tiled over M. bf16 MXU operands, f32 accum."""
    Mp, Kp = patches.shape
    Kw, Coutp = w.shape
    assert Kp == Kw and Mp % tm == 0
    return pl.pallas_call(
        _conv_matmul_relu_kernel,
        out_shape=jax.ShapeDtypeStruct((Mp, Coutp), jnp.bfloat16),
        grid=(Mp // tm,),
        in_specs=[
            pl.BlockSpec((tm, Kp), lambda i: (i, 0)),
            pl.BlockSpec((Kp, Coutp), lambda i: (0, 0)),   # weights stay resident
            pl.BlockSpec((1, Coutp), lambda i: (0, 0)),
        ],
        out_specs=pl.BlockSpec((tm, Coutp), lambda i: (i, 0)),
        compiler_params=pltpu.CompilerParams(
            dimension_semantics=("parallel",)),
    )(patches, w, b)


def _dist_partial_kernel(f1_ref, f2_ref, w_ref, o_ref):
    # f1/f2: (TR, Cp) bf16 rows = flattened (sample, spatial) positions
    # w: (Cp, 128) f32, column 0 = lin weight / (H*W), other columns zero
    # o: (8, 128) f32 lane-dense partial sum for this grid step
    f1 = f1_ref[...].astype(jnp.float32)
    f2 = f2_ref[...].astype(jnp.float32)
    eps = 1e-10
    # reference-LPIPS channel unit-normalization: x / (||x|| + eps)
    inv1 = 1.0 / (jnp.sqrt(jnp.sum(f1 * f1, axis=-1, keepdims=True)) + eps)
    inv2 = 1.0 / (jnp.sqrt(jnp.sum(f2 * f2, axis=-1, keepdims=True)) + eps)
    d = f1 * inv1 - f2 * inv2
    # 1x1 "lin" conv + channel reduction as one MXU matmul (only col 0 nonzero)
    wsum = jnp.dot(d * d, w_ref[...], preferred_element_type=jnp.float32)  # (TR,128)
    # lane-dense partial: sublane fold instead of a cross-lane reduce / 1-lane store
    o_ref[...] = jnp.sum(wsum.reshape(-1, 8, 128), axis=0)


def lpips_dist_from_conv(out2d, rp, w_col):
    """Distance partial sums for one tap, reading the padded conv output directly.

    out2d: (2*rp, Cp) bf16 with img1 rows in [0, rp) and img2 rows in [rp, 2*rp).
    Padded rows are identical in both halves -> contribute exactly 0.
    """
    cp = out2d.shape[1]
    tr = 256 if rp % 256 == 0 else rp
    nblk = rp // tr
    partials = pl.pallas_call(
        _dist_partial_kernel,
        out_shape=jax.ShapeDtypeStruct((nblk, 8, 128), jnp.float32),
        grid=(nblk,),
        in_specs=[
            pl.BlockSpec((tr, cp), lambda r: (r, 0)),            # img1 half
            pl.BlockSpec((tr, cp), lambda r: (r + nblk, 0)),     # img2 half
            pl.BlockSpec((cp, 128), lambda r: (0, 0)),
        ],
        out_specs=pl.BlockSpec((None, 8, 128), lambda r: (r, 0, 0)),
        compiler_params=pltpu.CompilerParams(
            dimension_semantics=("parallel",)),
    )(out2d, out2d, w_col)
    return jnp.sum(partials)


def lpips_dist_stacked(f1_s, f2_s, w_s):
    """One fused distance call over several small taps: grid axis = tap index."""
    t, rpd, cpd = f1_s.shape
    partials = pl.pallas_call(
        _dist_partial_kernel,
        out_shape=jax.ShapeDtypeStruct((t, 8, 128), jnp.float32),
        grid=(t,),
        in_specs=[
            pl.BlockSpec((None, rpd, cpd), lambda i: (i, 0, 0)),
            pl.BlockSpec((None, rpd, cpd), lambda i: (i, 0, 0)),
            pl.BlockSpec((None, cpd, 128), lambda i: (i, 0, 0)),
        ],
        out_specs=pl.BlockSpec((None, 8, 128), lambda i: (i, 0, 0)),
        compiler_params=pltpu.CompilerParams(
            dimension_semantics=("parallel",)),
    )(f1_s, f2_s, w_s)
    return jnp.sum(partials)


# ------------------------------ JAX glue ------------------------------------

def conv_relu(x_nhwc, w_oihw, b, stride, pad):
    """Conv+ReLU over the batched (img1|img2) stack.

    Returns the row/lane padded 2D activation (2*Rp, Coutp) bf16 where rows
    [0, Rp) belong to img1 and rows [Rp, 2*Rp) to img2, plus geometry.
    """
    B, H, W, Cin = x_nhwc.shape                     # B = 2N (both images)
    Cout, _, kh, kw = w_oihw.shape
    # one fused XLA op instead of a python loop of strided slices + concat
    patches = lax.conv_general_dilated_patches(
        x_nhwc, (kh, kw), (stride, stride), [(pad, pad), (pad, pad)],
        dimension_numbers=("NHWC", "HWIO", "NHWC"))  # (B, oh, ow, Cin*kh*kw)
    _, oh, ow, K = patches.shape
    R = (B // 2) * oh * ow                          # rows per image half
    Kp = _round_up(K, 128)                          # lane-aligned contraction dim
    Coutp = _round_up(Cout, 128)                    # lane-dense output stores
    tm = min(256, _round_up(R, 8))                  # v5e-safe tile
    Rp = _round_up(R, tm)                           # grid = 2*Rp//tm >= 2 always
    patches = patches.reshape(2, R, K)
    patches = jnp.pad(patches, ((0, 0), (0, Rp - R), (0, Kp - K)))
    patches = patches.reshape(2 * Rp, Kp).astype(jnp.bfloat16)
    # conv_general_dilated_patches feature order is channel-major: (cin, kh, kw)
    wf = jnp.transpose(w_oihw, (1, 2, 3, 0)).reshape(K, Cout)
    wf = jnp.pad(wf, ((0, Kp - K), (0, Coutp - Cout))).astype(jnp.bfloat16)
    bp = jnp.pad(b, (0, Coutp - Cout)).reshape(1, Coutp).astype(jnp.float32)
    out2d = conv_matmul_relu(patches, wf, bp, tm)   # (2*Rp, Coutp) bf16
    return out2d, oh, ow, Rp


def maxpool_3x3_s2(x_nhwc):
    return lax.reduce_window(x_nhwc, jnp.array(-jnp.inf, x_nhwc.dtype), lax.max,
                             (1, 3, 3, 1), (1, 2, 2, 1), "VALID")


_ALEX_CFG = [
    # (Cin, Cout, k, stride, pad)  -- static Python config, never traced
    (3, 64, 11, 4, 2),
    (64, 192, 5, 1, 2),
    (192, 384, 3, 1, 1),
    (384, 256, 3, 1, 1),
    (256, 256, 3, 1, 1),
]
_LIN_CHANS = [64, 192, 384, 256, 256]


def init_params(key):
    params = {"convs": [], "lins": []}
    keys = jax.random.split(key, len(_ALEX_CFG))
    for wk, (cin, cout, k, _, _) in zip(keys, _ALEX_CFG):
        fan_in = cin * k * k
        w = jax.random.normal(wk, (cout, cin, k, k), jnp.float32) * (2.0 / fan_in) ** 0.5
        b = jnp.zeros((cout,), jnp.float32)
        params["convs"].append((w, b))
    lkeys = jax.random.split(jax.random.fold_in(key, 123), len(_LIN_CHANS))
    for lk, c in zip(lkeys, _LIN_CHANS):
        # LPIPS 'lin' weights are non-negative per-channel scalars
        params["lins"].append(jnp.abs(jax.random.normal(lk, (c,), jnp.float32)) * 0.1)
    return params


def alexnet_taps(x_nchw_both, params):
    # LPIPS scaling layer (inputs assumed in [-1, 1], normalize=False default)
    shift = jnp.array([-0.030, -0.088, -0.188], jnp.float32)
    scale = jnp.array([0.458, 0.448, 0.450], jnp.float32)
    x = (x_nchw_both - shift[None, :, None, None]) / scale[None, :, None, None]
    x = jnp.transpose(x, (0, 2, 3, 1)).astype(jnp.bfloat16)   # NCHW -> NHWC, bf16
    B = x.shape[0]
    taps = []
    last = len(_ALEX_CFG) - 1
    for idx, ((w, b), (_, cout, _, s, p)) in enumerate(zip(params["convs"], _ALEX_CFG)):
        out2d, oh, ow, Rp = conv_relu(x, w, b, s, p)           # relu1..relu5 taps
        taps.append((out2d, oh, ow, Rp, cout))
        if idx < last:                                         # NHWC for next layer
            R = (B // 2) * oh * ow
            x = out2d.reshape(2, Rp, -1)[:, :R, :cout].reshape(B, oh, ow, cout)
            if idx in (0, 1):                                  # pool after relu1/relu2
                x = maxpool_3x3_s2(x)
    return taps


def lpips_loss(img1, img2, params):
    """Equivalent of LpipsLoss_.forward: 1 - lpips(img1, img2).squeeze().mean()."""
    N = img1.shape[0]
    # run both images through the shared conv stack in one batched pass
    both = jnp.concatenate([img1, img2], axis=0)
    taps = alexnet_taps(both, params)

    # --- tap 1 (largest): consume the padded conv output directly -------------
    out2d, oh, ow, Rp, cout = taps[0]
    cp = out2d.shape[1]
    w_col = jnp.zeros((cp, 128), jnp.float32).at[:cout, 0].set(
        params["lins"][0] / float(oh * ow))        # spatial mean folded into w
    total = lpips_dist_from_conv(out2d, Rp, w_col)

    # --- taps 2..5 (tiny): one fused call, grid over taps ---------------------
    rest = taps[1:]
    cpd = max(_round_up(t[4], 128) for t in rest)                    # 384
    rpd = _round_up(max(N * t[1] * t[2] for t in rest), 8)
    f1_parts, f2_parts, w_parts = [], [], []
    for (o2d, ohh, oww, rp, c), lin in zip(rest, params["lins"][1:]):
        R = N * ohh * oww
        h = o2d.reshape(2, rp, -1)[:, :R, :]                         # (2, R, Coutp)
        h = jnp.pad(h, ((0, 0), (0, rpd - R), (0, cpd - h.shape[-1])))
        f1_parts.append(h[0])
        f2_parts.append(h[1])
        w_parts.append(jnp.zeros((cpd, 128), jnp.float32)
                       .at[:c, 0].set(lin / float(ohh * oww)))
    total = total + lpips_dist_stacked(jnp.stack(f1_parts),
                                       jnp.stack(f2_parts),
                                       jnp.stack(w_parts))

    lpips_score = total / N                        # == (N,1,1,1).squeeze().mean()
    return (1.0 - lpips_score).astype(jnp.float32)


# --------------------------------- main --------------------------------------

if __name__ == "__main__":
    key = jax.random.PRNGKey(0)
    pkey, k1, k2 = jax.random.split(key, 3)
    params = init_params(pkey)

    # small images consistent with LPIPS/AlexNet (N, C, H, W), values in [-1, 1]
    img1 = jax.random.uniform(k1, (2, 3, 64, 64), jnp.float32, minval=-1.0, maxval=1.0)
    img2 = jax.random.uniform(k2, (2, 3, 64, 64), jnp.float32, minval=-1.0, maxval=1.0)

    loss = jax.jit(lpips_loss)(img1, img2, params)
    jax.block_until_ready(loss)
    assert loss.shape == () and loss.dtype == jnp.float32
    assert bool(jnp.isfinite(loss))
    print("KERNEL_OK")
</pallas_src>

<mosaic_0001>
module attributes {stable_mosaic.version = 11 : i64} {
  func.func @_conv_matmul_relu_kernel(%arg0: i32, %arg1: memref<256x384xbf16, #tpu.memory_space<vmem>>, %arg2: memref<384x128xbf16, #tpu.memory_space<vmem>>, %arg3: memref<1x128xf32, #tpu.memory_space<vmem>>, %arg4: memref<256x128xbf16, #tpu.memory_space<vmem>>) attributes {dimension_semantics = [#tpu.dimension_semantics<parallel>], iteration_bounds = array<i64: 4>, scalar_prefetch = 0 : i64, scratch_operands = 0 : i64, tpu.core_type = #tpu.core_type<tc>, window_params = [{transform_indices = @transform_0, window_bounds = array<i64: 256, 384>}, {pipeline_mode = #tpu.pipeline_mode<synchronous>, transform_indices = @transform_1, window_bounds = array<i64: 384, 128>}, {pipeline_mode = #tpu.pipeline_mode<synchronous>, transform_indices = @transform_2, window_bounds = array<i64: 1, 128>}, {transform_indices = @transform_3, window_bounds = array<i64: 256, 128>}]} {
    %c0 = arith.constant 0 : index
    %c0_0 = arith.constant 0 : index
    %0 = vector.load %arg1[%c0, %c0_0] : memref<256x384xbf16, #tpu.memory_space<vmem>>, vector<256x384xbf16>
    %c0_1 = arith.constant 0 : index
    %c0_2 = arith.constant 0 : index
    %1 = vector.load %arg2[%c0_1, %c0_2] : memref<384x128xbf16, #tpu.memory_space<vmem>>, vector<384x128xbf16>
    %cst = arith.constant dense<0.000000e+00> : vector<256x128xf32>
    %2 = tpu.matmul %0, %1, %cst {dimension_numbers = #tpu.dot_dimension_numbers<[1], [0], [0], [1], [0, 0, 1, 1], [], []>} : vector<256x384xbf16>, vector<384x128xbf16>, vector<256x128xf32> -> vector<256x128xf32>
    %c0_3 = arith.constant 0 : index
    %c0_4 = arith.constant 0 : index
    %3 = vector.load %arg3[%c0_3, %c0_4] : memref<1x128xf32, #tpu.memory_space<vmem>>, vector<1x128xf32>
    %4 = vector.broadcast %3 : vector<1x128xf32> to vector<256x128xf32>
    %5 = arith.addf %2, %4 : vector<256x128xf32>
    %cst_5 = arith.constant 0.000000e+00 : f32
    %6 = vector.broadcast %cst_5 : f32 to vector<256x128xf32>
    %7 = arith.maximumf %5, %6 : vector<256x128xf32>
    %8 = arith.truncf %7 : vector<256x128xf32> to vector<256x128xbf16>
    %c0_6 = arith.constant 0 : index
    %c0_7 = arith.constant 0 : index
    %9 = vector.load %arg4[%c0_6, %c0_7] : memref<256x128xbf16, #tpu.memory_space<vmem>>, vector<256x128xbf16>
    tpu.vector_store %arg4[%c0_6, %c0_7], %8 {strides = array<i32>} : memref<256x128xbf16, #tpu.memory_space<vmem>>, vector<256x128xbf16>,
    return
  }
  func.func @transform_0(%arg0: i32) -> (i32, i32) {
    %c0_i32 = arith.constant 0 : i32
    %c0_i32_0 = arith.constant 0 : i32
    return %arg0, %c0_i32 : i32, i32
  }
  func.func @transform_1(%arg0: i32) -> (i32, i32) {
    %c0_i32 = arith.constant 0 : i32
    %c0_i32_0 = arith.constant 0 : i32
    %c0_i32_1 = arith.constant 0 : i32
    return %c0_i32, %c0_i32_0 : i32, i32
  }
  func.func @transform_2(%arg0: i32) -> (i32, i32) {
    %c0_i32 = arith.constant 0 : i32
    %c0_i32_0 = arith.constant 0 : i32
    %c0_i32_1 = arith.constant 0 : i32
    return %c0_i32, %c0_i32_0 : i32, i32
  }
  func.func @transform_3(%arg0: i32) -> (i32, i32) {
    %c0_i32 = arith.constant 0 : i32
    %c0_i32_0 = arith.constant 0 : i32
    return %arg0, %c0_i32 : i32, i32
  }
}

module attributes {stable_mosaic.version = 11 : i64} {
  func.func @_conv_matmul_relu_kernel(%arg0: i32, %arg1: memref<104x1664xbf16, #tpu.memory_space<vmem>>, %arg2: memref<1664x256xbf16, #tpu.memory_space<vmem>>, %arg3: memref<1x256xf32, #tpu.memory_space<vmem>>, %arg4: memref<104x256xbf16, #tpu.memory_space<vmem>>) attributes {dimension_semantics = [#tpu.dimension_semantics<parallel>], iteration_bounds = array<i64: 2>, scalar_prefetch = 0 : i64, scratch_operands = 0 : i64, tpu.core_type = #tpu.core_type<tc>, window_params = [{transform_indices = @transform_0, window_bounds = array<i64: 104, 1664>}, {pipeline_mode = #tpu.pipeline_mode<synchronous>, transform_indices = @transform_1, window_bounds = array<i64: 1664, 256>}, {pipeline_mode = #tpu.pipeline_mode<synchronous>, transform_indices = @transform_2, window_bounds = array<i64: 1, 256>}, {transform_indices = @transform_3, window_bounds = array<i64: 104, 256>}]} {
    %c0 = arith.constant 0 : index
    %c0_0 = arith.constant 0 : index
    %0 = vector.load %arg1[%c0, %c0_0] : memref<104x1664xbf16, #tpu.memory_space<vmem>>, vector<104x1664xbf16>
    %c0_1 = arith.constant 0 : index
    %c0_2 = arith.constant 0 : index
    %1 = vector.load %arg2[%c0_1, %c0_2] : memref<1664x256xbf16, #tpu.memory_space<vmem>>, vector<1664x256xbf16>
    %cst = arith.constant dense<0.000000e+00> : vector<104x256xf32>
    %2 = tpu.matmul %0, %1, %cst {dimension_numbers = #tpu.dot_dimension_numbers<[1], [0], [0], [1], [0, 0, 1, 1], [], []>} : vector<104x1664xbf16>, vector<1664x256xbf16>, vector<104x256xf32> -> vector<104x256xf32>
    %c0_3 = arith.constant 0 : index
    %c0_4 = arith.constant 0 : index
    %3 = vector.load %arg3[%c0_3, %c0_4] : memref<1x256xf32, #tpu.memory_space<vmem>>, vector<1x256xf32>
    %4 = vector.broadcast %3 : vector<1x256xf32> to vector<104x256xf32>
    %5 = arith.addf %2, %4 : vector<104x256xf32>
    %cst_5 = arith.constant 0.000000e+00 : f32
    %6 = vector.broadcast %cst_5 : f32 to vector<104x256xf32>
    %7 = arith.maximumf %5, %6 : vector<104x256xf32>
    %8 = arith.truncf %7 : vector<104x256xf32> to vector<104x256xbf16>
    %c0_6 = arith.constant 0 : index
    %c0_7 = arith.constant 0 : index
    %9 = vector.load %arg4[%c0_6, %c0_7] : memref<104x256xbf16, #tpu.memory_space<vmem>>, vector<104x256xbf16>
    tpu.vector_store %arg4[%c0_6, %c0_7], %8 {strides = array<i32>} : memref<104x256xbf16, #tpu.memory_space<vmem>>, vector<104x256xbf16>,
    return
  }
  func.func @transform_0(%arg0: i32) -> (i32, i32) {
    %c0_i32 = arith.constant 0 : i32
    %c0_i32_0 = arith.constant 0 : i32
    return %arg0, %c0_i32 : i32, i32
  }
  func.func @transform_1(%arg0: i32) -> (i32, i32) {
    %c0_i32 = arith.constant 0 : i32
    %c0_i32_0 = arith.constant 0 : i32
    %c0_i32_1 = arith.constant 0 : i32
    return %c0_i32, %c0_i32_0 : i32, i32
  }
  func.func @transform_2(%arg0: i32) -> (i32, i32) {
    %c0_i32 = arith.constant 0 : i32
    %c0_i32_0 = arith.constant 0 : i32
    %c0_i32_1 = arith.constant 0 : i32
    return %c0_i32, %c0_i32_0 : i32, i32
  }
  func.func @transform_3(%arg0: i32) -> (i32, i32) {
    %c0_i32 = arith.constant 0 : i32
    %c0_i32_0 = arith.constant 0 : i32
    return %arg0, %c0_i32 : i32, i32
  }
}

module attributes {stable_mosaic.version = 11 : i64} {
  func.func @_conv_matmul_relu_kernel(%arg0: i32, %arg1: memref<24x1792xbf16, #tpu.memory_space<vmem>>, %arg2: memref<1792x384xbf16, #tpu.memory_space<vmem>>, %arg3: memref<1x384xf32, #tpu.memory_space<vmem>>, %arg4: memref<24x384xbf16, #tpu.memory_space<vmem>>) attributes {dimension_semantics = [#tpu.dimension_semantics<parallel>], iteration_bounds = array<i64: 2>, scalar_prefetch = 0 : i64, scratch_operands = 0 : i64, tpu.core_type = #tpu.core_type<tc>, window_params = [{transform_indices = @transform_0, window_bounds = array<i64: 24, 1792>}, {pipeline_mode = #tpu.pipeline_mode<synchronous>, transform_indices = @transform_1, window_bounds = array<i64: 1792, 384>}, {pipeline_mode = #tpu.pipeline_mode<synchronous>, transform_indices = @transform_2, window_bounds = array<i64: 1, 384>}, {transform_indices = @transform_3, window_bounds = array<i64: 24, 384>}]} {
    %c0 = arith.constant 0 : index
    %c0_0 = arith.constant 0 : index
    %0 = vector.load %arg1[%c0, %c0_0] : memref<24x1792xbf16, #tpu.memory_space<vmem>>, vector<24x1792xbf16>
    %c0_1 = arith.constant 0 : index
    %c0_2 = arith.constant 0 : index
    %1 = vector.load %arg2[%c0_1, %c0_2] : memref<1792x384xbf16, #tpu.memory_space<vmem>>, vector<1792x384xbf16>
    %cst = arith.constant dense<0.000000e+00> : vector<24x384xf32>
    %2 = tpu.matmul %0, %1, %cst {dimension_numbers = #tpu.dot_dimension_numbers<[1], [0], [0], [1], [0, 0, 1, 1], [], []>} : vector<24x1792xbf16>, vector<1792x384xbf16>, vector<24x384xf32> -> vector<24x384xf32>
    %c0_3 = arith.constant 0 : index
    %c0_4 = arith.constant 0 : index
    %3 = vector.load %arg3[%c0_3, %c0_4] : memref<1x384xf32, #tpu.memory_space<vmem>>, vector<1x384xf32>
    %4 = vector.broadcast %3 : vector<1x384xf32> to vector<24x384xf32>
    %5 = arith.addf %2, %4 : vector<24x384xf32>
    %cst_5 = arith.constant 0.000000e+00 : f32
    %6 = vector.broadcast %cst_5 : f32 to vector<24x384xf32>
    %7 = arith.maximumf %5, %6 : vector<24x384xf32>
    %8 = arith.truncf %7 : vector<24x384xf32> to vector<24x384xbf16>
    %c0_6 = arith.constant 0 : index
    %c0_7 = arith.constant 0 : index
    %9 = vector.load %arg4[%c0_6, %c0_7] : memref<24x384xbf16, #tpu.memory_space<vmem>>, vector<24x384xbf16>
    tpu.vector_store %arg4[%c0_6, %c0_7], %8 {strides = array<i32>} : memref<24x384xbf16, #tpu.memory_space<vmem>>, vector<24x384xbf16>,
    return
  }
  func.func @transform_0(%arg0: i32) -> (i32, i32) {
    %c0_i32 = arith.constant 0 : i32
    %c0_i32_0 = arith.constant 0 : i32
    return %arg0, %c0_i32 : i32, i32
  }
  func.func @transform_1(%arg0: i32) -> (i32, i32) {
    %c0_i32 = arith.constant 0 : i32
    %c0_i32_0 = arith.constant 0 : i32
    %c0_i32_1 = arith.constant 0 : i32
    return %c0_i32, %c0_i32_0 : i32, i32
  }
  func.func @transform_2(%arg0: i32) -> (i32, i32) {
    %c0_i32 = arith.constant 0 : i32
    %c0_i32_0 = arith.constant 0 : i32
    %c0_i32_1 = arith.constant 0 : i32
    return %c0_i32, %c0_i32_0 : i32, i32
  }
  func.func @transform_3(%arg0: i32) -> (i32, i32) {
    %c0_i32 = arith.constant 0 : i32
    %c0_i32_0 = arith.constant 0 : i32
    return %arg0, %c0_i32 : i32, i32
  }
}

module attributes {stable_mosaic.version = 11 : i64} {
  func.func @_conv_matmul_relu_kernel(%arg0: i32, %arg1: memref<24x3456xbf16, #tpu.memory_space<vmem>>, %arg2: memref<3456x256xbf16, #tpu.memory_space<vmem>>, %arg3: memref<1x256xf32, #tpu.memory_space<vmem>>, %arg4: memref<24x256xbf16, #tpu.memory_space<vmem>>) attributes {dimension_semantics = [#tpu.dimension_semantics<parallel>], iteration_bounds = array<i64: 2>, scalar_prefetch = 0 : i64, scratch_operands = 0 : i64, tpu.core_type = #tpu.core_type<tc>, window_params = [{transform_indices = @transform_0, window_bounds = array<i64: 24, 3456>}, {pipeline_mode = #tpu.pipeline_mode<synchronous>, transform_indices = @transform_1, window_bounds = array<i64: 3456, 256>}, {pipeline_mode = #tpu.pipeline_mode<synchronous>, transform_indices = @transform_2, window_bounds = array<i64: 1, 256>}, {transform_indices = @transform_3, window_bounds = array<i64: 24, 256>}]} {
    %c0 = arith.constant 0 : index
    %c0_0 = arith.constant 0 : index
    %0 = vector.load %arg1[%c0, %c0_0] : memref<24x3456xbf16, #tpu.memory_space<vmem>>, vector<24x3456xbf16>
    %c0_1 = arith.constant 0 : index
    %c0_2 = arith.constant 0 : index
    %1 = vector.load %arg2[%c0_1, %c0_2] : memref<3456x256xbf16, #tpu.memory_space<vmem>>, vector<3456x256xbf16>
    %cst = arith.constant dense<0.000000e+00> : vector<24x256xf32>
    %2 = tpu.matmul %0, %1, %cst {dimension_numbers = #tpu.dot_dimension_numbers<[1], [0], [0], [1], [0, 0, 1, 1], [], []>} : vector<24x3456xbf16>, vector<3456x256xbf16>, vector<24x256xf32> -> vector<24x256xf32>
    %c0_3 = arith.constant 0 : index
    %c0_4 = arith.constant 0 : index
    %3 = vector.load %arg3[%c0_3, %c0_4] : memref<1x256xf32, #tpu.memory_space<vmem>>, vector<1x256xf32>
    %4 = vector.broadcast %3 : vector<1x256xf32> to vector<24x256xf32>
    %5 = arith.addf %2, %4 : vector<24x256xf32>
    %cst_5 = arith.constant 0.000000e+00 : f32
    %6 = vector.broadcast %cst_5 : f32 to vector<24x256xf32>
    %7 = arith.maximumf %5, %6 : vector<24x256xf32>
    %8 = arith.truncf %7 : vector<24x256xf32> to vector<24x256xbf16>
    %c0_6 = arith.constant 0 : index
    %c0_7 = arith.constant 0 : index
    %9 = vector.load %arg4[%c0_6, %c0_7] : memref<24x256xbf16, #tpu.memory_space<vmem>>, vector<24x256xbf16>
    tpu.vector_store %arg4[%c0_6, %c0_7], %8 {strides = array<i32>} : memref<24x256xbf16, #tpu.memory_space<vmem>>, vector<24x256xbf16>,
    return
  }
  func.func @transform_0(%arg0: i32) -> (i32, i32) {
    %c0_i32 = arith.constant 0 : i32
    %c0_i32_0 = arith.constant 0 : i32
    return %arg0, %c0_i32 : i32, i32
  }
  func.func @transform_1(%arg0: i32) -> (i32, i32) {
    %c0_i32 = arith.constant 0 : i32
    %c0_i32_0 = arith.constant 0 : i32
    %c0_i32_1 = arith.constant 0 : i32
    return %c0_i32, %c0_i32_0 : i32, i32
  }
  func.func @transform_2(%arg0: i32) -> (i32, i32) {
    %c0_i32 = arith.constant 0 : i32
    %c0_i32_0 = arith.constant 0 : i32
    %c0_i32_1 = arith.constant 0 : i32
    return %c0_i32, %c0_i32_0 : i32, i32
  }
  func.func @transform_3(%arg0: i32) -> (i32, i32) {
    %c0_i32 = arith.constant 0 : i32
    %c0_i32_0 = arith.constant 0 : i32
    return %arg0, %c0_i32 : i32, i32
  }
}

module attributes {stable_mosaic.version = 11 : i64} {
  func.func @_conv_matmul_relu_kernel(%arg0: i32, %arg1: memref<24x2304xbf16, #tpu.memory_space<vmem>>, %arg2: memref<2304x256xbf16, #tpu.memory_space<vmem>>, %arg3: memref<1x256xf32, #tpu.memory_space<vmem>>, %arg4: memref<24x256xbf16, #tpu.memory_space<vmem>>) attributes {dimension_semantics = [#tpu.dimension_semantics<parallel>], iteration_bounds = array<i64: 2>, scalar_prefetch = 0 : i64, scratch_operands = 0 : i64, tpu.core_type = #tpu.core_type<tc>, window_params = [{transform_indices = @transform_0, window_bounds = array<i64: 24, 2304>}, {pipeline_mode = #tpu.pipeline_mode<synchronous>, transform_indices = @transform_1, window_bounds = array<i64: 2304, 256>}, {pipeline_mode = #tpu.pipeline_mode<synchronous>, transform_indices = @transform_2, window_bounds = array<i64: 1, 256>}, {transform_indices = @transform_3, window_bounds = array<i64: 24, 256>}]} {
    %c0 = arith.constant 0 : index
    %c0_0 = arith.constant 0 : index
    %0 = vector.load %arg1[%c0, %c0_0] : memref<24x2304xbf16, #tpu.memory_space<vmem>>, vector<24x2304xbf16>
    %c0_1 = arith.constant 0 : index
    %c0_2 = arith.constant 0 : index
    %1 = vector.load %arg2[%c0_1, %c0_2] : memref<2304x256xbf16, #tpu.memory_space<vmem>>, vector<2304x256xbf16>
    %cst = arith.constant dense<0.000000e+00> : vector<24x256xf32>
    %2 = tpu.matmul %0, %1, %cst {dimension_numbers = #tpu.dot_dimension_numbers<[1], [0], [0], [1], [0, 0, 1, 1], [], []>} : vector<24x2304xbf16>, vector<2304x256xbf16>, vector<24x256xf32> -> vector<24x256xf32>
    %c0_3 = arith.constant 0 : index
    %c0_4 = arith.constant 0 : index
    %3 = vector.load %arg3[%c0_3, %c0_4] : memref<1x256xf32, #tpu.memory_space<vmem>>, vector<1x256xf32>
    %4 = vector.broadcast %3 : vector<1x256xf32> to vector<24x256xf32>
    %5 = arith.addf %2, %4 : vector<24x256xf32>
    %cst_5 = arith.constant 0.000000e+00 : f32
    %6 = vector.broadcast %cst_5 : f32 to vector<24x256xf32>
    %7 = arith.maximumf %5, %6 : vector<24x256xf32>
    %8 = arith.truncf %7 : vector<24x256xf32> to vector<24x256xbf16>
    %c0_6 = arith.constant 0 : index
    %c0_7 = arith.constant 0 : index
    %9 = vector.load %arg4[%c0_6, %c0_7] : memref<24x256xbf16, #tpu.memory_space<vmem>>, vector<24x256xbf16>
    tpu.vector_store %arg4[%c0_6, %c0_7], %8 {strides = array<i32>} : memref<24x256xbf16, #tpu.memory_space<vmem>>, vector<24x256xbf16>,
    return
  }
  func.func @transform_0(%arg0: i32) -> (i32, i32) {
    %c0_i32 = arith.constant 0 : i32
    %c0_i32_0 = arith.constant 0 : i32
    return %arg0, %c0_i32 : i32, i32
  }
  func.func @transform_1(%arg0: i32) -> (i32, i32) {
    %c0_i32 = arith.constant 0 : i32
    %c0_i32_0 = arith.constant 0 : i32
    %c0_i32_1 = arith.constant 0 : i32
    return %c0_i32, %c0_i32_0 : i32, i32
  }
  func.func @transform_2(%arg0: i32) -> (i32, i32) {
    %c0_i32 = arith.constant 0 : i32
    %c0_i32_0 = arith.constant 0 : i32
    %c0_i32_1 = arith.constant 0 : i32
    return %c0_i32, %c0_i32_0 : i32, i32
  }
  func.func @transform_3(%arg0: i32) -> (i32, i32) {
    %c0_i32 = arith.constant 0 : i32
    %c0_i32_0 = arith.constant 0 : i32
    return %arg0, %c0_i32 : i32, i32
  }
}

module attributes {stable_mosaic.version = 11 : i64} {
  func.func @_dist_partial_kernel(%arg0: i32, %arg1: memref<1x104x384xbf16, #tpu.memory_space<vmem>>, %arg2: memref<1x104x384xbf16, #tpu.memory_space<vmem>>, %arg3: memref<1x384x128xf32, #tpu.memory_space<vmem>>, %arg4: memref<1x8x128xf32, #tpu.memory_space<vmem>>) attributes {dimension_semantics = [#tpu.dimension_semantics<parallel>], iteration_bounds = array<i64: 4>, scalar_prefetch = 0 : i64, scratch_operands = 0 : i64, tpu.core_type = #tpu.core_type<tc>, window_params = [{transform_indices = @transform_0, window_bounds = array<i64: 1, 104, 384>}, {transform_indices = @transform_1, window_bounds = array<i64: 1, 104, 384>}, {transform_indices = @transform_2, window_bounds = array<i64: 1, 384, 128>}, {transform_indices = @transform_3, window_bounds = array<i64: 1, 8, 128>}]} {
    %c0 = arith.constant 0 : index
    %c0_0 = arith.constant 0 : index
    %c0_1 = arith.constant 0 : index
    %0 = vector.load %arg1[%c0, %c0_0, %c0_1] : memref<1x104x384xbf16, #tpu.memory_space<vmem>>, vector<1x104x384xbf16>
    %1 = vector.shape_cast %0 : vector<1x104x384xbf16> to vector<104x384xbf16>
    %2 = arith.extf %1 : vector<104x384xbf16> to vector<104x384xf32>
    %c0_2 = arith.constant 0 : index
    %c0_3 = arith.constant 0 : index
    %c0_4 = arith.constant 0 : index
    %3 = vector.load %arg2[%c0_2, %c0_3, %c0_4] : memref<1x104x384xbf16, #tpu.memory_space<vmem>>, vector<1x104x384xbf16>
    %4 = vector.shape_cast %3 : vector<1x104x384xbf16> to vector<104x384xbf16>
    %5 = arith.extf %4 : vector<104x384xbf16> to vector<104x384xf32>
    %6 = arith.mulf %2, %2 : vector<104x384xf32>
    %cst = arith.constant dense<0.000000e+00> : vector<104xf32>
    %7 = vector.multi_reduction <add>, %6, %cst [1] : vector<104x384xf32> to vector<104xf32>
    %8 = vector.shape_cast %7 : vector<104xf32> to vector<104x1xf32>
    %9 = math.sqrt %8 : vector<104x1xf32>
    %cst_5 = arith.constant 1.000000e-10 : f32
    %10 = vector.broadcast %cst_5 : f32 to vector<104x1xf32>
    %11 = arith.addf %9, %10 : vector<104x1xf32>
    %cst_6 = arith.constant 1.000000e+00 : f32
    %12 = vector.broadcast %cst_6 : f32 to vector<104x1xf32>
    %13 = arith.divf %12, %11 : vector<104x1xf32>
    %14 = arith.mulf %5, %5 : vector<104x384xf32>
    %cst_7 = arith.constant dense<0.000000e+00> : vector<104xf32>
    %15 = vector.multi_reduction <add>, %14, %cst_7 [1] : vector<104x384xf32> to vector<104xf32>
    %16 = vector.shape_cast %15 : vector<104xf32> to vector<104x1xf32>
    %17 = math.sqrt %16 : vector<104x1xf32>
    %cst_8 = arith.constant 1.000000e-10 : f32
    %18 = vector.broadcast %cst_8 : f32 to vector<104x1xf32>
    %19 = arith.addf %17, %18 : vector<104x1xf32>
    %cst_9 = arith.constant 1.000000e+00 : f32
    %20 = vector.broadcast %cst_9 : f32 to vector<104x1xf32>
    %21 = arith.divf %20, %19 : vector<104x1xf32>
    %22 = vector.broadcast %13 : vector<104x1xf32> to vector<104x384xf32>
    %23 = arith.mulf %2, %22 : vector<104x384xf32>
    %24 = vector.broadcast %21 : vector<104x1xf32> to vector<104x384xf32>
    %25 = arith.mulf %5, %24 : vector<104x384xf32>
    %26 = arith.subf %23, %25 : vector<104x384xf32>
    %27 = arith.mulf %26, %26 : vector<104x384xf32>
    %c0_10 = arith.constant 0 : index
    %c0_11 = arith.constant 0 : index
    %c0_12 = arith.constant 0 : index
    %28 = vector.load %arg3[%c0_10, %c0_11, %c0_12] : memref<1x384x128xf32, #tpu.memory_space<vmem>>, vector<1x384x128xf32>
    %29 = vector.shape_cast %28 : vector<1x384x128xf32> to vector<384x128xf32>
    %cst_13 = arith.constant dense<0.000000e+00> : vector<104x128xf32>
    %30 = tpu.matmul %27, %29, %cst_13 {dimension_numbers = #tpu.dot_dimension_numbers<[1], [0], [0], [1], [0, 0, 1, 1], [], []>} : vector<104x384xf32>, vector<384x128xf32>, vector<104x128xf32> -> vector<104x128xf32>
    %31 = vector.shape_cast %30 : vector<104x128xf32> to vector<13x8x128xf32>
    %cst_14 = arith.constant dense<0.000000e+00> : vector<8x128xf32>
    %32 = vector.multi_reduction <add>, %31, %cst_14 [0] : vector<13x8x128xf32> to vector<8x128xf32>
    %c0_15 = arith.constant 0 : index
    %c0_16 = arith.constant 0 : index
    %c0_17 = arith.constant 0 : index
    %33 = vector.load %arg4[%c0_15, %c0_16, %c0_17] : memref<1x8x128xf32, #tpu.memory_space<vmem>>, vector<1x8x128xf32>
    %34 = vector.shape_cast %33 : vector<1x8x128xf32> to vector<8x128xf32>
    %35 = vector.shape_cast %32 : vector<8x128xf32> to vector<1x8x128xf32>
    tpu.vector_store %arg4[%c0_15, %c0_16, %c0_17], %35 {strides = array<i32>} : memref<1x8x128xf32, #tpu.memory_space<vmem>>, vector<1x8x128xf32>,
    return
  }
  func.func @transform_0(%arg0: i32) -> (i32, i32, i32) {
    %c0_i32 = arith.constant 0 : i32
    %c0_i32_0 = arith.constant 0 : i32
    %c0_i32_1 = arith.constant 0 : i32
    return %arg0, %c0_i32, %c0_i32_0 : i32, i32, i32
  }
  func.func @transform_1(%arg0: i32) -> (i32, i32, i32) {
    %c0_i32 = arith.constant 0 : i32
    %c0_i32_0 = arith.constant 0 : i32
    %c0_i32_1 = arith.constant 0 : i32
    return %arg0, %c0_i32, %c0_i32_0 : i32, i32, i32
  }
  func.func @transform_2(%arg0: i32) -> (i32, i32, i32) {
    %c0_i32 = arith.constant 0 : i32
    %c0_i32_0 = arith.constant 0 : i32
    %c0_i32_1 = arith.constant 0 : i32
    return %arg0, %c0_i32, %c0_i32_0 : i32, i32, i32
  }
  func.func @transform_3(%arg0: i32) -> (i32, i32, i32) {
    %c0_i32 = arith.constant 0 : i32
    %c0_i32_0 = arith.constant 0 : i32
    %c0_i32_1 = arith.constant 0 : i32
    return %arg0, %c0_i32, %c0_i32_0 : i32, i32, i32
  }
}

module attributes {stable_mosaic.version = 11 : i64} {
  func.func @_dist_partial_kernel(%arg0: i32, %arg1: memref<256x128xbf16, #tpu.memory_space<vmem>>, %arg2: memref<256x128xbf16, #tpu.memory_space<vmem>>, %arg3: memref<128x128xf32, #tpu.memory_space<vmem>>, %arg4: memref<1x8x128xf32, #tpu.memory_space<vmem>>) attributes {dimension_semantics = [#tpu.dimension_semantics<parallel>], iteration_bounds = array<i64: 2>, scalar_prefetch = 0 : i64, scratch_operands = 0 : i64, tpu.core_type = #tpu.core_type<tc>, window_params = [{transform_indices = @transform_0, window_bounds = array<i64: 256, 128>}, {transform_indices = @transform_1, window_bounds = array<i64: 256, 128>}, {pipeline_mode = #tpu.pipeline_mode<synchronous>, transform_indices = @transform_2, window_bounds = array<i64: 128, 128>}, {transform_indices = @transform_3, window_bounds = array<i64: 1, 8, 128>}]} {
    %c0 = arith.constant 0 : index
    %c0_0 = arith.constant 0 : index
    %0 = vector.load %arg1[%c0, %c0_0] : memref<256x128xbf16, #tpu.memory_space<vmem>>, vector<256x128xbf16>
    %1 = arith.extf %0 : vector<256x128xbf16> to vector<256x128xf32>
    %c0_1 = arith.constant 0 : index
    %c0_2 = arith.constant 0 : index
    %2 = vector.load %arg2[%c0_1, %c0_2] : memref<256x128xbf16, #tpu.memory_space<vmem>>, vector<256x128xbf16>
    %3 = arith.extf %2 : vector<256x128xbf16> to vector<256x128xf32>
    %4 = arith.mulf %1, %1 : vector<256x128xf32>
    %cst = arith.constant dense<0.000000e+00> : vector<256xf32>
    %5 = vector.multi_reduction <add>, %4, %cst [1] : vector<256x128xf32> to vector<256xf32>
    %6 = vector.shape_cast %5 : vector<256xf32> to vector<256x1xf32>
    %7 = math.sqrt %6 : vector<256x1xf32>
    %cst_3 = arith.constant 1.000000e-10 : f32
    %8 = vector.broadcast %cst_3 : f32 to vector<256x1xf32>
    %9 = arith.addf %7, %8 : vector<256x1xf32>
    %cst_4 = arith.constant 1.000000e+00 : f32
    %10 = vector.broadcast %cst_4 : f32 to vector<256x1xf32>
    %11 = arith.divf %10, %9 : vector<256x1xf32>
    %12 = arith.mulf %3, %3 : vector<256x128xf32>
    %cst_5 = arith.constant dense<0.000000e+00> : vector<256xf32>
    %13 = vector.multi_reduction <add>, %12, %cst_5 [1] : vector<256x128xf32> to vector<256xf32>
    %14 = vector.shape_cast %13 : vector<256xf32> to vector<256x1xf32>
    %15 = math.sqrt %14 : vector<256x1xf32>
    %cst_6 = arith.constant 1.000000e-10 : f32
    %16 = vector.broadcast %cst_6 : f32 to vector<256x1xf32>
    %17 = arith.addf %15, %16 : vector<256x1xf32>
    %cst_7 = arith.constant 1.000000e+00 : f32
    %18 = vector.broadcast %cst_7 : f32 to vector<256x1xf32>
    %19 = arith.divf %18, %17 : vector<256x1xf32>
    %20 = vector.broadcast %11 : vector<256x1xf32> to vector<256x128xf32>
    %21 = arith.mulf %1, %20 : vector<256x128xf32>
    %22 = vector.broadcast %19 : vector<256x1xf32> to vector<256x128xf32>
    %23 = arith.mulf %3, %22 : vector<256x128xf32>
    %24 = arith.subf %21, %23 : vector<256x128xf32>
    %25 = arith.mulf %24, %24 : vector<256x128xf32>
    %c0_8 = arith.constant 0 : index
    %c0_9 = arith.constant 0 : index
    %26 = vector.load %arg3[%c0_8, %c0_9] : memref<128x128xf32, #tpu.memory_space<vmem>>, vector<128x128xf32>
    %cst_10 = arith.constant dense<0.000000e+00> : vector<256x128xf32>
    %27 = tpu.matmul %25, %26, %cst_10 {dimension_numbers = #tpu.dot_dimension_numbers<[1], [0], [0], [1], [0, 0, 1, 1], [], []>} : vector<256x128xf32>, vector<128x128xf32>, vector<256x128xf32> -> vector<256x128xf32>
    %28 = vector.shape_cast %27 : vector<256x128xf32> to vector<32x8x128xf32>
    %cst_11 = arith.constant dense<0.000000e+00> : vector<8x128xf32>
    %29 = vector.multi_reduction <add>, %28, %cst_11 [0] : vector<32x8x128xf32> to vector<8x128xf32>
    %c0_12 = arith.constant 0 : index
    %c0_13 = arith.constant 0 : index
    %c0_14 = arith.constant 0 : index
    %30 = vector.load %arg4[%c0_12, %c0_13, %c0_14] : memref<1x8x128xf32, #tpu.memory_space<vmem>>, vector<1x8x128xf32>
    %31 = vector.shape_cast %30 : vector<1x8x128xf32> to vector<8x128xf32>
    %32 = vector.shape_cast %29 : vector<8x128xf32> to vector<1x8x128xf32>
    tpu.vector_store %arg4[%c0_12, %c0_13, %c0_14], %32 {strides = array<i32>} : memref<1x8x128xf32, #tpu.memory_space<vmem>>, vector<1x8x128xf32>,
    return
  }
  func.func @transform_0(%arg0: i32) -> (i32, i32) {
    %c0_i32 = arith.constant 0 : i32
    %c0_i32_0 = arith.constant 0 : i32
    return %arg0, %c0_i32 : i32, i32
  }
  func.func @transform_1(%arg0: i32) -> (i32, i32) {
    %c2_i32 = arith.constant 2 : i32
    %0 = arith.addi %arg0, %c2_i32 : i32
    %c0_i32 = arith.constant 0 : i32
    %c0_i32_0 = arith.constant 0 : i32
    return %0, %c0_i32 : i32, i32
  }
  func.func @transform_2(%arg0: i32) -> (i32, i32) {
    %c0_i32 = arith.constant 0 : i32
    %c0_i32_0 = arith.constant 0 : i32
    %c0_i32_1 = arith.constant 0 : i32
    return %c0_i32, %c0_i32_0 : i32, i32
  }
  func.func @transform_3(%arg0: i32) -> (i32, i32, i32) {
    %c0_i32 = arith.constant 0 : i32
    %c0_i32_0 = arith.constant 0 : i32
    %c0_i32_1 = arith.constant 0 : i32
    return %arg0, %c0_i32, %c0_i32_0 : i32, i32, i32
  }
}

</mosaic_0001>

<bundles_post_ra>
// kernel: lpips_loss.7
= control target key start
LH: loop header
LB: loop body
LE: loop exit
PB: predicated region body
PF: predicated region fallthrough
CT: control target
= control target key end

     0   :  { %s1835_s12 = smov 0   ;;  %s2063_s0 = inlined_call_operand.vmem [shape: bf16[1024,384], index: 0, kind: input, shape index: {}]   ;;  %s2064_s1 = inlined_call_operand.vmem [shape: bf16[384,128], index: 1, kind: input, shape index: {}]   ;;  %s2065_s2 = inlined_call_operand.vmem [shape: f32[1,128], index: 2, kind: input, shape index: {}]   ;;  %s2066_s3 = inlined_call_operand.vmem [shape: bf16[1024,128], index: 3, kind: output, shape index: {}]  }
   0x1 LB: > { %s1267_s13 = sadd.s32 4294967295, %s1813_s12   ;;  %p1271_p0 = scmp.ge.s32.totalorder %s1813_s12, 1  ;;  %s1813_s12 = sphi %s1835_s12, %s13_s12  }
   0x2   : > { %p139_p1 = scmp.lt.s32.totalorder %s1813_s12, 5 }
   0x4   : > { %p140_p2 = pnand %p1271_p0, %p139_p1 }
   0x5   : > { %v1719_v0 = vld [vmem:[%s2064_s1 + $0x40] sm:$0xff] (!%p140_p2)   ;;  %s1272_s16 = sshll.u32 (!%p140_p2), %s1267_s13, 5  ;;  %v1721_v2 = vld [vmem:[%s2064_s1 + $0x48] sm:$0xff] (!%p140_p2)   ;;  %v1723_v4 = vld [vmem:[%s2064_s1 + $0x50] sm:$0xff] (!%p140_p2)  }
   0x6   : > { %143 = sbr.rel (%p140_p2) target bundleno = 352 (0x160), region = 32  ;;  %v1720_v1 = vld [vmem:[%s2064_s1] sm:$0xff] (!%p140_p2)   ;;  %1510 = vmatprep.subr.bf16.mxu0 (!%p140_p2), %v1719_v0  ;;  %1694 = vmatprep.subr.bf16.mxu1 (!%p140_p2), %v1719_v0  ;;  %p165_p3 = scmp.lt.s32.totalorder (!%p140_p2), %s1272_s16, 127  ;;  %v1722_v3 = vld [vmem:[%s2064_s1 + $0x8] sm:$0xff] (!%p140_p2)   ;;  %v1724_v5 = vld [vmem:[%s2064_s1 + $0x10] sm:$0xff] (!%p140_p2)  }
   0x7   : > { %1511 = vmatpush3.bf16.msra.mxu0 (!%p140_p2), %v1720_v1  ;;  %1702 = vmatpush3.bf16.msra.mxu1 (!%p140_p2), %v1720_v1  ;;  %v1725_v6 = vld [vmem:[%s2064_s1 + $0x58] sm:$0xff] (!%p140_p2)   ;;  %v1727_v8 = vld [vmem:[%s2064_s1 + $0x60] sm:$0xff] (!%p140_p2)   ;;  %v1729_v10 = vld [vmem:[%s2064_s1 + $0x68] sm:$0xff] (!%p140_p2)  }
   0x8   : > { %1512 = vmatprep.subr.bf16.mxu0 (!%p140_p2), %v1721_v2  ;;  %1695 = vmatprep.subr.bf16.mxu1 (!%p140_p2), %v1721_v2  ;;  %v1726_v7 = vld [vmem:[%s2064_s1 + $0x18] sm:$0xff] (!%p140_p2)   ;;  %v1728_v9 = vld [vmem:[%s2064_s1 + $0x20] sm:$0xff] (!%p140_p2)   ;;  %v1730_v13 = vld [vmem:[%s2064_s1 + $0x28] sm:$0xff] (!%p140_p2)  }
   0x9   : > { %v1731_v14 = vld [vmem:[%s2064_s1 + $0x70] sm:$0xff] (!%p140_p2)   ;;  %v1733_v16 = vld [vmem:[%s2064_s1 + $0x78] sm:$0xff] (!%p140_p2)   ;;  %v1741_v18 = vld [vmem:[%s2064_s1 + $0x80] sm:$0xff] (!%p140_p2)  }
   0xa   : > { %v1732_v15 = vld [vmem:[%s2064_s1 + $0x30] sm:$0xff] (!%p140_p2)   ;;  %v1734_v17 = vld [vmem:[%s2064_s1 + $0x38] sm:$0xff] (!%p140_p2)   ;;  %v1742_v22 = vld [vmem:[%s2064_s1 + $0x88] sm:$0xff] (!%p140_p2)  }
   0xb   : > { %1513 = vmatpush3.bf16.msra.mxu0 (!%p140_p2), %v1722_v3  ;;  %1703 = vmatpush3.bf16.msra.mxu1 (!%p140_p2), %v1722_v3  ;;  %v1749_v25 = vld [vmem:[%s2064_s1 + $0x90] sm:$0xff] (!%p140_p2)   ;;  %v1750_v27 = vld [vmem:[%s2064_s1 + $0x98] sm:$0xff] (!%p140_p2)   ;;  %v1757_v30 = vld [vmem:[%s2064_s1 + $0xa0] sm:$0xff] (!%p140_p2)  }
   0xc   : > { %1514 = vmatprep.subr.bf16.mxu0 (!%p140_p2), %v1723_v4  ;;  %1696 = vmatprep.subr.bf16.mxu1 (!%p140_p2), %v1723_v4  ;;  %v1758_v33 = vld [vmem:[%s2064_s1 + $0xa8] sm:$0xff] (!%p140_p2)   ;;  %v1765_v36 = vld [vmem:[%s2064_s1 + $0xb0] sm:$0xff] (!%p140_p2)   ;;  %v1766_v40 = vld [vmem:[%s2064_s1 + $0xb8] sm:$0xff] (!%p140_p2)  }
   0xd   : > { %s2068_s16 = smov (!%p165_p3, %s1272_s16), 127 }
   0xe   : > { %s1710_s29 = smul.u32 12, %s2068_s16  ;;  %s1275_s19 = sshll.u32 %s2068_s16, 2 }
   0xf   : > { %1515 = vmatpush3.bf16.msra.mxu0 %v1724_v5  ;;  %1704 = vmatpush3.bf16.msra.mxu1 %v1724_v5  ;;  %s2000_s22 = scalar_lea.vmem %s2066_s3, %s1275_s19 }
  0x10   : > { %1516 = vmatprep.subr.bf16.mxu0 %v1725_v6  ;;  %1697 = vmatprep.subr.bf16.mxu1 %v1725_v6  ;;  %s1876_s9 = scalar_lea.vmem %s2063_s0, %s1710_s29 }
  0x11   : > { %v1737_v11 = vld [vmem:[%s1876_s9 + $0x4] ss:$12 sps:$4 sm:$0xff]   ;;  %v1735_v19 = vld [vmem:[%s1876_s9] ss:$12 sps:$4 sm:$0xff]   ;;  %v1743_v21 = vld [vmem:[%s1876_s9 + $0x1c] ss:$12 sps:$4 sm:$0xff]  }
  0x12   : > { %v1740_v12 = vld [vmem:[%s1876_s9 + $0x124] ss:$12 sps:$4 sm:$0xff]   ;;  %729 = vmatprep.mubr.bf16.mxu0 %v1737_v11  ;;  %v1738_v20 = vld [vmem:[%s1876_s9 + $0x120] ss:$12 sps:$4 sm:$0xff]   ;;  %v1745_v23 = vld [vmem:[%s1876_s9 + $0x13c] ss:$12 sps:$4 sm:$0xff]  }
  0x13   : > { %1517 = vmatpush3.bf16.msra.mxu0 %v1726_v7  ;;  %1705 = vmatpush3.bf16.msra.mxu1 %v1726_v7  ;;  %v1747_v24 = vld [vmem:[%s1876_s9 + $0x18] ss:$12 sps:$4 sm:$0xff]   ;;  %v1751_v28 = vld [vmem:[%s1876_s9 + $0x34] ss:$12 sps:$4 sm:$0xff]   ;;  %v1755_v31 = vld [vmem:[%s1876_s9 + $0x30] ss:$12 sps:$4 sm:$0xff]  }
  0x14   : > { %1518 = vmatprep.subr.bf16.mxu0 %v1727_v8  ;;  %1698 = vmatprep.subr.bf16.mxu1 %v1727_v8  ;;  %v1748_v26 = vld [vmem:[%s1876_s9 + $0x138] ss:$12 sps:$4 sm:$0xff]   ;;  %v1753_v29 = vld [vmem:[%s1876_s9 + $0x154] ss:$12 sps:$4 sm:$0xff]   ;;  %v1756_v32 = vld [vmem:[%s1876_s9 + $0x150] ss:$12 sps:$4 sm:$0xff]  }
  0x15   : > { %825 = vmatprep.mubr.bf16.mxu1 %v1740_v12  ;;  %v1759_v34 = vld [vmem:[%s1876_s9 + $0x4c] ss:$12 sps:$4 sm:$0xff]   ;;  %v1763_v37 = vld [vmem:[%s1876_s9 + $0x48] ss:$12 sps:$4 sm:$0xff]   ;;  %v1767_v39 = vld [vmem:[%s1876_s9 + $0x64] ss:$12 sps:$4 sm:$0xff]  }
  0x16   : > { %v1761_v35 = vld [vmem:[%s1876_s9 + $0x16c] ss:$12 sps:$4 sm:$0xff]   ;;  %v1764_v38 = vld [vmem:[%s1876_s9 + $0x168] ss:$12 sps:$4 sm:$0xff]   ;;  %v1776_v47 = vld [vmem:[%s1876_s9 + $0x50] ss:$12 sps:$4 sm:$0xff]  }
  0x17   : > { %1519 = vmatpush3.bf16.msra.mxu0 %v1728_v9  ;;  %1706 = vmatpush3.bf16.msra.mxu1 %v1728_v9  ;;  %v1769_v41 = vld [vmem:[%s1876_s9 + $0x8] ss:$12 sps:$4 sm:$0xff]   ;;  %v1770_v42 = vld [vmem:[%s1876_s9 + $0x60] ss:$12 sps:$4 sm:$0xff]   ;;  %v1774_v45 = vld [vmem:[%s1876_s9 + $0x38] ss:$12 sps:$4 sm:$0xff]  }
  0x18   : > { %1520 = vmatprep.subr.bf16.mxu0 %v1729_v10  ;;  %1699 = vmatprep.subr.bf16.mxu1 %v1729_v10  ;;  %v1771_v43 = vld [vmem:[%s1876_s9 + $0x20] ss:$12 sps:$4 sm:$0xff]   ;;  %v1772_v44 = vld [vmem:[%s1876_s9 + $0x7c] ss:$12 sps:$4 sm:$0xff]   ;;  %v1775_v46 = vld [vmem:[%s1876_s9 + $0x78] ss:$12 sps:$4 sm:$0xff]  }
  0x19   : > { %v1777_v48 = vld [vmem:[%s1876_s9 + $0x94] ss:$12 sps:$4 sm:$0xff]   ;;  %v1780_v50 = vld [vmem:[%s1876_s9 + $0x90] ss:$12 sps:$4 sm:$0xff]   ;;  %v1782_v52 = vld [vmem:[%s1876_s9 + $0xac] ss:$12 sps:$4 sm:$0xff]  }
  0x1a   : > { %v1779_v49 = vld [vmem:[%s1876_s9 + $0x68] ss:$12 sps:$4 sm:$0xff]   ;;  %v1781_v51 = vld [vmem:[%s1876_s9 + $0x80] ss:$12 sps:$4 sm:$0xff]   ;;  %v1784_v53 = vld [vmem:[%s1876_s9 + $0x98] ss:$12 sps:$4 sm:$0xff]  }
  0x1b   : > { %1521 = vmatpush3.bf16.msra.mxu0 %v1730_v13  ;;  %1707 = vmatpush3.bf16.msra.mxu1 %v1730_v13  ;;  %v1785_v54 = vld [vmem:[%s1876_s9 + $0xa8] ss:$12 sps:$4 sm:$0xff]   ;;  %v1786_v55 = vld [vmem:[%s1876_s9 + $0xb0] ss:$12 sps:$4 sm:$0xff]   ;;  %v1790_v58 = vld [vmem:[%s1876_s9 + $0xc0] ss:$12 sps:$4 sm:$0xff]  }
  0x1c   : > { %1522 = vmatprep.subr.bf16.mxu0 %v1731_v14  ;;  %1700 = vmatprep.subr.bf16.mxu1 %v1731_v14  ;;  %v1787_v56 = vld [vmem:[%s1876_s9 + $0xc4] ss:$12 sps:$4 sm:$0xff]   ;;  %v1789_v57 = vld [vmem:[%s1876_s9 + $0xc8] ss:$12 sps:$4 sm:$0xff]   ;;  %v1791_v59 = vld [vmem:[%s1876_s9 + $0xe0] ss:$12 sps:$4 sm:$0xff]  }
  0x1d   : > { %v1792_v60 = vld [vmem:[%s1876_s9 + $0xdc] ss:$12 sps:$4 sm:$0xff]   ;;  %v1794_v61 = vld [vmem:[%s1876_s9 + $0xf8] ss:$12 sps:$4 sm:$0xff]   ;;  %v1797_v0 = vld [vmem:[%s1876_s9 + $0xf4] ss:$12 sps:$4 sm:$0xff]  }
  0x1e   : > { %v1795_v62 = vld [vmem:[%s1876_s9 + $0xd8] ss:$12 sps:$4 sm:$0xff]   ;;  %v1796_v63 = vld [vmem:[%s1876_s9 + $0x110] ss:$12 sps:$4 sm:$0xff]   ;;  %v1799_v1 = vld [vmem:[%s1876_s9 + $0x128] ss:$12 sps:$4 sm:$0xff]  }
  0x1f   : > { %1523 = vmatpush3.bf16.msra.mxu0 %v1732_v15  ;;  %1708 = vmatpush3.bf16.msra.mxu1 %v1732_v15  ;;  %v1800_v2 = vld [vmem:[%s1876_s9 + $0xf0] ss:$12 sps:$4 sm:$0xff]   ;;  %v1801_v3 = vld [vmem:[%s1876_s9 + $0x140] ss:$12 sps:$4 sm:$0xff]   ;;  %v1804_v5 = vld [vmem:[%s1876_s9 + $0x158] ss:$12 sps:$4 sm:$0xff]  }
  0x20   : > { %1524 = vmatprep.subr.bf16.mxu0 %v1733_v16  ;;  %1701 = vmatprep.subr.bf16.mxu1 %v1733_v16  ;;  %v1802_v4 = vld [vmem:[%s1876_s9 + $0x10c] ss:$12 sps:$4 sm:$0xff]   ;;  %v1805_v6 = vld [vmem:[%s1876_s9 + $0x108] ss:$12 sps:$4 sm:$0xff]   ;;  %v1806_v7 = vld [vmem:[%s1876_s9 + $0x170] ss:$12 sps:$4 sm:$0xff]  }
  0x23   : > { %1525 = vmatpush3.bf16.msra.mxu0 %v1734_v17  ;;  %1709 = vmatpush3.bf16.msra.mxu1 %v1734_v17 }
  0x24   : > { %1646 = vmatprep.subr.bf16.mxu1 %v1741_v18 }
  0x26   : > { %730 = vmatmul.mubr.bf16.vlgmr.msra.gmra.mrb[0].mxu0 %v1735_v19  ;;  %826 = vmatmul.mubr.bf16.vlgmr.msra.gmra.mrb[0].mxu1 %v1738_v20 }
  0x27   : > { %1647 = vmatpush3.bf16.msra.mxu1 %v1741_v18  ;;  %737 = vmatprep.mubr.bf16.mxu0 %v1743_v21 }
  0x28   : > { %1648 = vmatprep.subr.bf16.mxu1 %v1742_v22  ;;  %833 = vmatprep.mubr.bf16.mxu1 %v1745_v23 }
  0x2b   : > { %1649 = vmatpush3.bf16.msra.mxu1 %v1742_v22 }
  0x2c   : > { %1650 = vmatprep.subr.bf16.mxu1 %v1749_v25 }
  0x2e   : > { %738 = vmatmul.mubr.bf16.gmra.mrb[4].mxu0 %v1747_v24  ;;  %834 = vmatmul.mubr.bf16.gmra.mrb[4].mxu1 %v1748_v26 }
  0x2f   : > { %1651 = vmatpush3.bf16.msra.mxu1 %v1749_v25  ;;  %745 = vmatprep.mubr.bf16.mxu0 %v1751_v28 }
  0x30   : > { %1652 = vmatprep.subr.bf16.mxu1 %v1750_v27  ;;  %841 = vmatprep.mubr.bf16.mxu1 %v1753_v29 }
  0x33   : > { %1653 = vmatpush3.bf16.msra.mxu1 %v1750_v27 }
  0x34   : > { %1654 = vmatprep.subr.bf16.mxu1 %v1757_v30 }
  0x36   : > { %746 = vmatmul.mubr.bf16.gmra.mrb[8].mxu0 %v1755_v31  ;;  %842 = vmatmul.mubr.bf16.gmra.mrb[8].mxu1 %v1756_v32 }
  0x37   : > { %1655 = vmatpush3.bf16.msra.mxu1 %v1757_v30  ;;  %753 = vmatprep.mubr.bf16.mxu0 %v1759_v34 }
  0x38   : > { %1656 = vmatprep.subr.bf16.mxu1 %v1758_v33  ;;  %849 = vmatprep.mubr.bf16.mxu1 %v1761_v35 }
  0x3b   : > { %1657 = vmatpush3.bf16.msra.mxu1 %v1758_v33 }
  0x3c   : > { %1658 = vmatprep.subr.bf16.mxu1 %v1765_v36 }
  0x3e   : > { %754 = vmatmul.mubr.bf16.gmra.mrb[12].mxu0 %v1763_v37  ;;  %850 = vmatmul.mubr.bf16.gmra.mrb[12].mxu1 %v1764_v38 }
  0x3f   : > { %1659 = vmatpush3.bf16.msra.mxu1 %v1765_v36  ;;  %761 = vmatprep.mubr.bf16.mxu0 %v1767_v39 }
  0x40   : > { %1660 = vmatprep.subr.bf16.mxu1 %v1766_v40  ;;  %1662 = vmatprep.mubr.bf16.mxu1 %v1769_v41 }
  0x43   : > { %1661 = vmatpush3.bf16.msra.mxu1 %v1766_v40 }
  0x46   : > { %762 = vmatmul.mubr.bf16.gmra.mrb[16].mxu0 %v1770_v42  ;;  %1663 = vmatmul.mubr.bf16.vlgmr.msra.gmra.mrb[16].mxu1 %v1771_v43 }
  0x47   : > { %769 = vmatprep.mubr.bf16.mxu0 %v1772_v44  ;;  %1666 = vmatprep.mubr.bf16.mxu1 %v1774_v45 }
  0x4e   : > { %770 = vmatmul.mubr.bf16.gmra.mrb[20].mxu0 %v1775_v46  ;;  %1667 = vmatmul.mubr.bf16.gmra.mrb[20].mxu1 %v1776_v47 }
  0x4f   : > { %777 = vmatprep.mubr.bf16.mxu0 %v1777_v48  ;;  %1670 = vmatprep.mubr.bf16.mxu1 %v1779_v49 }
  0x56   : > { %778 = vmatmul.mubr.bf16.gmra.mrb[24].mxu0 %v1780_v50  ;;  %1671 = vmatmul.mubr.bf16.gmra.mrb[24].mxu1 %v1781_v51 }
  0x57   : > { %785 = vmatprep.mubr.bf16.mxu0 %v1782_v52  ;;  %1674 = vmatprep.mubr.bf16.mxu1 %v1784_v53 }
  0x5e   : > { %786 = vmatmul.mubr.bf16.gmra.mrb[28].mxu0 %v1785_v54  ;;  %1675 = vmatmul.mubr.bf16.gmra.mrb[28].mxu1 %v1786_v55 }
  0x5f   : > { %793 = vmatprep.mubr.bf16.mxu0 %v1787_v56  ;;  %1678 = vmatprep.mubr.bf16.mxu1 %v1789_v57  ;;  %v1990_v56 = vld [vmem:[%s2065_s2] ss:$0 sm:$0xff] }
  0x66   : > { %794 = vmatmul.mubr.bf16.gmra.mrb[32].mxu0 %v1790_v58  ;;  %1679 = vmatmul.mubr.bf16.gmra.mrb[32].mxu1 %v1791_v59 }
  0x67   : > { %801 = vmatprep.mubr.bf16.mxu0 %v1792_v60  ;;  %1682 = vmatprep.mubr.bf16.mxu1 %v1794_v61 }
  0x6e   : > { %802 = vmatmul.mubr.bf16.gmra.mrb[36].mxu0 %v1795_v62  ;;  %1683 = vmatmul.mubr.bf16.gmra.mrb[36].mxu1 %v1796_v63 }
  0x6f   : > { %809 = vmatprep.mubr.bf16.mxu0 %v1797_v0  ;;  %1686 = vmatprep.mubr.bf16.mxu1 %v1799_v1 }
  0x76   : > { %810 = vmatmul.mubr.bf16.gmra.mrb[40].mxu0 %v1800_v2  ;;  %1687 = vmatmul.mubr.bf16.gmra.mrb[40].mxu1 %v1801_v3 }
  0x77   : > { %817 = vmatprep.mubr.bf16.mxu0 %v1802_v4  ;;  %1690 = vmatprep.mubr.bf16.mxu1 %v1804_v5 }
  0x7e   : > { %818 = vmatmul.mubr.bf16.gmra.mrb[44].mxu0 %v1805_v6  ;;  %1691 = vmatmul.mubr.bf16.gmra.mrb[44].mxu1 %v1806_v7 }
  0xf9   : > { %v1526_v8 = vpop.f32.mrb[0].mxu0  ;;  %v1598_v9 = vpop.f32.mrb[0].mxu1 }
  0xfa   : > { %v1527_v10 = vpop.f32.mrb[1].mxu0  ;;  %v1599_v11 = vpop.f32.mrb[1].mxu1 }
  0xfb   : > { %v1528_v12 = vadd.f32 %v1527_v10, %v1526_v8  ;;  %v1529_v13 = vpop.f32.mrb[2].mxu0  ;;  %v1971_v14 = vadd.f32 %v1599_v11, %v1598_v9  ;;  %v1601_v15 = vpop.f32.mrb[2].mxu1 }
  0xfc   : > { %v1530_v16 = vpop.f32.mrb[3].mxu0  ;;  %v1602_v17 = vpop.f32.mrb[3].mxu1 }
  0xfd   : > { %v1531_v18 = vadd.f32 %v1530_v16, %v1529_v13  ;;  %v1973_v19 = vadd.f32 %v1602_v17, %v1601_v15  ;;  %v732_v60 = vadd.f32 %v1528_v12, %v1990_v56 }
  0xff   : > { %v735_v5 = vadd.f32 %v1531_v18, %v1990_v56 }
 0x101   : > { %v1532_v20 = vpop.f32.mrb[4].mxu0  ;;  %v1604_v21 = vpop.f32.mrb[4].mxu1 }
 0x102   : > { %v1533_v22 = vpop.f32.mrb[5].mxu0  ;;  %v1605_v23 = vpop.f32.mrb[5].mxu1 }
 0x103   : > { %v1534_v24 = vadd.f32 %v1533_v22, %v1532_v20  ;;  %v1535_v25 = vpop.f32.mrb[6].mxu0  ;;  %v1975_v26 = vadd.f32 %v1605_v23, %v1604_v21  ;;  %v1607_v27 = vpop.f32.mrb[6].mxu1 }
 0x104   : > { %v1536_v28 = vpop.f32.mrb[7].mxu0  ;;  %v1608_v29 = vpop.f32.mrb[7].mxu1 }
 0x105   : > { %v1537_v30 = vadd.f32 %v1536_v28, %v1535_v25  ;;  %v1977_v31 = vadd.f32 %v1608_v29, %v1607_v27  ;;  %v740_v57 = vadd.f32 %v1534_v24, %v1990_v56 }
 0x107   : > { %v743_v0 = vadd.f32 %v1537_v30, %v1990_v56 }
 0x109   : > { %v1538_v32 = vpop.f32.mrb[8].mxu0  ;;  %v1610_v33 = vpop.f32.mrb[8].mxu1 }
 0x10a   : > { %v1539_v34 = vpop.f32.mrb[9].mxu0  ;;  %v1611_v35 = vpop.f32.mrb[9].mxu1 }
 0x10b   : > { %v1540_v36 = vadd.f32 %v1539_v34, %v1538_v32  ;;  %v1541_v37 = vpop.f32.mrb[10].mxu0  ;;  %v1979_v38 = vadd.f32 %v1611_v35, %v1610_v33  ;;  %v1613_v39 = vpop.f32.mrb[10].mxu1 }
 0x10c   : > { %v1542_v40 = vpop.f32.mrb[11].mxu0  ;;  %v1614_v41 = vpop.f32.mrb[11].mxu1 }
 0x10d   : > { %v1543_v42 = vadd.f32 %v1542_v40, %v1541_v37  ;;  %v1981_v43 = vadd.f32 %v1614_v41, %v1613_v39  ;;  %v748_v22 = vadd.f32 %v1540_v36, %v1990_v56 }
 0x10f   : > { %v751_v33 = vadd.f32 %v1543_v42, %v1990_v56 }
 0x111   : > { %v1544_v44 = vpop.f32.mrb[12].mxu0  ;;  %v1616_v45 = vpop.f32.mrb[12].mxu1 }
 0x112   : > { %v1545_v46 = vpop.f32.mrb[13].mxu0  ;;  %v1617_v47 = vpop.f32.mrb[13].mxu1 }
 0x113   : > { %v1546_v48 = vadd.f32 %v1545_v46, %v1544_v44  ;;  %v1547_v49 = vpop.f32.mrb[14].mxu0  ;;  %v1983_v50 = vadd.f32 %v1617_v47, %v1616_v45  ;;  %v1619_v51 = vpop.f32.mrb[14].mxu1 }
 0x114   : > { %v1548_v52 = vpop.f32.mrb[15].mxu0  ;;  %v1620_v53 = vpop.f32.mrb[15].mxu1 }
 0x115   : > { %v1549_v54 = vadd.f32 %v1548_v52, %v1547_v49  ;;  %v1985_v55 = vadd.f32 %v1620_v53, %v1619_v51  ;;  %v756_v17 = vadd.f32 %v1546_v48, %v1990_v56 }
 0x117   : > { %v759_v27 = vadd.f32 %v1549_v54, %v1990_v56 }
 0x119   : > { %v1550_v58 = vpop.f32.mrb[16].mxu0  ;;  %v1664_v59 = vpop.f32.mrb[16].mxu1 }
 0x11a   : > { %v901_v61 = vadd.f32 %v1664_v59, %v740_v57  ;;  %v1551_v62 = vpop.f32.mrb[17].mxu0  ;;  %v892_v63 = vpop.f32.mrb[17].mxu1 }
 0x11b   : > { %v1552_v1 = vadd.f32 %v1551_v62, %v1550_v58  ;;  %v893_v2 = vadd.f32 %v892_v63, %v732_v60  ;;  %v1553_v3 = vpop.f32.mrb[18].mxu0  ;;  %v1665_v4 = vpop.f32.mrb[18].mxu1 }
 0x11c   : > { %v904_v6 = vadd.f32 %v1665_v4, %v743_v0  ;;  %v1554_v7 = vpop.f32.mrb[19].mxu0  ;;  %v895_v8 = vpop.f32.mrb[19].mxu1  ;;  %v1021_v11 = vmax.f32 %v901_v61, 0.0 }
 0x11d   : > { %v1555_v9 = vadd.f32 %v1554_v7, %v1553_v3  ;;  %v896_v10 = vadd.f32 %v895_v8, %v735_v5  ;;  %v1019_v12 = vmax.f32 %v893_v2, 0.0  ;;  %v764_v52 = vadd.f32 %v1552_v1, %v1990_v56 }
 0x11e   : > { %v1022_v13 = vmax.f32 %v904_v6, 0.0 }
 0x11f   : > { %v1020_v15 = vmax.f32 %v896_v10, 0.0  ;;  %v767_v62 = vadd.f32 %v1555_v9, %v1990_v56 }
 0x120   : > { %v1423_v16 = vpack.c.bf16 %v1022_v13, %v1021_v11 }
 0x121   : > { %v1418_v18 = vpack.c.bf16 %v1020_v15, %v1019_v12  ;;  %v1556_v20 = vpop.f32.mrb[20].mxu0  ;;  %v1668_v21 = vpop.f32.mrb[20].mxu1 }
 0x122   : > { %1495 = vst [vmem:[%s2000_s22 + $0x8] sm:$0xff] %v1423_v16   ;;  %v917_v23 = vadd.f32 %v1668_v21, %v756_v17  ;;  %v1557_v24 = vpop.f32.mrb[21].mxu0  ;;  %v908_v25 = vpop.f32.mrb[21].mxu1 }
 0x123   : > { %1419 = vst [vmem:[%s2000_s22] sm:$0xff] %v1418_v18   ;;  %v1558_v28 = vadd.f32 %v1557_v24, %v1556_v20  ;;  %v909_v29 = vadd.f32 %v908_v25, %v748_v22  ;;  %v1559_v30 = vpop.f32.mrb[22].mxu0  ;;  %v1669_v32 = vpop.f32.mrb[22].mxu1 }
 0x124   : > { %v920_v34 = vadd.f32 %v1669_v32, %v759_v27  ;;  %v1560_v35 = vpop.f32.mrb[23].mxu0  ;;  %v911_v37 = vpop.f32.mrb[23].mxu1  ;;  %v1025_v36 = vmax.f32 %v917_v23, 0.0 }
 0x125   : > { %v1561_v39 = vadd.f32 %v1560_v35, %v1559_v30  ;;  %v912_v40 = vadd.f32 %v911_v37, %v751_v33  ;;  %v1023_v44 = vmax.f32 %v909_v29, 0.0  ;;  %v772_v47 = vadd.f32 %v1558_v28, %v1990_v56 }
 0x126   : > { %v1026_v41 = vmax.f32 %v920_v34, 0.0 }
 0x127   : > { %v1024_v45 = vmax.f32 %v912_v40, 0.0  ;;  %v775_v57 = vadd.f32 %v1561_v39, %v1990_v56 }
 0x128   : > { %v1433_v46 = vpack.c.bf16 %v1026_v41, %v1025_v36 }
 0x129   : > { %v1428_v48 = vpack.c.bf16 %v1024_v45, %v1023_v44  ;;  %v1562_v49 = vpop.f32.mrb[24].mxu0  ;;  %v1672_v51 = vpop.f32.mrb[24].mxu1 }
 0x12a   : > { %1497 = vst [vmem:[%s2000_s22 + $0x18] sm:$0xff] %v1433_v46   ;;  %v933_v42 = vadd.f32 %v1672_v51, %v772_v47  ;;  %v1563_v53 = vpop.f32.mrb[25].mxu0  ;;  %v924_v54 = vpop.f32.mrb[25].mxu1 }
 0x12b   : > { %1496 = vst [vmem:[%s2000_s22 + $0x10] sm:$0xff] %v1428_v48   ;;  %v1564_v58 = vadd.f32 %v1563_v53, %v1562_v49  ;;  %v925_v59 = vadd.f32 %v924_v54, %v764_v52  ;;  %v1565_v60 = vpop.f32.mrb[26].mxu0  ;;  %v1673_v61 = vpop.f32.mrb[26].mxu1 }
 0x12c   : > { %v936_v63 = vadd.f32 %v1673_v61, %v775_v57  ;;  %v1566_v0 = vpop.f32.mrb[27].mxu0  ;;  %v927_v2 = vpop.f32.mrb[27].mxu1  ;;  %v1029_v4 = vmax.f32 %v933_v42, 0.0 }
 0x12d   : > { %v1567_v3 = vadd.f32 %v1566_v0, %v1565_v60  ;;  %v928_v1 = vadd.f32 %v927_v2, %v767_v62  ;;  %v1027_v6 = vmax.f32 %v925_v59, 0.0  ;;  %v780_v12 = vadd.f32 %v1564_v58, %v1990_v56 }
 0x12e   : > { %v1030_v5 = vmax.f32 %v936_v63, 0.0 }
 0x12f   : > { %v1028_v7 = vmax.f32 %v928_v1, 0.0  ;;  %v783_v21 = vadd.f32 %v1567_v3, %v1990_v56 }
 0x130   : > { %v1443_v8 = vpack.c.bf16 %v1030_v5, %v1029_v4 }
 0x131   : > { %v1438_v10 = vpack.c.bf16 %v1028_v7, %v1027_v6  ;;  %v1568_v11 = vpop.f32.mrb[28].mxu0  ;;  %v1676_v13 = vpop.f32.mrb[28].mxu1 }
 0x132   : > { %1499 = vst [vmem:[%s2000_s22 + $0x28] sm:$0xff] %v1443_v8   ;;  %v1569_v15 = vpop.f32.mrb[29].mxu0  ;;  %v940_v16 = vpop.f32.mrb[29].mxu1 }
 0x133   : > { %1498 = vst [vmem:[%s2000_s22 + $0x20] sm:$0xff] %v1438_v10   ;;  %v1570_v9 = vadd.f32 %v1569_v15, %v1568_v11  ;;  %v941_v17 = vadd.f32 %v940_v16, %v780_v12  ;;  %v1571_v18 = vpop.f32.mrb[30].mxu0  ;;  %v1677_v20 = vpop.f32.mrb[30].mxu1  ;;  %v836_v10 = vadd.f32 %v1975_v26, %v1990_v56  ;;  %v828_v15 = vadd.f32 %v1971_v14, %v1990_v56 }
 0x134   : > { %v1572_v22 = vpop.f32.mrb[31].mxu0  ;;  %v943_v23 = vpop.f32.mrb[31].mxu1 }
 0x135   : > { %v788_v24 = vadd.f32 %v1570_v9, %v1990_v56  ;;  %v1573_v25 = vadd.f32 %v1572_v22, %v1571_v18  ;;  %v944_v27 = vadd.f32 %v943_v23, %v783_v21  ;;  %v1031_v29 = vmax.f32 %v941_v17, 0.0 }
 0x136   : > { %v839_v18 = vadd.f32 %v1977_v31, %v1990_v56 }
 0x137   : > { %v949_v28 = vadd.f32 %v1676_v13, %v788_v24  ;;  %v791_v30 = vadd.f32 %v1573_v25, %v1990_v56  ;;  %v1032_v32 = vmax.f32 %v944_v27, 0.0 }
 0x139   : > { %v952_v33 = vadd.f32 %v1677_v20, %v791_v30  ;;  %v1448_v34 = vpack.c.bf16 %v1032_v32, %v1031_v29  ;;  %v1574_v35 = vpop.f32.mrb[32].mxu0  ;;  %v1680_v37 = vpop.f32.mrb[32].mxu1  ;;  %v1033_v36 = vmax.f32 %v949_v28, 0.0  ;;  %v831_v28 = vadd.f32 %v1973_v19, %v1990_v56 }
 0x13a   : > { %v1575_v39 = vpop.f32.mrb[33].mxu0  ;;  %v956_v40 = vpop.f32.mrb[33].mxu1 }
 0x13b   : > { %v1034_v41 = vmax.f32 %v952_v33, 0.0  ;;  %1500 = vst [vmem:[%s2000_s22 + $0x30] sm:$0xff] %v1448_v34   ;;  %v1576_v44 = vadd.f32 %v1575_v39, %v1574_v35  ;;  %v1577_v45 = vpop.f32.mrb[34].mxu0  ;;  %v1681_v46 = vpop.f32.mrb[34].mxu1 }
 0x13c   : > { %v1578_v47 = vpop.f32.mrb[35].mxu0  ;;  %v959_v48 = vpop.f32.mrb[35].mxu1 }
 0x13d   : > { %v1453_v49 = vpack.c.bf16 %v1034_v41, %v1033_v36  ;;  %v796_v51 = vadd.f32 %v1576_v44, %v1990_v56  ;;  %v1579_v52 = vadd.f32 %v1578_v47, %v1577_v45  ;;  %v852_v41 = vadd.f32 %v1983_v50, %v1990_v56 }
 0x13f   : > { %1501 = vst [vmem:[%s2000_s22 + $0x38] sm:$0xff] %v1453_v49   ;;  %v957_v42 = vadd.f32 %v956_v40, %v796_v51  ;;  %v799_v53 = vadd.f32 %v1579_v52, %v1990_v56  ;;  %v855_v52 = vadd.f32 %v1985_v55, %v1990_v56 }
 0x141   : > { %v960_v54 = vadd.f32 %v959_v48, %v799_v53  ;;  %v1580_v57 = vpop.f32.mrb[36].mxu0  ;;  %v2024_v58 = vpop.f32.mrb[36].mxu1  ;;  %v1035_v61 = vmax.f32 %v957_v42, 0.0 }
 0x142   : > { %v1581_v59 = vpop.f32.mrb[37].mxu0  ;;  %v972_v60 = vpop.f32.mrb[37].mxu1 }
 0x143   : > { %v1036_v62 = vmax.f32 %v960_v54, 0.0  ;;  %v1582_v63 = vadd.f32 %v1581_v59, %v1580_v57  ;;  %v1583_v0 = vpop.f32.mrb[38].mxu0  ;;  %v2026_v2 = vpop.f32.mrb[38].mxu1 }
 0x144   : > { %v1584_v3 = vpop.f32.mrb[39].mxu0  ;;  %v975_v1 = vpop.f32.mrb[39].mxu1 }
 0x145   : > { %v1458_v4 = vpack.c.bf16 %v1036_v62, %v1035_v61  ;;  %v804_v5 = vadd.f32 %v1582_v63, %v1990_v56  ;;  %v1585_v6 = vadd.f32 %v1584_v3, %v1583_v0 }
 0x147   : > { %1502 = vst [vmem:[%s2000_s22 + $0x40] sm:$0xff] %v1458_v4   ;;  %v965_v7 = vadd.f32 %v1680_v37, %v804_v5  ;;  %v807_v8 = vadd.f32 %v1585_v6, %v1990_v56 }
 0x149   : > { %v968_v11 = vadd.f32 %v1681_v46, %v807_v8  ;;  %v1586_v13 = vpop.f32.mrb[40].mxu0  ;;  %v1688_v12 = vpop.f32.mrb[40].mxu1  ;;  %v1037_v20 = vmax.f32 %v965_v7, 0.0  ;;  %v844_v46 = vadd.f32 %v1979_v38, %v1990_v56  ;;  %v847_v38 = vadd.f32 %v1981_v43, %v1990_v56 }
 0x14a   : > { %v997_v16 = vadd.f32 %v1688_v12, %v836_v10  ;;  %v1587_v9 = vpop.f32.mrb[41].mxu0  ;;  %v988_v17 = vpop.f32.mrb[41].mxu1 }
 0x14b   : > { %v1038_v21 = vmax.f32 %v968_v11, 0.0  ;;  %v1588_v22 = vadd.f32 %v1587_v9, %v1586_v13  ;;  %v989_v23 = vadd.f32 %v988_v17, %v828_v15  ;;  %v1589_v24 = vpop.f32.mrb[42].mxu0  ;;  %v1689_v25 = vpop.f32.mrb[42].mxu1 }
 0x14c   : > { %v1000_v26 = vadd.f32 %v1689_v25, %v839_v18  ;;  %v1590_v27 = vpop.f32.mrb[43].mxu0  ;;  %v991_v29 = vpop.f32.mrb[43].mxu1  ;;  %v1045_v33 = vmax.f32 %v997_v16, 0.0 }
 0x14d   : > { %v1463_v14 = vpack.c.bf16 %v1038_v21, %v1037_v20  ;;  %v812_v30 = vadd.f32 %v1588_v22, %v1990_v56  ;;  %v1591_v32 = vadd.f32 %v1590_v27, %v1589_v24  ;;  %v992_v34 = vadd.f32 %v991_v29, %v831_v28 }
 0x14e   : > { %v1046_v31 = vmax.f32 %v1000_v26, 0.0  ;;  %v1043_v39 = vmax.f32 %v989_v23, 0.0 }
 0x14f   : > { %1503 = vst [vmem:[%s2000_s22 + $0x48] sm:$0xff] %v1463_v14   ;;  %v973_v35 = vadd.f32 %v972_v60, %v812_v30  ;;  %v815_v37 = vadd.f32 %v1591_v32, %v1990_v56  ;;  %v1044_v36 = vmax.f32 %v992_v34, 0.0 }
 0x150   : > { %v1483_v40 = vpack.c.bf16 %v1046_v31, %v1045_v33 }
 0x151   : > { %v976_v19 = vadd.f32 %v975_v1, %v815_v37  ;;  %v1592_v44 = vpop.f32.mrb[44].mxu0  ;;  %v1692_v45 = vpop.f32.mrb[44].mxu1  ;;  %v1478_v47 = vpack.c.bf16 %v1044_v36, %v1043_v39  ;;  %v1039_v42 = vmax.f32 %v973_v35, 0.0 }
 0x152   : > { %1507 = vst [vmem:[%s2000_s22 + $0x68] sm:$0xff] %v1483_v40   ;;  %v1013_v48 = vadd.f32 %v1692_v45, %v852_v41  ;;  %v1593_v49 = vpop.f32.mrb[45].mxu0  ;;  %v1004_v51 = vpop.f32.mrb[45].mxu1 }
 0x153   : > { %v1040_v53 = vmax.f32 %v976_v19, 0.0  ;;  %v1594_v54 = vadd.f32 %v1593_v49, %v1592_v44  ;;  %v1005_v50 = vadd.f32 %v1004_v51, %v844_v46  ;;  %v1595_v57 = vpop.f32.mrb[46].mxu0  ;;  %v1693_v59 = vpop.f32.mrb[46].mxu1  ;;  %1506 = vst [vmem:[%s2000_s22 + $0x60] sm:$0xff] %v1478_v47  }
 0x154   : > { %v1016_v60 = vadd.f32 %v1693_v59, %v855_v52  ;;  %v1596_v61 = vpop.f32.mrb[47].mxu0  ;;  %v1007_v62 = vpop.f32.mrb[47].mxu1  ;;  %v1049_v3 = vmax.f32 %v1013_v48, 0.0 }
 0x155   : > { %v1468_v63 = vpack.c.bf16 %v1040_v53, %v1039_v42  ;;  %v820_v0 = vadd.f32 %v1594_v54, %v1990_v56  ;;  %v1597_v55 = vadd.f32 %v1596_v61, %v1595_v57  ;;  %v1008_v4 = vadd.f32 %v1007_v62, %v847_v38 }
 0x156   : > { %v1050_v1 = vmax.f32 %v1016_v60, 0.0  ;;  %v1047_v7 = vmax.f32 %v1005_v50, 0.0 }
 0x157   : > { %1504 = vst [vmem:[%s2000_s22 + $0x50] sm:$0xff] %v1468_v63   ;;  %v981_v5 = vadd.f32 %v2024_v58, %v820_v0  ;;  %v823_v6 = vadd.f32 %v1597_v55, %v1990_v56  ;;  %v1048_v10 = vmax.f32 %v1008_v4, 0.0 }
 0x158   : > { %v1493_v8 = vpack.c.bf16 %v1050_v1, %v1049_v3 }
 0x159   : > { %v984_v43 = vadd.f32 %v2026_v2, %v823_v6  ;;  %v1488_v11 = vpack.c.bf16 %v1048_v10, %v1047_v7  ;;  %v1041_v13 = vmax.f32 %v981_v5, 0.0 }
 0x15a   : > { %1509 = vst [vmem:[%s2000_s22 + $0x78] sm:$0xff] %v1493_v8  }
 0x15b   : > { %v1042_v12 = vmax.f32 %v984_v43, 0.0  ;;  %1508 = vst [vmem:[%s2000_s22 + $0x70] sm:$0xff] %v1488_v11  }
 0x15d   : > { %v1473_v15 = vpack.c.bf16 %v1042_v12, %v1041_v13 }
 0x15f   : > { %1505 = vst [vmem:[%s2000_s22 + $0x58] sm:$0xff] %v1473_v15  }
 0x160 PF: > { %s13_s12 = sadd.s32 1, %s1813_s12  }
 0x161   : > { %p10_p4 = scmp.ge.s32.totalorder %s13_s12, 6  }
 0x163   :  { %12 = sbr.rel (!%p10_p4) target bundleno = 1 (0x1), region = 62 }

// kernel: lpips_loss.8
= control target key start
LH: loop header
LB: loop body
LE: loop exit
PB: predicated region body
PF: predicated region fallthrough
CT: control target
= control target key end

     0   :  { %s3891_s12 = smov 0   ;;  %s4873_s0 = inlined_call_operand.vmem [shape: bf16[208,1664], index: 0, kind: input, shape index: {}]   ;;  %s4874_s1 = inlined_call_operand.vmem [shape: bf16[1664,256], index: 1, kind: input, shape index: {}]   ;;  %s4875_s2 = inlined_call_operand.vmem [shape: f32[1,256], index: 2, kind: input, shape index: {}]   ;;  %s4876_s3 = inlined_call_operand.vmem [shape: bf16[208,256], index: 3, kind: output, shape index: {}]  }
   0x1 LB: > { %s2857_s13 = sadd.s32 4294967295, %s3868_s12   ;;  %p2861_p0 = scmp.ge.s32.totalorder %s3868_s12, 1  ;;  %s3868_s12 = sphi %s3891_s12, %s13_s12  }
   0x2   : > { %p139_p1 = scmp.lt.s32.totalorder %s3868_s12, 3 }
   0x4   : > { %p140_p2 = pnand %p2861_p0, %p139_p1 }
   0x5   : > { %v3423_v0 = vld [vmem:[%s4874_s1 + $0x4] ss:$8 sps:$4 sm:$0xff] (!%p140_p2)   ;;  %v3427_v2 = vld [vmem:[%s4874_s1] ss:$8 sps:$4 sm:$0xff] (!%p140_p2)   ;;  %v3429_v4 = vld [vmem:[%s4874_s1 + $0x14] ss:$8 sps:$4 sm:$0xff] (!%p140_p2)  }
   0x6   : > { %143 = sbr.rel (%p140_p2) target bundleno = 500 (0x1f4), region = 32  ;;  %v3425_v1 = vld [vmem:[%s4874_s1 + $0x304] ss:$8 sps:$4 sm:$0xff] (!%p140_p2)   ;;  %1973 = vmatprep.subr.bf16.mxu1 (!%p140_p2), %v3423_v0  ;;  %v3428_v3 = vld [vmem:[%s4874_s1 + $0x300] ss:$8 sps:$4 sm:$0xff] (!%p140_p2)  }
   0x7   : > { %2276 = vmatprep.subr.bf16.mxu0 (!%p140_p2), %v3425_v1  ;;  %1974 = vmatpush1.bf16.msra.mxu1 (!%p140_p2), %v3427_v2  ;;  %v3431_v5 = vld [vmem:[%s4874_s1 + $0x314] ss:$8 sps:$4 sm:$0xff] (!%p140_p2)   ;;  %v3433_v6 = vld [vmem:[%s4874_s1 + $0x10] ss:$8 sps:$4 sm:$0xff] (!%p140_p2)   ;;  %v3435_v8 = vld [vmem:[%s4874_s1 + $0x24] ss:$8 sps:$4 sm:$0xff] (!%p140_p2)  }
   0x8   : > { %2277 = vmatpush1.bf16.msra.mxu0 (!%p140_p2), %v3428_v3  ;;  %1975 = vmatprep.subr.bf16.mxu1 (!%p140_p2), %v3429_v4  ;;  %v3434_v7 = vld [vmem:[%s4874_s1 + $0x310] ss:$8 sps:$4 sm:$0xff] (!%p140_p2)   ;;  %v3437_v9 = vld [vmem:[%s4874_s1 + $0x324] ss:$8 sps:$4 sm:$0xff] (!%p140_p2)   ;;  %v3439_v10 = vld [vmem:[%s4874_s1 + $0x20] ss:$8 sps:$4 sm:$0xff] (!%p140_p2)  }
   0x9   : > { %2278 = vmatprep.subr.bf16.mxu0 (!%p140_p2), %v3431_v5  ;;  %v3440_v11 = vld [vmem:[%s4874_s1 + $0x320] ss:$8 sps:$4 sm:$0xff] (!%p140_p2)   ;;  %v3441_v12 = vld [vmem:[%s4874_s1 + $0x34] ss:$8 sps:$4 sm:$0xff] (!%p140_p2)   ;;  %v3445_v14 = vld [vmem:[%s4874_s1 + $0x30] ss:$8 sps:$4 sm:$0xff] (!%p140_p2)  }
   0xa   : > { %v3443_v13 = vld [vmem:[%s4874_s1 + $0x334] ss:$8 sps:$4 sm:$0xff] (!%p140_p2)   ;;  %v3446_v15 = vld [vmem:[%s4874_s1 + $0x330] ss:$8 sps:$4 sm:$0xff] (!%p140_p2)   ;;  %v3447_v16 = vld [vmem:[%s4874_s1 + $0x44] ss:$8 sps:$4 sm:$0xff] (!%p140_p2)  }
   0xb   : > { %1976 = vmatpush1.bf16.msra.mxu1 (!%p140_p2), %v3433_v6  ;;  %v3449_v17 = vld [vmem:[%s4874_s1 + $0x344] ss:$8 sps:$4 sm:$0xff] (!%p140_p2)   ;;  %v3451_v18 = vld [vmem:[%s4874_s1 + $0x40] ss:$8 sps:$4 sm:$0xff] (!%p140_p2)   ;;  %v3453_v20 = vld [vmem:[%s4874_s1 + $0x54] ss:$8 sps:$4 sm:$0xff] (!%p140_p2)  }
   0xc   : > { %2279 = vmatpush1.bf16.msra.mxu0 (!%p140_p2), %v3434_v7  ;;  %1977 = vmatprep.subr.bf16.mxu1 (!%p140_p2), %v3435_v8  ;;  %v3452_v19 = vld [vmem:[%s4874_s1 + $0x340] ss:$8 sps:$4 sm:$0xff] (!%p140_p2)   ;;  %v3455_v21 = vld [vmem:[%s4874_s1 + $0x354] ss:$8 sps:$4 sm:$0xff] (!%p140_p2)   ;;  %v3457_v22 = vld [vmem:[%s4874_s1 + $0x50] ss:$8 sps:$4 sm:$0xff] (!%p140_p2)  }
   0xd   : > { %2280 = vmatprep.subr.bf16.mxu0 %v3437_v9  ;;  %v3458_v23 = vld [vmem:[%s4874_s1 + $0x350] ss:$8 sps:$4 sm:$0xff]   ;;  %v3459_v24 = vld [vmem:[%s4874_s1 + $0x64] ss:$8 sps:$4 sm:$0xff]   ;;  %v3463_v26 = vld [vmem:[%s4874_s1 + $0x60] ss:$8 sps:$4 sm:$0xff]  }
   0xe   : > { %v3461_v25 = vld [vmem:[%s4874_s1 + $0x364] ss:$8 sps:$4 sm:$0xff]   ;;  %v3464_v27 = vld [vmem:[%s4874_s1 + $0x360] ss:$8 sps:$4 sm:$0xff]   ;;  %v3465_v28 = vld [vmem:[%s4874_s1 + $0x74] ss:$8 sps:$4 sm:$0xff]  }
   0xf   : > { %1978 = vmatpush1.bf16.msra.mxu1 %v3439_v10  ;;  %s165_s22 = smul.u32 13, %s2857_s13  ;;  %v3467_v29 = vld [vmem:[%s4874_s1 + $0x374] ss:$8 sps:$4 sm:$0xff]   ;;  %v3469_v30 = vld [vmem:[%s4874_s1 + $0x70] ss:$8 sps:$4 sm:$0xff]  }
  0x10   : > { %2281 = vmatpush1.bf16.msra.mxu0 %v3440_v11  ;;  %1979 = vmatprep.subr.bf16.mxu1 %v3441_v12  ;;  %v3470_v31 = vld [vmem:[%s4874_s1 + $0x370] ss:$8 sps:$4 sm:$0xff]   ;;  %v3471_v32 = vld [vmem:[%s4874_s1 + $0x84] ss:$8 sps:$4 sm:$0xff]   ;;  %v3475_v34 = vld [vmem:[%s4874_s1 + $0x80] ss:$8 sps:$4 sm:$0xff]  }
  0x11   : > { %2282 = vmatprep.subr.bf16.mxu0 %v3443_v13  ;;  %p166_p3 = scmp.lt.s32.totalorder %s165_s22, 25  ;;  %v3473_v33 = vld [vmem:[%s4874_s1 + $0x384] ss:$8 sps:$4 sm:$0xff]   ;;  %v3476_v35 = vld [vmem:[%s4874_s1 + $0x380] ss:$8 sps:$4 sm:$0xff]  }
  0x12   : > { %v3477_v36 = vld [vmem:[%s4874_s1 + $0x94] ss:$8 sps:$4 sm:$0xff]   ;;  %v3481_v38 = vld [vmem:[%s4874_s1 + $0x90] ss:$8 sps:$4 sm:$0xff]   ;;  %v3483_v40 = vld [vmem:[%s4874_s1 + $0xa4] ss:$8 sps:$4 sm:$0xff]  }
  0x13   : > { %1980 = vmatpush1.bf16.msra.mxu1 %v3445_v14  ;;  %s4878_s22 = smov (!%p166_p3, %s165_s22), 25  ;;  %v3479_v37 = vld [vmem:[%s4874_s1 + $0x394] ss:$8 sps:$4 sm:$0xff]   ;;  %v3482_v39 = vld [vmem:[%s4874_s1 + $0x390] ss:$8 sps:$4 sm:$0xff]  }
  0x14   : > { %2283 = vmatpush1.bf16.msra.mxu0 %v3446_v15  ;;  %1981 = vmatprep.subr.bf16.mxu1 %v3447_v16  ;;  %s3413_s21 = smul.u32 52, %s4878_s22  ;;  %v3485_v41 = vld [vmem:[%s4874_s1 + $0x3a4] ss:$8 sps:$4 sm:$0xff]   ;;  %v3487_v42 = vld [vmem:[%s4874_s1 + $0xa0] ss:$8 sps:$4 sm:$0xff]   ;;  %s3179_s24 = sshll.u32 %s4878_s22, 3 }
  0x15   : > { %2284 = vmatprep.subr.bf16.mxu0 %v3449_v17  ;;  %v3488_v43 = vld [vmem:[%s4874_s1 + $0x3a0] ss:$8 sps:$4 sm:$0xff]   ;;  %v3489_v44 = vld [vmem:[%s4874_s1 + $0xb4] ss:$8 sps:$4 sm:$0xff]   ;;  %v3493_v46 = vld [vmem:[%s4874_s1 + $0xb0] ss:$8 sps:$4 sm:$0xff]   ;;  %s4797_s22 = scalar_lea.vmem %s4876_s3, %s3179_s24 }
  0x16   : > { %s4042_s5 = scalar_lea.vmem %s4873_s0, %s3413_s21  ;;  %v3491_v45 = vld [vmem:[%s4874_s1 + $0x3b4] ss:$8 sps:$4 sm:$0xff]   ;;  %v3494_v47 = vld [vmem:[%s4874_s1 + $0x3b0] ss:$8 sps:$4 sm:$0xff]   ;;  %v3495_v49 = vld [vmem:[%s4874_s1 + $0xc4] ss:$8 sps:$4 sm:$0xff]  }
  0x17   : > { %1982 = vmatpush1.bf16.msra.mxu1 %v3451_v18  ;;  %v3521_v48 = vld [vmem:[%s4042_s5 + $0x4] ss:$52 sps:$4 sm:$0xff]   ;;  %v3527_v51 = vld [vmem:[%s4042_s5 + $0x1c] ss:$52 sps:$4 sm:$0xff]   ;;  %v3499_v52 = vld [vmem:[%s4874_s1 + $0xc0] ss:$8 sps:$4 sm:$0xff]  }
  0x18   : > { %2285 = vmatpush1.bf16.msra.mxu0 %v3452_v19  ;;  %1983 = vmatprep.subr.bf16.mxu1 %v3453_v20  ;;  %v3497_v50 = vld [vmem:[%s4874_s1 + $0x3c4] ss:$8 sps:$4 sm:$0xff]   ;;  %v3500_v53 = vld [vmem:[%s4874_s1 + $0x3c0] ss:$8 sps:$4 sm:$0xff]   ;;  %v3501_v54 = vld [vmem:[%s4874_s1 + $0xd4] ss:$8 sps:$4 sm:$0xff]  }
  0x19   : > { %2286 = vmatprep.subr.bf16.mxu0 %v3455_v21  ;;  %2005 = vmatprep.mubr.bf16.mxu1 %v3521_v48  ;;  %v3503_v55 = vld [vmem:[%s4874_s1 + $0x3d4] ss:$8 sps:$4 sm:$0xff]   ;;  %v3505_v56 = vld [vmem:[%s4874_s1 + $0xd0] ss:$8 sps:$4 sm:$0xff]   ;;  %v3507_v58 = vld [vmem:[%s4874_s1 + $0xe4] ss:$8 sps:$4 sm:$0xff]  }
  0x1a   : > { %2308 = vmatprep.mubr.bf16.mxu0 %v3527_v51  ;;  %v3506_v57 = vld [vmem:[%s4874_s1 + $0x3d0] ss:$8 sps:$4 sm:$0xff]   ;;  %v3509_v59 = vld [vmem:[%s4874_s1 + $0x3e4] ss:$8 sps:$4 sm:$0xff]   ;;  %v3511_v60 = vld [vmem:[%s4874_s1 + $0xe0] ss:$8 sps:$4 sm:$0xff]  }
  0x1b   : > { %1984 = vmatpush1.bf16.msra.mxu1 %v3457_v22  ;;  %v3512_v61 = vld [vmem:[%s4874_s1 + $0x3e0] ss:$8 sps:$4 sm:$0xff]   ;;  %v3513_v62 = vld [vmem:[%s4874_s1 + $0xf4] ss:$8 sps:$4 sm:$0xff]   ;;  %v3517_v0 = vld [vmem:[%s4874_s1 + $0xf0] ss:$8 sps:$4 sm:$0xff]  }
  0x1c   : > { %2287 = vmatpush1.bf16.msra.mxu0 %v3458_v23  ;;  %1985 = vmatprep.subr.bf16.mxu1 %v3459_v24  ;;  %v3515_v63 = vld [vmem:[%s4874_s1 + $0x3f4] ss:$8 sps:$4 sm:$0xff]   ;;  %v3518_v1 = vld [vmem:[%s4874_s1 + $0x3f0] ss:$8 sps:$4 sm:$0xff]   ;;  %v3524_v2 = vld [vmem:[%s4874_s1 + $0x104] ss:$8 sps:$4 sm:$0xff]  }
  0x1d   : > { %2288 = vmatprep.subr.bf16.mxu0 %v3461_v25  ;;  %v3519_v3 = vld [vmem:[%s4042_s5] ss:$52 sps:$4 sm:$0xff]   ;;  %v3530_v4 = vld [vmem:[%s4874_s1 + $0x404] ss:$8 sps:$4 sm:$0xff]   ;;  %v3531_v12 = vld [vmem:[%s4874_s1 + $0x110] ss:$8 sps:$4 sm:$0xff]  }
  0x1e   : > { %v3522_v5 = vld [vmem:[%s4874_s1 + $0x100] ss:$8 sps:$4 sm:$0xff]   ;;  %v3525_v6 = vld [vmem:[%s4042_s5 + $0x18] ss:$52 sps:$4 sm:$0xff]   ;;  %v3533_v8 = vld [vmem:[%s4874_s1 + $0x114] ss:$8 sps:$4 sm:$0xff]  }
  0x1f   : > { %1986 = vmatpush1.bf16.msra.mxu1 %v3463_v26  ;;  %v3528_v7 = vld [vmem:[%s4874_s1 + $0x400] ss:$8 sps:$4 sm:$0xff]   ;;  %v3536_v9 = vld [vmem:[%s4874_s1 + $0x414] ss:$8 sps:$4 sm:$0xff]   ;;  %v3549_v10 = vld [vmem:[%s4042_s5 + $0x84] ss:$52 sps:$4 sm:$0xff]  }
  0x20   : > { %2289 = vmatpush1.bf16.msra.mxu0 %v3464_v27  ;;  %1987 = vmatprep.subr.bf16.mxu1 %v3465_v28  ;;  %v3551_v11 = vld [vmem:[%s4042_s5 + $0x6c] ss:$52 sps:$4 sm:$0xff]   ;;  %v3534_v13 = vld [vmem:[%s4874_s1 + $0x410] ss:$8 sps:$4 sm:$0xff]   ;;  %v3545_v18 = vld [vmem:[%s4874_s1 + $0x134] ss:$8 sps:$4 sm:$0xff]  }
  0x21   : > { %2290 = vmatprep.subr.bf16.mxu0 %v3467_v29  ;;  %v3539_v14 = vld [vmem:[%s4874_s1 + $0x124] ss:$8 sps:$4 sm:$0xff]   ;;  %v3537_v16 = vld [vmem:[%s4874_s1 + $0x120] ss:$8 sps:$4 sm:$0xff]   ;;  %v3548_v21 = vld [vmem:[%s4874_s1 + $0x434] ss:$8 sps:$4 sm:$0xff]  }
  0x22   : > { %v3542_v15 = vld [vmem:[%s4874_s1 + $0x424] ss:$8 sps:$4 sm:$0xff]   ;;  %v3540_v17 = vld [vmem:[%s4874_s1 + $0x420] ss:$8 sps:$4 sm:$0xff]   ;;  %v3543_v24 = vld [vmem:[%s4874_s1 + $0x130] ss:$8 sps:$4 sm:$0xff]  }
  0x23   : > { %1988 = vmatpush1.bf16.msra.mxu1 %v3469_v30  ;;  %v3556_v19 = vld [vmem:[%s4042_s5 + $0x80] ss:$52 sps:$4 sm:$0xff]   ;;  %v3560_v20 = vld [vmem:[%s4042_s5 + $0x68] ss:$52 sps:$4 sm:$0xff]   ;;  %v3546_v25 = vld [vmem:[%s4874_s1 + $0x430] ss:$8 sps:$4 sm:$0xff]  }
  0x24   : > { %2291 = vmatpush1.bf16.msra.mxu0 %v3470_v31  ;;  %1989 = vmatprep.subr.bf16.mxu1 %v3471_v32  ;;  %v3567_v22 = vld [vmem:[%s4042_s5 + $0xec] ss:$52 sps:$4 sm:$0xff]   ;;  %v3569_v23 = vld [vmem:[%s4042_s5 + $0xd4] ss:$52 sps:$4 sm:$0xff]   ;;  %v3578_v32 = vld [vmem:[%s4042_s5 + $0xd0] ss:$52 sps:$4 sm:$0xff]  }
  0x25   : > { %2292 = vmatprep.subr.bf16.mxu0 %v3473_v33  ;;  %v3555_v26 = vld [vmem:[%s4874_s1 + $0x144] ss:$8 sps:$4 sm:$0xff]   ;;  %v3553_v28 = vld [vmem:[%s4874_s1 + $0x140] ss:$8 sps:$4 sm:$0xff]   ;;  %v3563_v30 = vld [vmem:[%s4874_s1 + $0x154] ss:$8 sps:$4 sm:$0xff]  }
  0x26   : > { %v3559_v27 = vld [vmem:[%s4874_s1 + $0x444] ss:$8 sps:$4 sm:$0xff]   ;;  %v3557_v29 = vld [vmem:[%s4874_s1 + $0x440] ss:$8 sps:$4 sm:$0xff]   ;;  %v3566_v33 = vld [vmem:[%s4874_s1 + $0x454] ss:$8 sps:$4 sm:$0xff]  }
  0x27   : > { %1990 = vmatpush1.bf16.msra.mxu1 %v3475_v34  ;;  %v3574_v31 = vld [vmem:[%s4042_s5 + $0xe8] ss:$52 sps:$4 sm:$0xff]   ;;  %v3579_v48 = vld [vmem:[%s4874_s1 + $0x170] ss:$8 sps:$4 sm:$0xff]   ;;  %v3595_v51 = vld [vmem:[%s4874_s1 + $0x484] ss:$8 sps:$4 sm:$0xff]  }
  0x28   : > { %2293 = vmatpush1.bf16.msra.mxu0 %v3476_v35  ;;  %1991 = vmatprep.subr.bf16.mxu1 %v3477_v36  ;;  %v3585_v34 = vld [vmem:[%s4042_s5 + $0x154] ss:$52 sps:$4 sm:$0xff]   ;;  %v3587_v35 = vld [vmem:[%s4042_s5 + $0x13c] ss:$52 sps:$4 sm:$0xff]  }
  0x29   : > { %2294 = vmatprep.subr.bf16.mxu0 %v3479_v37  ;;  %v3561_v36 = vld [vmem:[%s4874_s1 + $0x150] ss:$8 sps:$4 sm:$0xff]  }
  0x2a   : > { %v3564_v37 = vld [vmem:[%s4874_s1 + $0x450] ss:$8 sps:$4 sm:$0xff]  }
  0x2b   : > { %1992 = vmatpush1.bf16.msra.mxu1 %v3481_v38  ;;  %v3573_v38 = vld [vmem:[%s4874_s1 + $0x164] ss:$8 sps:$4 sm:$0xff]  }
  0x2c   : > { %2295 = vmatpush1.bf16.msra.mxu0 %v3482_v39  ;;  %1993 = vmatprep.subr.bf16.mxu1 %v3483_v40  ;;  %v3577_v39 = vld [vmem:[%s4874_s1 + $0x464] ss:$8 sps:$4 sm:$0xff]   ;;  %v3571_v40 = vld [vmem:[%s4874_s1 + $0x160] ss:$8 sps:$4 sm:$0xff]  }
  0x2d   : > { %2296 = vmatprep.subr.bf16.mxu0 %v3485_v41  ;;  %v3575_v41 = vld [vmem:[%s4874_s1 + $0x460] ss:$8 sps:$4 sm:$0xff]  }
  0x2f   : > { %1994 = vmatpush1.bf16.msra.mxu1 %v3487_v42  ;;  %v3581_v42 = vld [vmem:[%s4874_s1 + $0x174] ss:$8 sps:$4 sm:$0xff]  }
  0x30   : > { %2297 = vmatpush1.bf16.msra.mxu0 %v3488_v43  ;;  %1995 = vmatprep.subr.bf16.mxu1 %v3489_v44  ;;  %v3592_v43 = vld [vmem:[%s4042_s5 + $0x150] ss:$52 sps:$4 sm:$0xff]   ;;  %v3596_v44 = vld [vmem:[%s4042_s5 + $0x138] ss:$52 sps:$4 sm:$0xff]  }
  0x31   : > { %2298 = vmatprep.subr.bf16.mxu0 %v3491_v45  ;;  %v3584_v45 = vld [vmem:[%s4874_s1 + $0x474] ss:$8 sps:$4 sm:$0xff]  }
  0x33   : > { %1996 = vmatpush1.bf16.msra.mxu1 %v3493_v46  ;;  %v3603_v46 = vld [vmem:[%s4042_s5 + $0x1bc] ss:$52 sps:$4 sm:$0xff]  }
  0x34   : > { %2299 = vmatpush1.bf16.msra.mxu0 %v3494_v47  ;;  %1997 = vmatprep.subr.bf16.mxu1 %v3495_v49  ;;  %v3605_v47 = vld [vmem:[%s4042_s5 + $0x1a4] ss:$52 sps:$4 sm:$0xff]  }
  0x35   : > { %2300 = vmatprep.subr.bf16.mxu0 %v3497_v50  ;;  %v3582_v49 = vld [vmem:[%s4874_s1 + $0x470] ss:$8 sps:$4 sm:$0xff]   ;;  %v3591_v50 = vld [vmem:[%s4874_s1 + $0x184] ss:$8 sps:$4 sm:$0xff]  }
  0x37   : > { %1998 = vmatpush1.bf16.msra.mxu1 %v3499_v52  ;;  %v3589_v52 = vld [vmem:[%s4874_s1 + $0x180] ss:$8 sps:$4 sm:$0xff]  }
  0x38   : > { %2301 = vmatpush1.bf16.msra.mxu0 %v3500_v53  ;;  %1999 = vmatprep.subr.bf16.mxu1 %v3501_v54  ;;  %v3610_v53 = vld [vmem:[%s4042_s5 + $0x1b8] ss:$52 sps:$4 sm:$0xff]   ;;  %v3614_v54 = vld [vmem:[%s4042_s5 + $0x1a0] ss:$52 sps:$4 sm:$0xff]  }
  0x39   : > { %2302 = vmatprep.subr.bf16.mxu0 %v3503_v55  ;;  %v3593_v55 = vld [vmem:[%s4874_s1 + $0x480] ss:$8 sps:$4 sm:$0xff]  }
  0x3b   : > { %2000 = vmatpush1.bf16.msra.mxu1 %v3505_v56  ;;  %v3599_v56 = vld [vmem:[%s4874_s1 + $0x194] ss:$8 sps:$4 sm:$0xff]  }
  0x3c   : > { %2303 = vmatpush1.bf16.msra.mxu0 %v3506_v57  ;;  %2001 = vmatprep.subr.bf16.mxu1 %v3507_v58  ;;  %v3602_v57 = vld [vmem:[%s4874_s1 + $0x494] ss:$8 sps:$4 sm:$0xff]   ;;  %v3621_v58 = vld [vmem:[%s4042_s5 + $0x224] ss:$52 sps:$4 sm:$0xff]  }
  0x3d   : > { %2304 = vmatprep.subr.bf16.mxu0 %v3509_v59  ;;  %v3597_v59 = vld [vmem:[%s4874_s1 + $0x190] ss:$8 sps:$4 sm:$0xff]  }
  0x3f   : > { %2002 = vmatpush1.bf16.msra.mxu1 %v3511_v60  ;;  %v3623_v60 = vld [vmem:[%s4042_s5 + $0x20c] ss:$52 sps:$4 sm:$0xff]  }
  0x40   : > { %2305 = vmatpush1.bf16.msra.mxu0 %v3512_v61  ;;  %2003 = vmatprep.subr.bf16.mxu1 %v3513_v62  ;;  %v3600_v61 = vld [vmem:[%s4874_s1 + $0x490] ss:$8 sps:$4 sm:$0xff]   ;;  %v3609_v62 = vld [vmem:[%s4874_s1 + $0x1a4] ss:$8 sps:$4 sm:$0xff]  }
  0x41   : > { %2306 = vmatprep.subr.bf16.mxu0 %v3515_v63  ;;  %v3613_v63 = vld [vmem:[%s4874_s1 + $0x4a4] ss:$8 sps:$4 sm:$0xff]  }
  0x43   : > { %2004 = vmatpush1.bf16.msra.mxu1 %v3517_v0  ;;  %v3628_v0 = vld [vmem:[%s4042_s5 + $0x220] ss:$52 sps:$4 sm:$0xff]  }
  0x44   : > { %2307 = vmatpush1.bf16.msra.mxu0 %v3518_v1  ;;  %2074 = vmatprep.subr.bf16.mxu1 %v3524_v2  ;;  %v3632_v1 = vld [vmem:[%s4042_s5 + $0x208] ss:$52 sps:$4 sm:$0xff]  }
  0x45   : > { %2377 = vmatprep.subr.bf16.mxu0 %v3530_v4  ;;  %v267_v2 = vld [vmem:[%s4042_s5 + $0x288] sm:$0xff] }
  0x46   : > { %2006 = vmatmul.mubr.bf16.vlgmr.msra.gmra.mrb[0].mxu1 %v3519_v3  ;;  %v264_v3 = vld [vmem:[%s4042_s5 + $0x270] sm:$0xff]  ;;  %v3607_v4 = vld [vmem:[%s4874_s1 + $0x1a0] ss:$8 sps:$4 sm:$0xff]  }
  0x47   : > { %2309 = vmatmul.mubr.bf16.vlgmr.msra.gmra.mrb[0].mxu0 %v3525_v6  ;;  %2075 = vmatpush1.bf16.msra.mxu1 %v3522_v5  ;;  %v3611_v5 = vld [vmem:[%s4874_s1 + $0x4a0] ss:$8 sps:$4 sm:$0xff]   ;;  %v3617_v6 = vld [vmem:[%s4874_s1 + $0x1b4] ss:$8 sps:$4 sm:$0xff]  }
  0x48   : > { %2378 = vmatpush1.bf16.msra.mxu0 %v3528_v7  ;;  %2076 = vmatprep.subr.bf16.mxu1 %v3533_v8  ;;  %v3620_v7 = vld [vmem:[%s4874_s1 + $0x4b4] ss:$8 sps:$4 sm:$0xff]   ;;  %v2950_v8 = vcombine.high %v267_v2, %v267_v2 }
  0x49   : > { %2379 = vmatprep.subr.bf16.mxu0 %v3536_v9  ;;  %2318 = vmatprep.mubr.bf16.mxu0 %v3549_v10  ;;  %v2944_v9 = vcombine.high %v264_v3, %v264_v3  ;;  %v3615_v10 = vld [vmem:[%s4874_s1 + $0x1b0] ss:$8 sps:$4 sm:$0xff]  }
  0x4a   : > { %2015 = vmatprep.mubr.bf16.mxu1 %v3551_v11  ;;  %v3618_v11 = vld [vmem:[%s4874_s1 + $0x4b0] ss:$8 sps:$4 sm:$0xff]  }
  0x4b   : > { %2077 = vmatpush1.bf16.msra.mxu1 %v3531_v12  ;;  %v3627_v12 = vld [vmem:[%s4874_s1 + $0x1c4] ss:$8 sps:$4 sm:$0xff]  }
  0x4c   : > { %2380 = vmatpush1.bf16.msra.mxu0 %v3534_v13  ;;  %2078 = vmatprep.subr.bf16.mxu1 %v3539_v14  ;;  %v3631_v13 = vld [vmem:[%s4874_s1 + $0x4c4] ss:$8 sps:$4 sm:$0xff]   ;;  %v3625_v14 = vld [vmem:[%s4874_s1 + $0x1c0] ss:$8 sps:$4 sm:$0xff]  }
  0x4d   : > { %2381 = vmatprep.subr.bf16.mxu0 %v3542_v15  ;;  %v2949_v15 = vcombine.low %v267_v2, %v267_v2  ;;  %v3700_v2 = vld [vmem:[%s4874_s1 + $0x250] ss:$8 sps:$4 sm:$0xff]  }
  0x4e   : > { %2016 = vmatmul.mubr.bf16.gmra.mrb[4].mxu1 %v3560_v20  ;;  %v3657_v20 = vld [vmem:[%s4042_s5 + $0x24] ss:$52 sps:$4 sm:$0xff]  }
  0x4f   : > { %2319 = vmatmul.mubr.bf16.gmra.mrb[4].mxu0 %v3556_v19  ;;  %2079 = vmatpush1.bf16.msra.mxu1 %v3537_v16  ;;  %v2943_v16 = vcombine.low %v264_v3, %v264_v3  ;;  %v3638_v19 = vld [vmem:[%s4874_s1 + $0x4d4] ss:$8 sps:$4 sm:$0xff]   ;;  %v4437_v3 = vld [vmem:[%s4874_s1 + $0x550] ss:$8 sps:$4 sm:$0xff]  }
  0x50   : > { %2382 = vmatpush1.bf16.msra.mxu0 %v3540_v17  ;;  %2080 = vmatprep.subr.bf16.mxu1 %v3545_v18  ;;  %v3629_v17 = vld [vmem:[%s4874_s1 + $0x4c0] ss:$8 sps:$4 sm:$0xff]   ;;  %v3635_v18 = vld [vmem:[%s4874_s1 + $0x1d4] ss:$8 sps:$4 sm:$0xff]  }
  0x51   : > { %2383 = vmatprep.subr.bf16.mxu0 %v3548_v21  ;;  %2328 = vmatprep.mubr.bf16.mxu0 %v3567_v22  ;;  %v3660_v21 = vld [vmem:[%s4042_s5 + $0xc] ss:$52 sps:$4 sm:$0xff]   ;;  %v3633_v22 = vld [vmem:[%s4874_s1 + $0x1d0] ss:$8 sps:$4 sm:$0xff]  }
  0x52   : > { %2025 = vmatprep.mubr.bf16.mxu1 %v3569_v23  ;;  %v3636_v23 = vld [vmem:[%s4874_s1 + $0x4d0] ss:$8 sps:$4 sm:$0xff]  }
  0x53   : > { %2081 = vmatpush1.bf16.msra.mxu1 %v3543_v24  ;;  %v3643_v24 = vld [vmem:[%s4874_s1 + $0x1e4] ss:$8 sps:$4 sm:$0xff]  }
  0x54   : > { %2384 = vmatpush1.bf16.msra.mxu0 %v3546_v25  ;;  %2082 = vmatprep.subr.bf16.mxu1 %v3555_v26  ;;  %v3647_v25 = vld [vmem:[%s4874_s1 + $0x4e4] ss:$8 sps:$4 sm:$0xff]   ;;  %v3641_v26 = vld [vmem:[%s4874_s1 + $0x1e0] ss:$8 sps:$4 sm:$0xff]  }
  0x55   : > { %2385 = vmatprep.subr.bf16.mxu0 %v3559_v27  ;;  %v3645_v27 = vld [vmem:[%s4874_s1 + $0x4e0] ss:$8 sps:$4 sm:$0xff]  }
  0x56   : > { %2026 = vmatmul.mubr.bf16.gmra.mrb[8].mxu1 %v3578_v32  ;;  %v3663_v32 = vld [vmem:[%s4874_s1 + $0x204] ss:$8 sps:$4 sm:$0xff]  }
  0x57   : > { %2329 = vmatmul.mubr.bf16.gmra.mrb[8].mxu0 %v3574_v31  ;;  %2083 = vmatpush1.bf16.msra.mxu1 %v3553_v28  ;;  %v3651_v28 = vld [vmem:[%s4874_s1 + $0x1f4] ss:$8 sps:$4 sm:$0xff]   ;;  %v3652_v31 = vld [vmem:[%s4874_s1 + $0x4f0] ss:$8 sps:$4 sm:$0xff]  }
  0x58   : > { %2386 = vmatpush1.bf16.msra.mxu0 %v3557_v29  ;;  %2084 = vmatprep.subr.bf16.mxu1 %v3563_v30  ;;  %v3654_v29 = vld [vmem:[%s4874_s1 + $0x4f4] ss:$8 sps:$4 sm:$0xff]   ;;  %v3649_v30 = vld [vmem:[%s4874_s1 + $0x1f0] ss:$8 sps:$4 sm:$0xff]  }
  0x59   : > { %2387 = vmatprep.subr.bf16.mxu0 %v3566_v33  ;;  %2338 = vmatprep.mubr.bf16.mxu0 %v3585_v34  ;;  %v4327_v33 = vld [vmem:[%s4874_s1 + $0x504] ss:$8 sps:$4 sm:$0xff]   ;;  %v3655_v34 = vld [vmem:[%s4042_s5 + $0x20] ss:$52 sps:$4 sm:$0xff]  }
  0x5a   : > { %2035 = vmatprep.mubr.bf16.mxu1 %v3587_v35  ;;  %v3658_v35 = vld [vmem:[%s4042_s5 + $0x8] ss:$52 sps:$4 sm:$0xff]  }
  0x5b   : > { %2085 = vmatpush1.bf16.msra.mxu1 %v3561_v36  ;;  %v3661_v36 = vld [vmem:[%s4874_s1 + $0x200] ss:$8 sps:$4 sm:$0xff]  }
  0x5c   : > { %2388 = vmatpush1.bf16.msra.mxu0 %v3564_v37  ;;  %2086 = vmatprep.subr.bf16.mxu1 %v3573_v38  ;;  %v4337_v37 = vld [vmem:[%s4874_s1 + $0x500] ss:$8 sps:$4 sm:$0xff]   ;;  %v3669_v38 = vld [vmem:[%s4874_s1 + $0x214] ss:$8 sps:$4 sm:$0xff]  }
  0x5d   : > { %2389 = vmatprep.subr.bf16.mxu0 %v3577_v39  ;;  %v4346_v39 = vld [vmem:[%s4874_s1 + $0x514] ss:$8 sps:$4 sm:$0xff]  }
  0x5e   : > { %2036 = vmatmul.mubr.bf16.gmra.mrb[12].mxu1 %v3596_v44  ;;  %v3677_v44 = vld [vmem:[%s4874_s1 + $0x224] ss:$8 sps:$4 sm:$0xff]  }
  0x5f   : > { %2339 = vmatmul.mubr.bf16.gmra.mrb[12].mxu0 %v3592_v43  ;;  %2087 = vmatpush1.bf16.msra.mxu1 %v3571_v40  ;;  %v3673_v40 = vld [vmem:[%s4042_s5 + $0x8c] ss:$52 sps:$4 sm:$0xff]   ;;  %v4357_v43 = vld [vmem:[%s4874_s1 + $0x510] ss:$8 sps:$4 sm:$0xff]  }
  0x60   : > { %2390 = vmatpush1.bf16.msra.mxu0 %v3575_v41  ;;  %2088 = vmatprep.subr.bf16.mxu1 %v3581_v42  ;;  %v3688_v41 = vld [vmem:[%s4042_s5 + $0x74] ss:$52 sps:$4 sm:$0xff]   ;;  %v3667_v42 = vld [vmem:[%s4874_s1 + $0x210] ss:$8 sps:$4 sm:$0xff]  }
  0x61   : > { %2391 = vmatprep.subr.bf16.mxu0 %v3584_v45  ;;  %2348 = vmatprep.mubr.bf16.mxu0 %v3603_v46  ;;  %v4366_v45 = vld [vmem:[%s4874_s1 + $0x524] ss:$8 sps:$4 sm:$0xff]   ;;  %v3675_v46 = vld [vmem:[%s4874_s1 + $0x220] ss:$8 sps:$4 sm:$0xff]  }
  0x62   : > { %2045 = vmatprep.mubr.bf16.mxu1 %v3605_v47  ;;  %v3678_v47 = vld [vmem:[%s4042_s5 + $0x88] ss:$52 sps:$4 sm:$0xff]  }
  0x63   : > { %2089 = vmatpush1.bf16.msra.mxu1 %v3579_v48  ;;  %v3692_v48 = vld [vmem:[%s4042_s5 + $0x70] ss:$52 sps:$4 sm:$0xff]  }
  0x64   : > { %2392 = vmatpush1.bf16.msra.mxu0 %v3582_v49  ;;  %2090 = vmatprep.subr.bf16.mxu1 %v3591_v50  ;;  %v4377_v49 = vld [vmem:[%s4874_s1 + $0x520] ss:$8 sps:$4 sm:$0xff]   ;;  %v3684_v50 = vld [vmem:[%s4874_s1 + $0x234] ss:$8 sps:$4 sm:$0xff]  }
  0x65   : > { %2393 = vmatprep.subr.bf16.mxu0 %v3595_v51  ;;  %v4386_v51 = vld [vmem:[%s4874_s1 + $0x534] ss:$8 sps:$4 sm:$0xff]  }
  0x66   : > { %2046 = vmatmul.mubr.bf16.gmra.mrb[16].mxu1 %v3614_v54  ;;  %v3682_v54 = vld [vmem:[%s4874_s1 + $0x230] ss:$8 sps:$4 sm:$0xff]  }
  0x67   : > { %2349 = vmatmul.mubr.bf16.gmra.mrb[16].mxu0 %v3610_v53  ;;  %2091 = vmatpush1.bf16.msra.mxu1 %v3589_v52  ;;  %v3690_v52 = vld [vmem:[%s4042_s5 + $0xf4] ss:$52 sps:$4 sm:$0xff]   ;;  %v3706_v53 = vld [vmem:[%s4042_s5 + $0xdc] ss:$52 sps:$4 sm:$0xff]  }
  0x68   : > { %2394 = vmatpush1.bf16.msra.mxu0 %v3593_v55  ;;  %2092 = vmatprep.subr.bf16.mxu1 %v3599_v56  ;;  %v4397_v55 = vld [vmem:[%s4874_s1 + $0x530] ss:$8 sps:$4 sm:$0xff]   ;;  %v3695_v56 = vld [vmem:[%s4874_s1 + $0x244] ss:$8 sps:$4 sm:$0xff]  }
  0x69   : > { %2395 = vmatprep.subr.bf16.mxu0 %v3602_v57  ;;  %2358 = vmatprep.mubr.bf16.mxu0 %v3621_v58  ;;  %v4406_v57 = vld [vmem:[%s4874_s1 + $0x544] ss:$8 sps:$4 sm:$0xff]   ;;  %v3693_v58 = vld [vmem:[%s4874_s1 + $0x240] ss:$8 sps:$4 sm:$0xff]  }
  0x6a   : > { %2055 = vmatprep.mubr.bf16.mxu1 %v3623_v60  ;;  %v3710_v60 = vld [vmem:[%s4042_s5 + $0xd8] ss:$52 sps:$4 sm:$0xff]  }
  0x6b   : > { %2093 = vmatpush1.bf16.msra.mxu1 %v3597_v59  ;;  %v3696_v59 = vld [vmem:[%s4042_s5 + $0xf0] ss:$52 sps:$4 sm:$0xff]  }
  0x6c   : > { %2396 = vmatpush1.bf16.msra.mxu0 %v3600_v61  ;;  %2094 = vmatprep.subr.bf16.mxu1 %v3609_v62  ;;  %v4417_v61 = vld [vmem:[%s4874_s1 + $0x540] ss:$8 sps:$4 sm:$0xff]   ;;  %v3702_v62 = vld [vmem:[%s4874_s1 + $0x254] ss:$8 sps:$4 sm:$0xff]  }
  0x6d   : > { %2397 = vmatprep.subr.bf16.mxu0 %v3613_v63  ;;  %v4426_v63 = vld [vmem:[%s4874_s1 + $0x554] ss:$8 sps:$4 sm:$0xff]  }
  0x6e   : > { %2056 = vmatmul.mubr.bf16.gmra.mrb[20].mxu1 %v3632_v1  ;;  %v3724_v1 = vld [vmem:[%s4042_s5 + $0x144] ss:$52 sps:$4 sm:$0xff]  }
  0x6f   : > { %2359 = vmatmul.mubr.bf16.gmra.mrb[20].mxu0 %v3628_v0  ;;  %2095 = vmatpush1.bf16.msra.mxu1 %v3607_v4  ;;  %v3708_v0 = vld [vmem:[%s4042_s5 + $0x15c] ss:$52 sps:$4 sm:$0xff]   ;;  %v3713_v4 = vld [vmem:[%s4874_s1 + $0x264] ss:$8 sps:$4 sm:$0xff]  }
  0x70   : > { %2398 = vmatpush1.bf16.msra.mxu0 %v3611_v5  ;;  %2096 = vmatprep.subr.bf16.mxu1 %v3617_v6  ;;  %v4446_v5 = vld [vmem:[%s4874_s1 + $0x564] ss:$8 sps:$4 sm:$0xff]   ;;  %v3711_v6 = vld [vmem:[%s4874_s1 + $0x260] ss:$8 sps:$4 sm:$0xff]  }
  0x71   : > { %2399 = vmatprep.subr.bf16.mxu0 %v3620_v7  ;;  %2368 = vmatprep.mubr.bf16.mxu0 %v2950_v8  ;;  %v3714_v7 = vld [vmem:[%s4042_s5 + $0x158] ss:$52 sps:$4 sm:$0xff]   ;;  %v4455_v8 = vld [vmem:[%s4874_s1 + $0x560] ss:$8 sps:$4 sm:$0xff]  }
  0x72   : > { %2065 = vmatprep.mubr.bf16.mxu1 %v2944_v9  ;;  %v3728_v9 = vld [vmem:[%s4042_s5 + $0x140] ss:$52 sps:$4 sm:$0xff]  }
  0x73   : > { %2097 = vmatpush1.bf16.msra.mxu1 %v3615_v10  ;;  %v3720_v10 = vld [vmem:[%s4874_s1 + $0x274] ss:$8 sps:$4 sm:$0xff]  }
  0x74   : > { %2400 = vmatpush1.bf16.msra.mxu0 %v3618_v11  ;;  %2098 = vmatprep.subr.bf16.mxu1 %v3627_v12  ;;  %v4465_v11 = vld [vmem:[%s4874_s1 + $0x574] ss:$8 sps:$4 sm:$0xff]   ;;  %v3726_v12 = vld [vmem:[%s4042_s5 + $0x1c4] ss:$52 sps:$4 sm:$0xff]  }
  0x75   : > { %2401 = vmatprep.subr.bf16.mxu0 %v3631_v13  ;;  %v3742_v13 = vld [vmem:[%s4042_s5 + $0x1ac] ss:$52 sps:$4 sm:$0xff]  }
  0x76   : > { %2066 = vmatmul.mubr.bf16.gmra.mrb[24].mxu1 %v2943_v16  ;;  %v3731_v16 = vld [vmem:[%s4874_s1 + $0x284] ss:$8 sps:$4 sm:$0xff]  }
  0x77   : > { %2369 = vmatmul.mubr.bf16.gmra.mrb[24].mxu0 %v2949_v15  ;;  %2099 = vmatpush1.bf16.msra.mxu1 %v3625_v14  ;;  %v3718_v14 = vld [vmem:[%s4874_s1 + $0x270] ss:$8 sps:$4 sm:$0xff]  }
  0x78   : > { %2402 = vmatpush1.bf16.msra.mxu0 %v3629_v17  ;;  %2100 = vmatprep.subr.bf16.mxu1 %v3635_v18  ;;  %v4476_v15 = vld [vmem:[%s4874_s1 + $0x570] ss:$8 sps:$4 sm:$0xff]   ;;  %v4486_v17 = vld [vmem:[%s4874_s1 + $0x584] ss:$8 sps:$4 sm:$0xff]   ;;  %v3729_v18 = vld [vmem:[%s4874_s1 + $0x280] ss:$8 sps:$4 sm:$0xff]  }
  0x79   : > { %2403 = vmatprep.subr.bf16.mxu0 %v3638_v19  ;;  %2409 = vmatprep.mubr.bf16.mxu0 %v3657_v20  ;;  %v3732_v19 = vld [vmem:[%s4042_s5 + $0x1c0] ss:$52 sps:$4 sm:$0xff]  }
  0x7a   : > { %2106 = vmatprep.mubr.bf16.mxu1 %v3660_v21  ;;  %v4495_v20 = vld [vmem:[%s4874_s1 + $0x580] ss:$8 sps:$4 sm:$0xff]  }
  0x7b   : > { %2101 = vmatpush1.bf16.msra.mxu1 %v3633_v22  ;;  %v3746_v21 = vld [vmem:[%s4042_s5 + $0x1a8] ss:$52 sps:$4 sm:$0xff]  }
  0x7c   : > { %2404 = vmatpush1.bf16.msra.mxu0 %v3636_v23  ;;  %2102 = vmatprep.subr.bf16.mxu1 %v3643_v24  ;;  %v3738_v22 = vld [vmem:[%s4874_s1 + $0x294] ss:$8 sps:$4 sm:$0xff]   ;;  %v3744_v24 = vld [vmem:[%s4042_s5 + $0x22c] ss:$52 sps:$4 sm:$0xff]  }
  0x7d   : > { %2405 = vmatprep.subr.bf16.mxu0 %v3647_v25  ;;  %v4506_v23 = vld [vmem:[%s4874_s1 + $0x594] ss:$8 sps:$4 sm:$0xff]  }
  0x7e   : > { %v3760_v25 = vld [vmem:[%s4042_s5 + $0x214] ss:$52 sps:$4 sm:$0xff]  }
  0x7f   : > { %2103 = vmatpush1.bf16.msra.mxu1 %v3641_v26  ;;  %v3736_v26 = vld [vmem:[%s4874_s1 + $0x290] ss:$8 sps:$4 sm:$0xff]  }
  0x80   : > { %2406 = vmatpush1.bf16.msra.mxu0 %v3645_v27  ;;  %2104 = vmatprep.subr.bf16.mxu1 %v3651_v28  ;;  %v4516_v27 = vld [vmem:[%s4874_s1 + $0x590] ss:$8 sps:$4 sm:$0xff]   ;;  %v3749_v28 = vld [vmem:[%s4874_s1 + $0x2a4] ss:$8 sps:$4 sm:$0xff]  }
  0x81   : > { %2407 = vmatprep.subr.bf16.mxu0 %v3654_v29  ;;  %v3750_v29 = vld [vmem:[%s4042_s5 + $0x228] ss:$52 sps:$4 sm:$0xff]  }
  0x83   : > { %2105 = vmatpush1.bf16.msra.mxu1 %v3649_v30  ;;  %v4527_v30 = vld [vmem:[%s4874_s1 + $0x5a4] ss:$8 sps:$4 sm:$0xff]  }
  0x84   : > { %2408 = vmatpush1.bf16.msra.mxu0 %v3652_v31  ;;  %2175 = vmatprep.subr.bf16.mxu1 %v3663_v32  ;;  %v3747_v31 = vld [vmem:[%s4874_s1 + $0x2a0] ss:$8 sps:$4 sm:$0xff]   ;;  %v268_v32 = vld [vmem:[%s4042_s5 + $0x290] sm:$0xff] }
  0x85   : > { %2478 = vmatprep.subr.bf16.mxu0 %v4327_v33 }
  0x86   : > { %2107 = vmatmul.mubr.bf16.vlgmr.msra.gmra.mrb[0].mxu1 %v3658_v35  ;;  %v265_v35 = vld [vmem:[%s4042_s5 + $0x278] sm:$0xff] }
  0x87   : > { %2410 = vmatmul.mubr.bf16.vlgmr.msra.gmra.mrb[0].mxu0 %v3655_v34  ;;  %2176 = vmatpush1.bf16.msra.mxu1 %v3661_v36  ;;  %v3763_v34 = vld [vmem:[%s4042_s5 + $0x210] ss:$52 sps:$4 sm:$0xff]   ;;  %v4539_v36 = vld [vmem:[%s4874_s1 + $0x5a0] ss:$8 sps:$4 sm:$0xff]  }
  0x88   : > { %2479 = vmatpush1.bf16.msra.mxu0 %v4337_v37  ;;  %2177 = vmatprep.subr.bf16.mxu1 %v3669_v38  ;;  %v3756_v38 = vld [vmem:[%s4874_s1 + $0x2b4] ss:$8 sps:$4 sm:$0xff]  }
  0x89   : > { %2480 = vmatprep.subr.bf16.mxu0 %v4346_v39  ;;  %2419 = vmatprep.mubr.bf16.mxu0 %v3673_v40  ;;  %v4548_v40 = vld [vmem:[%s4874_s1 + $0x5b4] ss:$8 sps:$4 sm:$0xff]  }
  0x8a   : > { %2116 = vmatprep.mubr.bf16.mxu1 %v3688_v41  ;;  %v2952_v41 = vcombine.high %v268_v32, %v268_v32 }
  0x8b   : > { %2178 = vmatpush1.bf16.msra.mxu1 %v3667_v42  ;;  %v2946_v42 = vcombine.high %v265_v35, %v265_v35 }
  0x8c   : > { %2481 = vmatpush1.bf16.msra.mxu0 %v4357_v43  ;;  %2179 = vmatprep.subr.bf16.mxu1 %v3677_v44  ;;  %v3754_v44 = vld [vmem:[%s4874_s1 + $0x2b0] ss:$8 sps:$4 sm:$0xff]  }
  0x8d   : > { %2482 = vmatprep.subr.bf16.mxu0 %v4366_v45 }
  0x8e   : > { %2117 = vmatmul.mubr.bf16.gmra.mrb[4].mxu1 %v3692_v48  ;;  %v4566_v48 = vld [vmem:[%s4874_s1 + $0x5c4] ss:$8 sps:$4 sm:$0xff]  }
  0x8f   : > { %2420 = vmatmul.mubr.bf16.gmra.mrb[4].mxu0 %v3678_v47  ;;  %2180 = vmatpush1.bf16.msra.mxu1 %v3675_v46  ;;  %v4556_v46 = vld [vmem:[%s4874_s1 + $0x5b0] ss:$8 sps:$4 sm:$0xff]   ;;  %v3766_v47 = vld [vmem:[%s4874_s1 + $0x2c4] ss:$8 sps:$4 sm:$0xff]  }
  0x90   : > { %2483 = vmatpush1.bf16.msra.mxu0 %v4377_v49  ;;  %2181 = vmatprep.subr.bf16.mxu1 %v3684_v50  ;;  %v3764_v50 = vld [vmem:[%s4874_s1 + $0x2c0] ss:$8 sps:$4 sm:$0xff]  }
  0x91   : > { %2484 = vmatprep.subr.bf16.mxu0 %v4386_v51  ;;  %2429 = vmatprep.mubr.bf16.mxu0 %v3690_v52  ;;  %v2951_v52 = vcombine.low %v268_v32, %v268_v32  ;;  %v3820_v32 = vld [vmem:[%s4042_s5 + $0xf8] ss:$52 sps:$4 sm:$0xff]  }
  0x92   : > { %2126 = vmatprep.mubr.bf16.mxu1 %v3706_v53  ;;  %v4574_v53 = vld [vmem:[%s4874_s1 + $0x5c0] ss:$8 sps:$4 sm:$0xff]  }
  0x93   : > { %2182 = vmatpush1.bf16.msra.mxu1 %v3682_v54  ;;  %v3773_v54 = vld [vmem:[%s4874_s1 + $0x2d4] ss:$8 sps:$4 sm:$0xff]  }
  0x94   : > { %2485 = vmatpush1.bf16.msra.mxu0 %v4397_v55  ;;  %2183 = vmatprep.subr.bf16.mxu1 %v3695_v56  ;;  %v2945_v56 = vcombine.low %v265_v35, %v265_v35  ;;  %v3829_v35 = vld [vmem:[%s4042_s5 + $0x164] ss:$52 sps:$4 sm:$0xff]  }
  0x95   : > { %2486 = vmatprep.subr.bf16.mxu0 %v4406_v57 }
  0x96   : > { %2127 = vmatmul.mubr.bf16.gmra.mrb[8].mxu1 %v3710_v60  ;;  %v3796_v60 = vld [vmem:[%s4042_s5 + $0x2c] ss:$52 sps:$4 sm:$0xff]  }
  0x97   : > { %2430 = vmatmul.mubr.bf16.gmra.mrb[8].mxu0 %v3696_v59  ;;  %2184 = vmatpush1.bf16.msra.mxu1 %v3693_v58  ;;  %v4583_v58 = vld [vmem:[%s4874_s1 + $0x5d4] ss:$8 sps:$4 sm:$0xff]  }
  0x98   : > { %2487 = vmatpush1.bf16.msra.mxu0 %v4417_v61  ;;  %2185 = vmatprep.subr.bf16.mxu1 %v3702_v62  ;;  %v3793_v59 = vld [vmem:[%s4042_s5 + $0x14] ss:$52 sps:$4 sm:$0xff]   ;;  %v3771_v62 = vld [vmem:[%s4874_s1 + $0x2d0] ss:$8 sps:$4 sm:$0xff]  }
  0x99   : > { %2488 = vmatprep.subr.bf16.mxu0 %v4426_v63  ;;  %2439 = vmatprep.mubr.bf16.mxu0 %v3708_v0  ;;  %v4594_v0 = vld [vmem:[%s4874_s1 + $0x5d0] ss:$8 sps:$4 sm:$0xff]  }
  0x9a   : > { %2136 = vmatprep.mubr.bf16.mxu1 %v3724_v1  ;;  %v3781_v1 = vld [vmem:[%s4874_s1 + $0x2e4] ss:$8 sps:$4 sm:$0xff]  }
  0x9b   : > { %2186 = vmatpush1.bf16.msra.mxu1 %v3700_v2  ;;  %v4604_v2 = vld [vmem:[%s4874_s1 + $0x5e4] ss:$8 sps:$4 sm:$0xff]  }
  0x9c   : > { %2489 = vmatpush1.bf16.msra.mxu0 %v4437_v3  ;;  %2187 = vmatprep.subr.bf16.mxu1 %v3713_v4  ;;  %v3779_v4 = vld [vmem:[%s4874_s1 + $0x2e0] ss:$8 sps:$4 sm:$0xff]  }
  0x9d   : > { %2490 = vmatprep.subr.bf16.mxu0 %v4446_v5 }
  0x9e   : > { %2137 = vmatmul.mubr.bf16.gmra.mrb[12].mxu1 %v3728_v9  ;;  %v4622_v9 = vld [vmem:[%s4874_s1 + $0x5f4] ss:$8 sps:$4 sm:$0xff]  }
  0x9f   : > { %2440 = vmatmul.mubr.bf16.gmra.mrb[12].mxu0 %v3714_v7  ;;  %2188 = vmatpush1.bf16.msra.mxu1 %v3711_v6  ;;  %v4612_v6 = vld [vmem:[%s4874_s1 + $0x5e0] ss:$8 sps:$4 sm:$0xff]   ;;  %v3787_v7 = vld [vmem:[%s4874_s1 + $0x2f4] ss:$8 sps:$4 sm:$0xff]  }
  0xa0   : > { %2491 = vmatpush1.bf16.msra.mxu0 %v4455_v8  ;;  %2189 = vmatprep.subr.bf16.mxu1 %v3720_v10  ;;  %v3785_v10 = vld [vmem:[%s4874_s1 + $0x2f0] ss:$8 sps:$4 sm:$0xff]  }
  0xa1   : > { %2492 = vmatprep.subr.bf16.mxu0 %v4465_v11  ;;  %2449 = vmatprep.mubr.bf16.mxu0 %v3726_v12  ;;  %v4631_v12 = vld [vmem:[%s4874_s1 + $0x5f0] ss:$8 sps:$4 sm:$0xff]  }
  0xa2   : > { %2146 = vmatprep.mubr.bf16.mxu1 %v3742_v13  ;;  %v3799_v13 = vld [vmem:[%s4874_s1 + $0x604] ss:$8 sps:$4 sm:$0xff]  }
  0xa3   : > { %2190 = vmatpush1.bf16.msra.mxu1 %v3718_v14  ;;  %v3791_v14 = vld [vmem:[%s4042_s5 + $0x10] ss:$52 sps:$4 sm:$0xff]  }
  0xa4   : > { %2493 = vmatpush1.bf16.msra.mxu0 %v4476_v15  ;;  %2191 = vmatprep.subr.bf16.mxu1 %v3731_v16  ;;  %v3794_v16 = vld [vmem:[%s4042_s5 + $0x28] ss:$52 sps:$4 sm:$0xff]  }
  0xa5   : > { %2494 = vmatprep.subr.bf16.mxu0 %v4486_v17 }
  0xa6   : > { %2147 = vmatmul.mubr.bf16.gmra.mrb[16].mxu1 %v3746_v21  ;;  %v3803_v21 = vld [vmem:[%s4042_s5 + $0x7c] ss:$52 sps:$4 sm:$0xff]  }
  0xa7   : > { %2450 = vmatmul.mubr.bf16.gmra.mrb[16].mxu0 %v3732_v19  ;;  %2192 = vmatpush1.bf16.msra.mxu1 %v3729_v18  ;;  %v3797_v18 = vld [vmem:[%s4874_s1 + $0x600] ss:$8 sps:$4 sm:$0xff]   ;;  %v3802_v19 = vld [vmem:[%s4874_s1 + $0x614] ss:$8 sps:$4 sm:$0xff]  }
  0xa8   : > { %2495 = vmatpush1.bf16.msra.mxu0 %v4495_v20  ;;  %2193 = vmatprep.subr.bf16.mxu1 %v3738_v22  ;;  %v3805_v22 = vld [vmem:[%s4042_s5 + $0x94] ss:$52 sps:$4 sm:$0xff]  }
  0xa9   : > { %2496 = vmatprep.subr.bf16.mxu0 %v4506_v23  ;;  %2459 = vmatprep.mubr.bf16.mxu0 %v3744_v24  ;;  %v3800_v24 = vld [vmem:[%s4874_s1 + $0x610] ss:$8 sps:$4 sm:$0xff]  }
  0xaa   : > { %2156 = vmatprep.mubr.bf16.mxu1 %v3760_v25  ;;  %v3807_v25 = vld [vmem:[%s4042_s5 + $0x78] ss:$52 sps:$4 sm:$0xff]  }
  0xab   : > { %2194 = vmatpush1.bf16.msra.mxu1 %v3736_v26  ;;  %v3808_v26 = vld [vmem:[%s4042_s5 + $0x90] ss:$52 sps:$4 sm:$0xff]  }
  0xac   : > { %2497 = vmatpush1.bf16.msra.mxu0 %v4516_v27  ;;  %2195 = vmatprep.subr.bf16.mxu1 %v3749_v28  ;;  %v3815_v28 = vld [vmem:[%s4042_s5 + $0xe4] ss:$52 sps:$4 sm:$0xff]  }
  0xad   : > { %2498 = vmatprep.subr.bf16.mxu0 %v4527_v30 }
  0xae   : > { %2157 = vmatmul.mubr.bf16.gmra.mrb[20].mxu1 %v3763_v34  ;;  %v3827_v34 = vld [vmem:[%s4042_s5 + $0x14c] ss:$52 sps:$4 sm:$0xff]  }
  0xaf   : > { %2460 = vmatmul.mubr.bf16.gmra.mrb[20].mxu0 %v3750_v29  ;;  %2196 = vmatpush1.bf16.msra.mxu1 %v3747_v31  ;;  %v3817_v29 = vld [vmem:[%s4042_s5 + $0xfc] ss:$52 sps:$4 sm:$0xff]   ;;  %v3819_v31 = vld [vmem:[%s4042_s5 + $0xe0] ss:$52 sps:$4 sm:$0xff]  }
  0xb0   : > { %2499 = vmatpush1.bf16.msra.mxu0 %v4539_v36  ;;  %2197 = vmatprep.subr.bf16.mxu1 %v3756_v38  ;;  %v3831_v38 = vld [vmem:[%s4042_s5 + $0x148] ss:$52 sps:$4 sm:$0xff]  }
  0xb1   : > { %2500 = vmatprep.subr.bf16.mxu0 %v4548_v40  ;;  %2469 = vmatprep.mubr.bf16.mxu0 %v2952_v41  ;;  %v3832_v41 = vld [vmem:[%s4042_s5 + $0x160] ss:$52 sps:$4 sm:$0xff]  }
  0xb2   : > { %2166 = vmatprep.mubr.bf16.mxu1 %v2946_v42  ;;  %v3839_v42 = vld [vmem:[%s4042_s5 + $0x1b4] ss:$52 sps:$4 sm:$0xff]  }
  0xb3   : > { %2198 = vmatpush1.bf16.msra.mxu1 %v3754_v44  ;;  %v3841_v44 = vld [vmem:[%s4042_s5 + $0x1b0] ss:$52 sps:$4 sm:$0xff]  }
  0xb4   : > { %2501 = vmatpush1.bf16.msra.mxu0 %v4556_v46  ;;  %2199 = vmatprep.subr.bf16.mxu1 %v3766_v47  ;;  %v3842_v47 = vld [vmem:[%s4042_s5 + $0x30] ss:$52 sps:$4 sm:$0xff]  }
  0xb5   : > { %2502 = vmatprep.subr.bf16.mxu0 %v4566_v48 }
  0xb6   : > { %2167 = vmatmul.mubr.bf16.gmra.mrb[24].mxu1 %v2945_v56 }
  0xb7   : > { %2470 = vmatmul.mubr.bf16.gmra.mrb[24].mxu0 %v2951_v52  ;;  %2200 = vmatpush1.bf16.msra.mxu1 %v3764_v50  ;;  %v3845_v50 = vld [vmem:[%s4042_s5 + $0x218] ss:$52 sps:$4 sm:$0xff]  }
  0xb8   : > { %2503 = vmatpush1.bf16.msra.mxu0 %v4574_v53  ;;  %2201 = vmatprep.subr.bf16.mxu1 %v3773_v54  ;;  %v3846_v52 = vld [vmem:[%s4042_s5 + $0x98] ss:$52 sps:$4 sm:$0xff]  }
  0xb9   : > { %2504 = vmatprep.subr.bf16.mxu0 %v4583_v58  ;;  %2207 = vmatprep.mubr.bf16.mxu1 %v3793_v59 }
  0xba   : > { %2510 = vmatprep.mubr.bf16.mxu0 %v3796_v60 }
  0xbb   : > { %2202 = vmatpush1.bf16.msra.mxu1 %v3771_v62 }
  0xbc   : > { %2505 = vmatpush1.bf16.msra.mxu0 %v4594_v0  ;;  %2203 = vmatprep.subr.bf16.mxu1 %v3781_v1 }
  0xbd   : > { %2506 = vmatprep.subr.bf16.mxu0 %v4604_v2 }
  0xbf   : > { %2204 = vmatpush1.bf16.msra.mxu1 %v3779_v4 }
  0xc0   : > { %2507 = vmatpush1.bf16.msra.mxu0 %v4612_v6  ;;  %2205 = vmatprep.subr.bf16.mxu1 %v3787_v7 }
  0xc1   : > { %2508 = vmatprep.subr.bf16.mxu0 %v4622_v9 }
  0xc3   : > { %2206 = vmatpush1.bf16.msra.mxu1 %v3785_v10 }
  0xc4   : > { %2509 = vmatpush1.bf16.msra.mxu0 %v4631_v12  ;;  %3193 = vmatprep.subr.bf16.mxu1 %v4327_v33  ;;  %v3811_v33 = vld [vmem:[%s4874_s1 + $0x624] ss:$8 sps:$4 sm:$0xff]  }
  0xc5   : > { %2579 = vmatprep.subr.bf16.mxu0 %v3799_v13 }
  0xc6   : > { %2208 = vmatmul.mubr.bf16.vlgmr.msra.gmra.mrb[0].mxu1 %v3791_v14 }
  0xc7   : > { %2511 = vmatmul.mubr.bf16.vlgmr.msra.gmra.mrb[0].mxu0 %v3794_v16  ;;  %3209 = vmatpush1.bf16.msra.mxu1 %v4337_v37  ;;  %v3809_v37 = vld [vmem:[%s4874_s1 + $0x620] ss:$8 sps:$4 sm:$0xff]  }
  0xc8   : > { %2580 = vmatpush1.bf16.msra.mxu0 %v3797_v18  ;;  %3194 = vmatprep.subr.bf16.mxu1 %v4346_v39  ;;  %v3814_v39 = vld [vmem:[%s4874_s1 + $0x634] ss:$8 sps:$4 sm:$0xff]  }
  0xc9   : > { %2581 = vmatprep.subr.bf16.mxu0 %v3802_v19  ;;  %2217 = vmatprep.mubr.bf16.mxu1 %v3803_v21 }
  0xca   : > { %2520 = vmatprep.mubr.bf16.mxu0 %v3805_v22 }
  0xcb   : > { %3210 = vmatpush1.bf16.msra.mxu1 %v4357_v43  ;;  %v3812_v43 = vld [vmem:[%s4874_s1 + $0x630] ss:$8 sps:$4 sm:$0xff]  }
  0xcc   : > { %2582 = vmatpush1.bf16.msra.mxu0 %v3800_v24  ;;  %3195 = vmatprep.subr.bf16.mxu1 %v4366_v45  ;;  %v3823_v45 = vld [vmem:[%s4874_s1 + $0x644] ss:$8 sps:$4 sm:$0xff]  }
  0xcd   : > { %2583 = vmatprep.subr.bf16.mxu0 %v3811_v33  ;;  %v481_v33 = vlaneseq }
  0xce   : > { %2218 = vmatmul.mubr.bf16.gmra.mrb[4].mxu1 %v3807_v25 }
  0xcf   : > { %2521 = vmatmul.mubr.bf16.gmra.mrb[4].mxu0 %v3808_v26  ;;  %3211 = vmatpush1.bf16.msra.mxu1 %v4377_v49  ;;  %v3821_v49 = vld [vmem:[%s4874_s1 + $0x640] ss:$8 sps:$4 sm:$0xff]  }
  0xd0   : > { %2584 = vmatpush1.bf16.msra.mxu0 %v3809_v37  ;;  %3196 = vmatprep.subr.bf16.mxu1 %v4386_v51  ;;  %v3826_v51 = vld [vmem:[%s4874_s1 + $0x654] ss:$8 sps:$4 sm:$0xff]  }
  0xd1   : > { %2585 = vmatprep.subr.bf16.mxu0 %v3814_v39  ;;  %2227 = vmatprep.mubr.bf16.mxu1 %v3815_v28  ;;  %v482_v39 = vshrl.u32 %v481_v33, 7 }
  0xd2   : > { %2530 = vmatprep.mubr.bf16.mxu0 %v3817_v29 }
  0xd3   : > { %3212 = vmatpush1.bf16.msra.mxu1 %v4397_v55  ;;  %v3824_v55 = vld [vmem:[%s4874_s1 + $0x650] ss:$8 sps:$4 sm:$0xff]   ;;  %v483_v29 = vsub.s32 0, %v482_v39 }
  0xd4   : > { %2586 = vmatpush1.bf16.msra.mxu0 %v3812_v43  ;;  %3197 = vmatprep.subr.bf16.mxu1 %v4406_v57  ;;  %v3835_v57 = vld [vmem:[%s4874_s1 + $0x664] ss:$8 sps:$4 sm:$0xff]   ;;  %v479_v43 = vld [vmem:[%s4875_s2] sm:$0x3] }
  0xd5   : > { %2587 = vmatprep.subr.bf16.mxu0 %v3823_v45  ;;  %v487_v45 = vsub.s32 1, %v482_v39 }
  0xd6   : > { %2228 = vmatmul.mubr.bf16.gmra.mrb[8].mxu1 %v3819_v31 }
  0xd7   : > { %2531 = vmatmul.mubr.bf16.gmra.mrb[8].mxu0 %v3820_v32  ;;  %3213 = vmatpush1.bf16.msra.mxu1 %v4417_v61  ;;  %v3833_v61 = vld [vmem:[%s4874_s1 + $0x660] ss:$8 sps:$4 sm:$0xff]  }
  0xd8   : > { %2588 = vmatpush1.bf16.msra.mxu0 %v3821_v49  ;;  %3198 = vmatprep.subr.bf16.mxu1 %v4426_v63  ;;  %v3838_v63 = vld [vmem:[%s4874_s1 + $0x674] ss:$8 sps:$4 sm:$0xff]  }
  0xd9   : > { %2589 = vmatprep.subr.bf16.mxu0 %v3826_v51  ;;  %2237 = vmatprep.mubr.bf16.mxu1 %v3827_v34  ;;  %v4775_v51 = vrot.slane %v479_v43, %v483_v29 }
  0xda   : > { %2540 = vmatprep.mubr.bf16.mxu0 %v3829_v35  ;;  %v4779_v35 = vrot.slane %v479_v43, %v487_v45 }
  0xdb   : > { %3214 = vmatpush1.bf16.msra.mxu1 %v4437_v3  ;;  %v3836_v3 = vld [vmem:[%s4874_s1 + $0x670] ss:$8 sps:$4 sm:$0xff]  }
  0xdc   : > { %2590 = vmatpush1.bf16.msra.mxu0 %v3824_v55  ;;  %3199 = vmatprep.subr.bf16.mxu1 %v4446_v5  ;;  %v3870_v5 = vmov 0  }
  0xdd   : > { %2591 = vmatprep.subr.bf16.mxu0 %v3835_v57 }
  0xde   : > { %2238 = vmatmul.mubr.bf16.gmra.mrb[12].mxu1 %v3831_v38 }
  0xdf   : > { %2541 = vmatmul.mubr.bf16.gmra.mrb[12].mxu0 %v3832_v41  ;;  %3215 = vmatpush1.bf16.msra.mxu1 %v4455_v8  ;;  %v3843_v8 = vld [vmem:[%s4042_s5 + $0x21c] ss:$52 sps:$4 sm:$0xff]  }
  0xe0   : > { %2592 = vmatpush1.bf16.msra.mxu0 %v3833_v61  ;;  %3200 = vmatprep.subr.bf16.mxu1 %v4465_v11  ;;  %v266_v11 = vld [vmem:[%s4042_s5 + $0x280] sm:$0xff] }
  0xe1   : > { %2593 = vmatprep.subr.bf16.mxu0 %v3838_v63  ;;  %2247 = vmatprep.mubr.bf16.mxu1 %v3839_v42 }
  0xe2   : > { %2611 = vmatprep.mubr.bf16.mxu0 %v3870_v5 }
  0xe3   : > { %3216 = vmatpush1.bf16.msra.mxu1 %v4476_v15  ;;  %v2948_v15 = vcombine.high %v266_v11, %v266_v11 }
  0xe4   : > { %2594 = vmatpush1.bf16.msra.mxu0 %v3836_v3  ;;  %3201 = vmatprep.subr.bf16.mxu1 %v4486_v17  ;;  %v2947_v17 = vcombine.low %v266_v11, %v266_v11 }
  0xe6   : > { %2248 = vmatmul.mubr.bf16.gmra.mrb[16].mxu1 %v3841_v44 }
  0xe7   : > { %2612 = vmatmul.mubr.bf16.vlgmr.msra.gmra.mrb[0].mxu0 %v3842_v47  ;;  %3217 = vmatpush1.bf16.msra.mxu1 %v4495_v20  ;;  %v3849_v20 = vld [vmem:[%s4042_s5 + $0x100] ss:$52 sps:$4 sm:$0xff]  }
  0xe8   : > { %2257 = vmatprep.mubr.bf16.mxu1 %v3843_v8  ;;  %3202 = vmatprep.subr.bf16.mxu1 %v4506_v23  ;;  %v3853_v23 = vld [vmem:[%s4042_s5 + $0x1cc] ss:$52 sps:$4 sm:$0xff]  }
  0xe9   : > { %2621 = vmatprep.mubr.bf16.mxu0 %v3870_v5 }
  0xeb   : > { %3218 = vmatpush1.bf16.msra.mxu1 %v4516_v27  ;;  %v3850_v27 = vld [vmem:[%s4042_s5 + $0x168] ss:$52 sps:$4 sm:$0xff]  }
  0xec   : > { %3203 = vmatprep.subr.bf16.mxu1 %v4527_v30  ;;  %v3851_v30 = vld [vmem:[%s4042_s5 + $0x1c8] ss:$52 sps:$4 sm:$0xff]  }
  0xee   : > { %2258 = vmatmul.mubr.bf16.gmra.mrb[20].mxu1 %v3845_v50 }
  0xef   : > { %2622 = vmatmul.mubr.bf16.gmra.mrb[4].mxu0 %v3846_v52  ;;  %3219 = vmatpush1.bf16.msra.mxu1 %v4539_v36  ;;  %v3854_v36 = vld [vmem:[%s4042_s5 + $0x1d0] ss:$52 sps:$4 sm:$0xff]  }
  0xf0   : > { %2267 = vmatprep.mubr.bf16.mxu1 %v2948_v15  ;;  %3204 = vmatprep.subr.bf16.mxu1 %v4548_v40  ;;  %v3855_v40 = vld [vmem:[%s4042_s5 + $0x234] ss:$52 sps:$4 sm:$0xff]  }
  0xf1   : > { %2631 = vmatprep.mubr.bf16.mxu0 %v3870_v5 }
  0xf3   : > { %3220 = vmatpush1.bf16.msra.mxu1 %v4556_v46  ;;  %v269_v46 = vld [vmem:[%s4042_s5 + $0x298] sm:$0xff] }
  0xf4   : > { %3205 = vmatprep.subr.bf16.mxu1 %v4566_v48  ;;  %v3857_v48 = vld [vmem:[%s4042_s5 + $0x230] ss:$52 sps:$4 sm:$0xff]   ;;  %v2954_v54 = vcombine.high %v269_v46, %v269_v46  ;;  %v2953_v56 = vcombine.low %v269_v46, %v269_v46 }
  0xf6   : > { %2268 = vmatmul.mubr.bf16.gmra.mrb[24].mxu1 %v2947_v17 }
  0xf7   : > { %2632 = vmatmul.mubr.bf16.gmra.mrb[8].mxu0 %v3849_v20  ;;  %3221 = vmatpush1.bf16.msra.mxu1 %v4574_v53  ;;  %v3858_v53 = vld [vmem:[%s4042_s5 + $0x238] ss:$52 sps:$4 sm:$0xff]  }
  0xf8   : > { %2641 = vmatprep.mubr.bf16.mxu0 %v3870_v5  ;;  %3206 = vmatprep.subr.bf16.mxu1 %v4583_v58  ;;  %v3861_v58 = vld [vmem:[%s4042_s5 + $0x2a0] ss:$0 sps:$4 sm:$0xff]  }
  0xf9   : > { %2550 = vmatprep.mubr.bf16.mxu1 %v3853_v23 }
  0xfb   : > { %3222 = vmatpush1.bf16.msra.mxu1 %v4594_v0 }
  0xfc   : > { %3207 = vmatprep.subr.bf16.mxu1 %v4604_v2 }
  0xff   : > { %2642 = vmatmul.mubr.bf16.gmra.mrb[12].mxu0 %v3850_v27  ;;  %3223 = vmatpush1.bf16.msra.mxu1 %v4612_v6 }
 0x100   : > { %2651 = vmatprep.mubr.bf16.mxu0 %v3870_v5  ;;  %3208 = vmatprep.subr.bf16.mxu1 %v4622_v9 }
 0x103   : > { %3224 = vmatpush1.bf16.msra.mxu1 %v4631_v12 }
 0x106   : > { %2551 = vmatmul.mubr.bf16.vlgmr.msra.gmra.mrb[28].mxu1 %v3851_v30 }
 0x107   : > { %2652 = vmatmul.mubr.bf16.gmra.mrb[28].mxu0 %v3854_v36  ;;  %2560 = vmatprep.mubr.bf16.mxu1 %v3855_v40 }
 0x108   : > { %2661 = vmatprep.mubr.bf16.mxu0 %v3870_v5 }
 0x10e   : > { %2561 = vmatmul.mubr.bf16.gmra.mrb[32].mxu1 %v3857_v48 }
 0x10f   : > { %2662 = vmatmul.mubr.bf16.gmra.mrb[32].mxu0 %v3858_v53  ;;  %2570 = vmatprep.mubr.bf16.mxu1 %v2954_v54 }
 0x110   : > { %2671 = vmatprep.mubr.bf16.mxu0 %v3870_v5 }
 0x116   : > { %2571 = vmatmul.mubr.bf16.gmra.mrb[36].mxu1 %v2953_v56 }
 0x117   : > { %2672 = vmatmul.mubr.bf16.gmra.mrb[36].mxu0 %v3861_v58 }
 0x17a   : > { %v2451_v59 = vpop.f32.mrb[16].mxu0 }
 0x17b   : > { %v2453_v60 = vpop.f32.mrb[17].mxu0 }
 0x17c   : > { %v2455_v62 = vpop.f32.mrb[18].mxu0 }
 0x17d   : > { %v2457_v0 = vpop.f32.mrb[19].mxu0 }
 0x182   : > { %v4746_v1 = vpop.f32.mrb[20].mxu0 }
 0x183   : > { %v4748_v2 = vpop.f32.mrb[21].mxu0 }
 0x184   : > { %v4750_v4 = vpop.f32.mrb[22].mxu0 }
 0x185   : > { %v4752_v6 = vpop.f32.mrb[23].mxu0 }
 0x18a   : > { %v4754_v7 = vpop.f32.mrb[24].mxu0 }
 0x18b   : > { %v4756_v9 = vpop.f32.mrb[25].mxu0 }
 0x18c   : > { %v2475_v10 = vpop.f32.mrb[26].mxu0 }
 0x18d   : > { %v2476_v12 = vpop.f32.mrb[27].mxu0 }
 0x199   : > { %v2209_v13 = vpop.f32.mrb[0].mxu1 }
 0x19a   : > { %v2211_v14 = vpop.f32.mrb[1].mxu1  ;;  %v3225_v55 = vadd.f32 %v2209_v13, %v4775_v51 }
 0x19b   : > { %v2213_v16 = vpop.f32.mrb[2].mxu1  ;;  %v3227_v57 = vadd.f32 %v2211_v14, %v4779_v35 }
 0x19c   : > { %v2215_v18 = vpop.f32.mrb[3].mxu1  ;;  %v3229_v61 = vadd.f32 %v2213_v16, %v4775_v51 }
 0x19d   : > { %v3231_v44 = vadd.f32 %v2215_v18, %v4779_v35 }
 0x1a1   : > { %v2219_v19 = vpop.f32.mrb[4].mxu1 }
 0x1a2   : > { %v2221_v21 = vpop.f32.mrb[5].mxu1 }
 0x1a3   : > { %v2223_v22 = vpop.f32.mrb[6].mxu1  ;;  %v3235_v10 = vadd.f32 %v2221_v21, %v4779_v35 }
 0x1a4   : > { %v2225_v24 = vpop.f32.mrb[7].mxu1  ;;  %v3237_v14 = vadd.f32 %v2223_v22, %v4775_v51 }
 0x1a5   : > { %v3239_v39 = vadd.f32 %v2225_v24, %v4779_v35 }
 0x1a9   : > { %v4758_v25 = vpop.f32.mrb[8].mxu1 }
 0x1aa   : > { %v4760_v26 = vpop.f32.mrb[9].mxu1 }
 0x1ab   : > { %v4762_v37 = vpop.f32.mrb[10].mxu1 }
 0x1ac   : > { %v4764_v28 = vpop.f32.mrb[11].mxu1 }
 0x1b1   : > { %v4769_v31 = vpop.f32.mrb[12].mxu1 }
 0x1b2   : > { %v4771_v32 = vpop.f32.mrb[13].mxu1 }
 0x1b3   : > { %v4773_v49 = vpop.f32.mrb[14].mxu1 }
 0x1b4   : > { %v4777_v34 = vpop.f32.mrb[15].mxu1 }
 0x1b9   : > { %v2249_v38 = vpop.f32.mrb[16].mxu1 }
 0x1ba   : > { %v2613_v41 = vpop.f32.mrb[0].mxu0  ;;  %v3257_v63 = vadd.f32 %v2249_v38, %v4775_v51  ;;  %v2251_v3 = vpop.f32.mrb[17].mxu1 }
 0x1bb   : > { %v3226_v42 = vadd.f32 %v3225_v55, %v2613_v41  ;;  %v2615_v5 = vpop.f32.mrb[1].mxu0  ;;  %v3261_v47 = vadd.f32 %v2251_v3, %v4779_v35  ;;  %v2253_v11 = vpop.f32.mrb[18].mxu1 }
 0x1bc   : > { %v3228_v8 = vadd.f32 %v3227_v57, %v2615_v5  ;;  %v2617_v50 = vpop.f32.mrb[2].mxu0  ;;  %v3265_v15 = vadd.f32 %v2253_v11, %v4775_v51  ;;  %v2255_v20 = vpop.f32.mrb[19].mxu1  ;;  %v4789_v27 = vadd.f32 %v3257_v63, %v2451_v59  ;;  %v3233_v59 = vadd.f32 %v2219_v19, %v4775_v51 }
 0x1bd   : > { %v2680_v52 = vmax.f32 %v3226_v42, 0.0  ;;  %v3230_v17 = vadd.f32 %v3229_v61, %v2617_v50  ;;  %v2619_v23 = vpop.f32.mrb[3].mxu0  ;;  %v3269_v36 = vadd.f32 %v2255_v20, %v4779_v35  ;;  %v4792_v46 = vadd.f32 %v3261_v47, %v2453_v60 }
 0x1be   : > { %v2681_v30 = vmax.f32 %v3228_v8, 0.0  ;;  %v3232_v40 = vadd.f32 %v3231_v44, %v2619_v23  ;;  %v4799_v53 = vadd.f32 %v3265_v15, %v2455_v62  ;;  %v3243_v8 = vadd.f32 %v4760_v26, %v4779_v35 }
 0x1bf   : > { %v2682_v48 = vmax.f32 %v3230_v17, 0.0  ;;  %v4801_v58 = vadd.f32 %v3269_v36, %v2457_v0 }
 0x1c0   : > { %v3180_v54 = vpack.c.bf16 %v2681_v30, %v2680_v52  ;;  %v2683_v56 = vmax.f32 %v3232_v40, 0.0 }
 0x1c1   : > { %v2259_v12 = vpop.f32.mrb[20].mxu1 }
 0x1c2   : > { %2786 = vst [vmem:[%s4797_s22] sm:$0xff] %v3180_v54  ;;  %v3181_v60 = vpack.c.bf16 %v2683_v56, %v2682_v48  ;;  %v2623_v13 = vpop.f32.mrb[4].mxu0  ;;  %v3273_v16 = vadd.f32 %v2259_v12, %v4775_v51  ;;  %v2261_v62 = vpop.f32.mrb[21].mxu1 }
 0x1c3   : > { %v3234_v18 = vadd.f32 %v3233_v59, %v2623_v13  ;;  %v2625_v33 = vpop.f32.mrb[5].mxu0  ;;  %v3277_v0 = vadd.f32 %v2261_v62, %v4779_v35  ;;  %v2263_v19 = vpop.f32.mrb[22].mxu1  ;;  %v3249_v13 = vadd.f32 %v4769_v31, %v4775_v51 }
 0x1c4   : > { %2787 = vst [vmem:[%s4797_s22 + $0x8] sm:$0xff] %v3181_v60  ;;  %v3236_v29 = vadd.f32 %v3235_v10, %v2625_v33  ;;  %v2627_v43 = vpop.f32.mrb[6].mxu0  ;;  %v3281_v45 = vadd.f32 %v2263_v19, %v4775_v51  ;;  %v2265_v57 = vpop.f32.mrb[23].mxu1  ;;  %v4813_v38 = vadd.f32 %v3273_v16, %v4746_v1  ;;  %v3241_v1 = vadd.f32 %v4758_v25, %v4775_v51 }
 0x1c5   : > { %v2684_v21 = vmax.f32 %v3234_v18, 0.0  ;;  %v3238_v55 = vadd.f32 %v3237_v14, %v2627_v43  ;;  %v2629_v22 = vpop.f32.mrb[7].mxu0  ;;  %v3285_v61 = vadd.f32 %v2265_v57, %v4779_v35  ;;  %v4817_v63 = vadd.f32 %v3277_v0, %v4748_v2 }
 0x1c6   : > { %v2685_v41 = vmax.f32 %v3236_v29, 0.0  ;;  %v3240_v24 = vadd.f32 %v3239_v39, %v2629_v22  ;;  %v4820_v3 = vadd.f32 %v3281_v45, %v4750_v4  ;;  %v3245_v4 = vadd.f32 %v4762_v37, %v4775_v51 }
 0x1c7   : > { %v2686_v42 = vmax.f32 %v3238_v55, 0.0  ;;  %v4823_v47 = vadd.f32 %v3285_v61, %v4752_v6  ;;  %v3247_v6 = vadd.f32 %v4764_v28, %v4779_v35  ;;  %v3251_v14 = vadd.f32 %v4771_v32, %v4779_v35 }
 0x1c8   : > { %v3182_v5 = vpack.c.bf16 %v2685_v41, %v2684_v21  ;;  %v2687_v44 = vmax.f32 %v3240_v24, 0.0 }
 0x1c9   : > { %v2269_v2 = vpop.f32.mrb[24].mxu1 }
 0x1ca   : > { %2788 = vst [vmem:[%s4797_s22 + $0x10] sm:$0xff] %v3182_v5  ;;  %v3183_v11 = vpack.c.bf16 %v2687_v44, %v2686_v42  ;;  %v2633_v50 = vpop.f32.mrb[8].mxu0  ;;  %v3289_v52 = vadd.f32 %v2269_v2, %v4775_v51  ;;  %v2271_v17 = vpop.f32.mrb[25].mxu1 }
 0x1cb   : > { %v3242_v15 = vadd.f32 %v3241_v1, %v2633_v50  ;;  %v2635_v20 = vpop.f32.mrb[9].mxu0  ;;  %v3293_v25 = vadd.f32 %v2271_v17, %v4779_v35  ;;  %v2273_v26 = vpop.f32.mrb[26].mxu1 }
 0x1cc   : > { %2789 = vst [vmem:[%s4797_s22 + $0x18] sm:$0xff] %v3183_v11  ;;  %v3244_v23 = vadd.f32 %v3243_v8, %v2635_v20  ;;  %v2637_v30 = vpop.f32.mrb[10].mxu0  ;;  %v2274_v48 = vpop.f32.mrb[27].mxu1  ;;  %v4838_v37 = vadd.f32 %v3289_v52, %v4754_v7  ;;  %v3253_v7 = vadd.f32 %v4773_v49, %v4775_v51 }
 0x1cd   : > { %v2688_v36 = vmax.f32 %v3242_v15, 0.0  ;;  %v3246_v40 = vadd.f32 %v3245_v4, %v2637_v30  ;;  %v2639_v54 = vpop.f32.mrb[11].mxu0  ;;  %v4841_v10 = vadd.f32 %v3293_v25, %v4756_v9  ;;  %v3255_v9 = vadd.f32 %v4777_v34, %v4779_v35 }
 0x1ce   : > { %v2689_v56 = vmax.f32 %v3244_v23, 0.0  ;;  %v3248_v59 = vadd.f32 %v3247_v6, %v2639_v54 }
 0x1cf   : > { %v2690_v28 = vmax.f32 %v3246_v40, 0.0 }
 0x1d0   : > { %v3184_v60 = vpack.c.bf16 %v2689_v56, %v2688_v36  ;;  %v2691_v12 = vmax.f32 %v3248_v59, 0.0 }
 0x1d2   : > { %2790 = vst [vmem:[%s4797_s22 + $0x20] sm:$0xff] %v3184_v60  ;;  %v3185_v16 = vpack.c.bf16 %v2691_v12, %v2690_v28  ;;  %v2643_v18 = vpop.f32.mrb[12].mxu0 }
 0x1d3   : > { %v3250_v62 = vadd.f32 %v3249_v13, %v2643_v18  ;;  %v2645_v33 = vpop.f32.mrb[13].mxu0 }
 0x1d4   : > { %2791 = vst [vmem:[%s4797_s22 + $0x28] sm:$0xff] %v3185_v16  ;;  %v3252_v39 = vadd.f32 %v3251_v14, %v2645_v33  ;;  %v2647_v0 = vpop.f32.mrb[14].mxu0 }
 0x1d5   : > { %v2692_v31 = vmax.f32 %v3250_v62, 0.0  ;;  %v3254_v29 = vadd.f32 %v3253_v7, %v2647_v0  ;;  %v2649_v19 = vpop.f32.mrb[15].mxu0 }
 0x1d6   : > { %v2693_v32 = vmax.f32 %v3252_v39, 0.0  ;;  %v3256_v43 = vadd.f32 %v3255_v9, %v2649_v19 }
 0x1d7   : > { %v2694_v21 = vmax.f32 %v3254_v29, 0.0 }
 0x1d8   : > { %v3186_v45 = vpack.c.bf16 %v2693_v32, %v2692_v31  ;;  %v2695_v55 = vmax.f32 %v3256_v43, 0.0 }
 0x1d9   : > { %v2552_v49 = vpop.f32.mrb[28].mxu1 }
 0x1da   : > { %2792 = vst [vmem:[%s4797_s22 + $0x30] sm:$0xff] %v3186_v45  ;;  %v3187_v57 = vpack.c.bf16 %v2695_v55, %v2694_v21  ;;  %v2653_v51 = vpop.f32.mrb[28].mxu0  ;;  %v3259_v22 = vadd.f32 %v4789_v27, %v2552_v49  ;;  %v2554_v41 = vpop.f32.mrb[29].mxu1 }
 0x1db   : > { %v2655_v34 = vpop.f32.mrb[29].mxu0  ;;  %v3263_v35 = vadd.f32 %v4792_v46, %v2554_v41  ;;  %v2556_v61 = vpop.f32.mrb[30].mxu1 }
 0x1dc   : > { %2793 = vst [vmem:[%s4797_s22 + $0x38] sm:$0xff] %v3187_v57  ;;  %v2657_v24 = vpop.f32.mrb[30].mxu0  ;;  %v3260_v42 = vadd.f32 %v3259_v22, %v2653_v51  ;;  %v3267_v5 = vadd.f32 %v4799_v53, %v2556_v61  ;;  %v2558_v44 = vpop.f32.mrb[31].mxu1 }
 0x1dd   : > { %v2659_v1 = vpop.f32.mrb[31].mxu0  ;;  %v3264_v8 = vadd.f32 %v3263_v35, %v2655_v34  ;;  %v3271_v11 = vadd.f32 %v4801_v58, %v2558_v44 }
 0x1de   : > { %v2696_v2 = vmax.f32 %v3260_v42, 0.0  ;;  %v3268_v50 = vadd.f32 %v3267_v5, %v2657_v24 }
 0x1df   : > { %v2697_v4 = vmax.f32 %v3264_v8, 0.0  ;;  %v3272_v27 = vadd.f32 %v3271_v11, %v2659_v1 }
 0x1e0   : > { %v2698_v52 = vmax.f32 %v3268_v50, 0.0 }
 0x1e1   : > { %v3188_v15 = vpack.c.bf16 %v2697_v4, %v2696_v2  ;;  %v2699_v17 = vmax.f32 %v3272_v27, 0.0  ;;  %v2562_v46 = vpop.f32.mrb[32].mxu1 }
 0x1e2   : > { %v2663_v20 = vpop.f32.mrb[32].mxu0  ;;  %v3275_v6 = vadd.f32 %v4813_v38, %v2562_v46  ;;  %v2564_v25 = vpop.f32.mrb[33].mxu1 }
 0x1e3   : > { %v2665_v53 = vpop.f32.mrb[33].mxu0  ;;  %2794 = vst [vmem:[%s4797_s22 + $0x40] sm:$0xff] %v3188_v15  ;;  %v3189_v23 = vpack.c.bf16 %v2699_v17, %v2698_v52  ;;  %v3279_v26 = vadd.f32 %v4817_v63, %v2564_v25  ;;  %v2566_v30 = vpop.f32.mrb[34].mxu1 }
 0x1e4   : > { %v2667_v58 = vpop.f32.mrb[34].mxu0  ;;  %v3276_v36 = vadd.f32 %v3275_v6, %v2663_v20  ;;  %v3283_v40 = vadd.f32 %v4820_v3, %v2566_v30  ;;  %v2568_v48 = vpop.f32.mrb[35].mxu1 }
 0x1e5   : > { %v2669_v54 = vpop.f32.mrb[35].mxu0  ;;  %2795 = vst [vmem:[%s4797_s22 + $0x48] sm:$0xff] %v3189_v23  ;;  %v3280_v56 = vadd.f32 %v3279_v26, %v2665_v53  ;;  %v3287_v59 = vadd.f32 %v4823_v47, %v2568_v48 }
 0x1e6   : > { %v2700_v28 = vmax.f32 %v3276_v36, 0.0  ;;  %v3284_v38 = vadd.f32 %v3283_v40, %v2667_v58 }
 0x1e7   : > { %v2701_v60 = vmax.f32 %v3280_v56, 0.0  ;;  %v3288_v12 = vadd.f32 %v3287_v59, %v2669_v54 }
 0x1e8   : > { %v2702_v13 = vmax.f32 %v3284_v38, 0.0 }
 0x1e9   : > { %v3190_v14 = vpack.c.bf16 %v2701_v60, %v2700_v28  ;;  %v2703_v63 = vmax.f32 %v3288_v12, 0.0  ;;  %v2572_v16 = vpop.f32.mrb[36].mxu1 }
 0x1ea   : > { %v2673_v18 = vpop.f32.mrb[36].mxu0  ;;  %v3291_v7 = vadd.f32 %v4838_v37, %v2572_v16  ;;  %v2574_v3 = vpop.f32.mrb[37].mxu1 }
 0x1eb   : > { %v2675_v62 = vpop.f32.mrb[37].mxu0  ;;  %2796 = vst [vmem:[%s4797_s22 + $0x50] sm:$0xff] %v3190_v14  ;;  %v3191_v33 = vpack.c.bf16 %v2703_v63, %v2702_v13  ;;  %v3295_v9 = vadd.f32 %v4841_v10, %v2574_v3  ;;  %v2576_v47 = vpop.f32.mrb[38].mxu1 }
 0x1ec   : > { %v2677_v39 = vpop.f32.mrb[38].mxu0  ;;  %v3292_v0 = vadd.f32 %v3291_v7, %v2673_v18  ;;  %v2577_v31 = vpop.f32.mrb[39].mxu1 }
 0x1ed   : > { %v2678_v29 = vpop.f32.mrb[39].mxu0  ;;  %2797 = vst [vmem:[%s4797_s22 + $0x58] sm:$0xff] %v3191_v33  ;;  %v3296_v19 = vadd.f32 %v3295_v9, %v2675_v62 }
 0x1ee   : > { %v2704_v32 = vmax.f32 %v3292_v0, 0.0 }
 0x1ef   : > { %v2705_v43 = vmax.f32 %v3296_v19, 0.0 }
 0x1f1   : > { %v3192_v21 = vpack.c.bf16 %v2705_v43, %v2704_v32 }
 0x1f3   : > { %2798 = vst [vmem:[%s4797_s22 + $0x60] sm:$0xff] %v3192_v21 }
 0x1f4 PF: > { %s13_s12 = sadd.s32 1, %s3868_s12  }
 0x1f5   : > { %p10_p4 = scmp.ge.s32.totalorder %s13_s12, 4  }
 0x1f7   :  { %12 = sbr.rel (!%p10_p4) target bundleno = 1 (0x1), region = 62 }

// kernel: lpips_loss.9
= control target key start
LH: loop header
LB: loop body
LE: loop exit
PB: predicated region body
PF: predicated region fallthrough
CT: control target
= control target key end

     0   :  { %s4550_s12 = smov 0   ;;  %s5735_s0 = inlined_call_operand.vmem [shape: bf16[48,1792], index: 0, kind: input, shape index: {}]   ;;  %s5736_s1 = inlined_call_operand.vmem [shape: bf16[1792,384], index: 1, kind: input, shape index: {}]   ;;  %s5737_s2 = inlined_call_operand.vmem [shape: f32[1,384], index: 2, kind: input, shape index: {}]   ;;  %s5738_s3 = inlined_call_operand.vmem [shape: bf16[48,384], index: 3, kind: output, shape index: {}]  }
   0x1 LB: > { %s3376_s13 = sadd.s32 4294967295, %s4528_s12   ;;  %p3380_p0 = scmp.ge.s32.totalorder %s4528_s12, 1  ;;  %s4528_s12 = sphi %s4550_s12, %s13_s12  }
   0x2   : > { %p139_p1 = scmp.lt.s32.totalorder %s4528_s12, 3 }
   0x4   : > { %p140_p2 = pnand %p3380_p0, %p139_p1 }
   0x5   : > { %v4035_v0 = vld [vmem:[%s5736_s1 + $0x4] ss:$12 sps:$4 sm:$0xff] (!%p140_p2)   ;;  %v4039_v2 = vld [vmem:[%s5736_s1] ss:$12 sps:$4 sm:$0xff] (!%p140_p2)   ;;  %v4041_v4 = vld [vmem:[%s5736_s1 + $0x1c] ss:$12 sps:$4 sm:$0xff] (!%p140_p2)  }
   0x6   : > { %143 = sbr.rel (%p140_p2) target bundleno = 583 (0x247), region = 32  ;;  %v4037_v1 = vld [vmem:[%s5736_s1 + $0x304] ss:$12 sps:$4 sm:$0xff] (!%p140_p2)   ;;  %2577 = vmatprep.subr.bf16.mxu1 (!%p140_p2), %v4035_v0  ;;  %v4040_v3 = vld [vmem:[%s5736_s1 + $0x300] ss:$12 sps:$4 sm:$0xff] (!%p140_p2)  }
   0x7   : > { %2679 = vmatprep.subr.bf16.mxu0 (!%p140_p2), %v4037_v1  ;;  %2578 = vmatpush1.bf16.msra.mxu1 (!%p140_p2), %v4039_v2  ;;  %v4043_v5 = vld [vmem:[%s5736_s1 + $0x31c] ss:$12 sps:$4 sm:$0xff] (!%p140_p2)   ;;  %v4045_v6 = vld [vmem:[%s5736_s1 + $0x18] ss:$12 sps:$4 sm:$0xff] (!%p140_p2)   ;;  %v4047_v8 = vld [vmem:[%s5736_s1 + $0x34] ss:$12 sps:$4 sm:$0xff] (!%p140_p2)  }
   0x8   : > { %2680 = vmatpush1.bf16.msra.mxu0 (!%p140_p2), %v4040_v3  ;;  %2579 = vmatprep.subr.bf16.mxu1 (!%p140_p2), %v4041_v4  ;;  %v4046_v7 = vld [vmem:[%s5736_s1 + $0x318] ss:$12 sps:$4 sm:$0xff] (!%p140_p2)   ;;  %v4049_v9 = vld [vmem:[%s5736_s1 + $0x334] ss:$12 sps:$4 sm:$0xff] (!%p140_p2)   ;;  %v4051_v10 = vld [vmem:[%s5736_s1 + $0x30] ss:$12 sps:$4 sm:$0xff] (!%p140_p2)  }
   0x9   : > { %2681 = vmatprep.subr.bf16.mxu0 (!%p140_p2), %v4043_v5  ;;  %v4052_v11 = vld [vmem:[%s5736_s1 + $0x330] ss:$12 sps:$4 sm:$0xff] (!%p140_p2)   ;;  %v4053_v12 = vld [vmem:[%s5736_s1 + $0x4c] ss:$12 sps:$4 sm:$0xff] (!%p140_p2)   ;;  %v4057_v14 = vld [vmem:[%s5736_s1 + $0x48] ss:$12 sps:$4 sm:$0xff] (!%p140_p2)  }
   0xa   : > { %v4055_v13 = vld [vmem:[%s5736_s1 + $0x34c] ss:$12 sps:$4 sm:$0xff] (!%p140_p2)   ;;  %v4058_v15 = vld [vmem:[%s5736_s1 + $0x348] ss:$12 sps:$4 sm:$0xff] (!%p140_p2)   ;;  %v4059_v16 = vld [vmem:[%s5736_s1 + $0x64] ss:$12 sps:$4 sm:$0xff] (!%p140_p2)  }
   0xb   : > { %2580 = vmatpush1.bf16.msra.mxu1 (!%p140_p2), %v4045_v6  ;;  %v4061_v17 = vld [vmem:[%s5736_s1 + $0x364] ss:$12 sps:$4 sm:$0xff] (!%p140_p2)   ;;  %v4063_v18 = vld [vmem:[%s5736_s1 + $0x60] ss:$12 sps:$4 sm:$0xff] (!%p140_p2)   ;;  %v4065_v20 = vld [vmem:[%s5736_s1 + $0x7c] ss:$12 sps:$4 sm:$0xff] (!%p140_p2)  }
   0xc   : > { %2682 = vmatpush1.bf16.msra.mxu0 (!%p140_p2), %v4046_v7  ;;  %2581 = vmatprep.subr.bf16.mxu1 (!%p140_p2), %v4047_v8  ;;  %v4064_v19 = vld [vmem:[%s5736_s1 + $0x360] ss:$12 sps:$4 sm:$0xff] (!%p140_p2)   ;;  %v4067_v21 = vld [vmem:[%s5736_s1 + $0x37c] ss:$12 sps:$4 sm:$0xff] (!%p140_p2)   ;;  %v4069_v22 = vld [vmem:[%s5736_s1 + $0x78] ss:$12 sps:$4 sm:$0xff] (!%p140_p2)  }
   0xd   : > { %2683 = vmatprep.subr.bf16.mxu0 %v4049_v9  ;;  %v4070_v23 = vld [vmem:[%s5736_s1 + $0x378] ss:$12 sps:$4 sm:$0xff]   ;;  %v4071_v24 = vld [vmem:[%s5736_s1 + $0x94] ss:$12 sps:$4 sm:$0xff]   ;;  %v4075_v26 = vld [vmem:[%s5736_s1 + $0x90] ss:$12 sps:$4 sm:$0xff]  }
   0xe   : > { %v4073_v25 = vld [vmem:[%s5736_s1 + $0x394] ss:$12 sps:$4 sm:$0xff]   ;;  %v4076_v27 = vld [vmem:[%s5736_s1 + $0x390] ss:$12 sps:$4 sm:$0xff]   ;;  %v4077_v28 = vld [vmem:[%s5736_s1 + $0xac] ss:$12 sps:$4 sm:$0xff]  }
   0xf   : > { %2582 = vmatpush1.bf16.msra.mxu1 %v4051_v10  ;;  %s165_s22 = smul.u32 3, %s3376_s13  ;;  %v4079_v29 = vld [vmem:[%s5736_s1 + $0x3ac] ss:$12 sps:$4 sm:$0xff]   ;;  %v4081_v30 = vld [vmem:[%s5736_s1 + $0xa8] ss:$12 sps:$4 sm:$0xff]  }
  0x10   : > { %2684 = vmatpush1.bf16.msra.mxu0 %v4052_v11  ;;  %2583 = vmatprep.subr.bf16.mxu1 %v4053_v12  ;;  %v4082_v31 = vld [vmem:[%s5736_s1 + $0x3a8] ss:$12 sps:$4 sm:$0xff]   ;;  %v4083_v32 = vld [vmem:[%s5736_s1 + $0xc4] ss:$12 sps:$4 sm:$0xff]   ;;  %v4087_v34 = vld [vmem:[%s5736_s1 + $0xc0] ss:$12 sps:$4 sm:$0xff]  }
  0x11   : > { %2685 = vmatprep.subr.bf16.mxu0 %v4055_v13  ;;  %p166_p3 = scmp.lt.s32.totalorder %s165_s22, 5  ;;  %v4085_v33 = vld [vmem:[%s5736_s1 + $0x3c4] ss:$12 sps:$4 sm:$0xff]   ;;  %v4088_v35 = vld [vmem:[%s5736_s1 + $0x3c0] ss:$12 sps:$4 sm:$0xff]  }
  0x12   : > { %v4089_v36 = vld [vmem:[%s5736_s1 + $0xdc] ss:$12 sps:$4 sm:$0xff]   ;;  %v4093_v38 = vld [vmem:[%s5736_s1 + $0xd8] ss:$12 sps:$4 sm:$0xff]   ;;  %v4095_v40 = vld [vmem:[%s5736_s1 + $0xf4] ss:$12 sps:$4 sm:$0xff]  }
  0x13   : > { %2584 = vmatpush1.bf16.msra.mxu1 %v4057_v14  ;;  %s5740_s22 = smov (!%p166_p3, %s165_s22), 5  ;;  %v4091_v37 = vld [vmem:[%s5736_s1 + $0x3dc] ss:$12 sps:$4 sm:$0xff]   ;;  %v4094_v39 = vld [vmem:[%s5736_s1 + $0x3d8] ss:$12 sps:$4 sm:$0xff]  }
  0x14   : > { %2686 = vmatpush1.bf16.msra.mxu0 %v4058_v15  ;;  %2585 = vmatprep.subr.bf16.mxu1 %v4059_v16  ;;  %s4025_s21 = smul.u32 56, %s5740_s22  ;;  %v4097_v41 = vld [vmem:[%s5736_s1 + $0x3f4] ss:$12 sps:$4 sm:$0xff]   ;;  %v4099_v42 = vld [vmem:[%s5736_s1 + $0xf0] ss:$12 sps:$4 sm:$0xff]  }
  0x15   : > { %2687 = vmatprep.subr.bf16.mxu0 %v4061_v17  ;;  %v4100_v43 = vld [vmem:[%s5736_s1 + $0x3f0] ss:$12 sps:$4 sm:$0xff]   ;;  %v4101_v44 = vld [vmem:[%s5736_s1 + $0x10c] ss:$12 sps:$4 sm:$0xff]   ;;  %v4105_v46 = vld [vmem:[%s5736_s1 + $0x108] ss:$12 sps:$4 sm:$0xff]  }
  0x16   : > { %s4701_s5 = scalar_lea.vmem %s5735_s0, %s4025_s21  ;;  %v4103_v45 = vld [vmem:[%s5736_s1 + $0x40c] ss:$12 sps:$4 sm:$0xff]   ;;  %v4106_v47 = vld [vmem:[%s5736_s1 + $0x408] ss:$12 sps:$4 sm:$0xff]   ;;  %v4107_v49 = vld [vmem:[%s5736_s1 + $0x124] ss:$12 sps:$4 sm:$0xff]  }
  0x17   : > { %2586 = vmatpush1.bf16.msra.mxu1 %v4063_v18  ;;  %v4713_v48 = vld [vmem:[%s4701_s5 + $0x4] ss:$56 sps:$4 sm:$0xff]   ;;  %v4139_v51 = vld [vmem:[%s4701_s5 + $0x14] ss:$56 sps:$4 sm:$0xff]   ;;  %v4772_v4 = vld [vmem:[%s4701_s5] ss:$56 sps:$4 sm:$0xff]  }
  0x18   : > { %2688 = vmatpush1.bf16.msra.mxu0 %v4064_v19  ;;  %2587 = vmatprep.subr.bf16.mxu1 %v4065_v20  ;;  %v4109_v50 = vld [vmem:[%s5736_s1 + $0x424] ss:$12 sps:$4 sm:$0xff]   ;;  %v4111_v52 = vld [vmem:[%s5736_s1 + $0x120] ss:$12 sps:$4 sm:$0xff]   ;;  %v4113_v54 = vld [vmem:[%s5736_s1 + $0x13c] ss:$12 sps:$4 sm:$0xff]  }
  0x19   : > { %2689 = vmatprep.subr.bf16.mxu0 %v4067_v21  ;;  %2609 = vmatprep.mubr.bf16.mxu1 %v4713_v48  ;;  %v4112_v53 = vld [vmem:[%s5736_s1 + $0x420] ss:$12 sps:$4 sm:$0xff]   ;;  %v4115_v55 = vld [vmem:[%s5736_s1 + $0x43c] ss:$12 sps:$4 sm:$0xff]   ;;  %v4117_v56 = vld [vmem:[%s5736_s1 + $0x138] ss:$12 sps:$4 sm:$0xff]  }
  0x1a   : > { %2711 = vmatprep.mubr.bf16.mxu0 %v4139_v51  ;;  %v4118_v57 = vld [vmem:[%s5736_s1 + $0x438] ss:$12 sps:$4 sm:$0xff]   ;;  %v4119_v58 = vld [vmem:[%s5736_s1 + $0x154] ss:$12 sps:$4 sm:$0xff]   ;;  %v4123_v60 = vld [vmem:[%s5736_s1 + $0x150] ss:$12 sps:$4 sm:$0xff]  }
  0x1b   : > { %2588 = vmatpush1.bf16.msra.mxu1 %v4069_v22  ;;  %v4121_v59 = vld [vmem:[%s5736_s1 + $0x454] ss:$12 sps:$4 sm:$0xff]   ;;  %v4124_v61 = vld [vmem:[%s5736_s1 + $0x450] ss:$12 sps:$4 sm:$0xff]   ;;  %v4125_v62 = vld [vmem:[%s5736_s1 + $0x16c] ss:$12 sps:$4 sm:$0xff]  }
  0x1c   : > { %2690 = vmatpush1.bf16.msra.mxu0 %v4070_v23  ;;  %2589 = vmatprep.subr.bf16.mxu1 %v4071_v24  ;;  %v4127_v63 = vld [vmem:[%s5736_s1 + $0x46c] ss:$12 sps:$4 sm:$0xff]   ;;  %v4129_v0 = vld [vmem:[%s5736_s1 + $0x168] ss:$12 sps:$4 sm:$0xff]   ;;  %v4136_v2 = vld [vmem:[%s5736_s1 + $0x184] ss:$12 sps:$4 sm:$0xff]  }
  0x1d   : > { %2691 = vmatprep.subr.bf16.mxu0 %v4073_v25  ;;  %v4130_v1 = vld [vmem:[%s5736_s1 + $0x468] ss:$12 sps:$4 sm:$0xff]   ;;  %v4142_v3 = vld [vmem:[%s5736_s1 + $0x484] ss:$12 sps:$4 sm:$0xff]   ;;  %v4134_v5 = vld [vmem:[%s5736_s1 + $0x180] ss:$12 sps:$4 sm:$0xff]  }
  0x1e   : > { %v4137_v6 = vld [vmem:[%s4701_s5 + $0x10] ss:$56 sps:$4 sm:$0xff]   ;;  %v4140_v7 = vld [vmem:[%s5736_s1 + $0x480] ss:$12 sps:$4 sm:$0xff]   ;;  %v4143_v10 = vld [vmem:[%s5736_s1 + $0x198] ss:$12 sps:$4 sm:$0xff]  }
  0x1f   : > { %2590 = vmatpush1.bf16.msra.mxu1 %v4075_v26  ;;  %v4145_v8 = vld [vmem:[%s5736_s1 + $0x19c] ss:$12 sps:$4 sm:$0xff]   ;;  %v4146_v11 = vld [vmem:[%s5736_s1 + $0x498] ss:$12 sps:$4 sm:$0xff]   ;;  %v4151_v12 = vld [vmem:[%s5736_s1 + $0x1b4] ss:$12 sps:$4 sm:$0xff]  }
  0x20   : > { %2692 = vmatpush1.bf16.msra.mxu0 %v4076_v27  ;;  %2591 = vmatprep.subr.bf16.mxu1 %v4077_v28  ;;  %v4148_v9 = vld [vmem:[%s5736_s1 + $0x49c] ss:$12 sps:$4 sm:$0xff]   ;;  %v4154_v13 = vld [vmem:[%s5736_s1 + $0x4b4] ss:$12 sps:$4 sm:$0xff]   ;;  %v4157_v16 = vld [vmem:[%s5736_s1 + $0x1cc] ss:$12 sps:$4 sm:$0xff]  }
  0x21   : > { %2693 = vmatprep.subr.bf16.mxu0 %v4079_v29  ;;  %v4149_v14 = vld [vmem:[%s5736_s1 + $0x1b0] ss:$12 sps:$4 sm:$0xff]   ;;  %v4160_v17 = vld [vmem:[%s5736_s1 + $0x4cc] ss:$12 sps:$4 sm:$0xff]   ;;  %v4155_v18 = vld [vmem:[%s5736_s1 + $0x1c8] ss:$12 sps:$4 sm:$0xff]  }
  0x22   : > { %v4152_v15 = vld [vmem:[%s5736_s1 + $0x4b0] ss:$12 sps:$4 sm:$0xff]   ;;  %v4158_v19 = vld [vmem:[%s5736_s1 + $0x4c8] ss:$12 sps:$4 sm:$0xff]   ;;  %v4161_v22 = vld [vmem:[%s5736_s1 + $0x1e0] ss:$12 sps:$4 sm:$0xff]  }
  0x23   : > { %2592 = vmatpush1.bf16.msra.mxu1 %v4081_v30  ;;  %v4163_v20 = vld [vmem:[%s5736_s1 + $0x1e4] ss:$12 sps:$4 sm:$0xff]   ;;  %v4164_v23 = vld [vmem:[%s5736_s1 + $0x4e0] ss:$12 sps:$4 sm:$0xff]   ;;  %v4169_v24 = vld [vmem:[%s5736_s1 + $0x1fc] ss:$12 sps:$4 sm:$0xff]  }
  0x24   : > { %2694 = vmatpush1.bf16.msra.mxu0 %v4082_v31  ;;  %2593 = vmatprep.subr.bf16.mxu1 %v4083_v32  ;;  %v4166_v21 = vld [vmem:[%s5736_s1 + $0x4e4] ss:$12 sps:$4 sm:$0xff]   ;;  %v4172_v25 = vld [vmem:[%s5736_s1 + $0x4fc] ss:$12 sps:$4 sm:$0xff]   ;;  %v4175_v32 = vld [vmem:[%s5736_s1 + $0x214] ss:$12 sps:$4 sm:$0xff]  }
  0x25   : > { %2695 = vmatprep.subr.bf16.mxu0 %v4085_v33  ;;  %v194_v26 = vld [vmem:[%s4701_s5 + $0x70] sm:$0xff]  ;;  %v4167_v27 = vld [vmem:[%s5736_s1 + $0x1f8] ss:$12 sps:$4 sm:$0xff]   ;;  %s4026_s14 = smul.u32 12, %s5740_s22 }
  0x26   : > { %v4840_v28 = vcombine.high %v194_v26, %v194_v26  ;;  %v4842_v29 = vcombine.low %v194_v26, %v194_v26  ;;  %v4170_v30 = vld [vmem:[%s5736_s1 + $0x4f8] ss:$12 sps:$4 sm:$0xff]   ;;  %v4178_v33 = vld [vmem:[%s5736_s1 + $0x514] ss:$12 sps:$4 sm:$0xff]  }
  0x27   : > { %2594 = vmatpush1.bf16.msra.mxu1 %v4087_v34  ;;  %v196_v31 = vld [vmem:[%s4701_s5 + $0x80] sm:$0xff]  ;;  %s5722_s22 = scalar_lea.vmem %s5738_s3, %s4026_s14 }
  0x28   : > { %2696 = vmatpush1.bf16.msra.mxu0 %v4088_v35  ;;  %2595 = vmatprep.subr.bf16.mxu1 %v4089_v36  ;;  %v4854_v34 = vcombine.high %v196_v31, %v196_v31  ;;  %v4857_v35 = vcombine.low %v196_v31, %v196_v31  ;;  %v4173_v36 = vld [vmem:[%s5736_s1 + $0x210] ss:$12 sps:$4 sm:$0xff]   ;;  %v4191_v51 = vld [vmem:[%s5736_s1 + $0x258] ss:$12 sps:$4 sm:$0xff]   ;;  %v4257_v26 = vld [vmem:[%s5736_s1 + $0x634] ss:$12 sps:$4 sm:$0xff]  }
  0x29   : > { %2697 = vmatprep.subr.bf16.mxu0 %v4091_v37  ;;  %v4176_v37 = vld [vmem:[%s5736_s1 + $0x510] ss:$12 sps:$4 sm:$0xff]  }
  0x2b   : > { %2596 = vmatpush1.bf16.msra.mxu1 %v4093_v38  ;;  %v4181_v38 = vld [vmem:[%s5736_s1 + $0x22c] ss:$12 sps:$4 sm:$0xff]  }
  0x2c   : > { %2698 = vmatpush1.bf16.msra.mxu0 %v4094_v39  ;;  %2597 = vmatprep.subr.bf16.mxu1 %v4095_v40  ;;  %v4184_v39 = vld [vmem:[%s5736_s1 + $0x52c] ss:$12 sps:$4 sm:$0xff]  }
  0x2d   : > { %2699 = vmatprep.subr.bf16.mxu0 %v4097_v41  ;;  %v4874_v40 = vld [vmem:[%s4701_s5 + $0xc] ss:$56 sps:$4 sm:$0xff]   ;;  %v4179_v41 = vld [vmem:[%s5736_s1 + $0x228] ss:$12 sps:$4 sm:$0xff]  }
  0x2f   : > { %2598 = vmatpush1.bf16.msra.mxu1 %v4099_v42  ;;  %v4242_v42 = vld [vmem:[%s4701_s5 + $0x1c] ss:$56 sps:$4 sm:$0xff]  }
  0x30   : > { %2700 = vmatpush1.bf16.msra.mxu0 %v4100_v43  ;;  %2599 = vmatprep.subr.bf16.mxu1 %v4101_v44  ;;  %v4182_v43 = vld [vmem:[%s5736_s1 + $0x528] ss:$12 sps:$4 sm:$0xff]   ;;  %v4187_v44 = vld [vmem:[%s5736_s1 + $0x244] ss:$12 sps:$4 sm:$0xff]  }
  0x31   : > { %2701 = vmatprep.subr.bf16.mxu0 %v4103_v45  ;;  %v4190_v45 = vld [vmem:[%s5736_s1 + $0x544] ss:$12 sps:$4 sm:$0xff]  }
  0x33   : > { %2600 = vmatpush1.bf16.msra.mxu1 %v4105_v46  ;;  %v4185_v46 = vld [vmem:[%s5736_s1 + $0x240] ss:$12 sps:$4 sm:$0xff]  }
  0x34   : > { %2702 = vmatpush1.bf16.msra.mxu0 %v4106_v47  ;;  %2601 = vmatprep.subr.bf16.mxu1 %v4107_v49  ;;  %v4188_v47 = vld [vmem:[%s5736_s1 + $0x540] ss:$12 sps:$4 sm:$0xff]   ;;  %v4193_v49 = vld [vmem:[%s5736_s1 + $0x25c] ss:$12 sps:$4 sm:$0xff]  }
  0x35   : > { %2703 = vmatprep.subr.bf16.mxu0 %v4109_v50  ;;  %v4196_v50 = vld [vmem:[%s5736_s1 + $0x55c] ss:$12 sps:$4 sm:$0xff]  }
  0x37   : > { %2602 = vmatpush1.bf16.msra.mxu1 %v4111_v52  ;;  %v4194_v52 = vld [vmem:[%s5736_s1 + $0x558] ss:$12 sps:$4 sm:$0xff]  }
  0x38   : > { %2704 = vmatpush1.bf16.msra.mxu0 %v4112_v53  ;;  %2603 = vmatprep.subr.bf16.mxu1 %v4113_v54  ;;  %v4199_v53 = vld [vmem:[%s5736_s1 + $0x274] ss:$12 sps:$4 sm:$0xff]  }
  0x39   : > { %2705 = vmatprep.subr.bf16.mxu0 %v4115_v55  ;;  %v4202_v54 = vld [vmem:[%s5736_s1 + $0x574] ss:$12 sps:$4 sm:$0xff]   ;;  %v4197_v55 = vld [vmem:[%s5736_s1 + $0x270] ss:$12 sps:$4 sm:$0xff]  }
  0x3b   : > { %2604 = vmatpush1.bf16.msra.mxu1 %v4117_v56  ;;  %v4200_v56 = vld [vmem:[%s5736_s1 + $0x570] ss:$12 sps:$4 sm:$0xff]  }
  0x3c   : > { %2706 = vmatpush1.bf16.msra.mxu0 %v4118_v57  ;;  %2605 = vmatprep.subr.bf16.mxu1 %v4119_v58  ;;  %v4205_v57 = vld [vmem:[%s5736_s1 + $0x28c] ss:$12 sps:$4 sm:$0xff]  }
  0x3d   : > { %2707 = vmatprep.subr.bf16.mxu0 %v4121_v59  ;;  %v4208_v58 = vld [vmem:[%s5736_s1 + $0x58c] ss:$12 sps:$4 sm:$0xff]   ;;  %v4203_v59 = vld [vmem:[%s5736_s1 + $0x288] ss:$12 sps:$4 sm:$0xff]  }
  0x3f   : > { %2606 = vmatpush1.bf16.msra.mxu1 %v4123_v60  ;;  %v4206_v60 = vld [vmem:[%s5736_s1 + $0x588] ss:$12 sps:$4 sm:$0xff]  }
  0x40   : > { %2708 = vmatpush1.bf16.msra.mxu0 %v4124_v61  ;;  %2607 = vmatprep.subr.bf16.mxu1 %v4125_v62  ;;  %v4211_v61 = vld [vmem:[%s5736_s1 + $0x2a4] ss:$12 sps:$4 sm:$0xff]  }
  0x41   : > { %2709 = vmatprep.subr.bf16.mxu0 %v4127_v63  ;;  %v4214_v62 = vld [vmem:[%s5736_s1 + $0x5a4] ss:$12 sps:$4 sm:$0xff]   ;;  %v4209_v63 = vld [vmem:[%s5736_s1 + $0x2a0] ss:$12 sps:$4 sm:$0xff]  }
  0x43   : > { %2608 = vmatpush1.bf16.msra.mxu1 %v4129_v0  ;;  %v4212_v0 = vld [vmem:[%s5736_s1 + $0x5a0] ss:$12 sps:$4 sm:$0xff]  }
  0x44   : > { %2710 = vmatpush1.bf16.msra.mxu0 %v4130_v1  ;;  %2628 = vmatprep.subr.bf16.mxu1 %v4136_v2  ;;  %v4217_v1 = vld [vmem:[%s5736_s1 + $0x2bc] ss:$12 sps:$4 sm:$0xff]  }
  0x45   : > { %2730 = vmatprep.subr.bf16.mxu0 %v4142_v3  ;;  %v4220_v2 = vld [vmem:[%s5736_s1 + $0x5bc] ss:$12 sps:$4 sm:$0xff]   ;;  %v4215_v3 = vld [vmem:[%s5736_s1 + $0x2b8] ss:$12 sps:$4 sm:$0xff]  }
  0x46   : > { %2610 = vmatmul.mubr.bf16.vlgmr.msra.gmra.mrb[0].mxu1 %v4772_v4 }
  0x47   : > { %2712 = vmatmul.mubr.bf16.vlgmr.msra.gmra.mrb[0].mxu0 %v4137_v6  ;;  %2629 = vmatpush1.bf16.msra.mxu1 %v4134_v5  ;;  %v4218_v5 = vld [vmem:[%s5736_s1 + $0x5b8] ss:$12 sps:$4 sm:$0xff]   ;;  %v4225_v6 = vld [vmem:[%s5736_s1 + $0x2d4] ss:$12 sps:$4 sm:$0xff]  }
  0x48   : > { %2731 = vmatpush1.bf16.msra.mxu0 %v4140_v7  ;;  %2630 = vmatprep.subr.bf16.mxu1 %v4145_v8  ;;  %v4229_v7 = vld [vmem:[%s5736_s1 + $0x5d4] ss:$12 sps:$4 sm:$0xff]   ;;  %v4223_v8 = vld [vmem:[%s5736_s1 + $0x2d0] ss:$12 sps:$4 sm:$0xff]  }
  0x49   : > { %2732 = vmatprep.subr.bf16.mxu0 %v4148_v9  ;;  %2619 = vmatprep.mubr.bf16.mxu1 %v4840_v28  ;;  %v4227_v9 = vld [vmem:[%s5736_s1 + $0x5d0] ss:$12 sps:$4 sm:$0xff]  }
  0x4a   : > { %2721 = vmatprep.mubr.bf16.mxu0 %v4854_v34 }
  0x4b   : > { %2631 = vmatpush1.bf16.msra.mxu1 %v4143_v10  ;;  %v4233_v10 = vld [vmem:[%s5736_s1 + $0x2ec] ss:$12 sps:$4 sm:$0xff]  }
  0x4c   : > { %2733 = vmatpush1.bf16.msra.mxu0 %v4146_v11  ;;  %2632 = vmatprep.subr.bf16.mxu1 %v4151_v12  ;;  %v4236_v11 = vld [vmem:[%s5736_s1 + $0x5ec] ss:$12 sps:$4 sm:$0xff]   ;;  %v4231_v12 = vld [vmem:[%s5736_s1 + $0x2e8] ss:$12 sps:$4 sm:$0xff]  }
  0x4d   : > { %2734 = vmatprep.subr.bf16.mxu0 %v4154_v13  ;;  %v4234_v13 = vld [vmem:[%s5736_s1 + $0x5e8] ss:$12 sps:$4 sm:$0xff]  }
  0x4e   : > { %2620 = vmatmul.mubr.bf16.gmra.mrb[4].mxu1 %v4842_v29 }
  0x4f   : > { %2633 = vmatpush1.bf16.msra.mxu1 %v4149_v14  ;;  %2722 = vmatmul.mubr.bf16.gmra.mrb[4].mxu0 %v4857_v35  ;;  %v4245_v14 = vld [vmem:[%s5736_s1 + $0x604] ss:$12 sps:$4 sm:$0xff]  }
  0x50   : > { %2735 = vmatpush1.bf16.msra.mxu0 %v4152_v15  ;;  %2634 = vmatprep.subr.bf16.mxu1 %v4157_v16  ;;  %v4985_v15 = vld [vmem:[%s4701_s5 + $0x8] ss:$56 sps:$4 sm:$0xff]   ;;  %v4240_v16 = vld [vmem:[%s4701_s5 + $0x18] ss:$56 sps:$4 sm:$0xff]  }
  0x51   : > { %2736 = vmatprep.subr.bf16.mxu0 %v4160_v17  ;;  %2660 = vmatprep.mubr.bf16.mxu1 %v4874_v40  ;;  %v4246_v17 = vld [vmem:[%s5736_s1 + $0xc8] ss:$12 sps:$4 sm:$0xff]  }
  0x52   : > { %2762 = vmatprep.mubr.bf16.mxu0 %v4242_v42 }
  0x53   : > { %2635 = vmatpush1.bf16.msra.mxu1 %v4155_v18  ;;  %v4243_v18 = vld [vmem:[%s5736_s1 + $0x600] ss:$12 sps:$4 sm:$0xff]  }
  0x54   : > { %2737 = vmatpush1.bf16.msra.mxu0 %v4158_v19  ;;  %2636 = vmatprep.subr.bf16.mxu1 %v4163_v20  ;;  %v195_v19 = vld [vmem:[%s4701_s5 + $0x78] sm:$0xff]  ;;  %v4247_v20 = vld [vmem:[%s5736_s1 + $0x8] ss:$12 sps:$4 sm:$0xff]  }
  0x55   : > { %2738 = vmatprep.subr.bf16.mxu0 %v4166_v21  ;;  %v4250_v21 = vld [vmem:[%s5736_s1 + $0x61c] ss:$12 sps:$4 sm:$0xff]   ;;  %v5023_v31 = vcombine.low %v195_v19, %v195_v19 }
  0x57   : > { %2637 = vmatpush1.bf16.msra.mxu1 %v4161_v22  ;;  %v4251_v22 = vld [vmem:[%s5736_s1 + $0xe0] ss:$12 sps:$4 sm:$0xff]  }
  0x58   : > { %2739 = vmatpush1.bf16.msra.mxu0 %v4164_v23  ;;  %2638 = vmatprep.subr.bf16.mxu1 %v4169_v24  ;;  %v5004_v23 = vcombine.high %v195_v19, %v195_v19  ;;  %v4248_v24 = vld [vmem:[%s5736_s1 + $0x618] ss:$12 sps:$4 sm:$0xff]  }
  0x59   : > { %2740 = vmatprep.subr.bf16.mxu0 %v4172_v25  ;;  %v4252_v25 = vld [vmem:[%s5736_s1 + $0x20] ss:$12 sps:$4 sm:$0xff]   ;;  %v4319_v19 = vld [vmem:[%s5736_s1 + $0x2d8] ss:$12 sps:$4 sm:$0xff]  }
  0x5b   : > { %2639 = vmatpush1.bf16.msra.mxu1 %v4167_v27  ;;  %v4258_v27 = vld [vmem:[%s5736_s1 + $0xf8] ss:$12 sps:$4 sm:$0xff]  }
  0x5c   : > { %2741 = vmatpush1.bf16.msra.mxu0 %v4170_v30  ;;  %2640 = vmatprep.subr.bf16.mxu1 %v4175_v32  ;;  %v4255_v30 = vld [vmem:[%s5736_s1 + $0x630] ss:$12 sps:$4 sm:$0xff]   ;;  %v4259_v32 = vld [vmem:[%s5736_s1 + $0x38] ss:$12 sps:$4 sm:$0xff]  }
  0x5d   : > { %2742 = vmatprep.subr.bf16.mxu0 %v4178_v33  ;;  %v4262_v33 = vld [vmem:[%s5736_s1 + $0x64c] ss:$12 sps:$4 sm:$0xff]  }
  0x5f   : > { %2641 = vmatpush1.bf16.msra.mxu1 %v4173_v36  ;;  %v4263_v36 = vld [vmem:[%s5736_s1 + $0x110] ss:$12 sps:$4 sm:$0xff]  }
  0x60   : > { %2743 = vmatpush1.bf16.msra.mxu0 %v4176_v37  ;;  %2642 = vmatprep.subr.bf16.mxu1 %v4181_v38  ;;  %v197_v37 = vld [vmem:[%s4701_s5 + $0x88] sm:$0xff] }
  0x61   : > { %2744 = vmatprep.subr.bf16.mxu0 %v4184_v39  ;;  %v4260_v38 = vld [vmem:[%s5736_s1 + $0x648] ss:$12 sps:$4 sm:$0xff]   ;;  %v4264_v39 = vld [vmem:[%s5736_s1 + $0x50] ss:$12 sps:$4 sm:$0xff]   ;;  %v5044_v42 = vcombine.low %v197_v37, %v197_v37 }
  0x63   : > { %2643 = vmatpush1.bf16.msra.mxu1 %v4179_v41  ;;  %v5042_v41 = vcombine.high %v197_v37, %v197_v37  ;;  %v4337_v37 = vld [vmem:[%s5736_s1 + $0x79c] ss:$12 sps:$4 sm:$0xff]  }
  0x64   : > { %2745 = vmatpush1.bf16.msra.mxu0 %v4182_v43  ;;  %2644 = vmatprep.subr.bf16.mxu1 %v4187_v44  ;;  %v4267_v43 = vld [vmem:[%s5736_s1 + $0x664] ss:$12 sps:$4 sm:$0xff]   ;;  %v4268_v44 = vld [vmem:[%s5736_s1 + $0x128] ss:$12 sps:$4 sm:$0xff]  }
  0x65   : > { %2746 = vmatprep.subr.bf16.mxu0 %v4190_v45  ;;  %v4265_v45 = vld [vmem:[%s5736_s1 + $0x660] ss:$12 sps:$4 sm:$0xff]  }
  0x67   : > { %2645 = vmatpush1.bf16.msra.mxu1 %v4185_v46  ;;  %v4269_v46 = vld [vmem:[%s5736_s1 + $0x68] ss:$12 sps:$4 sm:$0xff]  }
  0x68   : > { %2747 = vmatpush1.bf16.msra.mxu0 %v4188_v47  ;;  %2646 = vmatprep.subr.bf16.mxu1 %v4193_v49  ;;  %v4272_v47 = vld [vmem:[%s5736_s1 + $0x67c] ss:$12 sps:$4 sm:$0xff]  }
  0x69   : > { %2748 = vmatprep.subr.bf16.mxu0 %v4196_v50  ;;  %v5068_v49 = vld [vmem:[%s4701_s5 + $0x24] ss:$56 sps:$4 sm:$0xff]  }
  0x6a   : > { %v4270_v50 = vld [vmem:[%s5736_s1 + $0x678] ss:$12 sps:$4 sm:$0xff]  }
  0x6b   : > { %2647 = vmatpush1.bf16.msra.mxu1 %v4191_v51  ;;  %v4274_v51 = vld [vmem:[%s5736_s1 + $0x80] ss:$12 sps:$4 sm:$0xff]  }
  0x6c   : > { %2749 = vmatpush1.bf16.msra.mxu0 %v4194_v52  ;;  %2648 = vmatprep.subr.bf16.mxu1 %v4199_v53  ;;  %v4277_v52 = vld [vmem:[%s5736_s1 + $0x694] ss:$12 sps:$4 sm:$0xff]   ;;  %v4278_v53 = vld [vmem:[%s5736_s1 + $0x158] ss:$12 sps:$4 sm:$0xff]  }
  0x6d   : > { %2750 = vmatprep.subr.bf16.mxu0 %v4202_v54  ;;  %v4275_v54 = vld [vmem:[%s5736_s1 + $0x690] ss:$12 sps:$4 sm:$0xff]  }
  0x6f   : > { %2649 = vmatpush1.bf16.msra.mxu1 %v4197_v55  ;;  %v4279_v55 = vld [vmem:[%s5736_s1 + $0x98] ss:$12 sps:$4 sm:$0xff]  }
  0x70   : > { %2751 = vmatpush1.bf16.msra.mxu0 %v4200_v56  ;;  %2650 = vmatprep.subr.bf16.mxu1 %v4205_v57  ;;  %v4282_v56 = vld [vmem:[%s5736_s1 + $0x6ac] ss:$12 sps:$4 sm:$0xff]   ;;  %v4283_v57 = vld [vmem:[%s5736_s1 + $0x170] ss:$12 sps:$4 sm:$0xff]  }
  0x71   : > { %2752 = vmatprep.subr.bf16.mxu0 %v4208_v58  ;;  %v4280_v58 = vld [vmem:[%s5736_s1 + $0x6a8] ss:$12 sps:$4 sm:$0xff]  }
  0x73   : > { %2651 = vmatpush1.bf16.msra.mxu1 %v4203_v59  ;;  %v4284_v59 = vld [vmem:[%s5736_s1 + $0xb0] ss:$12 sps:$4 sm:$0xff]  }
  0x74   : > { %2753 = vmatpush1.bf16.msra.mxu0 %v4206_v60  ;;  %2652 = vmatprep.subr.bf16.mxu1 %v4211_v61  ;;  %v4287_v60 = vld [vmem:[%s5736_s1 + $0x6c4] ss:$12 sps:$4 sm:$0xff]   ;;  %v4288_v61 = vld [vmem:[%s5736_s1 + $0x248] ss:$12 sps:$4 sm:$0xff]  }
  0x75   : > { %2754 = vmatprep.subr.bf16.mxu0 %v4214_v62  ;;  %v4285_v62 = vld [vmem:[%s5736_s1 + $0x6c0] ss:$12 sps:$4 sm:$0xff]  }
  0x77   : > { %2653 = vmatpush1.bf16.msra.mxu1 %v4209_v63  ;;  %v4289_v63 = vld [vmem:[%s5736_s1 + $0x188] ss:$12 sps:$4 sm:$0xff]  }
  0x78   : > { %2755 = vmatpush1.bf16.msra.mxu0 %v4212_v0  ;;  %2654 = vmatprep.subr.bf16.mxu1 %v4217_v1  ;;  %v4292_v0 = vld [vmem:[%s5736_s1 + $0x6dc] ss:$12 sps:$4 sm:$0xff]   ;;  %v4293_v1 = vld [vmem:[%s5736_s1 + $0x260] ss:$12 sps:$4 sm:$0xff]  }
  0x79   : > { %2756 = vmatprep.subr.bf16.mxu0 %v4220_v2  ;;  %v4290_v2 = vld [vmem:[%s5736_s1 + $0x6d8] ss:$12 sps:$4 sm:$0xff]  }
  0x7b   : > { %2655 = vmatpush1.bf16.msra.mxu1 %v4215_v3  ;;  %v4294_v3 = vld [vmem:[%s5736_s1 + $0x1a0] ss:$12 sps:$4 sm:$0xff]  }
  0x7c   : > { %2757 = vmatpush1.bf16.msra.mxu0 %v4218_v5  ;;  %2656 = vmatprep.subr.bf16.mxu1 %v4225_v6  ;;  %v4297_v5 = vld [vmem:[%s5736_s1 + $0x6f4] ss:$12 sps:$4 sm:$0xff]   ;;  %v4295_v6 = vld [vmem:[%s5736_s1 + $0x6f0] ss:$12 sps:$4 sm:$0xff]  }
  0x7d   : > { %2758 = vmatprep.subr.bf16.mxu0 %v4229_v7  ;;  %v4299_v7 = vld [vmem:[%s5736_s1 + $0x1b8] ss:$12 sps:$4 sm:$0xff]  }
  0x7f   : > { %2657 = vmatpush1.bf16.msra.mxu1 %v4223_v8  ;;  %v4302_v8 = vld [vmem:[%s5736_s1 + $0x70c] ss:$12 sps:$4 sm:$0xff]  }
  0x80   : > { %2759 = vmatpush1.bf16.msra.mxu0 %v4227_v9  ;;  %2658 = vmatprep.subr.bf16.mxu1 %v4233_v10  ;;  %v4300_v9 = vld [vmem:[%s5736_s1 + $0x708] ss:$12 sps:$4 sm:$0xff]   ;;  %v4304_v10 = vld [vmem:[%s5736_s1 + $0x1d0] ss:$12 sps:$4 sm:$0xff]  }
  0x81   : > { %2760 = vmatprep.subr.bf16.mxu0 %v4236_v11  ;;  %v4307_v11 = vld [vmem:[%s5736_s1 + $0x724] ss:$12 sps:$4 sm:$0xff]  }
  0x83   : > { %2659 = vmatpush1.bf16.msra.mxu1 %v4231_v12  ;;  %v4308_v12 = vld [vmem:[%s5736_s1 + $0x2a8] ss:$12 sps:$4 sm:$0xff]  }
  0x84   : > { %2761 = vmatpush1.bf16.msra.mxu0 %v4234_v13  ;;  %3761 = vmatprep.subr.bf16.mxu1 %v4246_v17  ;;  %v4305_v13 = vld [vmem:[%s5736_s1 + $0x720] ss:$12 sps:$4 sm:$0xff]  }
  0x85   : > { %2781 = vmatprep.subr.bf16.mxu0 %v4245_v14  ;;  %v4312_v14 = vld [vmem:[%s5736_s1 + $0x73c] ss:$12 sps:$4 sm:$0xff]   ;;  %v4314_v17 = vld [vmem:[%s5736_s1 + $0x200] ss:$12 sps:$4 sm:$0xff]  }
  0x86   : > { %2661 = vmatmul.mubr.bf16.vlgmr.msra.gmra.mrb[0].mxu1 %v4985_v15 }
  0x87   : > { %2763 = vmatmul.mubr.bf16.vlgmr.msra.gmra.mrb[0].mxu0 %v4240_v16  ;;  %3762 = vmatpush3.bf16.msra.mxu1 %v4247_v20  ;;  %v4310_v16 = vld [vmem:[%s5736_s1 + $0x738] ss:$12 sps:$4 sm:$0xff]   ;;  %v4316_v20 = vld [vmem:[%s5736_s1 + $0x750] ss:$12 sps:$4 sm:$0xff]  }
  0x88   : > { %2782 = vmatpush1.bf16.msra.mxu0 %v4243_v18  ;;  %3763 = vmatprep.subr.bf16.mxu1 %v4251_v22  ;;  %v4318_v18 = vld [vmem:[%s5736_s1 + $0x754] ss:$12 sps:$4 sm:$0xff]   ;;  %v4324_v22 = vld [vmem:[%s5736_s1 + $0x76c] ss:$12 sps:$4 sm:$0xff]  }
  0x89   : > { %2783 = vmatprep.subr.bf16.mxu0 %v4250_v21  ;;  %2670 = vmatprep.mubr.bf16.mxu1 %v5004_v23  ;;  %v4321_v21 = vld [vmem:[%s5736_s1 + $0x218] ss:$12 sps:$4 sm:$0xff]  }
  0x8a   : > { %2772 = vmatprep.mubr.bf16.mxu0 %v5042_v41 }
  0x8b   : > { %3764 = vmatpush3.bf16.msra.mxu1 %v4252_v25  ;;  %v4322_v25 = vld [vmem:[%s5736_s1 + $0x768] ss:$12 sps:$4 sm:$0xff]  }
  0x8c   : > { %2784 = vmatpush1.bf16.msra.mxu0 %v4248_v24  ;;  %3765 = vmatprep.subr.bf16.mxu1 %v4258_v27  ;;  %v4325_v24 = vld [vmem:[%s5736_s1 + $0x2f0] ss:$12 sps:$4 sm:$0xff]  }
  0x8d   : > { %2785 = vmatprep.subr.bf16.mxu0 %v4257_v26  ;;  %v4326_v26 = vld [vmem:[%s5736_s1 + $0x230] ss:$12 sps:$4 sm:$0xff]  }
  0x8e   : > { %2671 = vmatmul.mubr.bf16.gmra.mrb[4].mxu1 %v5023_v31  ;;  %v4332_v27 = vld [vmem:[%s5736_s1 + $0x784] ss:$12 sps:$4 sm:$0xff]  }
  0x8f   : > { %3766 = vmatpush3.bf16.msra.mxu1 %v4259_v32  ;;  %2966 = vmatprep.mubr.bf16.mxu1 %v4713_v48  ;;  %v4273_v48 = vld [vmem:[%s5736_s1 + $0x140] ss:$12 sps:$4 sm:$0xff]   ;;  %v4333_v32 = vld [vmem:[%s5736_s1 + $0x3c8] ss:$12 sps:$4 sm:$0xff]  }
  0x90   : > { %2786 = vmatpush1.bf16.msra.mxu0 %v4255_v30  ;;  %3767 = vmatprep.subr.bf16.mxu1 %v4263_v36  ;;  %v5205_v30 = vld [vmem:[%s4701_s5 + $0x20] ss:$56 sps:$4 sm:$0xff]   ;;  %v4334_v36 = vld [vmem:[%s5736_s1 + $0x308] ss:$12 sps:$4 sm:$0xff]  }
  0x91   : > { %2787 = vmatprep.subr.bf16.mxu0 %v4262_v33  ;;  %2773 = vmatmul.mubr.bf16.gmra.mrb[4].mxu0 %v5044_v42  ;;  %v4330_v33 = vld [vmem:[%s5736_s1 + $0x780] ss:$12 sps:$4 sm:$0xff]  }
  0x92   : > { %2813 = vmatprep.mubr.bf16.mxu0 %v5068_v49 }
  0x93   : > { %3768 = vmatpush3.bf16.msra.mxu1 %v4264_v39  ;;  %v198_v39 = vld [vmem:[%s4701_s5 + $0x90] sm:$0xff] }
  0x94   : > { %2788 = vmatpush1.bf16.msra.mxu0 %v4260_v38  ;;  %3769 = vmatprep.subr.bf16.mxu1 %v4268_v44  ;;  %v4338_v38 = vld [vmem:[%s5736_s1 + $0x3e0] ss:$12 sps:$4 sm:$0xff]   ;;  %v5226_v44 = vcombine.high %v198_v39, %v198_v39 }
  0x95   : > { %2789 = vmatprep.subr.bf16.mxu0 %v4267_v43  ;;  %v4335_v43 = vld [vmem:[%s5736_s1 + $0x798] ss:$12 sps:$4 sm:$0xff]  }
  0x97   : > { %3770 = vmatpush3.bf16.msra.mxu1 %v4269_v46  ;;  %v4342_v46 = vld [vmem:[%s5736_s1 + $0x7b4] ss:$12 sps:$4 sm:$0xff]  }
  0x98   : > { %2790 = vmatpush1.bf16.msra.mxu0 %v4265_v45  ;;  %3771 = vmatprep.subr.bf16.mxu1 %v4273_v48  ;;  %v4339_v45 = vld [vmem:[%s5736_s1 + $0x320] ss:$12 sps:$4 sm:$0xff]   ;;  %v5244_v48 = vcombine.low %v198_v39, %v198_v39  ;;  %v4406_v39 = vld [vmem:[%s5736_s1 + $0x518] ss:$12 sps:$4 sm:$0xff]  }
  0x99   : > { %2791 = vmatprep.subr.bf16.mxu0 %v4272_v47  ;;  %v4343_v47 = vld [vmem:[%s5736_s1 + $0x3f8] ss:$12 sps:$4 sm:$0xff]  }
  0x9b   : > { %3772 = vmatpush3.bf16.msra.mxu1 %v4274_v51  ;;  %v4348_v51 = vld [vmem:[%s5736_s1 + $0x410] ss:$12 sps:$4 sm:$0xff]  }
  0x9c   : > { %2792 = vmatpush1.bf16.msra.mxu0 %v4270_v50  ;;  %3773 = vmatprep.subr.bf16.mxu1 %v4278_v53  ;;  %v4344_v50 = vld [vmem:[%s5736_s1 + $0x338] ss:$12 sps:$4 sm:$0xff]  }
  0x9d   : > { %2793 = vmatprep.subr.bf16.mxu0 %v4277_v52  ;;  %v4345_v52 = vld [vmem:[%s5736_s1 + $0x7c8] ss:$12 sps:$4 sm:$0xff]   ;;  %v5259_v53 = vld [vmem:[%s4701_s5 + $0x2c] ss:$56 sps:$4 sm:$0xff]  }
  0x9f   : > { %3774 = vmatpush3.bf16.msra.mxu1 %v4279_v55  ;;  %v4352_v55 = vld [vmem:[%s5736_s1 + $0x7e4] ss:$12 sps:$4 sm:$0xff]  }
  0xa0   : > { %2794 = vmatpush1.bf16.msra.mxu0 %v4275_v54  ;;  %3775 = vmatprep.subr.bf16.mxu1 %v4283_v57  ;;  %v4349_v54 = vld [vmem:[%s5736_s1 + $0x350] ss:$12 sps:$4 sm:$0xff]   ;;  %v4518_v57 = vld [vmem:[%s4701_s5 + $0x14] ss:$56 sps:$4 sm:$0xff]  }
  0xa1   : > { %2795 = vmatprep.subr.bf16.mxu0 %v4282_v56  ;;  %v4353_v56 = vld [vmem:[%s5736_s1 + $0x428] ss:$12 sps:$4 sm:$0xff]  }
  0xa3   : > { %3776 = vmatpush3.bf16.msra.mxu1 %v4284_v59  ;;  %v4357_v59 = vld [vmem:[%s5736_s1 + $0x7fc] ss:$12 sps:$4 sm:$0xff]  }
  0xa4   : > { %2796 = vmatpush1.bf16.msra.mxu0 %v4280_v58  ;;  %3789 = vmatprep.subr.bf16.mxu1 %v4288_v61  ;;  %v4354_v58 = vld [vmem:[%s5736_s1 + $0x368] ss:$12 sps:$4 sm:$0xff]   ;;  %v4355_v61 = vld [vmem:[%s5736_s1 + $0x7f8] ss:$12 sps:$4 sm:$0xff]  }
  0xa5   : > { %2797 = vmatprep.subr.bf16.mxu0 %v4287_v60  ;;  %v4358_v60 = vld [vmem:[%s5736_s1 + $0x440] ss:$12 sps:$4 sm:$0xff]  }
  0xa6   : > { %2967 = vmatmul.mubr.bf16.vlgmr.msra.gmra.mrb[8].mxu1 %v4772_v4  ;;  %v4298_v4 = vld [vmem:[%s5736_s1 + $0x278] ss:$12 sps:$4 sm:$0xff]  }
  0xa7   : > { %3790 = vmatpush3.bf16.msra.mxu1 %v4289_v63  ;;  %2974 = vmatprep.mubr.bf16.mxu1 %v4840_v28  ;;  %v4303_v28 = vld [vmem:[%s5736_s1 + $0x290] ss:$12 sps:$4 sm:$0xff]   ;;  %v4362_v63 = vld [vmem:[%s5736_s1 + $0x814] ss:$12 sps:$4 sm:$0xff]  }
  0xa8   : > { %2798 = vmatpush1.bf16.msra.mxu0 %v4285_v62  ;;  %3791 = vmatprep.subr.bf16.mxu1 %v4293_v1  ;;  %v4359_v62 = vld [vmem:[%s5736_s1 + $0x380] ss:$12 sps:$4 sm:$0xff]   ;;  %v4360_v1 = vld [vmem:[%s5736_s1 + $0x810] ss:$12 sps:$4 sm:$0xff]  }
  0xa9   : > { %2799 = vmatprep.subr.bf16.mxu0 %v4292_v0  ;;  %v4363_v0 = vld [vmem:[%s5736_s1 + $0x458] ss:$12 sps:$4 sm:$0xff]  }
  0xab   : > { %3792 = vmatpush3.bf16.msra.mxu1 %v4294_v3  ;;  %v4367_v3 = vld [vmem:[%s5736_s1 + $0x82c] ss:$12 sps:$4 sm:$0xff]  }
  0xac   : > { %2800 = vmatpush1.bf16.msra.mxu0 %v4290_v2  ;;  %3793 = vmatprep.subr.bf16.mxu1 %v4298_v4  ;;  %v4364_v2 = vld [vmem:[%s5736_s1 + $0x398] ss:$12 sps:$4 sm:$0xff]   ;;  %v4365_v4 = vld [vmem:[%s5736_s1 + $0x828] ss:$12 sps:$4 sm:$0xff]  }
  0xad   : > { %2801 = vmatprep.subr.bf16.mxu0 %v4297_v5  ;;  %v4368_v5 = vld [vmem:[%s5736_s1 + $0x470] ss:$12 sps:$4 sm:$0xff]  }
  0xae   : > { %2975 = vmatmul.mubr.bf16.gmra.mrb[12].mxu1 %v4842_v29  ;;  %v4309_v29 = vld [vmem:[%s5736_s1 + $0x1e8] ss:$12 sps:$4 sm:$0xff]  }
  0xaf   : > { %3794 = vmatpush3.bf16.msra.mxu1 %v4299_v7  ;;  %3014 = vmatprep.mubr.bf16.mxu1 %v4874_v40  ;;  %v4313_v40 = vld [vmem:[%s5736_s1 + $0x2c0] ss:$12 sps:$4 sm:$0xff]   ;;  %v4372_v7 = vld [vmem:[%s5736_s1 + $0x844] ss:$12 sps:$4 sm:$0xff]  }
  0xb0   : > { %2802 = vmatpush1.bf16.msra.mxu0 %v4295_v6  ;;  %3795 = vmatprep.subr.bf16.mxu1 %v4303_v28  ;;  %v4369_v6 = vld [vmem:[%s5736_s1 + $0x3b0] ss:$12 sps:$4 sm:$0xff]   ;;  %v4370_v28 = vld [vmem:[%s5736_s1 + $0x840] ss:$12 sps:$4 sm:$0xff]  }
  0xb1   : > { %2803 = vmatprep.subr.bf16.mxu0 %v4302_v8  ;;  %v4373_v8 = vld [vmem:[%s5736_s1 + $0x548] ss:$12 sps:$4 sm:$0xff]  }
  0xb3   : > { %3796 = vmatpush3.bf16.msra.mxu1 %v4304_v10  ;;  %v4377_v10 = vld [vmem:[%s5736_s1 + $0x85c] ss:$12 sps:$4 sm:$0xff]  }
  0xb4   : > { %2804 = vmatpush1.bf16.msra.mxu0 %v4300_v9  ;;  %3797 = vmatprep.subr.bf16.mxu1 %v4308_v12  ;;  %v4374_v9 = vld [vmem:[%s5736_s1 + $0x488] ss:$12 sps:$4 sm:$0xff]  }
  0xb5   : > { %2805 = vmatprep.subr.bf16.mxu0 %v4307_v11  ;;  %v4378_v11 = vld [vmem:[%s5736_s1 + $0x560] ss:$12 sps:$4 sm:$0xff]   ;;  %v4519_v12 = vld [vmem:[%s4701_s5 + $0x10] ss:$56 sps:$4 sm:$0xff]  }
  0xb7   : > { %3798 = vmatpush3.bf16.msra.mxu1 %v4309_v29  ;;  %v4379_v29 = vld [vmem:[%s5736_s1 + $0x4a0] ss:$12 sps:$4 sm:$0xff]  }
  0xb8   : > { %2806 = vmatpush1.bf16.msra.mxu0 %v4305_v13  ;;  %3799 = vmatprep.subr.bf16.mxu1 %v4313_v40  ;;  %v4375_v13 = vld [vmem:[%s5736_s1 + $0x858] ss:$12 sps:$4 sm:$0xff]  }
  0xb9   : > { %2807 = vmatprep.subr.bf16.mxu0 %v4312_v14  ;;  %v4382_v14 = vld [vmem:[%s5736_s1 + $0x874] ss:$12 sps:$4 sm:$0xff]   ;;  %v4383_v40 = vld [vmem:[%s5736_s1 + $0x578] ss:$12 sps:$4 sm:$0xff]  }
  0xbb   : > { %3800 = vmatpush3.bf16.msra.mxu1 %v4314_v17  ;;  %v4384_v17 = vld [vmem:[%s5736_s1 + $0x4b8] ss:$12 sps:$4 sm:$0xff]  }
  0xbc   : > { %2808 = vmatpush1.bf16.msra.mxu0 %v4310_v16  ;;  %3801 = vmatprep.subr.bf16.mxu1 %v4319_v19  ;;  %v4380_v16 = vld [vmem:[%s5736_s1 + $0x870] ss:$12 sps:$4 sm:$0xff]   ;;  %v4385_v19 = vld [vmem:[%s5736_s1 + $0x888] ss:$12 sps:$4 sm:$0xff]  }
  0xbd   : > { %2809 = vmatprep.subr.bf16.mxu0 %v4318_v18  ;;  %v4387_v18 = vld [vmem:[%s5736_s1 + $0x88c] ss:$12 sps:$4 sm:$0xff]  }
  0xbf   : > { %3802 = vmatpush3.bf16.msra.mxu1 %v4321_v21  ;;  %v4392_v21 = vld [vmem:[%s5736_s1 + $0x8a4] ss:$12 sps:$4 sm:$0xff]  }
  0xc0   : > { %2810 = vmatpush1.bf16.msra.mxu0 %v4316_v20  ;;  %3803 = vmatprep.subr.bf16.mxu1 %v4325_v24  ;;  %v4389_v20 = vld [vmem:[%s5736_s1 + $0x4d0] ss:$12 sps:$4 sm:$0xff]  }
  0xc1   : > { %2811 = vmatprep.subr.bf16.mxu0 %v4324_v22  ;;  %v4393_v22 = vld [vmem:[%s5736_s1 + $0x5a8] ss:$12 sps:$4 sm:$0xff]  }
  0xc2   : > { %v4520_v24 = vld [vmem:[%s4701_s5 + $0x1c] ss:$56 sps:$4 sm:$0xff]  }
  0xc3   : > { %3804 = vmatpush3.bf16.msra.mxu1 %v4326_v26  ;;  %v4397_v26 = vld [vmem:[%s5736_s1 + $0x8bc] ss:$12 sps:$4 sm:$0xff]  }
  0xc4   : > { %2812 = vmatpush1.bf16.msra.mxu0 %v4322_v25  ;;  %3817 = vmatprep.subr.bf16.mxu1 %v4333_v32  ;;  %v4394_v25 = vld [vmem:[%s5736_s1 + $0x4e8] ss:$12 sps:$4 sm:$0xff]   ;;  %v4395_v32 = vld [vmem:[%s5736_s1 + $0x8b8] ss:$12 sps:$4 sm:$0xff]  }
  0xc5   : > { %2832 = vmatprep.subr.bf16.mxu0 %v4332_v27  ;;  %v4398_v27 = vld [vmem:[%s5736_s1 + $0x5c0] ss:$12 sps:$4 sm:$0xff]  }
  0xc6   : > { %3015 = vmatmul.mubr.bf16.vlgmr.msra.gmra.mrb[16].mxu1 %v4985_v15  ;;  %v4340_v15 = vld [vmem:[%s5736_s1 + $0x7b0] ss:$12 sps:$4 sm:$0xff]  }
  0xc7   : > { %2814 = vmatmul.mubr.bf16.vlgmr.msra.gmra.mrb[0].mxu0 %v5205_v30  ;;  %3818 = vmatpush3.bf16.msra.mxu1 %v4334_v36  ;;  %v4403_v36 = vld [vmem:[%s5736_s1 + $0x8d4] ss:$12 sps:$4 sm:$0xff]  }
  0xc8   : > { %2833 = vmatpush1.bf16.msra.mxu0 %v4330_v33  ;;  %3819 = vmatprep.subr.bf16.mxu1 %v4338_v38  ;;  %v4399_v33 = vld [vmem:[%s5736_s1 + $0x500] ss:$12 sps:$4 sm:$0xff]   ;;  %v4401_v38 = vld [vmem:[%s5736_s1 + $0x8d0] ss:$12 sps:$4 sm:$0xff]  }
  0xc9   : > { %2834 = vmatprep.subr.bf16.mxu0 %v4337_v37  ;;  %3022 = vmatprep.mubr.bf16.mxu1 %v5004_v23  ;;  %v4347_v23 = vld [vmem:[%s5736_s1 + $0x7cc] ss:$12 sps:$4 sm:$0xff]  }
  0xca   : > { %2823 = vmatprep.mubr.bf16.mxu0 %v5226_v44  ;;  %v4404_v37 = vld [vmem:[%s5736_s1 + $0x5d8] ss:$12 sps:$4 sm:$0xff]  }
  0xcb   : > { %3820 = vmatpush3.bf16.msra.mxu1 %v4339_v45  ;;  %v4410_v45 = vld [vmem:[%s5736_s1 + $0x5f0] ss:$12 sps:$4 sm:$0xff]  }
  0xcc   : > { %2835 = vmatpush1.bf16.msra.mxu0 %v4335_v43  ;;  %3821 = vmatprep.subr.bf16.mxu1 %v4343_v47  ;;  %v4409_v43 = vld [vmem:[%s5736_s1 + $0x8ec] ss:$12 sps:$4 sm:$0xff]   ;;  %v4411_v47 = vld [vmem:[%s5736_s1 + $0x530] ss:$12 sps:$4 sm:$0xff]  }
  0xcd   : > { %2836 = vmatprep.subr.bf16.mxu0 %v4342_v46  ;;  %v4407_v46 = vld [vmem:[%s5736_s1 + $0x8e8] ss:$12 sps:$4 sm:$0xff]  }
  0xce   : > { %3023 = vmatmul.mubr.bf16.gmra.mrb[20].mxu1 %v5023_v31  ;;  %v4350_v31 = vld [vmem:[%s5736_s1 + $0x7e0] ss:$12 sps:$4 sm:$0xff]  }
  0xcf   : > { %2824 = vmatmul.mubr.bf16.gmra.mrb[4].mxu0 %v5244_v48  ;;  %3822 = vmatpush3.bf16.msra.mxu1 %v4344_v50  ;;  %v5420_v50 = vld [vmem:[%s4701_s5 + $0x28] ss:$56 sps:$4 sm:$0xff]  }
  0xd0   : > { %2837 = vmatpush1.bf16.msra.mxu0 %v4340_v15  ;;  %3823 = vmatprep.subr.bf16.mxu1 %v4348_v51  ;;  %v4417_v15 = vld [vmem:[%s5736_s1 + $0x904] ss:$12 sps:$4 sm:$0xff]   ;;  %v4415_v51 = vld [vmem:[%s5736_s1 + $0x900] ss:$12 sps:$4 sm:$0xff]  }
  0xd1   : > { %2838 = vmatprep.subr.bf16.mxu0 %v4347_v23  ;;  %3062 = vmatprep.mubr.bf16.mxu1 %v4518_v57  ;;  %v4418_v23 = vld [vmem:[%s5736_s1 + $0x6c8] ss:$12 sps:$4 sm:$0xff]  }
  0xd2   : > { %2864 = vmatprep.mubr.bf16.mxu0 %v5259_v53 }
  0xd3   : > { %3824 = vmatpush3.bf16.msra.mxu1 %v4349_v54  ;;  %v4419_v54 = vld [vmem:[%s5736_s1 + $0x608] ss:$12 sps:$4 sm:$0xff]  }
  0xd4   : > { %2839 = vmatpush1.bf16.msra.mxu0 %v4345_v52  ;;  %3825 = vmatprep.subr.bf16.mxu1 %v4353_v56  ;;  %v199_v52 = vld [vmem:[%s4701_s5 + $0x98] sm:$0xff]  ;;  %v4423_v56 = vld [vmem:[%s5736_s1 + $0x6e0] ss:$12 sps:$4 sm:$0xff]  }
  0xd5   : > { %2840 = vmatprep.subr.bf16.mxu0 %v4352_v55  ;;  %v4422_v55 = vld [vmem:[%s5736_s1 + $0x91c] ss:$12 sps:$4 sm:$0xff]   ;;  %v5438_v57 = vcombine.high %v199_v52, %v199_v52 }
  0xd7   : > { %3826 = vmatpush3.bf16.msra.mxu1 %v4354_v58  ;;  %v4420_v58 = vld [vmem:[%s5736_s1 + $0x918] ss:$12 sps:$4 sm:$0xff]  }
  0xd8   : > { %2841 = vmatpush1.bf16.msra.mxu0 %v4350_v31  ;;  %3827 = vmatprep.subr.bf16.mxu1 %v4358_v60  ;;  %v4521_v31 = vld [vmem:[%s4701_s5 + $0x18] ss:$56 sps:$4 sm:$0xff]   ;;  %v4427_v60 = vld [vmem:[%s5736_s1 + $0x934] ss:$12 sps:$4 sm:$0xff]  }
  0xd9   : > { %2842 = vmatprep.subr.bf16.mxu0 %v4357_v59  ;;  %v4424_v59 = vld [vmem:[%s5736_s1 + $0x620] ss:$12 sps:$4 sm:$0xff]  }
  0xdb   : > { %3828 = vmatpush3.bf16.msra.mxu1 %v4359_v62  ;;  %v4425_v62 = vld [vmem:[%s5736_s1 + $0x930] ss:$12 sps:$4 sm:$0xff]  }
  0xdc   : > { %2843 = vmatpush1.bf16.msra.mxu0 %v4355_v61  ;;  %3829 = vmatprep.subr.bf16.mxu1 %v4363_v0  ;;  %v4428_v61 = vld [vmem:[%s5736_s1 + $0x6f8] ss:$12 sps:$4 sm:$0xff]   ;;  %v5462_v0 = vcombine.low %v199_v52, %v199_v52  ;;  %v4495_v52 = vld [vmem:[%s5736_s1 + $0x8f0] ss:$12 sps:$4 sm:$0xff]  }
  0xdd   : > { %2844 = vmatprep.subr.bf16.mxu0 %v4362_v63  ;;  %v4429_v63 = vld [vmem:[%s5736_s1 + $0x638] ss:$12 sps:$4 sm:$0xff]  }
  0xdf   : > { %3830 = vmatpush3.bf16.msra.mxu1 %v4364_v2  ;;  %v4430_v2 = vld [vmem:[%s5736_s1 + $0x948] ss:$12 sps:$4 sm:$0xff]  }
  0xe0   : > { %2845 = vmatpush1.bf16.msra.mxu0 %v4360_v1  ;;  %3831 = vmatprep.subr.bf16.mxu1 %v4368_v5  ;;  %v4432_v1 = vld [vmem:[%s5736_s1 + $0x94c] ss:$12 sps:$4 sm:$0xff]   ;;  %v4434_v5 = vld [vmem:[%s5736_s1 + $0x650] ss:$12 sps:$4 sm:$0xff]  }
  0xe1   : > { %2846 = vmatprep.subr.bf16.mxu0 %v4367_v3  ;;  %v5474_v3 = vld [vmem:[%s4701_s5 + $0x34] ss:$56 sps:$4 sm:$0xff]  }
  0xe3   : > { %3832 = vmatpush3.bf16.msra.mxu1 %v4369_v6  ;;  %v4438_v6 = vld [vmem:[%s5736_s1 + $0x728] ss:$12 sps:$4 sm:$0xff]  }
  0xe4   : > { %2847 = vmatpush1.bf16.msra.mxu0 %v4365_v4  ;;  %3845 = vmatprep.subr.bf16.mxu1 %v4373_v8  ;;  %v4437_v4 = vld [vmem:[%s5736_s1 + $0x964] ss:$12 sps:$4 sm:$0xff]   ;;  %v4442_v8 = vld [vmem:[%s5736_s1 + $0x97c] ss:$12 sps:$4 sm:$0xff]  }
  0xe5   : > { %2848 = vmatprep.subr.bf16.mxu0 %v4372_v7  ;;  %v4439_v7 = vld [vmem:[%s5736_s1 + $0x668] ss:$12 sps:$4 sm:$0xff]  }
  0xe6   : > { %3063 = vmatmul.mubr.bf16.vlgmr.msra.gmra.mrb[24].mxu1 %v4519_v12  ;;  %v4445_v12 = vld [vmem:[%s5736_s1 + $0x990] ss:$12 sps:$4 sm:$0xff]  }
  0xe7   : > { %3846 = vmatpush3.bf16.msra.mxu1 %v4374_v9  ;;  %3070 = vmatprep.mubr.bf16.mxu1 %v4854_v34  ;;  %v4388_v34 = vld [vmem:[%s5736_s1 + $0x590] ss:$12 sps:$4 sm:$0xff]   ;;  %v4444_v9 = vld [vmem:[%s5736_s1 + $0x680] ss:$12 sps:$4 sm:$0xff]  }
  0xe8   : > { %2849 = vmatpush1.bf16.msra.mxu0 %v4370_v28  ;;  %3847 = vmatprep.subr.bf16.mxu1 %v4378_v11  ;;  %v4440_v28 = vld [vmem:[%s5736_s1 + $0x978] ss:$12 sps:$4 sm:$0xff]  }
  0xe9   : > { %2850 = vmatprep.subr.bf16.mxu0 %v4377_v10  ;;  %v4447_v10 = vld [vmem:[%s5736_s1 + $0x994] ss:$12 sps:$4 sm:$0xff]   ;;  %v4448_v11 = vld [vmem:[%s5736_s1 + $0x758] ss:$12 sps:$4 sm:$0xff]  }
  0xeb   : > { %3848 = vmatpush3.bf16.msra.mxu1 %v4379_v29  ;;  %v4452_v29 = vld [vmem:[%s5736_s1 + $0x9ac] ss:$12 sps:$4 sm:$0xff]  }
  0xec   : > { %2851 = vmatpush1.bf16.msra.mxu0 %v4375_v13  ;;  %3849 = vmatprep.subr.bf16.mxu1 %v4383_v40  ;;  %v4449_v13 = vld [vmem:[%s5736_s1 + $0x698] ss:$12 sps:$4 sm:$0xff]   ;;  %v4450_v40 = vld [vmem:[%s5736_s1 + $0x9a8] ss:$12 sps:$4 sm:$0xff]  }
  0xed   : > { %2852 = vmatprep.subr.bf16.mxu0 %v4382_v14  ;;  %v4453_v14 = vld [vmem:[%s5736_s1 + $0x770] ss:$12 sps:$4 sm:$0xff]  }
  0xee   : > { %3071 = vmatmul.mubr.bf16.gmra.mrb[28].mxu1 %v4857_v35  ;;  %v4390_v35 = vld [vmem:[%s5736_s1 + $0x8a0] ss:$12 sps:$4 sm:$0xff]  }
  0xef   : > { %3850 = vmatpush3.bf16.msra.mxu1 %v4384_v17  ;;  %3110 = vmatprep.mubr.bf16.mxu1 %v4520_v24  ;;  %v4457_v17 = vld [vmem:[%s5736_s1 + $0x9c4] ss:$12 sps:$4 sm:$0xff]   ;;  %v4464_v24 = vld [vmem:[%s5736_s1 + $0x7a0] ss:$12 sps:$4 sm:$0xff]  }
  0xf0   : > { %2853 = vmatpush1.bf16.msra.mxu0 %v4380_v16  ;;  %3851 = vmatprep.subr.bf16.mxu1 %v4388_v34  ;;  %v4454_v16 = vld [vmem:[%s5736_s1 + $0x6b0] ss:$12 sps:$4 sm:$0xff]   ;;  %v4455_v34 = vld [vmem:[%s5736_s1 + $0x9c0] ss:$12 sps:$4 sm:$0xff]  }
  0xf1   : > { %2854 = vmatprep.subr.bf16.mxu0 %v4387_v18  ;;  %v4458_v18 = vld [vmem:[%s5736_s1 + $0x848] ss:$12 sps:$4 sm:$0xff]  }
  0xf3   : > { %3852 = vmatpush3.bf16.msra.mxu1 %v4389_v20  ;;  %v4462_v20 = vld [vmem:[%s5736_s1 + $0x9dc] ss:$12 sps:$4 sm:$0xff]  }
  0xf4   : > { %2855 = vmatpush1.bf16.msra.mxu0 %v4385_v19  ;;  %3853 = vmatprep.subr.bf16.mxu1 %v4393_v22  ;;  %v4459_v19 = vld [vmem:[%s5736_s1 + $0x788] ss:$12 sps:$4 sm:$0xff]   ;;  %v4460_v22 = vld [vmem:[%s5736_s1 + $0x9d8] ss:$12 sps:$4 sm:$0xff]  }
  0xf5   : > { %2856 = vmatprep.subr.bf16.mxu0 %v4392_v21  ;;  %v4463_v21 = vld [vmem:[%s5736_s1 + $0x860] ss:$12 sps:$4 sm:$0xff]  }
  0xf7   : > { %3854 = vmatpush3.bf16.msra.mxu1 %v4394_v25  ;;  %v4465_v25 = vld [vmem:[%s5736_s1 + $0x9f0] ss:$12 sps:$4 sm:$0xff]  }
  0xf8   : > { %2857 = vmatpush1.bf16.msra.mxu0 %v4390_v35  ;;  %3855 = vmatprep.subr.bf16.mxu1 %v4398_v27  ;;  %v4467_v35 = vld [vmem:[%s5736_s1 + $0x9f4] ss:$12 sps:$4 sm:$0xff]   ;;  %v4472_v27 = vld [vmem:[%s5736_s1 + $0xa0c] ss:$12 sps:$4 sm:$0xff]  }
  0xf9   : > { %2858 = vmatprep.subr.bf16.mxu0 %v4397_v26  ;;  %v4469_v26 = vld [vmem:[%s5736_s1 + $0x7b8] ss:$12 sps:$4 sm:$0xff]  }
  0xfb   : > { %3856 = vmatpush3.bf16.msra.mxu1 %v4399_v33  ;;  %v4474_v33 = vld [vmem:[%s5736_s1 + $0x7d0] ss:$12 sps:$4 sm:$0xff]  }
  0xfc   : > { %2859 = vmatpush1.bf16.msra.mxu0 %v4395_v32  ;;  %3857 = vmatprep.subr.bf16.mxu1 %v4404_v37  ;;  %v4470_v32 = vld [vmem:[%s5736_s1 + $0xa08] ss:$12 sps:$4 sm:$0xff]   ;;  %v4475_v37 = vld [vmem:[%s5736_s1 + $0xa20] ss:$12 sps:$4 sm:$0xff]  }
  0xfd   : > { %2860 = vmatprep.subr.bf16.mxu0 %v4403_v36  ;;  %v4477_v36 = vld [vmem:[%s5736_s1 + $0xa24] ss:$12 sps:$4 sm:$0xff]  }
  0xff   : > { %3858 = vmatpush3.bf16.msra.mxu1 %v4406_v39  ;;  %v4482_v39 = vld [vmem:[%s5736_s1 + $0xa3c] ss:$12 sps:$4 sm:$0xff]  }
 0x100   : > { %2861 = vmatpush1.bf16.msra.mxu0 %v4401_v38  ;;  %3859 = vmatprep.subr.bf16.mxu1 %v4410_v45  ;;  %v4479_v38 = vld [vmem:[%s5736_s1 + $0x7e8] ss:$12 sps:$4 sm:$0xff]   ;;  %v4484_v45 = vld [vmem:[%s5736_s1 + $0x800] ss:$12 sps:$4 sm:$0xff]  }
 0x101   : > { %2862 = vmatprep.subr.bf16.mxu0 %v4409_v43  ;;  %v4480_v43 = vld [vmem:[%s5736_s1 + $0xa38] ss:$12 sps:$4 sm:$0xff]  }
 0x103   : > { %3860 = vmatpush3.bf16.msra.mxu1 %v4411_v47  ;;  %v4490_v47 = vld [vmem:[%s5736_s1 + $0x8d8] ss:$12 sps:$4 sm:$0xff]  }
 0x104   : > { %2863 = vmatpush1.bf16.msra.mxu0 %v4407_v46  ;;  %3873 = vmatprep.subr.bf16.mxu1 %v4418_v23  ;;  %v4489_v46 = vld [vmem:[%s5736_s1 + $0xa54] ss:$12 sps:$4 sm:$0xff]   ;;  %v4491_v23 = vld [vmem:[%s5736_s1 + $0x818] ss:$12 sps:$4 sm:$0xff]  }
 0x105   : > { %2883 = vmatprep.subr.bf16.mxu0 %v4417_v15  ;;  %v4487_v15 = vld [vmem:[%s5736_s1 + $0xa50] ss:$12 sps:$4 sm:$0xff]  }
 0x106   : > { %3111 = vmatmul.mubr.bf16.vlgmr.msra.gmra.mrb[32].mxu1 %v4521_v31  ;;  %v5635_v31 = vld [vmem:[%s4701_s5 + $0x30] ss:$56 sps:$4 sm:$0xff]  }
 0x107   : > { %2865 = vmatmul.mubr.bf16.vlgmr.msra.gmra.mrb[0].mxu0 %v5420_v50  ;;  %3874 = vmatpush3.bf16.msra.mxu1 %v4419_v54  ;;  %v4492_v54 = vld [vmem:[%s5736_s1 + $0xa68] ss:$12 sps:$4 sm:$0xff]  }
 0x108   : > { %2884 = vmatpush1.bf16.msra.mxu0 %v4415_v51  ;;  %3875 = vmatprep.subr.bf16.mxu1 %v4423_v56  ;;  %v4494_v51 = vld [vmem:[%s5736_s1 + $0xa6c] ss:$12 sps:$4 sm:$0xff]   ;;  %v4500_v56 = vld [vmem:[%s5736_s1 + $0x9c8] ss:$12 sps:$4 sm:$0xff]  }
 0x109   : > { %2885 = vmatprep.subr.bf16.mxu0 %v4422_v55  ;;  %3118 = vmatprep.mubr.bf16.mxu1 %v5042_v41  ;;  %v4433_v41 = vld [vmem:[%s5736_s1 + $0x710] ss:$12 sps:$4 sm:$0xff]  }
 0x10a   : > { %2874 = vmatprep.mubr.bf16.mxu0 %v5438_v57  ;;  %v4496_v55 = vld [vmem:[%s5736_s1 + $0x830] ss:$12 sps:$4 sm:$0xff]  }
 0x10b   : > { %3876 = vmatpush3.bf16.msra.mxu1 %v4424_v59  ;;  %v4501_v59 = vld [vmem:[%s5736_s1 + $0x908] ss:$12 sps:$4 sm:$0xff]  }
 0x10c   : > { %2886 = vmatpush1.bf16.msra.mxu0 %v4420_v58  ;;  %3877 = vmatprep.subr.bf16.mxu1 %v4428_v61  ;;  %v200_v58 = vld [vmem:[%s4701_s5 + $0xa0] sm:$0xff] }
 0x10d   : > { %2887 = vmatprep.subr.bf16.mxu0 %v4427_v60  ;;  %v4502_v60 = vld [vmem:[%s5736_s1 + $0x9e0] ss:$12 sps:$4 sm:$0xff]   ;;  %v3410_v61 = vcombine.high %v200_v58, %v200_v58 }
 0x10e   : > { %3119 = vmatmul.mubr.bf16.gmra.mrb[36].mxu1 %v5044_v42  ;;  %v4435_v42 = vld [vmem:[%s5736_s1 + $0x960] ss:$12 sps:$4 sm:$0xff]  }
 0x10f   : > { %2875 = vmatmul.mubr.bf16.gmra.mrb[4].mxu0 %v5462_v0  ;;  %3878 = vmatpush3.bf16.msra.mxu1 %v4429_v63  ;;  %v4506_v63 = vld [vmem:[%s5736_s1 + $0x9f8] ss:$12 sps:$4 sm:$0xff]  }
 0x110   : > { %2888 = vmatpush1.bf16.msra.mxu0 %v4425_v62  ;;  %3879 = vmatprep.subr.bf16.mxu1 %v4433_v41  ;;  %v4503_v62 = vld [vmem:[%s5736_s1 + $0x920] ss:$12 sps:$4 sm:$0xff]   ;;  %v4508_v41 = vld [vmem:[%s5736_s1 + $0xa10] ss:$12 sps:$4 sm:$0xff]  }
 0x111   : > { %2889 = vmatprep.subr.bf16.mxu0 %v4432_v1  ;;  %3158 = vmatprep.mubr.bf16.mxu1 %v5068_v49  ;;  %v4443_v49 = vld [vmem:[%s5736_s1 + $0x740] ss:$12 sps:$4 sm:$0xff]   ;;  %v3409_v1 = vcombine.low %v200_v58, %v200_v58 }
 0x112   : > { %2915 = vmatprep.mubr.bf16.mxu0 %v5474_v3 }
 0x113   : > { %3880 = vmatpush3.bf16.msra.mxu1 %v4434_v5  ;;  %v4512_v5 = vld [vmem:[%s5736_s1 + $0xa40] ss:$12 sps:$4 sm:$0xff]  }
 0x114   : > { %2890 = vmatpush1.bf16.msra.mxu0 %v4430_v2  ;;  %3881 = vmatprep.subr.bf16.mxu1 %v4438_v6  ;;  %v4510_v2 = vld [vmem:[%s5736_s1 + $0xa28] ss:$12 sps:$4 sm:$0xff]  }
 0x115   : > { %2891 = vmatprep.subr.bf16.mxu0 %v4437_v4  ;;  %v4513_v4 = vld [vmem:[%s5736_s1 + $0x980] ss:$12 sps:$4 sm:$0xff]  }
 0x117   : > { %3882 = vmatpush3.bf16.msra.mxu1 %v4439_v7 }
 0x118   : > { %2892 = vmatpush1.bf16.msra.mxu0 %v4435_v42  ;;  %3883 = vmatprep.subr.bf16.mxu1 %v4443_v49 }
 0x119   : > { %2893 = vmatprep.subr.bf16.mxu0 %v4442_v8  ;;  %v4515_v8 = vld [vmem:[%s5736_s1 + $0x998] ss:$12 sps:$4 sm:$0xff]  }
 0x11b   : > { %3884 = vmatpush3.bf16.msra.mxu1 %v4444_v9  ;;  %v4517_v9 = vld [vmem:[%s5736_s1 + $0x9b0] ss:$12 sps:$4 sm:$0xff]  }
 0x11c   : > { %2894 = vmatpush1.bf16.msra.mxu0 %v4440_v28  ;;  %3885 = vmatprep.subr.bf16.mxu1 %v4448_v11  ;;  %v4516_v28 = vld [vmem:[%s5736_s1 + $0xa70] ss:$12 sps:$4 sm:$0xff]  }
 0x11d   : > { %2895 = vmatprep.subr.bf16.mxu0 %v4447_v10 }
 0x11f   : > { %3886 = vmatpush3.bf16.msra.mxu1 %v4449_v13 }
 0x120   : > { %2896 = vmatpush1.bf16.msra.mxu0 %v4445_v12  ;;  %3887 = vmatprep.subr.bf16.mxu1 %v4453_v14 }
 0x121   : > { %2897 = vmatprep.subr.bf16.mxu0 %v4452_v29 }
 0x123   : > { %3888 = vmatpush3.bf16.msra.mxu1 %v4454_v16 }
 0x124   : > { %2898 = vmatpush1.bf16.msra.mxu0 %v4450_v40  ;;  %3901 = vmatprep.subr.bf16.mxu1 %v4458_v18 }
 0x125   : > { %2899 = vmatprep.subr.bf16.mxu0 %v4457_v17 }
 0x126   : > { %3159 = vmatmul.mubr.bf16.vlgmr.msra.gmra.mrb[40].mxu1 %v5205_v30  ;;  %v4468_v30 = vld [vmem:[%s5736_s1 + $0x878] ss:$12 sps:$4 sm:$0xff]  }
 0x127   : > { %3902 = vmatpush3.bf16.msra.mxu1 %v4459_v19  ;;  %3166 = vmatprep.mubr.bf16.mxu1 %v5226_v44  ;;  %v4473_v44 = vld [vmem:[%s5736_s1 + $0x890] ss:$12 sps:$4 sm:$0xff]  }
 0x128   : > { %2900 = vmatpush1.bf16.msra.mxu0 %v4455_v34  ;;  %3903 = vmatprep.subr.bf16.mxu1 %v4463_v21 }
 0x129   : > { %2901 = vmatprep.subr.bf16.mxu0 %v4462_v20 }
 0x12b   : > { %3904 = vmatpush3.bf16.msra.mxu1 %v4464_v24  ;;  %v651_v24 = vlaneseq }
 0x12c   : > { %2902 = vmatpush1.bf16.msra.mxu0 %v4460_v22  ;;  %3905 = vmatprep.subr.bf16.mxu1 %v4468_v30 }
 0x12d   : > { %2903 = vmatprep.subr.bf16.mxu0 %v4467_v35  ;;  %v5701_v35 = vshrl.u32 %v651_v24, 7 }
 0x12e   : > { %3167 = vmatmul.mubr.bf16.gmra.mrb[44].mxu1 %v5244_v48  ;;  %v4478_v48 = vld [vmem:[%s5736_s1 + $0x8a8] ss:$12 sps:$4 sm:$0xff]  }
 0x12f   : > { %3906 = vmatpush3.bf16.msra.mxu1 %v4469_v26  ;;  %3206 = vmatprep.mubr.bf16.mxu1 %v5259_v53  ;;  %v4483_v53 = vld [vmem:[%s5736_s1 + $0x8c0] ss:$12 sps:$4 sm:$0xff]   ;;  %v661_v30 = vsub.s32 2, %v5701_v35 }
 0x130   : > { %2904 = vmatpush1.bf16.msra.mxu0 %v4465_v25  ;;  %3907 = vmatprep.subr.bf16.mxu1 %v4473_v44  ;;  %v5707_v25 = vld [vmem:[%s5737_s2] sm:$0x7] }
 0x131   : > { %2905 = vmatprep.subr.bf16.mxu0 %v4472_v27  ;;  %v662_v26 = vrot.slane %v5707_v25, %v661_v30 }
 0x133   : > { %3908 = vmatpush3.bf16.msra.mxu1 %v4474_v33 }
 0x134   : > { %2906 = vmatpush1.bf16.msra.mxu0 %v4470_v32  ;;  %3909 = vmatprep.subr.bf16.mxu1 %v4478_v48 }
 0x135   : > { %2907 = vmatprep.subr.bf16.mxu0 %v4477_v36 }
 0x137   : > { %3910 = vmatpush3.bf16.msra.mxu1 %v4479_v38 }
 0x138   : > { %2908 = vmatpush1.bf16.msra.mxu0 %v4475_v37  ;;  %3911 = vmatprep.subr.bf16.mxu1 %v4483_v53 }
 0x139   : > { %2909 = vmatprep.subr.bf16.mxu0 %v4482_v39 }
 0x13b   : > { %3912 = vmatpush3.bf16.msra.mxu1 %v4484_v45 }
 0x13c   : > { %2910 = vmatpush1.bf16.msra.mxu0 %v4480_v43  ;;  %3913 = vmatprep.subr.bf16.mxu1 %v4490_v47 }
 0x13d   : > { %2911 = vmatprep.subr.bf16.mxu0 %v4489_v46 }
 0x13f   : > { %3914 = vmatpush3.bf16.msra.mxu1 %v4491_v23 }
 0x140   : > { %2912 = vmatpush1.bf16.msra.mxu0 %v4487_v15  ;;  %3915 = vmatprep.subr.bf16.mxu1 %v4495_v52 }
 0x141   : > { %2913 = vmatprep.subr.bf16.mxu0 %v4494_v51 }
 0x143   : > { %3916 = vmatpush3.bf16.msra.mxu1 %v4496_v55 }
 0x144   : > { %2914 = vmatpush1.bf16.msra.mxu0 %v4492_v54  ;;  %3957 = vmatprep.subr.bf16.mxu1 %v4500_v56 }
 0x145   : > { %3929 = vmatprep.subr.bf16.mxu0 %v4500_v56 }
 0x146   : > { %3207 = vmatmul.mubr.bf16.vlgmr.msra.gmra.mrb[48].mxu1 %v5420_v50  ;;  %v4507_v50 = vld [vmem:[%s5736_s1 + $0x938] ss:$12 sps:$4 sm:$0xff]  }
 0x147   : > { %2916 = vmatmul.mubr.bf16.vlgmr.msra.gmra.mrb[0].mxu0 %v5635_v31  ;;  %3965 = vmatpush3.bf16.msra.mxu1 %v4501_v59 }
 0x148   : > { %3930 = vmatpush3.bf16.msra.mxu0 %v4501_v59  ;;  %3958 = vmatprep.subr.bf16.mxu1 %v4502_v60 }
 0x149   : > { %3931 = vmatprep.subr.bf16.mxu0 %v4502_v60  ;;  %2925 = vmatprep.mubr.bf16.mxu0 %v3410_v61 }
 0x14a   : > { %3214 = vmatprep.mubr.bf16.mxu1 %v5438_v57  ;;  %v4509_v57 = vld [vmem:[%s5736_s1 + $0x950] ss:$12 sps:$4 sm:$0xff]  }
 0x14b   : > { %3966 = vmatpush3.bf16.msra.mxu1 %v4503_v62 }
 0x14c   : > { %3932 = vmatpush3.bf16.msra.mxu0 %v4503_v62  ;;  %3959 = vmatprep.subr.bf16.mxu1 %v4506_v63 }
 0x14d   : > { %3933 = vmatprep.subr.bf16.mxu0 %v4506_v63 }
 0x14e   : > { %3215 = vmatmul.mubr.bf16.gmra.mrb[52].mxu1 %v5462_v0  ;;  %v4511_v0 = vld [vmem:[%s5736_s1 + $0x968] ss:$12 sps:$4 sm:$0xff]  }
 0x14f   : > { %2926 = vmatmul.mubr.bf16.gmra.mrb[4].mxu0 %v3409_v1  ;;  %3967 = vmatpush3.bf16.msra.mxu1 %v4507_v50 }
 0x150   : > { %3934 = vmatpush3.bf16.msra.mxu0 %v4507_v50  ;;  %3960 = vmatprep.subr.bf16.mxu1 %v4508_v41 }
 0x151   : > { %3935 = vmatprep.subr.bf16.mxu0 %v4508_v41  ;;  %3254 = vmatprep.mubr.bf16.mxu0 %v5474_v3  ;;  %v4514_v3 = vld [vmem:[%s5736_s1 + $0xa58] ss:$12 sps:$4 sm:$0xff]  }
 0x152   : > { %3262 = vmatprep.mubr.bf16.mxu1 %v3410_v61 }
 0x153   : > { %3968 = vmatpush3.bf16.msra.mxu1 %v4509_v57 }
 0x154   : > { %3936 = vmatpush3.bf16.msra.mxu0 %v4509_v57  ;;  %3961 = vmatprep.subr.bf16.mxu1 %v4510_v2 }
 0x155   : > { %3937 = vmatprep.subr.bf16.mxu0 %v4510_v2 }
 0x157   : > { %3969 = vmatpush3.bf16.msra.mxu1 %v4511_v0 }
 0x158   : > { %3938 = vmatpush3.bf16.msra.mxu0 %v4511_v0  ;;  %3962 = vmatprep.subr.bf16.mxu1 %v4512_v5 }
 0x159   : > { %3939 = vmatprep.subr.bf16.mxu0 %v4512_v5  ;;  %v5679_v6 = vpop.f32.mrb[0].mxu1 }
 0x15a   : > { %v5681_v42 = vpop.f32.mrb[1].mxu1 }
 0x15b   : > { %v5683_v7 = vpop.f32.mrb[2].mxu1  ;;  %3970 = vmatpush3.bf16.msra.mxu1 %v4513_v4 }
 0x15c   : > { %3940 = vmatpush3.bf16.msra.mxu0 %v4513_v4  ;;  %v5688_v49 = vpop.f32.mrb[3].mxu1  ;;  %3963 = vmatprep.subr.bf16.mxu1 %v4514_v3 }
 0x15d   : > { %3941 = vmatprep.subr.bf16.mxu0 %v4514_v3 }
 0x15f   : > { %3971 = vmatpush3.bf16.msra.mxu1 %v4515_v8 }
 0x160   : > { %3942 = vmatpush3.bf16.msra.mxu0 %v4515_v8  ;;  %3964 = vmatprep.subr.bf16.mxu1 %v4516_v28 }
 0x161   : > { %3943 = vmatprep.subr.bf16.mxu0 %v4516_v28  ;;  %v5696_v10 = vpop.f32.mrb[4].mxu1 }
 0x162   : > { %v5698_v11 = vpop.f32.mrb[5].mxu1 }
 0x163   : > { %v2676_v12 = vpop.f32.mrb[6].mxu1  ;;  %3972 = vmatpush3.bf16.msra.mxu1 %v4517_v9 }
 0x164   : > { %3944 = vmatpush3.bf16.msra.mxu0 %v4517_v9  ;;  %v2677_v13 = vpop.f32.mrb[7].mxu1 }
 0x166   : > { %3263 = vmatmul.mubr.bf16.vlgmr.msra.gmra.mrb[56].mxu1 %v3409_v1 }
 0x167   : > { %3255 = vmatmul.mubr.bf16.vlgmr.msra.gmra.mrb[8].mxu0 %v5635_v31 }
 0x179   : > { %v3777_v29 = vpop.f32.mrb[8].mxu1 }
 0x17a   : > { %v3778_v14 = vpop.f32.mrb[9].mxu1 }
 0x17b   : > { %v3779_v40 = vadd.f32 %v3778_v14, %v3777_v29  ;;  %v3780_v16 = vpop.f32.mrb[10].mxu1 }
 0x17c   : > { %v3781_v17 = vpop.f32.mrb[11].mxu1 }
 0x17d   : > { %v3782_v18 = vadd.f32 %v3781_v17, %v3780_v16  ;;  %v2969_v32 = vadd.f32 %v3779_v40, %v662_v26 }
 0x17f   : > { %v2972_v37 = vadd.f32 %v3782_v18, %v662_v26 }
 0x181   : > { %v3783_v34 = vpop.f32.mrb[12].mxu1 }
 0x182   : > { %v3784_v19 = vpop.f32.mrb[13].mxu1 }
 0x183   : > { %v3785_v20 = vadd.f32 %v3784_v19, %v3783_v34  ;;  %v3786_v21 = vpop.f32.mrb[14].mxu1 }
 0x184   : > { %v3787_v22 = vpop.f32.mrb[15].mxu1 }
 0x185   : > { %v2977_v46 = vadd.f32 %v3785_v20, %v662_v26 }
 0x199   : > { %v3805_v27 = vpop.f32.mrb[16].mxu1 }
 0x19a   : > { %v3806_v44 = vpop.f32.mrb[17].mxu1 }
 0x19b   : > { %v3807_v33 = vadd.f32 %v3806_v44, %v3805_v27  ;;  %v3808_v36 = vpop.f32.mrb[18].mxu1 }
 0x19c   : > { %v3809_v48 = vpop.f32.mrb[19].mxu1 }
 0x19d   : > { %v3017_v38 = vadd.f32 %v3807_v33, %v2969_v32  ;;  %v3810_v39 = vadd.f32 %v3809_v48, %v3808_v36  ;;  %v653_v33 = vsub.s32 0, %v5701_v35  ;;  %v657_v36 = vsub.s32 1, %v5701_v35 }
 0x19f   : > { %v3020_v53 = vadd.f32 %v3810_v39, %v2972_v37  ;;  %v654_v48 = vrot.slane %v5707_v25, %v653_v33  ;;  %v658_v37 = vrot.slane %v5707_v25, %v657_v36 }
 0x1a1   : > { %v3811_v43 = vpop.f32.mrb[20].mxu1  ;;  %v3975_v39 = vadd.f32 %v5681_v42, %v658_v37 }
 0x1a2   : > { %v3812_v45 = vpop.f32.mrb[21].mxu1 }
 0x1a3   : > { %v3813_v47 = vadd.f32 %v3812_v45, %v3811_v43  ;;  %v3814_v15 = vpop.f32.mrb[22].mxu1  ;;  %v3977_v45 = vadd.f32 %v5683_v7, %v654_v48 }
 0x1a4   : > { %v3815_v23 = vpop.f32.mrb[23].mxu1 }
 0x1a5   : > { %v3025_v51 = vadd.f32 %v3813_v47, %v2977_v46  ;;  %v3979_v23 = vadd.f32 %v5688_v49, %v658_v37 }
 0x1b9   : > { %v3833_v52 = vpop.f32.mrb[24].mxu1 }
 0x1ba   : > { %v3834_v54 = vpop.f32.mrb[25].mxu1 }
 0x1bb   : > { %v3835_v55 = vadd.f32 %v3834_v54, %v3833_v52  ;;  %v3836_v56 = vpop.f32.mrb[26].mxu1 }
 0x1bc   : > { %v3837_v31 = vpop.f32.mrb[27].mxu1 }
 0x1bd   : > { %v3065_v58 = vadd.f32 %v3835_v55, %v3017_v38  ;;  %v3838_v59 = vadd.f32 %v3837_v31, %v3836_v56  ;;  %v3973_v38 = vadd.f32 %v5679_v6, %v654_v48 }
 0x1bf   : > { %v3068_v60 = vadd.f32 %v3838_v59, %v3020_v53 }
 0x1c1   : > { %v3839_v61 = vpop.f32.mrb[28].mxu1 }
 0x1c2   : > { %v3840_v62 = vpop.f32.mrb[29].mxu1 }
 0x1c3   : > { %v3841_v63 = vadd.f32 %v3840_v62, %v3839_v61  ;;  %v3842_v1 = vpop.f32.mrb[30].mxu1  ;;  %v3981_v62 = vadd.f32 %v5696_v10, %v654_v48 }
 0x1c4   : > { %v3843_v50 = vpop.f32.mrb[31].mxu1 }
 0x1c5   : > { %v3073_v41 = vadd.f32 %v3841_v63, %v3025_v51  ;;  %v3983_v63 = vadd.f32 %v5698_v11, %v658_v37 }
 0x1d9   : > { %v3861_v57 = vpop.f32.mrb[32].mxu1 }
 0x1da   : > { %v3862_v2 = vpop.f32.mrb[33].mxu1 }
 0x1db   : > { %v3863_v0 = vadd.f32 %v3862_v2, %v3861_v57  ;;  %v3864_v5 = vpop.f32.mrb[34].mxu1 }
 0x1dc   : > { %v3865_v4 = vpop.f32.mrb[35].mxu1 }
 0x1dd   : > { %v3113_v3 = vadd.f32 %v3863_v0, %v3065_v58  ;;  %v3866_v8 = vadd.f32 %v3865_v4, %v3864_v5 }
 0x1df   : > { %v3116_v28 = vadd.f32 %v3866_v8, %v3068_v60 }
 0x1e1   : > { %v3867_v9 = vpop.f32.mrb[36].mxu1 }
 0x1e2   : > { %v3868_v12 = vpop.f32.mrb[37].mxu1 }
 0x1e3   : > { %v3869_v13 = vadd.f32 %v3868_v12, %v3867_v9  ;;  %v3870_v29 = vpop.f32.mrb[38].mxu1 }
 0x1e4   : > { %v3871_v14 = vpop.f32.mrb[39].mxu1 }
 0x1e5   : > { %v3121_v40 = vadd.f32 %v3869_v13, %v3073_v41 }
 0x1f9   : > { %v3889_v16 = vpop.f32.mrb[40].mxu1 }
 0x1fa   : > { %v3890_v17 = vpop.f32.mrb[41].mxu1 }
 0x1fb   : > { %v3891_v18 = vadd.f32 %v3890_v17, %v3889_v16  ;;  %v3892_v34 = vpop.f32.mrb[42].mxu1 }
 0x1fc   : > { %v3893_v19 = vpop.f32.mrb[43].mxu1 }
 0x1fd   : > { %v3161_v20 = vadd.f32 %v3891_v18, %v3113_v3  ;;  %v3894_v21 = vadd.f32 %v3893_v19, %v3892_v34 }
 0x1ff   : > { %v3164_v22 = vadd.f32 %v3894_v21, %v3116_v28 }
 0x201   : > { %v3895_v24 = vpop.f32.mrb[44].mxu1 }
 0x202   : > { %v3896_v30 = vpop.f32.mrb[45].mxu1 }
 0x203   : > { %v3897_v26 = vadd.f32 %v3896_v30, %v3895_v24  ;;  %v3898_v27 = vpop.f32.mrb[46].mxu1 }
 0x204   : > { %v3899_v44 = vpop.f32.mrb[47].mxu1 }
 0x205   : > { %v3169_v32 = vadd.f32 %v3897_v26, %v3121_v40 }
 0x219   : > { %v3917_v43 = vpop.f32.mrb[48].mxu1 }
 0x21a   : > { %v2917_v53 = vpop.f32.mrb[0].mxu0  ;;  %v3918_v15 = vpop.f32.mrb[49].mxu1 }
 0x21b   : > { %v3974_v46 = vadd.f32 %v3973_v38, %v2917_v53  ;;  %v2919_v47 = vpop.f32.mrb[1].mxu0  ;;  %v3919_v35 = vadd.f32 %v3918_v15, %v3917_v43  ;;  %v3920_v54 = vpop.f32.mrb[50].mxu1 }
 0x21c   : > { %v3976_v51 = vadd.f32 %v3975_v39, %v2919_v47  ;;  %v2921_v52 = vpop.f32.mrb[2].mxu0  ;;  %v3921_v6 = vpop.f32.mrb[51].mxu1 }
 0x21d   : > { %v3270_v55 = vmax.f32 %v3974_v46, 0.0  ;;  %v3978_v25 = vadd.f32 %v3977_v45, %v2921_v52  ;;  %v2923_v56 = vpop.f32.mrb[3].mxu0  ;;  %v3209_v42 = vadd.f32 %v3919_v35, %v3161_v20  ;;  %v3922_v59 = vadd.f32 %v3921_v6, %v3920_v54 }
 0x21e   : > { %v3271_v31 = vmax.f32 %v3976_v51, 0.0  ;;  %v3980_v58 = vadd.f32 %v3979_v23, %v2923_v56 }
 0x21f   : > { %v3273_v7 = vmax.f32 %v3978_v25, 0.0  ;;  %v3212_v61 = vadd.f32 %v3922_v59, %v3164_v22 }
 0x220   : > { %v3755_v49 = vpack.c.bf16 %v3271_v31, %v3270_v55  ;;  %v3274_v60 = vmax.f32 %v3980_v58, 0.0 }
 0x221   : > { %v3923_v41 = vpop.f32.mrb[52].mxu1 }
 0x222   : > { %3312 = vst [vmem:[%s5722_s22] sm:$0xff] %v3755_v49  ;;  %v3757_v1 = vpack.c.bf16 %v3274_v60, %v3273_v7  ;;  %v2927_v50 = vpop.f32.mrb[4].mxu0  ;;  %v3924_v0 = vpop.f32.mrb[53].mxu1 }
 0x223   : > { %v3982_v57 = vadd.f32 %v3981_v62, %v2927_v50  ;;  %v2929_v2 = vpop.f32.mrb[5].mxu0  ;;  %v3925_v4 = vadd.f32 %v3924_v0, %v3923_v41  ;;  %v3926_v8 = vpop.f32.mrb[54].mxu1 }
 0x224   : > { %3314 = vst [vmem:[%s5722_s22 + $0xc] sm:$0xff] %v3757_v1  ;;  %v3984_v5 = vadd.f32 %v3983_v63, %v2929_v2  ;;  %v2931_v3 = vpop.f32.mrb[6].mxu0  ;;  %v3927_v12 = vpop.f32.mrb[55].mxu1 }
 0x225   : > { %v3276_v28 = vmax.f32 %v3982_v57, 0.0  ;;  %v2932_v9 = vpop.f32.mrb[7].mxu0  ;;  %v3217_v10 = vadd.f32 %v3925_v4, %v3169_v32 }
 0x226   : > { %v3277_v13 = vmax.f32 %v3984_v5, 0.0 }
 0x228   : > { %v3759_v29 = vpack.c.bf16 %v3277_v13, %v3276_v28 }
 0x22a   : > { %3316 = vst [vmem:[%s5722_s22 + $0x18] sm:$0xff] %v3759_v29 }
 0x239   : > { %v3951_v14 = vpop.f32.mrb[56].mxu1 }
 0x23a   : > { %v3945_v11 = vpop.f32.mrb[8].mxu0  ;;  %v3952_v16 = vpop.f32.mrb[57].mxu1 }
 0x23b   : > { %v3946_v40 = vpop.f32.mrb[9].mxu0  ;;  %v3953_v18 = vadd.f32 %v3952_v16, %v3951_v14  ;;  %v3954_v19 = vpop.f32.mrb[58].mxu1 }
 0x23c   : > { %v3947_v17 = vadd.f32 %v3946_v40, %v3945_v11  ;;  %v3948_v34 = vpop.f32.mrb[10].mxu0  ;;  %v3955_v21 = vpop.f32.mrb[59].mxu1 }
 0x23d   : > { %v3949_v20 = vpop.f32.mrb[11].mxu0  ;;  %v3265_v24 = vadd.f32 %v3953_v18, %v3217_v10 }
 0x23e   : > { %v3257_v22 = vadd.f32 %v3947_v17, %v3209_v42  ;;  %v3950_v30 = vadd.f32 %v3949_v20, %v3948_v34 }
 0x23f   : > { %v3278_v27 = vmax.f32 %v3265_v24, 0.0 }
 0x240   : > { %v3272_v26 = vmax.f32 %v3257_v22, 0.0  ;;  %v3260_v44 = vadd.f32 %v3950_v30, %v3212_v61 }
 0x241   : > { %v3760_v33 = vpack.c.bf16 %v3278_v27, %v3278_v27 }
 0x242   : > { %v3756_v32 = vpack.c.bf16 %v3272_v26, %v3272_v26  ;;  %v3275_v36 = vmax.f32 %v3260_v44, 0.0 }
 0x243   : > { %3317 = vst [vmem:[%s5722_s22 + $0x20] sm:$0xf] %v3760_v33 }
 0x244   : > { %3313 = vst [vmem:[%s5722_s22 + $0x8] sm:$0xf] %v3756_v32  ;;  %v3758_v48 = vpack.c.bf16 %v3275_v36, %v3275_v36 }
 0x246   : > { %3315 = vst [vmem:[%s5722_s22 + $0x14] sm:$0xf] %v3758_v48 }
 0x247 PF: > { %s13_s12 = sadd.s32 1, %s4528_s12  }
 0x248   : > { %p10_p4 = scmp.ge.s32.totalorder %s13_s12, 4  }
 0x24a   :  { %12 = sbr.rel (!%p10_p4) target bundleno = 1 (0x1), region = 62 }

// kernel: lpips_loss.10
= control target key start
LH: loop header
LB: loop body
LE: loop exit
PB: predicated region body
PF: predicated region fallthrough
CT: control target
= control target key end

     0   :  { %s5223_s12 = smov 0   ;;  %s6588_s0 = inlined_call_operand.vmem [shape: bf16[48,3456], index: 0, kind: input, shape index: {}]   ;;  %s6589_s1 = inlined_call_operand.vmem [shape: bf16[3456,256], index: 1, kind: input, shape index: {}]   ;;  %s6590_s2 = inlined_call_operand.vmem [shape: f32[1,256], index: 2, kind: input, shape index: {}]   ;;  %s6591_s3 = inlined_call_operand.vmem [shape: bf16[48,256], index: 3, kind: output, shape index: {}]  }
   0x1 LB: > { %s3858_s13 = sadd.s32 4294967295, %s5200_s12   ;;  %p3862_p0 = scmp.ge.s32.totalorder %s5200_s12, 1  ;;  %s5200_s12 = sphi %s5223_s12, %s13_s12  }
   0x2   : > { %p139_p1 = scmp.lt.s32.totalorder %s5200_s12, 3 }
   0x4   : > { %p140_p2 = pnand %p3862_p0, %p139_p1 }
   0x5   : > { %v4479_v0 = vld [vmem:[%s6589_s1 + $0x4] ss:$8 sps:$4 sm:$0xff] (!%p140_p2)   ;;  %v4483_v2 = vld [vmem:[%s6589_s1] ss:$8 sps:$4 sm:$0xff] (!%p140_p2)   ;;  %v4485_v4 = vld [vmem:[%s6589_s1 + $0x14] ss:$8 sps:$4 sm:$0xff] (!%p140_p2)  }
   0x6   : > { %143 = sbr.rel (%p140_p2) target bundleno = 684 (0x2ac), region = 32  ;;  %v4481_v1 = vld [vmem:[%s6589_s1 + $0x704] ss:$8 sps:$4 sm:$0xff] (!%p140_p2)   ;;  %3057 = vmatprep.subr.bf16.mxu1 (!%p140_p2), %v4479_v0  ;;  %v4484_v3 = vld [vmem:[%s6589_s1 + $0x700] ss:$8 sps:$4 sm:$0xff] (!%p140_p2)  }
   0x7   : > { %3414 = vmatprep.subr.bf16.mxu0 (!%p140_p2), %v4481_v1  ;;  %3058 = vmatpush1.bf16.msra.mxu1 (!%p140_p2), %v4483_v2  ;;  %v4487_v5 = vld [vmem:[%s6589_s1 + $0x714] ss:$8 sps:$4 sm:$0xff] (!%p140_p2)   ;;  %v4489_v6 = vld [vmem:[%s6589_s1 + $0x10] ss:$8 sps:$4 sm:$0xff] (!%p140_p2)   ;;  %v4491_v8 = vld [vmem:[%s6589_s1 + $0x24] ss:$8 sps:$4 sm:$0xff] (!%p140_p2)  }
   0x8   : > { %3415 = vmatpush1.bf16.msra.mxu0 (!%p140_p2), %v4484_v3  ;;  %3059 = vmatprep.subr.bf16.mxu1 (!%p140_p2), %v4485_v4  ;;  %v4490_v7 = vld [vmem:[%s6589_s1 + $0x710] ss:$8 sps:$4 sm:$0xff] (!%p140_p2)   ;;  %v4493_v9 = vld [vmem:[%s6589_s1 + $0x724] ss:$8 sps:$4 sm:$0xff] (!%p140_p2)   ;;  %v4495_v10 = vld [vmem:[%s6589_s1 + $0x20] ss:$8 sps:$4 sm:$0xff] (!%p140_p2)  }
   0x9   : > { %3416 = vmatprep.subr.bf16.mxu0 (!%p140_p2), %v4487_v5  ;;  %v4496_v11 = vld [vmem:[%s6589_s1 + $0x720] ss:$8 sps:$4 sm:$0xff] (!%p140_p2)   ;;  %v4497_v12 = vld [vmem:[%s6589_s1 + $0x34] ss:$8 sps:$4 sm:$0xff] (!%p140_p2)   ;;  %v4501_v14 = vld [vmem:[%s6589_s1 + $0x30] ss:$8 sps:$4 sm:$0xff] (!%p140_p2)  }
   0xa   : > { %v4499_v13 = vld [vmem:[%s6589_s1 + $0x734] ss:$8 sps:$4 sm:$0xff] (!%p140_p2)   ;;  %v4502_v15 = vld [vmem:[%s6589_s1 + $0x730] ss:$8 sps:$4 sm:$0xff] (!%p140_p2)   ;;  %v4503_v16 = vld [vmem:[%s6589_s1 + $0x44] ss:$8 sps:$4 sm:$0xff] (!%p140_p2)  }
   0xb   : > { %3060 = vmatpush1.bf16.msra.mxu1 (!%p140_p2), %v4489_v6  ;;  %v4505_v17 = vld [vmem:[%s6589_s1 + $0x744] ss:$8 sps:$4 sm:$0xff] (!%p140_p2)   ;;  %v4507_v18 = vld [vmem:[%s6589_s1 + $0x40] ss:$8 sps:$4 sm:$0xff] (!%p140_p2)   ;;  %v4509_v20 = vld [vmem:[%s6589_s1 + $0x54] ss:$8 sps:$4 sm:$0xff] (!%p140_p2)  }
   0xc   : > { %3417 = vmatpush1.bf16.msra.mxu0 (!%p140_p2), %v4490_v7  ;;  %3061 = vmatprep.subr.bf16.mxu1 (!%p140_p2), %v4491_v8  ;;  %v4508_v19 = vld [vmem:[%s6589_s1 + $0x740] ss:$8 sps:$4 sm:$0xff] (!%p140_p2)   ;;  %v4511_v21 = vld [vmem:[%s6589_s1 + $0x754] ss:$8 sps:$4 sm:$0xff] (!%p140_p2)   ;;  %v4513_v22 = vld [vmem:[%s6589_s1 + $0x50] ss:$8 sps:$4 sm:$0xff] (!%p140_p2)  }
   0xd   : > { %3418 = vmatprep.subr.bf16.mxu0 %v4493_v9  ;;  %v4514_v23 = vld [vmem:[%s6589_s1 + $0x750] ss:$8 sps:$4 sm:$0xff]   ;;  %v4515_v24 = vld [vmem:[%s6589_s1 + $0x64] ss:$8 sps:$4 sm:$0xff]   ;;  %v4519_v26 = vld [vmem:[%s6589_s1 + $0x60] ss:$8 sps:$4 sm:$0xff]  }
   0xe   : > { %v4517_v25 = vld [vmem:[%s6589_s1 + $0x764] ss:$8 sps:$4 sm:$0xff]   ;;  %v4520_v27 = vld [vmem:[%s6589_s1 + $0x760] ss:$8 sps:$4 sm:$0xff]   ;;  %v4521_v28 = vld [vmem:[%s6589_s1 + $0x74] ss:$8 sps:$4 sm:$0xff]  }
   0xf   : > { %3062 = vmatpush1.bf16.msra.mxu1 %v4495_v10  ;;  %s165_s22 = smul.u32 3, %s3858_s13  ;;  %v4523_v29 = vld [vmem:[%s6589_s1 + $0x774] ss:$8 sps:$4 sm:$0xff]   ;;  %v4525_v30 = vld [vmem:[%s6589_s1 + $0x70] ss:$8 sps:$4 sm:$0xff]  }
  0x10   : > { %3419 = vmatpush1.bf16.msra.mxu0 %v4496_v11  ;;  %3063 = vmatprep.subr.bf16.mxu1 %v4497_v12  ;;  %v4526_v31 = vld [vmem:[%s6589_s1 + $0x770] ss:$8 sps:$4 sm:$0xff]   ;;  %v4527_v32 = vld [vmem:[%s6589_s1 + $0x84] ss:$8 sps:$4 sm:$0xff]   ;;  %v4531_v34 = vld [vmem:[%s6589_s1 + $0x80] ss:$8 sps:$4 sm:$0xff]  }
  0x11   : > { %3420 = vmatprep.subr.bf16.mxu0 %v4499_v13  ;;  %p166_p3 = scmp.lt.s32.totalorder %s165_s22, 5  ;;  %v4529_v33 = vld [vmem:[%s6589_s1 + $0x784] ss:$8 sps:$4 sm:$0xff]   ;;  %v4532_v35 = vld [vmem:[%s6589_s1 + $0x780] ss:$8 sps:$4 sm:$0xff]  }
  0x12   : > { %v4533_v36 = vld [vmem:[%s6589_s1 + $0x94] ss:$8 sps:$4 sm:$0xff]   ;;  %v4537_v38 = vld [vmem:[%s6589_s1 + $0x90] ss:$8 sps:$4 sm:$0xff]   ;;  %v4539_v40 = vld [vmem:[%s6589_s1 + $0xa4] ss:$8 sps:$4 sm:$0xff]  }
  0x13   : > { %3064 = vmatpush1.bf16.msra.mxu1 %v4501_v14  ;;  %s6593_s22 = smov (!%p166_p3, %s165_s22), 5  ;;  %v4535_v37 = vld [vmem:[%s6589_s1 + $0x794] ss:$8 sps:$4 sm:$0xff]   ;;  %v4538_v39 = vld [vmem:[%s6589_s1 + $0x790] ss:$8 sps:$4 sm:$0xff]  }
  0x14   : > { %3421 = vmatpush1.bf16.msra.mxu0 %v4502_v15  ;;  %3065 = vmatprep.subr.bf16.mxu1 %v4503_v16  ;;  %s4469_s21 = smul.u32 108, %s6593_s22  ;;  %v4541_v41 = vld [vmem:[%s6589_s1 + $0x7a4] ss:$8 sps:$4 sm:$0xff]   ;;  %v4543_v42 = vld [vmem:[%s6589_s1 + $0xa0] ss:$8 sps:$4 sm:$0xff]   ;;  %s4357_s15 = sshll.u32 %s6593_s22, 3 }
  0x15   : > { %3422 = vmatprep.subr.bf16.mxu0 %v4505_v17  ;;  %v4544_v43 = vld [vmem:[%s6589_s1 + $0x7a0] ss:$8 sps:$4 sm:$0xff]   ;;  %v4545_v44 = vld [vmem:[%s6589_s1 + $0xb4] ss:$8 sps:$4 sm:$0xff]   ;;  %v4549_v46 = vld [vmem:[%s6589_s1 + $0xb0] ss:$8 sps:$4 sm:$0xff]   ;;  %s177_s18 = scalar_lea.vmem %s6591_s3, %s4357_s15 }
  0x16   : > { %s5374_s5 = scalar_lea.vmem %s6588_s0, %s4469_s21  ;;  %v4547_v45 = vld [vmem:[%s6589_s1 + $0x7b4] ss:$8 sps:$4 sm:$0xff]   ;;  %v4550_v47 = vld [vmem:[%s6589_s1 + $0x7b0] ss:$8 sps:$4 sm:$0xff]   ;;  %v4551_v49 = vld [vmem:[%s6589_s1 + $0xc4] ss:$8 sps:$4 sm:$0xff]  }
  0x17   : > { %3066 = vmatpush1.bf16.msra.mxu1 %v4507_v18  ;;  %v4577_v48 = vld [vmem:[%s5374_s5 + $0x4] ss:$108 sps:$4 sm:$0xff]   ;;  %v4583_v51 = vld [vmem:[%s5374_s5 + $0x3c] ss:$108 sps:$4 sm:$0xff]   ;;  %v4575_v4 = vld [vmem:[%s5374_s5] ss:$108 sps:$4 sm:$0xff]  }
  0x18   : > { %3423 = vmatpush1.bf16.msra.mxu0 %v4508_v19  ;;  %3067 = vmatprep.subr.bf16.mxu1 %v4509_v20  ;;  %v4553_v50 = vld [vmem:[%s6589_s1 + $0x7c4] ss:$8 sps:$4 sm:$0xff]   ;;  %v4555_v52 = vld [vmem:[%s6589_s1 + $0xc0] ss:$8 sps:$4 sm:$0xff]   ;;  %v4557_v54 = vld [vmem:[%s6589_s1 + $0xd4] ss:$8 sps:$4 sm:$0xff]  }
  0x19   : > { %3424 = vmatprep.subr.bf16.mxu0 %v4511_v21  ;;  %3089 = vmatprep.mubr.bf16.mxu1 %v4577_v48  ;;  %v4556_v53 = vld [vmem:[%s6589_s1 + $0x7c0] ss:$8 sps:$4 sm:$0xff]   ;;  %v4559_v55 = vld [vmem:[%s6589_s1 + $0x7d4] ss:$8 sps:$4 sm:$0xff]   ;;  %v4561_v56 = vld [vmem:[%s6589_s1 + $0xd0] ss:$8 sps:$4 sm:$0xff]  }
  0x1a   : > { %3446 = vmatprep.mubr.bf16.mxu0 %v4583_v51  ;;  %v4562_v57 = vld [vmem:[%s6589_s1 + $0x7d0] ss:$8 sps:$4 sm:$0xff]   ;;  %v4563_v58 = vld [vmem:[%s6589_s1 + $0xe4] ss:$8 sps:$4 sm:$0xff]   ;;  %v4567_v60 = vld [vmem:[%s6589_s1 + $0xe0] ss:$8 sps:$4 sm:$0xff]  }
  0x1b   : > { %3068 = vmatpush1.bf16.msra.mxu1 %v4513_v22  ;;  %v4565_v59 = vld [vmem:[%s6589_s1 + $0x7e4] ss:$8 sps:$4 sm:$0xff]   ;;  %v4568_v61 = vld [vmem:[%s6589_s1 + $0x7e0] ss:$8 sps:$4 sm:$0xff]   ;;  %v4569_v62 = vld [vmem:[%s6589_s1 + $0xf4] ss:$8 sps:$4 sm:$0xff]  }
  0x1c   : > { %3425 = vmatpush1.bf16.msra.mxu0 %v4514_v23  ;;  %3069 = vmatprep.subr.bf16.mxu1 %v4515_v24  ;;  %v4571_v63 = vld [vmem:[%s6589_s1 + $0x7f4] ss:$8 sps:$4 sm:$0xff]   ;;  %v4573_v0 = vld [vmem:[%s6589_s1 + $0xf0] ss:$8 sps:$4 sm:$0xff]   ;;  %v4580_v2 = vld [vmem:[%s6589_s1 + $0x104] ss:$8 sps:$4 sm:$0xff]  }
  0x1d   : > { %3426 = vmatprep.subr.bf16.mxu0 %v4517_v25  ;;  %v4574_v1 = vld [vmem:[%s6589_s1 + $0x7f0] ss:$8 sps:$4 sm:$0xff]   ;;  %v4586_v3 = vld [vmem:[%s6589_s1 + $0x804] ss:$8 sps:$4 sm:$0xff]   ;;  %v4578_v5 = vld [vmem:[%s6589_s1 + $0x100] ss:$8 sps:$4 sm:$0xff]  }
  0x1e   : > { %v4581_v6 = vld [vmem:[%s5374_s5 + $0x38] ss:$108 sps:$4 sm:$0xff]   ;;  %v4584_v7 = vld [vmem:[%s6589_s1 + $0x800] ss:$8 sps:$4 sm:$0xff]   ;;  %v4589_v8 = vld [vmem:[%s6589_s1 + $0x114] ss:$8 sps:$4 sm:$0xff]  }
  0x1f   : > { %3070 = vmatpush1.bf16.msra.mxu1 %v4519_v26  ;;  %v4592_v9 = vld [vmem:[%s6589_s1 + $0x814] ss:$8 sps:$4 sm:$0xff]   ;;  %v4587_v10 = vld [vmem:[%s6589_s1 + $0x110] ss:$8 sps:$4 sm:$0xff]   ;;  %v4595_v12 = vld [vmem:[%s6589_s1 + $0x124] ss:$8 sps:$4 sm:$0xff]  }
  0x20   : > { %3427 = vmatpush1.bf16.msra.mxu0 %v4520_v27  ;;  %3071 = vmatprep.subr.bf16.mxu1 %v4521_v28  ;;  %v4590_v11 = vld [vmem:[%s6589_s1 + $0x810] ss:$8 sps:$4 sm:$0xff]   ;;  %v4598_v13 = vld [vmem:[%s6589_s1 + $0x824] ss:$8 sps:$4 sm:$0xff]   ;;  %v4593_v14 = vld [vmem:[%s6589_s1 + $0x120] ss:$8 sps:$4 sm:$0xff]  }
  0x21   : > { %3428 = vmatprep.subr.bf16.mxu0 %v4523_v29  ;;  %v4596_v15 = vld [vmem:[%s6589_s1 + $0x820] ss:$8 sps:$4 sm:$0xff]   ;;  %v4601_v16 = vld [vmem:[%s6589_s1 + $0x134] ss:$8 sps:$4 sm:$0xff]   ;;  %v4599_v18 = vld [vmem:[%s6589_s1 + $0x130] ss:$8 sps:$4 sm:$0xff]  }
  0x22   : > { %v4604_v17 = vld [vmem:[%s6589_s1 + $0x834] ss:$8 sps:$4 sm:$0xff]   ;;  %v4602_v19 = vld [vmem:[%s6589_s1 + $0x830] ss:$8 sps:$4 sm:$0xff]   ;;  %v4607_v20 = vld [vmem:[%s6589_s1 + $0x144] ss:$8 sps:$4 sm:$0xff]  }
  0x23   : > { %3072 = vmatpush1.bf16.msra.mxu1 %v4525_v30  ;;  %v4610_v21 = vld [vmem:[%s6589_s1 + $0x844] ss:$8 sps:$4 sm:$0xff]   ;;  %v4605_v22 = vld [vmem:[%s6589_s1 + $0x140] ss:$8 sps:$4 sm:$0xff]   ;;  %v4613_v24 = vld [vmem:[%s6589_s1 + $0x154] ss:$8 sps:$4 sm:$0xff]  }
  0x24   : > { %3429 = vmatpush1.bf16.msra.mxu0 %v4526_v31  ;;  %3073 = vmatprep.subr.bf16.mxu1 %v4527_v32  ;;  %v4608_v23 = vld [vmem:[%s6589_s1 + $0x840] ss:$8 sps:$4 sm:$0xff]   ;;  %v4616_v25 = vld [vmem:[%s6589_s1 + $0x854] ss:$8 sps:$4 sm:$0xff]   ;;  %v4611_v27 = vld [vmem:[%s6589_s1 + $0x150] ss:$8 sps:$4 sm:$0xff]  }
  0x25   : > { %3430 = vmatprep.subr.bf16.mxu0 %v4529_v33  ;;  %v208_v26 = vld [vmem:[%s5374_s5 + $0xd8] sm:$0xff]  ;;  %v215_v31 = vld [vmem:[%s5374_s5 + $0x110] sm:$0xff]  ;;  %v4619_v32 = vld [vmem:[%s6589_s1 + $0x164] ss:$8 sps:$4 sm:$0xff]  }
  0x26   : > { %v3894_v28 = vcombine.high %v208_v26, %v208_v26  ;;  %v3893_v29 = vcombine.low %v208_v26, %v208_v26  ;;  %v4614_v30 = vld [vmem:[%s6589_s1 + $0x850] ss:$8 sps:$4 sm:$0xff]   ;;  %v4622_v33 = vld [vmem:[%s6589_s1 + $0x864] ss:$8 sps:$4 sm:$0xff]   ;;  %v4637_v48 = vld [vmem:[%s6589_s1 + $0x194] ss:$8 sps:$4 sm:$0xff]  }
  0x27   : > { %3074 = vmatpush1.bf16.msra.mxu1 %v4531_v34  ;;  %v3908_v34 = vcombine.high %v215_v31, %v215_v31  ;;  %v4638_v51 = vld [vmem:[%s6589_s1 + $0x890] ss:$8 sps:$4 sm:$0xff]   ;;  %v4701_v26 = vld [vmem:[%s6589_s1 + $0x224] ss:$8 sps:$4 sm:$0xff]  }
  0x28   : > { %3431 = vmatpush1.bf16.msra.mxu0 %v4532_v35  ;;  %3075 = vmatprep.subr.bf16.mxu1 %v4533_v36  ;;  %v3907_v35 = vcombine.low %v215_v31, %v215_v31  ;;  %v4617_v36 = vld [vmem:[%s6589_s1 + $0x160] ss:$8 sps:$4 sm:$0xff]  }
  0x29   : > { %3432 = vmatprep.subr.bf16.mxu0 %v4535_v37  ;;  %v4620_v37 = vld [vmem:[%s6589_s1 + $0x860] ss:$8 sps:$4 sm:$0xff]  }
  0x2b   : > { %3076 = vmatpush1.bf16.msra.mxu1 %v4537_v38  ;;  %v4625_v38 = vld [vmem:[%s6589_s1 + $0x174] ss:$8 sps:$4 sm:$0xff]  }
  0x2c   : > { %3433 = vmatpush1.bf16.msra.mxu0 %v4538_v39  ;;  %3077 = vmatprep.subr.bf16.mxu1 %v4539_v40  ;;  %v4628_v39 = vld [vmem:[%s6589_s1 + $0x874] ss:$8 sps:$4 sm:$0xff]   ;;  %v4683_v40 = vld [vmem:[%s5374_s5 + $0xc] ss:$108 sps:$4 sm:$0xff]  }
  0x2d   : > { %3434 = vmatprep.subr.bf16.mxu0 %v4541_v41  ;;  %v4623_v41 = vld [vmem:[%s6589_s1 + $0x170] ss:$8 sps:$4 sm:$0xff]  }
  0x2f   : > { %3078 = vmatpush1.bf16.msra.mxu1 %v4543_v42  ;;  %v4626_v42 = vld [vmem:[%s6589_s1 + $0x870] ss:$8 sps:$4 sm:$0xff]  }
  0x30   : > { %3435 = vmatpush1.bf16.msra.mxu0 %v4544_v43  ;;  %3079 = vmatprep.subr.bf16.mxu1 %v4545_v44  ;;  %v4689_v43 = vld [vmem:[%s5374_s5 + $0x44] ss:$108 sps:$4 sm:$0xff]  }
  0x31   : > { %3436 = vmatprep.subr.bf16.mxu0 %v4547_v45  ;;  %v4631_v44 = vld [vmem:[%s6589_s1 + $0x184] ss:$8 sps:$4 sm:$0xff]  }
  0x32   : > { %v4634_v45 = vld [vmem:[%s6589_s1 + $0x884] ss:$8 sps:$4 sm:$0xff]  }
  0x33   : > { %3080 = vmatpush1.bf16.msra.mxu1 %v4549_v46  ;;  %v4629_v46 = vld [vmem:[%s6589_s1 + $0x180] ss:$8 sps:$4 sm:$0xff]  }
  0x34   : > { %3437 = vmatpush1.bf16.msra.mxu0 %v4550_v47  ;;  %3081 = vmatprep.subr.bf16.mxu1 %v4551_v49  ;;  %v4632_v47 = vld [vmem:[%s6589_s1 + $0x880] ss:$8 sps:$4 sm:$0xff]   ;;  %v4640_v49 = vld [vmem:[%s6589_s1 + $0x894] ss:$8 sps:$4 sm:$0xff]  }
  0x35   : > { %3438 = vmatprep.subr.bf16.mxu0 %v4553_v50  ;;  %v4635_v50 = vld [vmem:[%s6589_s1 + $0x190] ss:$8 sps:$4 sm:$0xff]  }
  0x37   : > { %3082 = vmatpush1.bf16.msra.mxu1 %v4555_v52  ;;  %v4643_v52 = vld [vmem:[%s6589_s1 + $0x1a4] ss:$8 sps:$4 sm:$0xff]  }
  0x38   : > { %3439 = vmatpush1.bf16.msra.mxu0 %v4556_v53  ;;  %3083 = vmatprep.subr.bf16.mxu1 %v4557_v54  ;;  %v4646_v53 = vld [vmem:[%s6589_s1 + $0x8a4] ss:$8 sps:$4 sm:$0xff]   ;;  %v4641_v54 = vld [vmem:[%s6589_s1 + $0x1a0] ss:$8 sps:$4 sm:$0xff]  }
  0x39   : > { %3440 = vmatprep.subr.bf16.mxu0 %v4559_v55  ;;  %v4644_v55 = vld [vmem:[%s6589_s1 + $0x8a0] ss:$8 sps:$4 sm:$0xff]  }
  0x3b   : > { %3084 = vmatpush1.bf16.msra.mxu1 %v4561_v56  ;;  %v4649_v56 = vld [vmem:[%s6589_s1 + $0x1b4] ss:$8 sps:$4 sm:$0xff]  }
  0x3c   : > { %3441 = vmatpush1.bf16.msra.mxu0 %v4562_v57  ;;  %3085 = vmatprep.subr.bf16.mxu1 %v4563_v58  ;;  %v4652_v57 = vld [vmem:[%s6589_s1 + $0x8b4] ss:$8 sps:$4 sm:$0xff]   ;;  %v4647_v58 = vld [vmem:[%s6589_s1 + $0x1b0] ss:$8 sps:$4 sm:$0xff]  }
  0x3d   : > { %3442 = vmatprep.subr.bf16.mxu0 %v4565_v59  ;;  %v4650_v59 = vld [vmem:[%s6589_s1 + $0x8b0] ss:$8 sps:$4 sm:$0xff]  }
  0x3f   : > { %3086 = vmatpush1.bf16.msra.mxu1 %v4567_v60  ;;  %v4655_v60 = vld [vmem:[%s6589_s1 + $0x1c4] ss:$8 sps:$4 sm:$0xff]  }
  0x40   : > { %3443 = vmatpush1.bf16.msra.mxu0 %v4568_v61  ;;  %3087 = vmatprep.subr.bf16.mxu1 %v4569_v62  ;;  %v4658_v61 = vld [vmem:[%s6589_s1 + $0x8c4] ss:$8 sps:$4 sm:$0xff]   ;;  %v4653_v62 = vld [vmem:[%s6589_s1 + $0x1c0] ss:$8 sps:$4 sm:$0xff]  }
  0x41   : > { %3444 = vmatprep.subr.bf16.mxu0 %v4571_v63  ;;  %v4656_v63 = vld [vmem:[%s6589_s1 + $0x8c0] ss:$8 sps:$4 sm:$0xff]  }
  0x43   : > { %3088 = vmatpush1.bf16.msra.mxu1 %v4573_v0  ;;  %v4661_v0 = vld [vmem:[%s6589_s1 + $0x1d4] ss:$8 sps:$4 sm:$0xff]  }
  0x44   : > { %3445 = vmatpush1.bf16.msra.mxu0 %v4574_v1  ;;  %3108 = vmatprep.subr.bf16.mxu1 %v4580_v2  ;;  %v4664_v1 = vld [vmem:[%s6589_s1 + $0x8d4] ss:$8 sps:$4 sm:$0xff]   ;;  %v4659_v2 = vld [vmem:[%s6589_s1 + $0x1d0] ss:$8 sps:$4 sm:$0xff]  }
  0x45   : > { %3465 = vmatprep.subr.bf16.mxu0 %v4586_v3  ;;  %v4662_v3 = vld [vmem:[%s6589_s1 + $0x8d0] ss:$8 sps:$4 sm:$0xff]  }
  0x46   : > { %3090 = vmatmul.mubr.bf16.vlgmr.msra.gmra.mrb[0].mxu1 %v4575_v4  ;;  %v4668_v4 = vld [vmem:[%s6589_s1 + $0x1e4] ss:$8 sps:$4 sm:$0xff]  }
  0x47   : > { %3447 = vmatmul.mubr.bf16.vlgmr.msra.gmra.mrb[0].mxu0 %v4581_v6  ;;  %3109 = vmatpush1.bf16.msra.mxu1 %v4578_v5  ;;  %v4672_v5 = vld [vmem:[%s6589_s1 + $0x8e4] ss:$8 sps:$4 sm:$0xff]   ;;  %v4666_v6 = vld [vmem:[%s6589_s1 + $0x1e0] ss:$8 sps:$4 sm:$0xff]  }
  0x48   : > { %3466 = vmatpush1.bf16.msra.mxu0 %v4584_v7  ;;  %3110 = vmatprep.subr.bf16.mxu1 %v4589_v8  ;;  %v4670_v7 = vld [vmem:[%s6589_s1 + $0x8e0] ss:$8 sps:$4 sm:$0xff]   ;;  %v4677_v8 = vld [vmem:[%s6589_s1 + $0x1f4] ss:$8 sps:$4 sm:$0xff]  }
  0x49   : > { %3467 = vmatprep.subr.bf16.mxu0 %v4592_v9  ;;  %3099 = vmatprep.mubr.bf16.mxu1 %v3894_v28  ;;  %v4680_v9 = vld [vmem:[%s6589_s1 + $0x8f4] ss:$8 sps:$4 sm:$0xff]   ;;  %v4699_v28 = vld [vmem:[%s6589_s1 + $0x220] ss:$8 sps:$4 sm:$0xff]  }
  0x4a   : > { %3456 = vmatprep.mubr.bf16.mxu0 %v3908_v34  ;;  %v4789_v34 = vld [vmem:[%s5374_s5 + $0x14] ss:$108 sps:$4 sm:$0xff]  }
  0x4b   : > { %3111 = vmatpush1.bf16.msra.mxu1 %v4587_v10  ;;  %v4675_v10 = vld [vmem:[%s6589_s1 + $0x1f0] ss:$8 sps:$4 sm:$0xff]  }
  0x4c   : > { %3468 = vmatpush1.bf16.msra.mxu0 %v4590_v11  ;;  %3112 = vmatprep.subr.bf16.mxu1 %v4595_v12  ;;  %v4678_v11 = vld [vmem:[%s6589_s1 + $0x8f0] ss:$8 sps:$4 sm:$0xff]   ;;  %v4681_v12 = vld [vmem:[%s5374_s5 + $0x8] ss:$108 sps:$4 sm:$0xff]  }
  0x4d   : > { %3469 = vmatprep.subr.bf16.mxu0 %v4598_v13  ;;  %v4686_v13 = vld [vmem:[%s6589_s1 + $0x204] ss:$8 sps:$4 sm:$0xff]  }
  0x4e   : > { %3100 = vmatmul.mubr.bf16.gmra.mrb[4].mxu1 %v3893_v29  ;;  %v4702_v29 = vld [vmem:[%s6589_s1 + $0x920] ss:$8 sps:$4 sm:$0xff]  }
  0x4f   : > { %3113 = vmatpush1.bf16.msra.mxu1 %v4593_v14  ;;  %3457 = vmatmul.mubr.bf16.gmra.mrb[4].mxu0 %v3907_v35  ;;  %v4692_v14 = vld [vmem:[%s6589_s1 + $0x904] ss:$8 sps:$4 sm:$0xff]  }
  0x50   : > { %3470 = vmatpush1.bf16.msra.mxu0 %v4596_v15  ;;  %3114 = vmatprep.subr.bf16.mxu1 %v4601_v16  ;;  %v4684_v15 = vld [vmem:[%s6589_s1 + $0x200] ss:$8 sps:$4 sm:$0xff]   ;;  %v4795_v35 = vld [vmem:[%s5374_s5 + $0x4c] ss:$108 sps:$4 sm:$0xff]  }
  0x51   : > { %3471 = vmatprep.subr.bf16.mxu0 %v4604_v17  ;;  %3140 = vmatprep.mubr.bf16.mxu1 %v4683_v40  ;;  %v4687_v16 = vld [vmem:[%s5374_s5 + $0x40] ss:$108 sps:$4 sm:$0xff]  }
  0x52   : > { %3497 = vmatprep.mubr.bf16.mxu0 %v4689_v43  ;;  %v4690_v17 = vld [vmem:[%s6589_s1 + $0x900] ss:$8 sps:$4 sm:$0xff]   ;;  %v4722_v43 = vld [vmem:[%s6589_s1 + $0x954] ss:$8 sps:$4 sm:$0xff]  }
  0x53   : > { %3115 = vmatpush1.bf16.msra.mxu1 %v4599_v18  ;;  %v4695_v18 = vld [vmem:[%s6589_s1 + $0x214] ss:$8 sps:$4 sm:$0xff]   ;;  %v4711_v40 = vld [vmem:[%s6589_s1 + $0x240] ss:$8 sps:$4 sm:$0xff]  }
  0x54   : > { %3472 = vmatpush1.bf16.msra.mxu0 %v4602_v19  ;;  %3116 = vmatprep.subr.bf16.mxu1 %v4607_v20  ;;  %v209_v19 = vld [vmem:[%s5374_s5 + $0xe0] sm:$0xff]  ;;  %v4698_v20 = vld [vmem:[%s6589_s1 + $0x914] ss:$8 sps:$4 sm:$0xff]  }
  0x55   : > { %3473 = vmatprep.subr.bf16.mxu0 %v4610_v21  ;;  %v3896_v21 = vcombine.high %v209_v19, %v209_v19 }
  0x57   : > { %3117 = vmatpush1.bf16.msra.mxu1 %v4605_v22  ;;  %v216_v22 = vld [vmem:[%s5374_s5 + $0x118] sm:$0xff] }
  0x58   : > { %3474 = vmatpush1.bf16.msra.mxu0 %v4608_v23  ;;  %3118 = vmatprep.subr.bf16.mxu1 %v4613_v24  ;;  %v4693_v23 = vld [vmem:[%s6589_s1 + $0x210] ss:$8 sps:$4 sm:$0xff]   ;;  %v3909_v31 = vcombine.low %v216_v22, %v216_v22 }
  0x59   : > { %3475 = vmatprep.subr.bf16.mxu0 %v4616_v25  ;;  %v4696_v24 = vld [vmem:[%s6589_s1 + $0x910] ss:$8 sps:$4 sm:$0xff]   ;;  %v3910_v25 = vcombine.high %v216_v22, %v216_v22  ;;  %v4792_v22 = vld [vmem:[%s6589_s1 + $0x304] ss:$8 sps:$4 sm:$0xff]  }
  0x5b   : > { %3119 = vmatpush1.bf16.msra.mxu1 %v4611_v27  ;;  %v4704_v27 = vld [vmem:[%s6589_s1 + $0x924] ss:$8 sps:$4 sm:$0xff]  }
  0x5c   : > { %3476 = vmatpush1.bf16.msra.mxu0 %v4614_v30  ;;  %3120 = vmatprep.subr.bf16.mxu1 %v4619_v32  ;;  %v3895_v30 = vcombine.low %v209_v19, %v209_v19  ;;  %v4707_v32 = vld [vmem:[%s6589_s1 + $0x234] ss:$8 sps:$4 sm:$0xff]  }
  0x5d   : > { %3477 = vmatprep.subr.bf16.mxu0 %v4622_v33  ;;  %v4710_v33 = vld [vmem:[%s6589_s1 + $0x934] ss:$8 sps:$4 sm:$0xff]  }
  0x5e   : > { %v4786_v19 = vld [vmem:[%s6589_s1 + $0x9f4] ss:$8 sps:$4 sm:$0xff]  }
  0x5f   : > { %3121 = vmatpush1.bf16.msra.mxu1 %v4617_v36  ;;  %v4705_v36 = vld [vmem:[%s6589_s1 + $0x230] ss:$8 sps:$4 sm:$0xff]  }
  0x60   : > { %3478 = vmatpush1.bf16.msra.mxu0 %v4620_v37  ;;  %3122 = vmatprep.subr.bf16.mxu1 %v4625_v38  ;;  %v4708_v37 = vld [vmem:[%s6589_s1 + $0x930] ss:$8 sps:$4 sm:$0xff]   ;;  %v4713_v38 = vld [vmem:[%s6589_s1 + $0x244] ss:$8 sps:$4 sm:$0xff]  }
  0x61   : > { %3479 = vmatprep.subr.bf16.mxu0 %v4628_v39  ;;  %v4716_v39 = vld [vmem:[%s6589_s1 + $0x944] ss:$8 sps:$4 sm:$0xff]  }
  0x63   : > { %3123 = vmatpush1.bf16.msra.mxu1 %v4623_v41  ;;  %v4714_v41 = vld [vmem:[%s6589_s1 + $0x940] ss:$8 sps:$4 sm:$0xff]  }
  0x64   : > { %3480 = vmatpush1.bf16.msra.mxu0 %v4626_v42  ;;  %3124 = vmatprep.subr.bf16.mxu1 %v4631_v44  ;;  %v4719_v42 = vld [vmem:[%s6589_s1 + $0x254] ss:$8 sps:$4 sm:$0xff]   ;;  %v4717_v44 = vld [vmem:[%s6589_s1 + $0x250] ss:$8 sps:$4 sm:$0xff]  }
  0x65   : > { %3481 = vmatprep.subr.bf16.mxu0 %v4634_v45  ;;  %v4720_v45 = vld [vmem:[%s6589_s1 + $0x950] ss:$8 sps:$4 sm:$0xff]  }
  0x67   : > { %3125 = vmatpush1.bf16.msra.mxu1 %v4629_v46  ;;  %v4725_v46 = vld [vmem:[%s6589_s1 + $0x264] ss:$8 sps:$4 sm:$0xff]  }
  0x68   : > { %3482 = vmatpush1.bf16.msra.mxu0 %v4632_v47  ;;  %3126 = vmatprep.subr.bf16.mxu1 %v4637_v48  ;;  %v4728_v47 = vld [vmem:[%s6589_s1 + $0x964] ss:$8 sps:$4 sm:$0xff]   ;;  %v4723_v48 = vld [vmem:[%s6589_s1 + $0x260] ss:$8 sps:$4 sm:$0xff]  }
  0x69   : > { %3483 = vmatprep.subr.bf16.mxu0 %v4640_v49  ;;  %v4726_v49 = vld [vmem:[%s6589_s1 + $0x960] ss:$8 sps:$4 sm:$0xff]  }
  0x6b   : > { %3127 = vmatpush1.bf16.msra.mxu1 %v4635_v50  ;;  %v4731_v50 = vld [vmem:[%s6589_s1 + $0x274] ss:$8 sps:$4 sm:$0xff]  }
  0x6c   : > { %3484 = vmatpush1.bf16.msra.mxu0 %v4638_v51  ;;  %3128 = vmatprep.subr.bf16.mxu1 %v4643_v52  ;;  %v4734_v51 = vld [vmem:[%s6589_s1 + $0x974] ss:$8 sps:$4 sm:$0xff]   ;;  %v4729_v52 = vld [vmem:[%s6589_s1 + $0x270] ss:$8 sps:$4 sm:$0xff]  }
  0x6d   : > { %3485 = vmatprep.subr.bf16.mxu0 %v4646_v53  ;;  %v4732_v53 = vld [vmem:[%s6589_s1 + $0x970] ss:$8 sps:$4 sm:$0xff]  }
  0x6f   : > { %3129 = vmatpush1.bf16.msra.mxu1 %v4641_v54  ;;  %v4737_v54 = vld [vmem:[%s6589_s1 + $0x284] ss:$8 sps:$4 sm:$0xff]  }
  0x70   : > { %3486 = vmatpush1.bf16.msra.mxu0 %v4644_v55  ;;  %3130 = vmatprep.subr.bf16.mxu1 %v4649_v56  ;;  %v4740_v55 = vld [vmem:[%s6589_s1 + $0x984] ss:$8 sps:$4 sm:$0xff]   ;;  %v4735_v56 = vld [vmem:[%s6589_s1 + $0x280] ss:$8 sps:$4 sm:$0xff]  }
  0x71   : > { %3487 = vmatprep.subr.bf16.mxu0 %v4652_v57  ;;  %v4738_v57 = vld [vmem:[%s6589_s1 + $0x980] ss:$8 sps:$4 sm:$0xff]  }
  0x73   : > { %3131 = vmatpush1.bf16.msra.mxu1 %v4647_v58  ;;  %v4743_v58 = vld [vmem:[%s6589_s1 + $0x294] ss:$8 sps:$4 sm:$0xff]  }
  0x74   : > { %3488 = vmatpush1.bf16.msra.mxu0 %v4650_v59  ;;  %3132 = vmatprep.subr.bf16.mxu1 %v4655_v60  ;;  %v4746_v59 = vld [vmem:[%s6589_s1 + $0x994] ss:$8 sps:$4 sm:$0xff]   ;;  %v4741_v60 = vld [vmem:[%s6589_s1 + $0x290] ss:$8 sps:$4 sm:$0xff]  }
  0x75   : > { %3489 = vmatprep.subr.bf16.mxu0 %v4658_v61  ;;  %v4744_v61 = vld [vmem:[%s6589_s1 + $0x990] ss:$8 sps:$4 sm:$0xff]  }
  0x77   : > { %3133 = vmatpush1.bf16.msra.mxu1 %v4653_v62  ;;  %v4749_v62 = vld [vmem:[%s6589_s1 + $0x2a4] ss:$8 sps:$4 sm:$0xff]  }
  0x78   : > { %3490 = vmatpush1.bf16.msra.mxu0 %v4656_v63  ;;  %3134 = vmatprep.subr.bf16.mxu1 %v4661_v0  ;;  %v4752_v63 = vld [vmem:[%s6589_s1 + $0x9a4] ss:$8 sps:$4 sm:$0xff]   ;;  %v4747_v0 = vld [vmem:[%s6589_s1 + $0x2a0] ss:$8 sps:$4 sm:$0xff]  }
  0x79   : > { %3491 = vmatprep.subr.bf16.mxu0 %v4664_v1  ;;  %v4750_v1 = vld [vmem:[%s6589_s1 + $0x9a0] ss:$8 sps:$4 sm:$0xff]  }
  0x7b   : > { %3135 = vmatpush1.bf16.msra.mxu1 %v4659_v2  ;;  %v4755_v2 = vld [vmem:[%s6589_s1 + $0x2b4] ss:$8 sps:$4 sm:$0xff]  }
  0x7c   : > { %3492 = vmatpush1.bf16.msra.mxu0 %v4662_v3  ;;  %3136 = vmatprep.subr.bf16.mxu1 %v4668_v4  ;;  %v4758_v3 = vld [vmem:[%s6589_s1 + $0x9b4] ss:$8 sps:$4 sm:$0xff]   ;;  %v4753_v4 = vld [vmem:[%s6589_s1 + $0x2b0] ss:$8 sps:$4 sm:$0xff]  }
  0x7d   : > { %3493 = vmatprep.subr.bf16.mxu0 %v4672_v5  ;;  %v4756_v5 = vld [vmem:[%s6589_s1 + $0x9b0] ss:$8 sps:$4 sm:$0xff]  }
  0x7f   : > { %3137 = vmatpush1.bf16.msra.mxu1 %v4666_v6  ;;  %v4761_v6 = vld [vmem:[%s6589_s1 + $0x2c4] ss:$8 sps:$4 sm:$0xff]  }
  0x80   : > { %3494 = vmatpush1.bf16.msra.mxu0 %v4670_v7  ;;  %3138 = vmatprep.subr.bf16.mxu1 %v4677_v8  ;;  %v4764_v7 = vld [vmem:[%s6589_s1 + $0x9c4] ss:$8 sps:$4 sm:$0xff]   ;;  %v4759_v8 = vld [vmem:[%s6589_s1 + $0x2c0] ss:$8 sps:$4 sm:$0xff]  }
  0x81   : > { %3495 = vmatprep.subr.bf16.mxu0 %v4680_v9  ;;  %v4762_v9 = vld [vmem:[%s6589_s1 + $0x9c0] ss:$8 sps:$4 sm:$0xff]  }
  0x83   : > { %3139 = vmatpush1.bf16.msra.mxu1 %v4675_v10  ;;  %v4767_v10 = vld [vmem:[%s6589_s1 + $0x2d4] ss:$8 sps:$4 sm:$0xff]  }
  0x84   : > { %3496 = vmatpush1.bf16.msra.mxu0 %v4678_v11  ;;  %3159 = vmatprep.subr.bf16.mxu1 %v4686_v13  ;;  %v4770_v11 = vld [vmem:[%s6589_s1 + $0x9d4] ss:$8 sps:$4 sm:$0xff]   ;;  %v4768_v13 = vld [vmem:[%s6589_s1 + $0x9d0] ss:$8 sps:$4 sm:$0xff]  }
  0x85   : > { %3516 = vmatprep.subr.bf16.mxu0 %v4692_v14  ;;  %v4774_v14 = vld [vmem:[%s6589_s1 + $0x2e4] ss:$8 sps:$4 sm:$0xff]  }
  0x86   : > { %3141 = vmatmul.mubr.bf16.vlgmr.msra.gmra.mrb[0].mxu1 %v4681_v12  ;;  %v4765_v12 = vld [vmem:[%s6589_s1 + $0x2d0] ss:$8 sps:$4 sm:$0xff]  }
  0x87   : > { %3498 = vmatmul.mubr.bf16.vlgmr.msra.gmra.mrb[0].mxu0 %v4687_v16  ;;  %3160 = vmatpush1.bf16.msra.mxu1 %v4684_v15  ;;  %v4778_v15 = vld [vmem:[%s6589_s1 + $0x9e4] ss:$8 sps:$4 sm:$0xff]   ;;  %v4772_v16 = vld [vmem:[%s6589_s1 + $0x2e0] ss:$8 sps:$4 sm:$0xff]  }
  0x88   : > { %3517 = vmatpush1.bf16.msra.mxu0 %v4690_v17  ;;  %3161 = vmatprep.subr.bf16.mxu1 %v4695_v18  ;;  %v4776_v17 = vld [vmem:[%s6589_s1 + $0x9e0] ss:$8 sps:$4 sm:$0xff]   ;;  %v4783_v18 = vld [vmem:[%s6589_s1 + $0x2f4] ss:$8 sps:$4 sm:$0xff]  }
  0x89   : > { %3518 = vmatprep.subr.bf16.mxu0 %v4698_v20  ;;  %3150 = vmatprep.mubr.bf16.mxu1 %v3896_v21  ;;  %v4781_v20 = vld [vmem:[%s6589_s1 + $0x2f0] ss:$8 sps:$4 sm:$0xff]  }
  0x8a   : > { %3507 = vmatprep.mubr.bf16.mxu0 %v3910_v25  ;;  %v4784_v21 = vld [vmem:[%s6589_s1 + $0x9f0] ss:$8 sps:$4 sm:$0xff]   ;;  %v4798_v25 = vld [vmem:[%s6589_s1 + $0xa04] ss:$8 sps:$4 sm:$0xff]  }
  0x8b   : > { %3162 = vmatpush1.bf16.msra.mxu1 %v4693_v23  ;;  %v4787_v23 = vld [vmem:[%s5374_s5 + $0x10] ss:$108 sps:$4 sm:$0xff]  }
  0x8c   : > { %3519 = vmatpush1.bf16.msra.mxu0 %v4696_v24  ;;  %3163 = vmatprep.subr.bf16.mxu1 %v4701_v26  ;;  %v4793_v24 = vld [vmem:[%s5374_s5 + $0x48] ss:$108 sps:$4 sm:$0xff]  }
  0x8d   : > { %3520 = vmatprep.subr.bf16.mxu0 %v4704_v27  ;;  %v210_v26 = vld [vmem:[%s5374_s5 + $0xe8] sm:$0xff]  ;;  %v217_v27 = vld [vmem:[%s5374_s5 + $0x120] sm:$0xff] }
  0x8e   : > { %3151 = vmatmul.mubr.bf16.gmra.mrb[4].mxu1 %v3895_v30  ;;  %v4801_v30 = vld [vmem:[%s6589_s1 + $0x314] ss:$8 sps:$4 sm:$0xff]  }
  0x8f   : > { %3508 = vmatmul.mubr.bf16.gmra.mrb[4].mxu0 %v3909_v31  ;;  %3164 = vmatpush1.bf16.msra.mxu1 %v4699_v28  ;;  %v4790_v28 = vld [vmem:[%s6589_s1 + $0x300] ss:$8 sps:$4 sm:$0xff]   ;;  %v4804_v31 = vld [vmem:[%s6589_s1 + $0xa14] ss:$8 sps:$4 sm:$0xff]  }
  0x90   : > { %3521 = vmatpush1.bf16.msra.mxu0 %v4702_v29  ;;  %3165 = vmatprep.subr.bf16.mxu1 %v4707_v32  ;;  %v4796_v29 = vld [vmem:[%s6589_s1 + $0xa00] ss:$8 sps:$4 sm:$0xff]   ;;  %v3898_v32 = vcombine.high %v210_v26, %v210_v26 }
  0x91   : > { %3522 = vmatprep.subr.bf16.mxu0 %v4710_v33  ;;  %3191 = vmatprep.mubr.bf16.mxu1 %v4789_v34  ;;  %v3912_v33 = vcombine.high %v217_v27, %v217_v27  ;;  %v4799_v34 = vld [vmem:[%s6589_s1 + $0x310] ss:$8 sps:$4 sm:$0xff]  }
  0x92   : > { %3548 = vmatprep.mubr.bf16.mxu0 %v4795_v35  ;;  %v4802_v35 = vld [vmem:[%s6589_s1 + $0xa10] ss:$8 sps:$4 sm:$0xff]  }
  0x93   : > { %3166 = vmatpush1.bf16.msra.mxu1 %v4705_v36  ;;  %v4807_v36 = vld [vmem:[%s6589_s1 + $0x324] ss:$8 sps:$4 sm:$0xff]  }
  0x94   : > { %3523 = vmatpush1.bf16.msra.mxu0 %v4708_v37  ;;  %3167 = vmatprep.subr.bf16.mxu1 %v4713_v38  ;;  %v4810_v37 = vld [vmem:[%s6589_s1 + $0xa24] ss:$8 sps:$4 sm:$0xff]   ;;  %v4805_v38 = vld [vmem:[%s6589_s1 + $0x320] ss:$8 sps:$4 sm:$0xff]  }
  0x95   : > { %3524 = vmatprep.subr.bf16.mxu0 %v4716_v39  ;;  %v3897_v39 = vcombine.low %v210_v26, %v210_v26  ;;  %v4878_v26 = vld [vmem:[%s6589_s1 + $0x3e0] ss:$8 sps:$4 sm:$0xff]  }
  0x97   : > { %3168 = vmatpush1.bf16.msra.mxu1 %v4711_v40  ;;  %v3911_v40 = vcombine.low %v217_v27, %v217_v27  ;;  %v4882_v27 = vld [vmem:[%s6589_s1 + $0xae0] ss:$8 sps:$4 sm:$0xff]  }
  0x98   : > { %3525 = vmatpush1.bf16.msra.mxu0 %v4714_v41  ;;  %3169 = vmatprep.subr.bf16.mxu1 %v4719_v42  ;;  %v4808_v41 = vld [vmem:[%s6589_s1 + $0xa20] ss:$8 sps:$4 sm:$0xff]   ;;  %v4813_v42 = vld [vmem:[%s6589_s1 + $0x334] ss:$8 sps:$4 sm:$0xff]  }
  0x99   : > { %3526 = vmatprep.subr.bf16.mxu0 %v4722_v43  ;;  %v4816_v43 = vld [vmem:[%s6589_s1 + $0xa34] ss:$8 sps:$4 sm:$0xff]  }
  0x9b   : > { %3170 = vmatpush1.bf16.msra.mxu1 %v4717_v44  ;;  %v4895_v44 = vld [vmem:[%s5374_s5 + $0x1c] ss:$108 sps:$4 sm:$0xff]  }
  0x9c   : > { %3527 = vmatpush1.bf16.msra.mxu0 %v4720_v45  ;;  %3171 = vmatprep.subr.bf16.mxu1 %v4725_v46  ;;  %v4901_v45 = vld [vmem:[%s5374_s5 + $0x54] ss:$108 sps:$4 sm:$0xff]   ;;  %v4811_v46 = vld [vmem:[%s6589_s1 + $0x330] ss:$8 sps:$4 sm:$0xff]  }
  0x9d   : > { %3528 = vmatprep.subr.bf16.mxu0 %v4728_v47  ;;  %v4814_v47 = vld [vmem:[%s6589_s1 + $0xa30] ss:$8 sps:$4 sm:$0xff]  }
  0x9f   : > { %3172 = vmatpush1.bf16.msra.mxu1 %v4723_v48  ;;  %v4819_v48 = vld [vmem:[%s6589_s1 + $0x344] ss:$8 sps:$4 sm:$0xff]  }
  0xa0   : > { %3529 = vmatpush1.bf16.msra.mxu0 %v4726_v49  ;;  %3173 = vmatprep.subr.bf16.mxu1 %v4731_v50  ;;  %v4822_v49 = vld [vmem:[%s6589_s1 + $0xa44] ss:$8 sps:$4 sm:$0xff]   ;;  %v4817_v50 = vld [vmem:[%s6589_s1 + $0x340] ss:$8 sps:$4 sm:$0xff]  }
  0xa1   : > { %3530 = vmatprep.subr.bf16.mxu0 %v4734_v51  ;;  %v4820_v51 = vld [vmem:[%s6589_s1 + $0xa40] ss:$8 sps:$4 sm:$0xff]  }
  0xa3   : > { %3174 = vmatpush1.bf16.msra.mxu1 %v4729_v52  ;;  %v4825_v52 = vld [vmem:[%s6589_s1 + $0x354] ss:$8 sps:$4 sm:$0xff]  }
  0xa4   : > { %3531 = vmatpush1.bf16.msra.mxu0 %v4732_v53  ;;  %3175 = vmatprep.subr.bf16.mxu1 %v4737_v54  ;;  %v4828_v53 = vld [vmem:[%s6589_s1 + $0xa54] ss:$8 sps:$4 sm:$0xff]   ;;  %v4823_v54 = vld [vmem:[%s6589_s1 + $0x350] ss:$8 sps:$4 sm:$0xff]  }
  0xa5   : > { %3532 = vmatprep.subr.bf16.mxu0 %v4740_v55  ;;  %v4826_v55 = vld [vmem:[%s6589_s1 + $0xa50] ss:$8 sps:$4 sm:$0xff]  }
  0xa7   : > { %3176 = vmatpush1.bf16.msra.mxu1 %v4735_v56  ;;  %v4831_v56 = vld [vmem:[%s6589_s1 + $0x364] ss:$8 sps:$4 sm:$0xff]  }
  0xa8   : > { %3533 = vmatpush1.bf16.msra.mxu0 %v4738_v57  ;;  %3177 = vmatprep.subr.bf16.mxu1 %v4743_v58  ;;  %v4834_v57 = vld [vmem:[%s6589_s1 + $0xa64] ss:$8 sps:$4 sm:$0xff]   ;;  %v4829_v58 = vld [vmem:[%s6589_s1 + $0x360] ss:$8 sps:$4 sm:$0xff]  }
  0xa9   : > { %3534 = vmatprep.subr.bf16.mxu0 %v4746_v59  ;;  %v4832_v59 = vld [vmem:[%s6589_s1 + $0xa60] ss:$8 sps:$4 sm:$0xff]  }
  0xab   : > { %3178 = vmatpush1.bf16.msra.mxu1 %v4741_v60  ;;  %v4837_v60 = vld [vmem:[%s6589_s1 + $0x374] ss:$8 sps:$4 sm:$0xff]  }
  0xac   : > { %3535 = vmatpush1.bf16.msra.mxu0 %v4744_v61  ;;  %3179 = vmatprep.subr.bf16.mxu1 %v4749_v62  ;;  %v4840_v61 = vld [vmem:[%s6589_s1 + $0xa74] ss:$8 sps:$4 sm:$0xff]   ;;  %v4835_v62 = vld [vmem:[%s6589_s1 + $0x370] ss:$8 sps:$4 sm:$0xff]  }
  0xad   : > { %3536 = vmatprep.subr.bf16.mxu0 %v4752_v63  ;;  %v4838_v63 = vld [vmem:[%s6589_s1 + $0xa70] ss:$8 sps:$4 sm:$0xff]  }
  0xaf   : > { %3180 = vmatpush1.bf16.msra.mxu1 %v4747_v0  ;;  %v4843_v0 = vld [vmem:[%s6589_s1 + $0x384] ss:$8 sps:$4 sm:$0xff]  }
  0xb0   : > { %3537 = vmatpush1.bf16.msra.mxu0 %v4750_v1  ;;  %3181 = vmatprep.subr.bf16.mxu1 %v4755_v2  ;;  %v4846_v1 = vld [vmem:[%s6589_s1 + $0xa84] ss:$8 sps:$4 sm:$0xff]   ;;  %v4841_v2 = vld [vmem:[%s6589_s1 + $0x380] ss:$8 sps:$4 sm:$0xff]  }
  0xb1   : > { %3538 = vmatprep.subr.bf16.mxu0 %v4758_v3  ;;  %v4844_v3 = vld [vmem:[%s6589_s1 + $0xa80] ss:$8 sps:$4 sm:$0xff]  }
  0xb3   : > { %3182 = vmatpush1.bf16.msra.mxu1 %v4753_v4  ;;  %v4849_v4 = vld [vmem:[%s6589_s1 + $0x394] ss:$8 sps:$4 sm:$0xff]  }
  0xb4   : > { %3539 = vmatpush1.bf16.msra.mxu0 %v4756_v5  ;;  %3183 = vmatprep.subr.bf16.mxu1 %v4761_v6  ;;  %v4852_v5 = vld [vmem:[%s6589_s1 + $0xa94] ss:$8 sps:$4 sm:$0xff]   ;;  %v4847_v6 = vld [vmem:[%s6589_s1 + $0x390] ss:$8 sps:$4 sm:$0xff]  }
  0xb5   : > { %3540 = vmatprep.subr.bf16.mxu0 %v4764_v7  ;;  %v4850_v7 = vld [vmem:[%s6589_s1 + $0xa90] ss:$8 sps:$4 sm:$0xff]  }
  0xb7   : > { %3184 = vmatpush1.bf16.msra.mxu1 %v4759_v8  ;;  %v4855_v8 = vld [vmem:[%s6589_s1 + $0x3a4] ss:$8 sps:$4 sm:$0xff]  }
  0xb8   : > { %3541 = vmatpush1.bf16.msra.mxu0 %v4762_v9  ;;  %3185 = vmatprep.subr.bf16.mxu1 %v4767_v10  ;;  %v4858_v9 = vld [vmem:[%s6589_s1 + $0xaa4] ss:$8 sps:$4 sm:$0xff]   ;;  %v4853_v10 = vld [vmem:[%s6589_s1 + $0x3a0] ss:$8 sps:$4 sm:$0xff]  }
  0xb9   : > { %3542 = vmatprep.subr.bf16.mxu0 %v4770_v11  ;;  %v4856_v11 = vld [vmem:[%s6589_s1 + $0xaa0] ss:$8 sps:$4 sm:$0xff]  }
  0xbb   : > { %3186 = vmatpush1.bf16.msra.mxu1 %v4765_v12  ;;  %v4861_v12 = vld [vmem:[%s6589_s1 + $0x3b4] ss:$8 sps:$4 sm:$0xff]  }
  0xbc   : > { %3543 = vmatpush1.bf16.msra.mxu0 %v4768_v13  ;;  %3187 = vmatprep.subr.bf16.mxu1 %v4774_v14  ;;  %v4864_v13 = vld [vmem:[%s6589_s1 + $0xab4] ss:$8 sps:$4 sm:$0xff]   ;;  %v4859_v14 = vld [vmem:[%s6589_s1 + $0x3b0] ss:$8 sps:$4 sm:$0xff]  }
  0xbd   : > { %3544 = vmatprep.subr.bf16.mxu0 %v4778_v15  ;;  %v4862_v15 = vld [vmem:[%s6589_s1 + $0xab0] ss:$8 sps:$4 sm:$0xff]  }
  0xbf   : > { %3188 = vmatpush1.bf16.msra.mxu1 %v4772_v16  ;;  %v4867_v16 = vld [vmem:[%s6589_s1 + $0x3c4] ss:$8 sps:$4 sm:$0xff]  }
  0xc0   : > { %3545 = vmatpush1.bf16.msra.mxu0 %v4776_v17  ;;  %3189 = vmatprep.subr.bf16.mxu1 %v4783_v18  ;;  %v4870_v17 = vld [vmem:[%s6589_s1 + $0xac4] ss:$8 sps:$4 sm:$0xff]   ;;  %v4865_v18 = vld [vmem:[%s6589_s1 + $0x3c0] ss:$8 sps:$4 sm:$0xff]  }
  0xc1   : > { %3546 = vmatprep.subr.bf16.mxu0 %v4786_v19  ;;  %v4868_v19 = vld [vmem:[%s6589_s1 + $0xac0] ss:$8 sps:$4 sm:$0xff]  }
  0xc3   : > { %3190 = vmatpush1.bf16.msra.mxu1 %v4781_v20  ;;  %v4873_v20 = vld [vmem:[%s6589_s1 + $0x3d4] ss:$8 sps:$4 sm:$0xff]  }
  0xc4   : > { %3547 = vmatpush1.bf16.msra.mxu0 %v4784_v21  ;;  %3210 = vmatprep.subr.bf16.mxu1 %v4792_v22  ;;  %v4876_v21 = vld [vmem:[%s6589_s1 + $0xad4] ss:$8 sps:$4 sm:$0xff]   ;;  %v4871_v22 = vld [vmem:[%s6589_s1 + $0x3d0] ss:$8 sps:$4 sm:$0xff]  }
  0xc5   : > { %3567 = vmatprep.subr.bf16.mxu0 %v4798_v25  ;;  %v4884_v25 = vld [vmem:[%s6589_s1 + $0xae4] ss:$8 sps:$4 sm:$0xff]  }
  0xc6   : > { %3192 = vmatmul.mubr.bf16.vlgmr.msra.gmra.mrb[0].mxu1 %v4787_v23  ;;  %v4874_v23 = vld [vmem:[%s6589_s1 + $0xad0] ss:$8 sps:$4 sm:$0xff]  }
  0xc7   : > { %3549 = vmatmul.mubr.bf16.vlgmr.msra.gmra.mrb[0].mxu0 %v4793_v24  ;;  %3211 = vmatpush1.bf16.msra.mxu1 %v4790_v28  ;;  %v4880_v24 = vld [vmem:[%s6589_s1 + $0x3e4] ss:$8 sps:$4 sm:$0xff]   ;;  %v4889_v28 = vld [vmem:[%s6589_s1 + $0x3f4] ss:$8 sps:$4 sm:$0xff]  }
  0xc8   : > { %3568 = vmatpush1.bf16.msra.mxu0 %v4796_v29  ;;  %3212 = vmatprep.subr.bf16.mxu1 %v4801_v30  ;;  %v4892_v29 = vld [vmem:[%s6589_s1 + $0xaf4] ss:$8 sps:$4 sm:$0xff]   ;;  %v4887_v30 = vld [vmem:[%s6589_s1 + $0x3f0] ss:$8 sps:$4 sm:$0xff]  }
  0xc9   : > { %3569 = vmatprep.subr.bf16.mxu0 %v4804_v31  ;;  %3201 = vmatprep.mubr.bf16.mxu1 %v3898_v32  ;;  %v4890_v31 = vld [vmem:[%s6589_s1 + $0xaf0] ss:$8 sps:$4 sm:$0xff]   ;;  %v4898_v32 = vld [vmem:[%s6589_s1 + $0x404] ss:$8 sps:$4 sm:$0xff]  }
  0xca   : > { %3558 = vmatprep.mubr.bf16.mxu0 %v3912_v33  ;;  %v4893_v33 = vld [vmem:[%s5374_s5 + $0x18] ss:$108 sps:$4 sm:$0xff]  }
  0xcb   : > { %3213 = vmatpush1.bf16.msra.mxu1 %v4799_v34  ;;  %v4904_v34 = vld [vmem:[%s6589_s1 + $0xb04] ss:$8 sps:$4 sm:$0xff]  }
  0xcc   : > { %3570 = vmatpush1.bf16.msra.mxu0 %v4802_v35  ;;  %3214 = vmatprep.subr.bf16.mxu1 %v4807_v36  ;;  %v4896_v35 = vld [vmem:[%s6589_s1 + $0x400] ss:$8 sps:$4 sm:$0xff]   ;;  %v4899_v36 = vld [vmem:[%s5374_s5 + $0x50] ss:$108 sps:$4 sm:$0xff]  }
  0xcd   : > { %3571 = vmatprep.subr.bf16.mxu0 %v4810_v37  ;;  %v4902_v37 = vld [vmem:[%s6589_s1 + $0xb00] ss:$8 sps:$4 sm:$0xff]  }
  0xce   : > { %3202 = vmatmul.mubr.bf16.gmra.mrb[4].mxu1 %v3897_v39  ;;  %v218_v39 = vld [vmem:[%s5374_s5 + $0x128] sm:$0xff] }
  0xcf   : > { %3559 = vmatmul.mubr.bf16.gmra.mrb[4].mxu0 %v3911_v40  ;;  %3215 = vmatpush1.bf16.msra.mxu1 %v4805_v38  ;;  %v211_v38 = vld [vmem:[%s5374_s5 + $0xf0] sm:$0xff] }
  0xd0   : > { %3572 = vmatpush1.bf16.msra.mxu0 %v4808_v41  ;;  %3216 = vmatprep.subr.bf16.mxu1 %v4813_v42  ;;  %v4907_v40 = vld [vmem:[%s6589_s1 + $0x414] ss:$8 sps:$4 sm:$0xff]   ;;  %v3900_v42 = vcombine.high %v211_v38, %v211_v38 }
  0xd1   : > { %3573 = vmatprep.subr.bf16.mxu0 %v4816_v43  ;;  %3242 = vmatprep.mubr.bf16.mxu1 %v4895_v44  ;;  %v4910_v41 = vld [vmem:[%s6589_s1 + $0xb14] ss:$8 sps:$4 sm:$0xff]   ;;  %v3914_v43 = vcombine.high %v218_v39, %v218_v39  ;;  %v4905_v44 = vld [vmem:[%s6589_s1 + $0x410] ss:$8 sps:$4 sm:$0xff]  }
  0xd2   : > { %3599 = vmatprep.mubr.bf16.mxu0 %v4901_v45  ;;  %v4908_v45 = vld [vmem:[%s6589_s1 + $0xb10] ss:$8 sps:$4 sm:$0xff]  }
  0xd3   : > { %3217 = vmatpush1.bf16.msra.mxu1 %v4811_v46  ;;  %v4913_v46 = vld [vmem:[%s6589_s1 + $0x424] ss:$8 sps:$4 sm:$0xff]  }
  0xd4   : > { %3574 = vmatpush1.bf16.msra.mxu0 %v4814_v47  ;;  %3218 = vmatprep.subr.bf16.mxu1 %v4819_v48  ;;  %v4916_v47 = vld [vmem:[%s6589_s1 + $0xb24] ss:$8 sps:$4 sm:$0xff]   ;;  %v4911_v48 = vld [vmem:[%s6589_s1 + $0x420] ss:$8 sps:$4 sm:$0xff]  }
  0xd5   : > { %3575 = vmatprep.subr.bf16.mxu0 %v4822_v49  ;;  %v4914_v49 = vld [vmem:[%s6589_s1 + $0xb20] ss:$8 sps:$4 sm:$0xff]  }
  0xd7   : > { %3219 = vmatpush1.bf16.msra.mxu1 %v4817_v50  ;;  %v3899_v50 = vcombine.low %v211_v38, %v211_v38  ;;  %v4995_v38 = vld [vmem:[%s6589_s1 + $0x4f4] ss:$8 sps:$4 sm:$0xff]  }
  0xd8   : > { %3576 = vmatpush1.bf16.msra.mxu0 %v4820_v51  ;;  %3220 = vmatprep.subr.bf16.mxu1 %v4825_v52  ;;  %v3913_v51 = vcombine.low %v218_v39, %v218_v39  ;;  %v4919_v52 = vld [vmem:[%s6589_s1 + $0x434] ss:$8 sps:$4 sm:$0xff]  }
  0xd9   : > { %3577 = vmatprep.subr.bf16.mxu0 %v4828_v53  ;;  %v4922_v53 = vld [vmem:[%s6589_s1 + $0xb34] ss:$8 sps:$4 sm:$0xff]  }
  0xda   : > { %v4998_v39 = vld [vmem:[%s6589_s1 + $0xbf4] ss:$8 sps:$4 sm:$0xff]  }
  0xdb   : > { %3221 = vmatpush1.bf16.msra.mxu1 %v4823_v54  ;;  %v5001_v54 = vld [vmem:[%s5374_s5 + $0x24] ss:$108 sps:$4 sm:$0xff]  }
  0xdc   : > { %3578 = vmatpush1.bf16.msra.mxu0 %v4826_v55  ;;  %3222 = vmatprep.subr.bf16.mxu1 %v4831_v56  ;;  %v5007_v55 = vld [vmem:[%s5374_s5 + $0x5c] ss:$108 sps:$4 sm:$0xff]   ;;  %v4917_v56 = vld [vmem:[%s6589_s1 + $0x430] ss:$8 sps:$4 sm:$0xff]  }
  0xdd   : > { %3579 = vmatprep.subr.bf16.mxu0 %v4834_v57  ;;  %v4920_v57 = vld [vmem:[%s6589_s1 + $0xb30] ss:$8 sps:$4 sm:$0xff]  }
  0xdf   : > { %3223 = vmatpush1.bf16.msra.mxu1 %v4829_v58  ;;  %v4925_v58 = vld [vmem:[%s6589_s1 + $0x444] ss:$8 sps:$4 sm:$0xff]  }
  0xe0   : > { %3580 = vmatpush1.bf16.msra.mxu0 %v4832_v59  ;;  %3224 = vmatprep.subr.bf16.mxu1 %v4837_v60  ;;  %v4928_v59 = vld [vmem:[%s6589_s1 + $0xb44] ss:$8 sps:$4 sm:$0xff]   ;;  %v4923_v60 = vld [vmem:[%s6589_s1 + $0x440] ss:$8 sps:$4 sm:$0xff]  }
  0xe1   : > { %3581 = vmatprep.subr.bf16.mxu0 %v4840_v61  ;;  %v4926_v61 = vld [vmem:[%s6589_s1 + $0xb40] ss:$8 sps:$4 sm:$0xff]  }
  0xe3   : > { %3225 = vmatpush1.bf16.msra.mxu1 %v4835_v62  ;;  %v4931_v62 = vld [vmem:[%s6589_s1 + $0x454] ss:$8 sps:$4 sm:$0xff]  }
  0xe4   : > { %3582 = vmatpush1.bf16.msra.mxu0 %v4838_v63  ;;  %3226 = vmatprep.subr.bf16.mxu1 %v4843_v0  ;;  %v4934_v63 = vld [vmem:[%s6589_s1 + $0xb54] ss:$8 sps:$4 sm:$0xff]   ;;  %v4929_v0 = vld [vmem:[%s6589_s1 + $0x450] ss:$8 sps:$4 sm:$0xff]  }
  0xe5   : > { %3583 = vmatprep.subr.bf16.mxu0 %v4846_v1  ;;  %v4932_v1 = vld [vmem:[%s6589_s1 + $0xb50] ss:$8 sps:$4 sm:$0xff]  }
  0xe7   : > { %3227 = vmatpush1.bf16.msra.mxu1 %v4841_v2  ;;  %v4937_v2 = vld [vmem:[%s6589_s1 + $0x464] ss:$8 sps:$4 sm:$0xff]  }
  0xe8   : > { %3584 = vmatpush1.bf16.msra.mxu0 %v4844_v3  ;;  %3228 = vmatprep.subr.bf16.mxu1 %v4849_v4  ;;  %v4940_v3 = vld [vmem:[%s6589_s1 + $0xb64] ss:$8 sps:$4 sm:$0xff]   ;;  %v4935_v4 = vld [vmem:[%s6589_s1 + $0x460] ss:$8 sps:$4 sm:$0xff]  }
  0xe9   : > { %3585 = vmatprep.subr.bf16.mxu0 %v4852_v5  ;;  %v4938_v5 = vld [vmem:[%s6589_s1 + $0xb60] ss:$8 sps:$4 sm:$0xff]  }
  0xeb   : > { %3229 = vmatpush1.bf16.msra.mxu1 %v4847_v6  ;;  %v4943_v6 = vld [vmem:[%s6589_s1 + $0x474] ss:$8 sps:$4 sm:$0xff]  }
  0xec   : > { %3586 = vmatpush1.bf16.msra.mxu0 %v4850_v7  ;;  %3230 = vmatprep.subr.bf16.mxu1 %v4855_v8  ;;  %v4946_v7 = vld [vmem:[%s6589_s1 + $0xb74] ss:$8 sps:$4 sm:$0xff]   ;;  %v4941_v8 = vld [vmem:[%s6589_s1 + $0x470] ss:$8 sps:$4 sm:$0xff]  }
  0xed   : > { %3587 = vmatprep.subr.bf16.mxu0 %v4858_v9  ;;  %v4944_v9 = vld [vmem:[%s6589_s1 + $0xb70] ss:$8 sps:$4 sm:$0xff]  }
  0xef   : > { %3231 = vmatpush1.bf16.msra.mxu1 %v4853_v10  ;;  %v4949_v10 = vld [vmem:[%s6589_s1 + $0x484] ss:$8 sps:$4 sm:$0xff]  }
  0xf0   : > { %3588 = vmatpush1.bf16.msra.mxu0 %v4856_v11  ;;  %3232 = vmatprep.subr.bf16.mxu1 %v4861_v12  ;;  %v4952_v11 = vld [vmem:[%s6589_s1 + $0xb84] ss:$8 sps:$4 sm:$0xff]   ;;  %v4947_v12 = vld [vmem:[%s6589_s1 + $0x480] ss:$8 sps:$4 sm:$0xff]  }
  0xf1   : > { %3589 = vmatprep.subr.bf16.mxu0 %v4864_v13  ;;  %v4950_v13 = vld [vmem:[%s6589_s1 + $0xb80] ss:$8 sps:$4 sm:$0xff]  }
  0xf3   : > { %3233 = vmatpush1.bf16.msra.mxu1 %v4859_v14  ;;  %v4955_v14 = vld [vmem:[%s6589_s1 + $0x494] ss:$8 sps:$4 sm:$0xff]  }
  0xf4   : > { %3590 = vmatpush1.bf16.msra.mxu0 %v4862_v15  ;;  %3234 = vmatprep.subr.bf16.mxu1 %v4867_v16  ;;  %v4958_v15 = vld [vmem:[%s6589_s1 + $0xb94] ss:$8 sps:$4 sm:$0xff]   ;;  %v4953_v16 = vld [vmem:[%s6589_s1 + $0x490] ss:$8 sps:$4 sm:$0xff]  }
  0xf5   : > { %3591 = vmatprep.subr.bf16.mxu0 %v4870_v17  ;;  %v4956_v17 = vld [vmem:[%s6589_s1 + $0xb90] ss:$8 sps:$4 sm:$0xff]  }
  0xf7   : > { %3235 = vmatpush1.bf16.msra.mxu1 %v4865_v18  ;;  %v4961_v18 = vld [vmem:[%s6589_s1 + $0x4a4] ss:$8 sps:$4 sm:$0xff]  }
  0xf8   : > { %3592 = vmatpush1.bf16.msra.mxu0 %v4868_v19  ;;  %3236 = vmatprep.subr.bf16.mxu1 %v4873_v20  ;;  %v4964_v19 = vld [vmem:[%s6589_s1 + $0xba4] ss:$8 sps:$4 sm:$0xff]   ;;  %v4959_v20 = vld [vmem:[%s6589_s1 + $0x4a0] ss:$8 sps:$4 sm:$0xff]  }
  0xf9   : > { %3593 = vmatprep.subr.bf16.mxu0 %v4876_v21  ;;  %v4962_v21 = vld [vmem:[%s6589_s1 + $0xba0] ss:$8 sps:$4 sm:$0xff]  }
  0xfb   : > { %3237 = vmatpush1.bf16.msra.mxu1 %v4871_v22  ;;  %v4967_v22 = vld [vmem:[%s6589_s1 + $0x4b4] ss:$8 sps:$4 sm:$0xff]  }
  0xfc   : > { %3594 = vmatpush1.bf16.msra.mxu0 %v4874_v23  ;;  %3238 = vmatprep.subr.bf16.mxu1 %v4880_v24  ;;  %v4970_v23 = vld [vmem:[%s6589_s1 + $0xbb4] ss:$8 sps:$4 sm:$0xff]   ;;  %v4965_v24 = vld [vmem:[%s6589_s1 + $0x4b0] ss:$8 sps:$4 sm:$0xff]  }
  0xfd   : > { %3595 = vmatprep.subr.bf16.mxu0 %v4884_v25  ;;  %v4968_v25 = vld [vmem:[%s6589_s1 + $0xbb0] ss:$8 sps:$4 sm:$0xff]  }
  0xff   : > { %3239 = vmatpush1.bf16.msra.mxu1 %v4878_v26  ;;  %v4973_v26 = vld [vmem:[%s6589_s1 + $0x4c4] ss:$8 sps:$4 sm:$0xff]  }
 0x100   : > { %3596 = vmatpush1.bf16.msra.mxu0 %v4882_v27  ;;  %3240 = vmatprep.subr.bf16.mxu1 %v4889_v28  ;;  %v4976_v27 = vld [vmem:[%s6589_s1 + $0xbc4] ss:$8 sps:$4 sm:$0xff]   ;;  %v4971_v28 = vld [vmem:[%s6589_s1 + $0x4c0] ss:$8 sps:$4 sm:$0xff]  }
 0x101   : > { %3597 = vmatprep.subr.bf16.mxu0 %v4892_v29  ;;  %v4974_v29 = vld [vmem:[%s6589_s1 + $0xbc0] ss:$8 sps:$4 sm:$0xff]  }
 0x103   : > { %3241 = vmatpush1.bf16.msra.mxu1 %v4887_v30  ;;  %v4979_v30 = vld [vmem:[%s6589_s1 + $0x4d4] ss:$8 sps:$4 sm:$0xff]  }
 0x104   : > { %3598 = vmatpush1.bf16.msra.mxu0 %v4890_v31  ;;  %3261 = vmatprep.subr.bf16.mxu1 %v4898_v32  ;;  %v4982_v31 = vld [vmem:[%s6589_s1 + $0xbd4] ss:$8 sps:$4 sm:$0xff]   ;;  %v4977_v32 = vld [vmem:[%s6589_s1 + $0x4d0] ss:$8 sps:$4 sm:$0xff]  }
 0x105   : > { %3618 = vmatprep.subr.bf16.mxu0 %v4904_v34  ;;  %v4986_v34 = vld [vmem:[%s6589_s1 + $0x4e4] ss:$8 sps:$4 sm:$0xff]  }
 0x106   : > { %3243 = vmatmul.mubr.bf16.vlgmr.msra.gmra.mrb[0].mxu1 %v4893_v33  ;;  %v4980_v33 = vld [vmem:[%s6589_s1 + $0xbd0] ss:$8 sps:$4 sm:$0xff]  }
 0x107   : > { %3600 = vmatmul.mubr.bf16.vlgmr.msra.gmra.mrb[0].mxu0 %v4899_v36  ;;  %3262 = vmatpush1.bf16.msra.mxu1 %v4896_v35  ;;  %v4990_v35 = vld [vmem:[%s6589_s1 + $0xbe4] ss:$8 sps:$4 sm:$0xff]   ;;  %v4984_v36 = vld [vmem:[%s6589_s1 + $0x4e0] ss:$8 sps:$4 sm:$0xff]  }
 0x108   : > { %3619 = vmatpush1.bf16.msra.mxu0 %v4902_v37  ;;  %3263 = vmatprep.subr.bf16.mxu1 %v4907_v40  ;;  %v4988_v37 = vld [vmem:[%s6589_s1 + $0xbe0] ss:$8 sps:$4 sm:$0xff]   ;;  %v4993_v40 = vld [vmem:[%s6589_s1 + $0x4f0] ss:$8 sps:$4 sm:$0xff]  }
 0x109   : > { %3620 = vmatprep.subr.bf16.mxu0 %v4910_v41  ;;  %3252 = vmatprep.mubr.bf16.mxu1 %v3900_v42  ;;  %v4996_v41 = vld [vmem:[%s6589_s1 + $0xbf0] ss:$8 sps:$4 sm:$0xff]   ;;  %v5004_v42 = vld [vmem:[%s6589_s1 + $0x504] ss:$8 sps:$4 sm:$0xff]  }
 0x10a   : > { %3609 = vmatprep.mubr.bf16.mxu0 %v3914_v43  ;;  %v5010_v43 = vld [vmem:[%s6589_s1 + $0xc04] ss:$8 sps:$4 sm:$0xff]  }
 0x10b   : > { %3264 = vmatpush1.bf16.msra.mxu1 %v4905_v44  ;;  %v4999_v44 = vld [vmem:[%s5374_s5 + $0x20] ss:$108 sps:$4 sm:$0xff]  }
 0x10c   : > { %3621 = vmatpush1.bf16.msra.mxu0 %v4908_v45  ;;  %3265 = vmatprep.subr.bf16.mxu1 %v4913_v46  ;;  %v5005_v45 = vld [vmem:[%s5374_s5 + $0x58] ss:$108 sps:$4 sm:$0xff]  }
 0x10d   : > { %3622 = vmatprep.subr.bf16.mxu0 %v4916_v47  ;;  %v212_v46 = vld [vmem:[%s5374_s5 + $0xf8] sm:$0xff]  ;;  %v219_v47 = vld [vmem:[%s5374_s5 + $0x130] sm:$0xff] }
 0x10e   : > { %3253 = vmatmul.mubr.bf16.gmra.mrb[4].mxu1 %v3899_v50  ;;  %v5013_v50 = vld [vmem:[%s6589_s1 + $0x514] ss:$8 sps:$4 sm:$0xff]  }
 0x10f   : > { %3610 = vmatmul.mubr.bf16.gmra.mrb[4].mxu0 %v3913_v51  ;;  %3266 = vmatpush1.bf16.msra.mxu1 %v4911_v48  ;;  %v5002_v48 = vld [vmem:[%s6589_s1 + $0x500] ss:$8 sps:$4 sm:$0xff]   ;;  %v5016_v51 = vld [vmem:[%s6589_s1 + $0xc14] ss:$8 sps:$4 sm:$0xff]  }
 0x110   : > { %3623 = vmatpush1.bf16.msra.mxu0 %v4914_v49  ;;  %3267 = vmatprep.subr.bf16.mxu1 %v4919_v52  ;;  %v5008_v49 = vld [vmem:[%s6589_s1 + $0xc00] ss:$8 sps:$4 sm:$0xff]   ;;  %v3902_v52 = vcombine.high %v212_v46, %v212_v46 }
 0x111   : > { %3624 = vmatprep.subr.bf16.mxu0 %v4922_v53  ;;  %3293 = vmatprep.mubr.bf16.mxu1 %v5001_v54  ;;  %v3916_v53 = vcombine.high %v219_v47, %v219_v47  ;;  %v5011_v54 = vld [vmem:[%s6589_s1 + $0x510] ss:$8 sps:$4 sm:$0xff]  }
 0x112   : > { %3650 = vmatprep.mubr.bf16.mxu0 %v5007_v55  ;;  %v5014_v55 = vld [vmem:[%s6589_s1 + $0xc10] ss:$8 sps:$4 sm:$0xff]  }
 0x113   : > { %3268 = vmatpush1.bf16.msra.mxu1 %v4917_v56  ;;  %v5019_v56 = vld [vmem:[%s6589_s1 + $0x524] ss:$8 sps:$4 sm:$0xff]  }
 0x114   : > { %3625 = vmatpush1.bf16.msra.mxu0 %v4920_v57  ;;  %3269 = vmatprep.subr.bf16.mxu1 %v4925_v58  ;;  %v5022_v57 = vld [vmem:[%s6589_s1 + $0xc24] ss:$8 sps:$4 sm:$0xff]   ;;  %v3901_v58 = vcombine.low %v212_v46, %v212_v46  ;;  %v5090_v46 = vld [vmem:[%s6589_s1 + $0x5e0] ss:$8 sps:$4 sm:$0xff]  }
 0x115   : > { %3626 = vmatprep.subr.bf16.mxu0 %v4928_v59  ;;  %v3915_v59 = vcombine.low %v219_v47, %v219_v47  ;;  %v5094_v47 = vld [vmem:[%s6589_s1 + $0xce0] ss:$8 sps:$4 sm:$0xff]  }
 0x117   : > { %3270 = vmatpush1.bf16.msra.mxu1 %v4923_v60  ;;  %v5017_v60 = vld [vmem:[%s6589_s1 + $0x520] ss:$8 sps:$4 sm:$0xff]  }
 0x118   : > { %3627 = vmatpush1.bf16.msra.mxu0 %v4926_v61  ;;  %3271 = vmatprep.subr.bf16.mxu1 %v4931_v62  ;;  %v5020_v61 = vld [vmem:[%s6589_s1 + $0xc20] ss:$8 sps:$4 sm:$0xff]   ;;  %v5025_v62 = vld [vmem:[%s6589_s1 + $0x534] ss:$8 sps:$4 sm:$0xff]  }
 0x119   : > { %3628 = vmatprep.subr.bf16.mxu0 %v4934_v63  ;;  %v5028_v63 = vld [vmem:[%s6589_s1 + $0xc34] ss:$8 sps:$4 sm:$0xff]  }
 0x11b   : > { %3272 = vmatpush1.bf16.msra.mxu1 %v4929_v0  ;;  %v5107_v0 = vld [vmem:[%s5374_s5 + $0x2c] ss:$108 sps:$4 sm:$0xff]  }
 0x11c   : > { %3629 = vmatpush1.bf16.msra.mxu0 %v4932_v1  ;;  %3273 = vmatprep.subr.bf16.mxu1 %v4937_v2  ;;  %v5113_v1 = vld [vmem:[%s5374_s5 + $0x64] ss:$108 sps:$4 sm:$0xff]  }
 0x11d   : > { %3630 = vmatprep.subr.bf16.mxu0 %v4940_v3  ;;  %v5023_v2 = vld [vmem:[%s6589_s1 + $0x530] ss:$8 sps:$4 sm:$0xff]  }
 0x11e   : > { %v5026_v3 = vld [vmem:[%s6589_s1 + $0xc30] ss:$8 sps:$4 sm:$0xff]  }
 0x11f   : > { %3274 = vmatpush1.bf16.msra.mxu1 %v4935_v4  ;;  %v5031_v4 = vld [vmem:[%s6589_s1 + $0x544] ss:$8 sps:$4 sm:$0xff]  }
 0x120   : > { %3631 = vmatpush1.bf16.msra.mxu0 %v4938_v5  ;;  %3275 = vmatprep.subr.bf16.mxu1 %v4943_v6  ;;  %v5034_v5 = vld [vmem:[%s6589_s1 + $0xc44] ss:$8 sps:$4 sm:$0xff]   ;;  %v5029_v6 = vld [vmem:[%s6589_s1 + $0x540] ss:$8 sps:$4 sm:$0xff]  }
 0x121   : > { %3632 = vmatprep.subr.bf16.mxu0 %v4946_v7  ;;  %v5032_v7 = vld [vmem:[%s6589_s1 + $0xc40] ss:$8 sps:$4 sm:$0xff]  }
 0x123   : > { %3276 = vmatpush1.bf16.msra.mxu1 %v4941_v8  ;;  %v5037_v8 = vld [vmem:[%s6589_s1 + $0x554] ss:$8 sps:$4 sm:$0xff]  }
 0x124   : > { %3633 = vmatpush1.bf16.msra.mxu0 %v4944_v9  ;;  %3277 = vmatprep.subr.bf16.mxu1 %v4949_v10  ;;  %v5040_v9 = vld [vmem:[%s6589_s1 + $0xc54] ss:$8 sps:$4 sm:$0xff]   ;;  %v5035_v10 = vld [vmem:[%s6589_s1 + $0x550] ss:$8 sps:$4 sm:$0xff]  }
 0x125   : > { %3634 = vmatprep.subr.bf16.mxu0 %v4952_v11  ;;  %v5038_v11 = vld [vmem:[%s6589_s1 + $0xc50] ss:$8 sps:$4 sm:$0xff]  }
 0x127   : > { %3278 = vmatpush1.bf16.msra.mxu1 %v4947_v12  ;;  %v5043_v12 = vld [vmem:[%s6589_s1 + $0x564] ss:$8 sps:$4 sm:$0xff]  }
 0x128   : > { %3635 = vmatpush1.bf16.msra.mxu0 %v4950_v13  ;;  %3279 = vmatprep.subr.bf16.mxu1 %v4955_v14  ;;  %v5046_v13 = vld [vmem:[%s6589_s1 + $0xc64] ss:$8 sps:$4 sm:$0xff]   ;;  %v5041_v14 = vld [vmem:[%s6589_s1 + $0x560] ss:$8 sps:$4 sm:$0xff]  }
 0x129   : > { %3636 = vmatprep.subr.bf16.mxu0 %v4958_v15  ;;  %v5044_v15 = vld [vmem:[%s6589_s1 + $0xc60] ss:$8 sps:$4 sm:$0xff]  }
 0x12b   : > { %3280 = vmatpush1.bf16.msra.mxu1 %v4953_v16  ;;  %v5049_v16 = vld [vmem:[%s6589_s1 + $0x574] ss:$8 sps:$4 sm:$0xff]  }
 0x12c   : > { %3637 = vmatpush1.bf16.msra.mxu0 %v4956_v17  ;;  %3281 = vmatprep.subr.bf16.mxu1 %v4961_v18  ;;  %v5052_v17 = vld [vmem:[%s6589_s1 + $0xc74] ss:$8 sps:$4 sm:$0xff]   ;;  %v5047_v18 = vld [vmem:[%s6589_s1 + $0x570] ss:$8 sps:$4 sm:$0xff]  }
 0x12d   : > { %3638 = vmatprep.subr.bf16.mxu0 %v4964_v19  ;;  %v5050_v19 = vld [vmem:[%s6589_s1 + $0xc70] ss:$8 sps:$4 sm:$0xff]  }
 0x12f   : > { %3282 = vmatpush1.bf16.msra.mxu1 %v4959_v20  ;;  %v5055_v20 = vld [vmem:[%s6589_s1 + $0x584] ss:$8 sps:$4 sm:$0xff]  }
 0x130   : > { %3639 = vmatpush1.bf16.msra.mxu0 %v4962_v21  ;;  %3283 = vmatprep.subr.bf16.mxu1 %v4967_v22  ;;  %v5058_v21 = vld [vmem:[%s6589_s1 + $0xc84] ss:$8 sps:$4 sm:$0xff]   ;;  %v5053_v22 = vld [vmem:[%s6589_s1 + $0x580] ss:$8 sps:$4 sm:$0xff]  }
 0x131   : > { %3640 = vmatprep.subr.bf16.mxu0 %v4970_v23  ;;  %v5056_v23 = vld [vmem:[%s6589_s1 + $0xc80] ss:$8 sps:$4 sm:$0xff]  }
 0x133   : > { %3284 = vmatpush1.bf16.msra.mxu1 %v4965_v24  ;;  %v5061_v24 = vld [vmem:[%s6589_s1 + $0x594] ss:$8 sps:$4 sm:$0xff]  }
 0x134   : > { %3641 = vmatpush1.bf16.msra.mxu0 %v4968_v25  ;;  %3285 = vmatprep.subr.bf16.mxu1 %v4973_v26  ;;  %v5064_v25 = vld [vmem:[%s6589_s1 + $0xc94] ss:$8 sps:$4 sm:$0xff]   ;;  %v5059_v26 = vld [vmem:[%s6589_s1 + $0x590] ss:$8 sps:$4 sm:$0xff]  }
 0x135   : > { %3642 = vmatprep.subr.bf16.mxu0 %v4976_v27  ;;  %v5062_v27 = vld [vmem:[%s6589_s1 + $0xc90] ss:$8 sps:$4 sm:$0xff]  }
 0x137   : > { %3286 = vmatpush1.bf16.msra.mxu1 %v4971_v28  ;;  %v5067_v28 = vld [vmem:[%s6589_s1 + $0x5a4] ss:$8 sps:$4 sm:$0xff]  }
 0x138   : > { %3643 = vmatpush1.bf16.msra.mxu0 %v4974_v29  ;;  %3287 = vmatprep.subr.bf16.mxu1 %v4979_v30  ;;  %v5070_v29 = vld [vmem:[%s6589_s1 + $0xca4] ss:$8 sps:$4 sm:$0xff]   ;;  %v5065_v30 = vld [vmem:[%s6589_s1 + $0x5a0] ss:$8 sps:$4 sm:$0xff]  }
 0x139   : > { %3644 = vmatprep.subr.bf16.mxu0 %v4982_v31  ;;  %v5068_v31 = vld [vmem:[%s6589_s1 + $0xca0] ss:$8 sps:$4 sm:$0xff]  }
 0x13b   : > { %3288 = vmatpush1.bf16.msra.mxu1 %v4977_v32  ;;  %v5073_v32 = vld [vmem:[%s6589_s1 + $0x5b4] ss:$8 sps:$4 sm:$0xff]  }
 0x13c   : > { %3645 = vmatpush1.bf16.msra.mxu0 %v4980_v33  ;;  %3289 = vmatprep.subr.bf16.mxu1 %v4986_v34  ;;  %v5076_v33 = vld [vmem:[%s6589_s1 + $0xcb4] ss:$8 sps:$4 sm:$0xff]   ;;  %v5071_v34 = vld [vmem:[%s6589_s1 + $0x5b0] ss:$8 sps:$4 sm:$0xff]  }
 0x13d   : > { %3646 = vmatprep.subr.bf16.mxu0 %v4990_v35  ;;  %v5074_v35 = vld [vmem:[%s6589_s1 + $0xcb0] ss:$8 sps:$4 sm:$0xff]  }
 0x13f   : > { %3290 = vmatpush1.bf16.msra.mxu1 %v4984_v36  ;;  %v5079_v36 = vld [vmem:[%s6589_s1 + $0x5c4] ss:$8 sps:$4 sm:$0xff]  }
 0x140   : > { %3647 = vmatpush1.bf16.msra.mxu0 %v4988_v37  ;;  %3291 = vmatprep.subr.bf16.mxu1 %v4995_v38  ;;  %v5082_v37 = vld [vmem:[%s6589_s1 + $0xcc4] ss:$8 sps:$4 sm:$0xff]   ;;  %v5077_v38 = vld [vmem:[%s6589_s1 + $0x5c0] ss:$8 sps:$4 sm:$0xff]  }
 0x141   : > { %3648 = vmatprep.subr.bf16.mxu0 %v4998_v39  ;;  %v5080_v39 = vld [vmem:[%s6589_s1 + $0xcc0] ss:$8 sps:$4 sm:$0xff]  }
 0x143   : > { %3292 = vmatpush1.bf16.msra.mxu1 %v4993_v40  ;;  %v5085_v40 = vld [vmem:[%s6589_s1 + $0x5d4] ss:$8 sps:$4 sm:$0xff]  }
 0x144   : > { %3649 = vmatpush1.bf16.msra.mxu0 %v4996_v41  ;;  %3312 = vmatprep.subr.bf16.mxu1 %v5004_v42  ;;  %v5088_v41 = vld [vmem:[%s6589_s1 + $0xcd4] ss:$8 sps:$4 sm:$0xff]   ;;  %v5083_v42 = vld [vmem:[%s6589_s1 + $0x5d0] ss:$8 sps:$4 sm:$0xff]  }
 0x145   : > { %3669 = vmatprep.subr.bf16.mxu0 %v5010_v43  ;;  %v5086_v43 = vld [vmem:[%s6589_s1 + $0xcd0] ss:$8 sps:$4 sm:$0xff]  }
 0x146   : > { %3294 = vmatmul.mubr.bf16.vlgmr.msra.gmra.mrb[0].mxu1 %v4999_v44  ;;  %v5092_v44 = vld [vmem:[%s6589_s1 + $0x5e4] ss:$8 sps:$4 sm:$0xff]  }
 0x147   : > { %3651 = vmatmul.mubr.bf16.vlgmr.msra.gmra.mrb[0].mxu0 %v5005_v45  ;;  %3313 = vmatpush1.bf16.msra.mxu1 %v5002_v48  ;;  %v5096_v45 = vld [vmem:[%s6589_s1 + $0xce4] ss:$8 sps:$4 sm:$0xff]   ;;  %v5101_v48 = vld [vmem:[%s6589_s1 + $0x5f4] ss:$8 sps:$4 sm:$0xff]  }
 0x148   : > { %3670 = vmatpush1.bf16.msra.mxu0 %v5008_v49  ;;  %3314 = vmatprep.subr.bf16.mxu1 %v5013_v50  ;;  %v5104_v49 = vld [vmem:[%s6589_s1 + $0xcf4] ss:$8 sps:$4 sm:$0xff]   ;;  %v5099_v50 = vld [vmem:[%s6589_s1 + $0x5f0] ss:$8 sps:$4 sm:$0xff]  }
 0x149   : > { %3671 = vmatprep.subr.bf16.mxu0 %v5016_v51  ;;  %3303 = vmatprep.mubr.bf16.mxu1 %v3902_v52  ;;  %v5102_v51 = vld [vmem:[%s6589_s1 + $0xcf0] ss:$8 sps:$4 sm:$0xff]   ;;  %v5110_v52 = vld [vmem:[%s6589_s1 + $0x604] ss:$8 sps:$4 sm:$0xff]  }
 0x14a   : > { %3660 = vmatprep.mubr.bf16.mxu0 %v3916_v53  ;;  %v5116_v53 = vld [vmem:[%s6589_s1 + $0xd04] ss:$8 sps:$4 sm:$0xff]  }
 0x14b   : > { %3315 = vmatpush1.bf16.msra.mxu1 %v5011_v54  ;;  %v5105_v54 = vld [vmem:[%s5374_s5 + $0x28] ss:$108 sps:$4 sm:$0xff]  }
 0x14c   : > { %3672 = vmatpush1.bf16.msra.mxu0 %v5014_v55  ;;  %3316 = vmatprep.subr.bf16.mxu1 %v5019_v56  ;;  %v5111_v55 = vld [vmem:[%s5374_s5 + $0x60] ss:$108 sps:$4 sm:$0xff]   ;;  %v220_v56 = vld [vmem:[%s5374_s5 + $0x138] sm:$0xff] }
 0x14d   : > { %3673 = vmatprep.subr.bf16.mxu0 %v5022_v57  ;;  %v213_v57 = vld [vmem:[%s5374_s5 + $0x100] sm:$0xff] }
 0x14e   : > { %3304 = vmatmul.mubr.bf16.gmra.mrb[4].mxu1 %v3901_v58  ;;  %v5108_v58 = vld [vmem:[%s6589_s1 + $0x600] ss:$8 sps:$4 sm:$0xff]  }
 0x14f   : > { %3661 = vmatmul.mubr.bf16.gmra.mrb[4].mxu0 %v3915_v59  ;;  %3317 = vmatpush1.bf16.msra.mxu1 %v5017_v60  ;;  %v5114_v59 = vld [vmem:[%s6589_s1 + $0xd00] ss:$8 sps:$4 sm:$0xff]   ;;  %v5119_v60 = vld [vmem:[%s6589_s1 + $0x614] ss:$8 sps:$4 sm:$0xff]  }
 0x150   : > { %3674 = vmatpush1.bf16.msra.mxu0 %v5020_v61  ;;  %3318 = vmatprep.subr.bf16.mxu1 %v5025_v62  ;;  %v5122_v61 = vld [vmem:[%s6589_s1 + $0xd14] ss:$8 sps:$4 sm:$0xff]   ;;  %v3918_v62 = vcombine.high %v220_v56, %v220_v56 }
 0x151   : > { %3675 = vmatprep.subr.bf16.mxu0 %v5028_v63  ;;  %3344 = vmatprep.mubr.bf16.mxu1 %v5107_v0  ;;  %v3904_v63 = vcombine.high %v213_v57, %v213_v57  ;;  %v5117_v0 = vld [vmem:[%s6589_s1 + $0x610] ss:$8 sps:$4 sm:$0xff]  }
 0x152   : > { %3701 = vmatprep.mubr.bf16.mxu0 %v5113_v1  ;;  %v5120_v1 = vld [vmem:[%s6589_s1 + $0xd10] ss:$8 sps:$4 sm:$0xff]  }
 0x153   : > { %3319 = vmatpush1.bf16.msra.mxu1 %v5023_v2  ;;  %v5125_v2 = vld [vmem:[%s6589_s1 + $0x624] ss:$8 sps:$4 sm:$0xff]  }
 0x154   : > { %3676 = vmatpush1.bf16.msra.mxu0 %v5026_v3  ;;  %3320 = vmatprep.subr.bf16.mxu1 %v5031_v4  ;;  %v5128_v3 = vld [vmem:[%s6589_s1 + $0xd24] ss:$8 sps:$4 sm:$0xff]   ;;  %v3917_v4 = vcombine.low %v220_v56, %v220_v56 }
 0x155   : > { %3677 = vmatprep.subr.bf16.mxu0 %v5034_v5  ;;  %v3903_v5 = vcombine.low %v213_v57, %v213_v57 }
 0x157   : > { %3321 = vmatpush1.bf16.msra.mxu1 %v5029_v6  ;;  %v5123_v6 = vld [vmem:[%s6589_s1 + $0x620] ss:$8 sps:$4 sm:$0xff]  }
 0x158   : > { %3678 = vmatpush1.bf16.msra.mxu0 %v5032_v7  ;;  %3322 = vmatprep.subr.bf16.mxu1 %v5037_v8  ;;  %v5126_v7 = vld [vmem:[%s6589_s1 + $0xd20] ss:$8 sps:$4 sm:$0xff]   ;;  %v5131_v8 = vld [vmem:[%s6589_s1 + $0x634] ss:$8 sps:$4 sm:$0xff]  }
 0x159   : > { %3679 = vmatprep.subr.bf16.mxu0 %v5040_v9  ;;  %v5134_v9 = vld [vmem:[%s6589_s1 + $0xd34] ss:$8 sps:$4 sm:$0xff]  }
 0x15b   : > { %3323 = vmatpush1.bf16.msra.mxu1 %v5035_v10  ;;  %v5191_v10 = vld [vmem:[%s5374_s5 + $0x34] ss:$108 sps:$4 sm:$0xff]  }
 0x15c   : > { %3680 = vmatpush1.bf16.msra.mxu0 %v5038_v11  ;;  %3324 = vmatprep.subr.bf16.mxu1 %v5043_v12  ;;  %v5129_v11 = vld [vmem:[%s6589_s1 + $0x630] ss:$8 sps:$4 sm:$0xff]  }
 0x15d   : > { %3681 = vmatprep.subr.bf16.mxu0 %v5046_v13  ;;  %v5132_v12 = vld [vmem:[%s6589_s1 + $0xd30] ss:$8 sps:$4 sm:$0xff]   ;;  %v5137_v13 = vld [vmem:[%s6589_s1 + $0x644] ss:$8 sps:$4 sm:$0xff]  }
 0x15f   : > { %3325 = vmatpush1.bf16.msra.mxu1 %v5041_v14  ;;  %v5140_v14 = vld [vmem:[%s6589_s1 + $0xd44] ss:$8 sps:$4 sm:$0xff]  }
 0x160   : > { %3682 = vmatpush1.bf16.msra.mxu0 %v5044_v15  ;;  %3326 = vmatprep.subr.bf16.mxu1 %v5049_v16  ;;  %v5202_v15 = vmov 0   ;;  %v5135_v16 = vld [vmem:[%s6589_s1 + $0x640] ss:$8 sps:$4 sm:$0xff]  }
 0x161   : > { %3683 = vmatprep.subr.bf16.mxu0 %v5052_v17  ;;  %v5138_v17 = vld [vmem:[%s6589_s1 + $0xd40] ss:$8 sps:$4 sm:$0xff]  }
 0x163   : > { %3327 = vmatpush1.bf16.msra.mxu1 %v5047_v18  ;;  %v5143_v18 = vld [vmem:[%s6589_s1 + $0x654] ss:$8 sps:$4 sm:$0xff]  }
 0x164   : > { %3684 = vmatpush1.bf16.msra.mxu0 %v5050_v19  ;;  %3328 = vmatprep.subr.bf16.mxu1 %v5055_v20  ;;  %v5146_v19 = vld [vmem:[%s6589_s1 + $0xd54] ss:$8 sps:$4 sm:$0xff]   ;;  %v5141_v20 = vld [vmem:[%s6589_s1 + $0x650] ss:$8 sps:$4 sm:$0xff]  }
 0x165   : > { %3685 = vmatprep.subr.bf16.mxu0 %v5058_v21  ;;  %v5144_v21 = vld [vmem:[%s6589_s1 + $0xd50] ss:$8 sps:$4 sm:$0xff]  }
 0x167   : > { %3329 = vmatpush1.bf16.msra.mxu1 %v5053_v22  ;;  %v5150_v22 = vld [vmem:[%s6589_s1 + $0x664] ss:$8 sps:$4 sm:$0xff]  }
 0x168   : > { %3686 = vmatpush1.bf16.msra.mxu0 %v5056_v23  ;;  %3330 = vmatprep.subr.bf16.mxu1 %v5061_v24  ;;  %v5154_v23 = vld [vmem:[%s6589_s1 + $0xd64] ss:$8 sps:$4 sm:$0xff]   ;;  %v5148_v24 = vld [vmem:[%s6589_s1 + $0x660] ss:$8 sps:$4 sm:$0xff]  }
 0x169   : > { %3687 = vmatprep.subr.bf16.mxu0 %v5064_v25  ;;  %v5152_v25 = vld [vmem:[%s6589_s1 + $0xd60] ss:$8 sps:$4 sm:$0xff]  }
 0x16b   : > { %3331 = vmatpush1.bf16.msra.mxu1 %v5059_v26  ;;  %v5157_v26 = vld [vmem:[%s6589_s1 + $0x674] ss:$8 sps:$4 sm:$0xff]  }
 0x16c   : > { %3688 = vmatpush1.bf16.msra.mxu0 %v5062_v27  ;;  %3332 = vmatprep.subr.bf16.mxu1 %v5067_v28  ;;  %v5160_v27 = vld [vmem:[%s6589_s1 + $0xd74] ss:$8 sps:$4 sm:$0xff]   ;;  %v5155_v28 = vld [vmem:[%s6589_s1 + $0x670] ss:$8 sps:$4 sm:$0xff]  }
 0x16d   : > { %3689 = vmatprep.subr.bf16.mxu0 %v5070_v29  ;;  %v5158_v29 = vld [vmem:[%s6589_s1 + $0xd70] ss:$8 sps:$4 sm:$0xff]  }
 0x16f   : > { %3333 = vmatpush1.bf16.msra.mxu1 %v5065_v30  ;;  %v5163_v30 = vld [vmem:[%s6589_s1 + $0x684] ss:$8 sps:$4 sm:$0xff]  }
 0x170   : > { %3690 = vmatpush1.bf16.msra.mxu0 %v5068_v31  ;;  %3334 = vmatprep.subr.bf16.mxu1 %v5073_v32  ;;  %v5164_v31 = vld [vmem:[%s5374_s5 + $0x68] ss:$108 sps:$4 sm:$0xff]  }
 0x171   : > { %3691 = vmatprep.subr.bf16.mxu0 %v5076_v33  ;;  %v5161_v32 = vld [vmem:[%s6589_s1 + $0x680] ss:$8 sps:$4 sm:$0xff]   ;;  %v5167_v33 = vld [vmem:[%s6589_s1 + $0x694] ss:$8 sps:$4 sm:$0xff]  }
 0x173   : > { %3335 = vmatpush1.bf16.msra.mxu1 %v5071_v34  ;;  %v5165_v34 = vld [vmem:[%s6589_s1 + $0x690] ss:$8 sps:$4 sm:$0xff]  }
 0x174   : > { %3692 = vmatpush1.bf16.msra.mxu0 %v5074_v35  ;;  %3336 = vmatprep.subr.bf16.mxu1 %v5079_v36  ;;  %v5170_v35 = vld [vmem:[%s6589_s1 + $0x6a4] ss:$8 sps:$4 sm:$0xff]   ;;  %v5171_v36 = vld [vmem:[%s5374_s5 + $0x140] ss:$0 sps:$4 sm:$0xff]  }
 0x175   : > { %3693 = vmatprep.subr.bf16.mxu0 %v5082_v37  ;;  %v5168_v37 = vld [vmem:[%s6589_s1 + $0x6a0] ss:$8 sps:$4 sm:$0xff]  }
 0x177   : > { %3337 = vmatpush1.bf16.msra.mxu1 %v5077_v38  ;;  %v5174_v38 = vld [vmem:[%s6589_s1 + $0x6b4] ss:$8 sps:$4 sm:$0xff]  }
 0x178   : > { %3694 = vmatpush1.bf16.msra.mxu0 %v5080_v39  ;;  %3338 = vmatprep.subr.bf16.mxu1 %v5085_v40  ;;  %v5172_v39 = vld [vmem:[%s6589_s1 + $0x6b0] ss:$8 sps:$4 sm:$0xff]   ;;  %v5177_v40 = vld [vmem:[%s6589_s1 + $0x6c4] ss:$8 sps:$4 sm:$0xff]  }
 0x179   : > { %3695 = vmatprep.subr.bf16.mxu0 %v5088_v41  ;;  %v5175_v41 = vld [vmem:[%s6589_s1 + $0x6c0] ss:$8 sps:$4 sm:$0xff]  }
 0x17b   : > { %3339 = vmatpush1.bf16.msra.mxu1 %v5083_v42  ;;  %v5180_v42 = vld [vmem:[%s6589_s1 + $0x6d4] ss:$8 sps:$4 sm:$0xff]  }
 0x17c   : > { %3696 = vmatpush1.bf16.msra.mxu0 %v5086_v43  ;;  %3340 = vmatprep.subr.bf16.mxu1 %v5092_v44  ;;  %v5178_v43 = vld [vmem:[%s6589_s1 + $0x6d0] ss:$8 sps:$4 sm:$0xff]   ;;  %v5185_v44 = vld [vmem:[%s6589_s1 + $0x6e4] ss:$8 sps:$4 sm:$0xff]  }
 0x17d   : > { %3697 = vmatprep.subr.bf16.mxu0 %v5096_v45  ;;  %v5183_v45 = vld [vmem:[%s6589_s1 + $0x6e0] ss:$8 sps:$4 sm:$0xff]  }
 0x17f   : > { %3341 = vmatpush1.bf16.msra.mxu1 %v5090_v46  ;;  %v5188_v46 = vld [vmem:[%s6589_s1 + $0x6f4] ss:$8 sps:$4 sm:$0xff]  }
 0x180   : > { %3698 = vmatpush1.bf16.msra.mxu0 %v5094_v47  ;;  %3342 = vmatprep.subr.bf16.mxu1 %v5101_v48  ;;  %v5186_v47 = vld [vmem:[%s6589_s1 + $0x6f0] ss:$8 sps:$4 sm:$0xff]   ;;  %v214_v48 = vld [vmem:[%s5374_s5 + $0x108] sm:$0xff] }
 0x181   : > { %3699 = vmatprep.subr.bf16.mxu0 %v5104_v49  ;;  %v5189_v49 = vld [vmem:[%s5374_s5 + $0x30] ss:$108 sps:$4 sm:$0xff]  }
 0x183   : > { %3343 = vmatpush1.bf16.msra.mxu1 %v5099_v50  ;;  %v3906_v50 = vcombine.high %v214_v48, %v214_v48 }
 0x184   : > { %3700 = vmatpush1.bf16.msra.mxu0 %v5102_v51  ;;  %3363 = vmatprep.subr.bf16.mxu1 %v5110_v52  ;;  %v3905_v51 = vcombine.low %v214_v48, %v214_v48 }
 0x185   : > { %3720 = vmatprep.subr.bf16.mxu0 %v5116_v53 }
 0x186   : > { %3345 = vmatmul.mubr.bf16.vlgmr.msra.gmra.mrb[0].mxu1 %v5105_v54 }
 0x187   : > { %3702 = vmatmul.mubr.bf16.vlgmr.msra.gmra.mrb[0].mxu0 %v5111_v55  ;;  %3364 = vmatpush1.bf16.msra.mxu1 %v5108_v58 }
 0x188   : > { %3721 = vmatpush1.bf16.msra.mxu0 %v5114_v59  ;;  %3365 = vmatprep.subr.bf16.mxu1 %v5119_v60  ;;  %v656_v60 = vlaneseq }
 0x189   : > { %3722 = vmatprep.subr.bf16.mxu0 %v5122_v61  ;;  %3711 = vmatprep.mubr.bf16.mxu0 %v3918_v62 }
 0x18a   : > { %3354 = vmatprep.mubr.bf16.mxu1 %v3904_v63  ;;  %v657_v61 = vshrl.u32 %v656_v60, 7  ;;  %v654_v63 = vld [vmem:[%s6590_s2] sm:$0x3] }
 0x18b   : > { %3366 = vmatpush1.bf16.msra.mxu1 %v5117_v0 }
 0x18c   : > { %3723 = vmatpush1.bf16.msra.mxu0 %v5120_v1  ;;  %3367 = vmatprep.subr.bf16.mxu1 %v5125_v2  ;;  %v658_v62 = vsub.s32 0, %v657_v61  ;;  %v662_v0 = vsub.s32 1, %v657_v61 }
 0x18d   : > { %3724 = vmatprep.subr.bf16.mxu0 %v5128_v3 }
 0x18e   : > { %3355 = vmatmul.mubr.bf16.gmra.mrb[4].mxu1 %v3903_v5  ;;  %v659_v1 = vrot.slane %v654_v63, %v658_v62  ;;  %v663_v2 = vrot.slane %v654_v63, %v662_v0 }
 0x18f   : > { %3712 = vmatmul.mubr.bf16.gmra.mrb[4].mxu0 %v3917_v4  ;;  %3368 = vmatpush1.bf16.msra.mxu1 %v5123_v6 }
 0x190   : > { %3725 = vmatpush1.bf16.msra.mxu0 %v5126_v7  ;;  %3369 = vmatprep.subr.bf16.mxu1 %v5131_v8 }
 0x191   : > { %3726 = vmatprep.subr.bf16.mxu0 %v5134_v9  ;;  %3752 = vmatprep.mubr.bf16.mxu0 %v5202_v15 }
 0x192   : > { %3395 = vmatprep.mubr.bf16.mxu1 %v5191_v10 }
 0x193   : > { %3370 = vmatpush1.bf16.msra.mxu1 %v5129_v11 }
 0x194   : > { %3727 = vmatpush1.bf16.msra.mxu0 %v5132_v12  ;;  %3371 = vmatprep.subr.bf16.mxu1 %v5137_v13 }
 0x195   : > { %3728 = vmatprep.subr.bf16.mxu0 %v5140_v14 }
 0x197   : > { %3372 = vmatpush1.bf16.msra.mxu1 %v5135_v16 }
 0x198   : > { %3729 = vmatpush1.bf16.msra.mxu0 %v5138_v17  ;;  %3373 = vmatprep.subr.bf16.mxu1 %v5143_v18 }
 0x199   : > { %3730 = vmatprep.subr.bf16.mxu0 %v5146_v19 }
 0x19b   : > { %3374 = vmatpush1.bf16.msra.mxu1 %v5141_v20 }
 0x19c   : > { %3731 = vmatpush1.bf16.msra.mxu0 %v5144_v21  ;;  %3375 = vmatprep.subr.bf16.mxu1 %v5150_v22 }
 0x19d   : > { %3732 = vmatprep.subr.bf16.mxu0 %v5154_v23 }
 0x19f   : > { %3376 = vmatpush1.bf16.msra.mxu1 %v5148_v24 }
 0x1a0   : > { %3733 = vmatpush1.bf16.msra.mxu0 %v5152_v25  ;;  %3377 = vmatprep.subr.bf16.mxu1 %v5157_v26 }
 0x1a1   : > { %3734 = vmatprep.subr.bf16.mxu0 %v5160_v27 }
 0x1a3   : > { %3378 = vmatpush1.bf16.msra.mxu1 %v5155_v28 }
 0x1a4   : > { %3735 = vmatpush1.bf16.msra.mxu0 %v5158_v29  ;;  %3379 = vmatprep.subr.bf16.mxu1 %v5163_v30 }
 0x1a7   : > { %3753 = vmatmul.mubr.bf16.vlgmr.msra.gmra.mrb[0].mxu0 %v5164_v31  ;;  %3380 = vmatpush1.bf16.msra.mxu1 %v5161_v32 }
 0x1a8   : > { %3762 = vmatprep.mubr.bf16.mxu0 %v5202_v15  ;;  %3381 = vmatprep.subr.bf16.mxu1 %v5167_v33 }
 0x1ab   : > { %3382 = vmatpush1.bf16.msra.mxu1 %v5165_v34 }
 0x1ac   : > { %3383 = vmatprep.subr.bf16.mxu1 %v5170_v35 }
 0x1af   : > { %3763 = vmatmul.mubr.bf16.gmra.mrb[4].mxu0 %v5171_v36  ;;  %3384 = vmatpush1.bf16.msra.mxu1 %v5168_v37 }
 0x1b0   : > { %3385 = vmatprep.subr.bf16.mxu1 %v5174_v38 }
 0x1b3   : > { %3386 = vmatpush1.bf16.msra.mxu1 %v5172_v39 }
 0x1b4   : > { %3387 = vmatprep.subr.bf16.mxu1 %v5177_v40 }
 0x1b7   : > { %3388 = vmatpush1.bf16.msra.mxu1 %v5175_v41 }
 0x1b8   : > { %3389 = vmatprep.subr.bf16.mxu1 %v5180_v42 }
 0x1bb   : > { %3390 = vmatpush1.bf16.msra.mxu1 %v5178_v43 }
 0x1bc   : > { %3391 = vmatprep.subr.bf16.mxu1 %v5185_v44 }
 0x1bf   : > { %3392 = vmatpush1.bf16.msra.mxu1 %v5183_v45 }
 0x1c0   : > { %3393 = vmatprep.subr.bf16.mxu1 %v5188_v46 }
 0x1c3   : > { %3394 = vmatpush1.bf16.msra.mxu1 %v5186_v47 }
 0x1c6   : > { %3396 = vmatmul.mubr.bf16.vlgmr.msra.gmra.mrb[0].mxu1 %v5189_v49 }
 0x1c7   : > { %3405 = vmatprep.mubr.bf16.mxu1 %v3906_v50 }
 0x1ce   : > { %3406 = vmatmul.mubr.bf16.gmra.mrb[4].mxu1 %v3905_v51 }
 0x27a   : > { %v3754_v52 = vpop.f32.mrb[0].mxu0 }
 0x27b   : > { %v3756_v53 = vpop.f32.mrb[1].mxu0 }
 0x27c   : > { %v3758_v54 = vpop.f32.mrb[2].mxu0 }
 0x27d   : > { %v3760_v55 = vpop.f32.mrb[3].mxu0 }
 0x282   : > { %v3764_v56 = vpop.f32.mrb[4].mxu0 }
 0x283   : > { %v3766_v57 = vpop.f32.mrb[5].mxu0 }
 0x284   : > { %v3768_v58 = vpop.f32.mrb[6].mxu0 }
 0x285   : > { %v3769_v59 = vpop.f32.mrb[7].mxu0 }
 0x299   : > { %v3397_v3 = vpop.f32.mrb[0].mxu1 }
 0x29a   : > { %v4361_v4 = vadd.f32 %v3397_v3, %v659_v1  ;;  %v3399_v5 = vpop.f32.mrb[1].mxu1 }
 0x29b   : > { %v4363_v6 = vadd.f32 %v3399_v5, %v663_v2  ;;  %v3401_v7 = vpop.f32.mrb[2].mxu1 }
 0x29c   : > { %v4362_v8 = vadd.f32 %v4361_v4, %v3754_v52  ;;  %v4365_v9 = vadd.f32 %v3401_v7, %v659_v1  ;;  %v3403_v10 = vpop.f32.mrb[3].mxu1 }
 0x29d   : > { %v4364_v11 = vadd.f32 %v4363_v6, %v3756_v53  ;;  %v4367_v12 = vadd.f32 %v3403_v10, %v663_v2 }
 0x29e   : > { %v3771_v13 = vmax.f32 %v4362_v8, 0.0  ;;  %v4366_v14 = vadd.f32 %v4365_v9, %v3758_v54 }
 0x29f   : > { %v3772_v15 = vmax.f32 %v4364_v11, 0.0  ;;  %v4368_v16 = vadd.f32 %v4367_v12, %v3760_v55 }
 0x2a0   : > { %v3773_v17 = vmax.f32 %v4366_v14, 0.0 }
 0x2a1   : > { %v4358_v18 = vpack.c.bf16 %v3772_v15, %v3771_v13  ;;  %v3774_v19 = vmax.f32 %v4368_v16, 0.0  ;;  %v3407_v20 = vpop.f32.mrb[4].mxu1 }
 0x2a2   : > { %v4369_v21 = vadd.f32 %v3407_v20, %v659_v1  ;;  %v3409_v22 = vpop.f32.mrb[5].mxu1 }
 0x2a3   : > { %3797 = vst [vmem:[%s177_s18] sm:$0xff] %v4358_v18  ;;  %v4359_v23 = vpack.c.bf16 %v3774_v19, %v3773_v17  ;;  %v4371_v24 = vadd.f32 %v3409_v22, %v663_v2  ;;  %v3411_v25 = vpop.f32.mrb[6].mxu1 }
 0x2a4   : > { %v4370_v26 = vadd.f32 %v4369_v21, %v3764_v56  ;;  %v3412_v27 = vpop.f32.mrb[7].mxu1 }
 0x2a5   : > { %3798 = vst [vmem:[%s177_s18 + $0x8] sm:$0xff] %v4359_v23  ;;  %v4372_v28 = vadd.f32 %v4371_v24, %v3766_v57 }
 0x2a6   : > { %v3775_v29 = vmax.f32 %v4370_v26, 0.0 }
 0x2a7   : > { %v3776_v30 = vmax.f32 %v4372_v28, 0.0 }
 0x2a9   : > { %v4360_v31 = vpack.c.bf16 %v3776_v30, %v3775_v29 }
 0x2ab   : > { %3799 = vst [vmem:[%s177_s18 + $0x10] sm:$0xff] %v4360_v31 }
 0x2ac PF: > { %s13_s12 = sadd.s32 1, %s5200_s12  }
 0x2ad   : > { %p10_p4 = scmp.ge.s32.totalorder %s13_s12, 4  }
 0x2af   :  { %12 = sbr.rel (!%p10_p4) target bundleno = 1 (0x1), region = 62 }

// kernel: lpips_loss.11
= control target key start
LH: loop header
LB: loop body
LE: loop exit
PB: predicated region body
PF: predicated region fallthrough
CT: control target
= control target key end

     0   :  { %s3598_s12 = smov 0   ;;  %s4523_s0 = inlined_call_operand.vmem [shape: bf16[48,2304], index: 0, kind: input, shape index: {}]   ;;  %s4524_s1 = inlined_call_operand.vmem [shape: bf16[2304,256], index: 1, kind: input, shape index: {}]   ;;  %s4525_s2 = inlined_call_operand.vmem [shape: f32[1,256], index: 2, kind: input, shape index: {}]   ;;  %s4526_s3 = inlined_call_operand.vmem [shape: bf16[48,256], index: 3, kind: output, shape index: {}]  }
   0x1 LB: > { %s2645_s13 = sadd.s32 4294967295, %s3576_s12   ;;  %p2649_p0 = scmp.ge.s32.totalorder %s3576_s12, 1  ;;  %s3576_s12 = sphi %s3598_s12, %s13_s12  }
   0x2   : > { %p139_p1 = scmp.lt.s32.totalorder %s3576_s12, 3 }
   0x4   : > { %p140_p2 = pnand %p2649_p0, %p139_p1 }
   0x5   : > { %v3093_v0 = vld [vmem:[%s4524_s1 + $0x4] ss:$8 sps:$4 sm:$0xff] (!%p140_p2)   ;;  %v3097_v2 = vld [vmem:[%s4524_s1] ss:$8 sps:$4 sm:$0xff] (!%p140_p2)   ;;  %v3099_v4 = vld [vmem:[%s4524_s1 + $0x14] ss:$8 sps:$4 sm:$0xff] (!%p140_p2)  }
   0x6   : > { %143 = sbr.rel (%p140_p2) target bundleno = 549 (0x225), region = 32  ;;  %v3095_v1 = vld [vmem:[%s4524_s1 + $0x404] ss:$8 sps:$4 sm:$0xff] (!%p140_p2)   ;;  %2099 = vmatprep.subr.bf16.mxu1 (!%p140_p2), %v3093_v0  ;;  %v3098_v3 = vld [vmem:[%s4524_s1 + $0x400] ss:$8 sps:$4 sm:$0xff] (!%p140_p2)  }
   0x7   : > { %2303 = vmatprep.subr.bf16.mxu0 (!%p140_p2), %v3095_v1  ;;  %2100 = vmatpush1.bf16.msra.mxu1 (!%p140_p2), %v3097_v2  ;;  %v3101_v5 = vld [vmem:[%s4524_s1 + $0x414] ss:$8 sps:$4 sm:$0xff] (!%p140_p2)   ;;  %v3103_v6 = vld [vmem:[%s4524_s1 + $0x10] ss:$8 sps:$4 sm:$0xff] (!%p140_p2)   ;;  %v3105_v8 = vld [vmem:[%s4524_s1 + $0x24] ss:$8 sps:$4 sm:$0xff] (!%p140_p2)  }
   0x8   : > { %2304 = vmatpush1.bf16.msra.mxu0 (!%p140_p2), %v3098_v3  ;;  %2101 = vmatprep.subr.bf16.mxu1 (!%p140_p2), %v3099_v4  ;;  %v3104_v7 = vld [vmem:[%s4524_s1 + $0x410] ss:$8 sps:$4 sm:$0xff] (!%p140_p2)   ;;  %v3107_v9 = vld [vmem:[%s4524_s1 + $0x424] ss:$8 sps:$4 sm:$0xff] (!%p140_p2)   ;;  %v3109_v10 = vld [vmem:[%s4524_s1 + $0x20] ss:$8 sps:$4 sm:$0xff] (!%p140_p2)  }
   0x9   : > { %2305 = vmatprep.subr.bf16.mxu0 (!%p140_p2), %v3101_v5  ;;  %v3110_v11 = vld [vmem:[%s4524_s1 + $0x420] ss:$8 sps:$4 sm:$0xff] (!%p140_p2)   ;;  %v3111_v12 = vld [vmem:[%s4524_s1 + $0x34] ss:$8 sps:$4 sm:$0xff] (!%p140_p2)   ;;  %v3115_v14 = vld [vmem:[%s4524_s1 + $0x30] ss:$8 sps:$4 sm:$0xff] (!%p140_p2)  }
   0xa   : > { %v3113_v13 = vld [vmem:[%s4524_s1 + $0x434] ss:$8 sps:$4 sm:$0xff] (!%p140_p2)   ;;  %v3116_v15 = vld [vmem:[%s4524_s1 + $0x430] ss:$8 sps:$4 sm:$0xff] (!%p140_p2)   ;;  %v3117_v16 = vld [vmem:[%s4524_s1 + $0x44] ss:$8 sps:$4 sm:$0xff] (!%p140_p2)  }
   0xb   : > { %2102 = vmatpush1.bf16.msra.mxu1 (!%p140_p2), %v3103_v6  ;;  %v3119_v17 = vld [vmem:[%s4524_s1 + $0x444] ss:$8 sps:$4 sm:$0xff] (!%p140_p2)   ;;  %v3121_v18 = vld [vmem:[%s4524_s1 + $0x40] ss:$8 sps:$4 sm:$0xff] (!%p140_p2)   ;;  %v3123_v20 = vld [vmem:[%s4524_s1 + $0x54] ss:$8 sps:$4 sm:$0xff] (!%p140_p2)  }
   0xc   : > { %2306 = vmatpush1.bf16.msra.mxu0 (!%p140_p2), %v3104_v7  ;;  %2103 = vmatprep.subr.bf16.mxu1 (!%p140_p2), %v3105_v8  ;;  %v3122_v19 = vld [vmem:[%s4524_s1 + $0x440] ss:$8 sps:$4 sm:$0xff] (!%p140_p2)   ;;  %v3125_v21 = vld [vmem:[%s4524_s1 + $0x454] ss:$8 sps:$4 sm:$0xff] (!%p140_p2)   ;;  %v3127_v22 = vld [vmem:[%s4524_s1 + $0x50] ss:$8 sps:$4 sm:$0xff] (!%p140_p2)  }
   0xd   : > { %2307 = vmatprep.subr.bf16.mxu0 %v3107_v9  ;;  %v3128_v23 = vld [vmem:[%s4524_s1 + $0x450] ss:$8 sps:$4 sm:$0xff]   ;;  %v3129_v24 = vld [vmem:[%s4524_s1 + $0x64] ss:$8 sps:$4 sm:$0xff]   ;;  %v3133_v26 = vld [vmem:[%s4524_s1 + $0x60] ss:$8 sps:$4 sm:$0xff]  }
   0xe   : > { %v3131_v25 = vld [vmem:[%s4524_s1 + $0x464] ss:$8 sps:$4 sm:$0xff]   ;;  %v3134_v27 = vld [vmem:[%s4524_s1 + $0x460] ss:$8 sps:$4 sm:$0xff]   ;;  %v3135_v28 = vld [vmem:[%s4524_s1 + $0x74] ss:$8 sps:$4 sm:$0xff]  }
   0xf   : > { %2104 = vmatpush1.bf16.msra.mxu1 %v3109_v10  ;;  %s165_s22 = smul.u32 3, %s2645_s13  ;;  %v3137_v29 = vld [vmem:[%s4524_s1 + $0x474] ss:$8 sps:$4 sm:$0xff]   ;;  %v3139_v30 = vld [vmem:[%s4524_s1 + $0x70] ss:$8 sps:$4 sm:$0xff]  }
  0x10   : > { %2308 = vmatpush1.bf16.msra.mxu0 %v3110_v11  ;;  %2105 = vmatprep.subr.bf16.mxu1 %v3111_v12  ;;  %v3140_v31 = vld [vmem:[%s4524_s1 + $0x470] ss:$8 sps:$4 sm:$0xff]   ;;  %v3141_v32 = vld [vmem:[%s4524_s1 + $0x84] ss:$8 sps:$4 sm:$0xff]   ;;  %v3145_v34 = vld [vmem:[%s4524_s1 + $0x80] ss:$8 sps:$4 sm:$0xff]  }
  0x11   : > { %2309 = vmatprep.subr.bf16.mxu0 %v3113_v13  ;;  %p166_p3 = scmp.lt.s32.totalorder %s165_s22, 5  ;;  %v3143_v33 = vld [vmem:[%s4524_s1 + $0x484] ss:$8 sps:$4 sm:$0xff]   ;;  %v3146_v35 = vld [vmem:[%s4524_s1 + $0x480] ss:$8 sps:$4 sm:$0xff]  }
  0x12   : > { %v3147_v36 = vld [vmem:[%s4524_s1 + $0x94] ss:$8 sps:$4 sm:$0xff]   ;;  %v3151_v38 = vld [vmem:[%s4524_s1 + $0x90] ss:$8 sps:$4 sm:$0xff]   ;;  %v3153_v40 = vld [vmem:[%s4524_s1 + $0xa4] ss:$8 sps:$4 sm:$0xff]  }
  0x13   : > { %2106 = vmatpush1.bf16.msra.mxu1 %v3115_v14  ;;  %s4528_s22 = smov (!%p166_p3, %s165_s22), 5  ;;  %v3149_v37 = vld [vmem:[%s4524_s1 + $0x494] ss:$8 sps:$4 sm:$0xff]   ;;  %v3152_v39 = vld [vmem:[%s4524_s1 + $0x490] ss:$8 sps:$4 sm:$0xff]  }
  0x14   : > { %2310 = vmatpush1.bf16.msra.mxu0 %v3116_v15  ;;  %2107 = vmatprep.subr.bf16.mxu1 %v3117_v16  ;;  %s3084_s21 = smul.u32 72, %s4528_s22  ;;  %v3155_v41 = vld [vmem:[%s4524_s1 + $0x4a4] ss:$8 sps:$4 sm:$0xff]   ;;  %v3157_v42 = vld [vmem:[%s4524_s1 + $0xa0] ss:$8 sps:$4 sm:$0xff]  }
  0x15   : > { %2311 = vmatprep.subr.bf16.mxu0 %v3119_v17  ;;  %v3158_v43 = vld [vmem:[%s4524_s1 + $0x4a0] ss:$8 sps:$4 sm:$0xff]   ;;  %v3159_v44 = vld [vmem:[%s4524_s1 + $0xb4] ss:$8 sps:$4 sm:$0xff]   ;;  %v3163_v46 = vld [vmem:[%s4524_s1 + $0xb0] ss:$8 sps:$4 sm:$0xff]  }
  0x16   : > { %s3749_s5 = scalar_lea.vmem %s4523_s0, %s3084_s21  ;;  %v3161_v45 = vld [vmem:[%s4524_s1 + $0x4b4] ss:$8 sps:$4 sm:$0xff]   ;;  %v3164_v47 = vld [vmem:[%s4524_s1 + $0x4b0] ss:$8 sps:$4 sm:$0xff]   ;;  %v3165_v49 = vld [vmem:[%s4524_s1 + $0xc4] ss:$8 sps:$4 sm:$0xff]  }
  0x17   : > { %2108 = vmatpush1.bf16.msra.mxu1 %v3121_v18  ;;  %v3191_v48 = vld [vmem:[%s3749_s5 + $0x4] ss:$72 sps:$4 sm:$0xff]   ;;  %v3169_v52 = vld [vmem:[%s4524_s1 + $0xc0] ss:$8 sps:$4 sm:$0xff]   ;;  %v3171_v54 = vld [vmem:[%s4524_s1 + $0xd4] ss:$8 sps:$4 sm:$0xff]  }
  0x18   : > { %2312 = vmatpush1.bf16.msra.mxu0 %v3122_v19  ;;  %2109 = vmatprep.subr.bf16.mxu1 %v3123_v20  ;;  %v3167_v50 = vld [vmem:[%s4524_s1 + $0x4c4] ss:$8 sps:$4 sm:$0xff]   ;;  %v3170_v53 = vld [vmem:[%s4524_s1 + $0x4c0] ss:$8 sps:$4 sm:$0xff]   ;;  %v3173_v55 = vld [vmem:[%s4524_s1 + $0x4d4] ss:$8 sps:$4 sm:$0xff]  }
  0x19   : > { %2313 = vmatprep.subr.bf16.mxu0 %v3125_v21  ;;  %2131 = vmatprep.mubr.bf16.mxu1 %v3191_v48  ;;  %v3197_v51 = vld [vmem:[%s3749_s5 + $0x24] ss:$72 sps:$4 sm:$0xff]   ;;  %v3175_v56 = vld [vmem:[%s4524_s1 + $0xd0] ss:$8 sps:$4 sm:$0xff]   ;;  %v3181_v60 = vld [vmem:[%s4524_s1 + $0xe0] ss:$8 sps:$4 sm:$0xff]  }
  0x1a   : > { %2335 = vmatprep.mubr.bf16.mxu0 %v3197_v51  ;;  %v3176_v57 = vld [vmem:[%s4524_s1 + $0x4d0] ss:$8 sps:$4 sm:$0xff]   ;;  %v3177_v58 = vld [vmem:[%s4524_s1 + $0xe4] ss:$8 sps:$4 sm:$0xff]   ;;  %v3182_v61 = vld [vmem:[%s4524_s1 + $0x4e0] ss:$8 sps:$4 sm:$0xff]  }
  0x1b   : > { %2110 = vmatpush1.bf16.msra.mxu1 %v3127_v22  ;;  %v3179_v59 = vld [vmem:[%s4524_s1 + $0x4e4] ss:$8 sps:$4 sm:$0xff]   ;;  %v3183_v62 = vld [vmem:[%s4524_s1 + $0xf4] ss:$8 sps:$4 sm:$0xff]   ;;  %v3187_v0 = vld [vmem:[%s4524_s1 + $0xf0] ss:$8 sps:$4 sm:$0xff]  }
  0x1c   : > { %2314 = vmatpush1.bf16.msra.mxu0 %v3128_v23  ;;  %2111 = vmatprep.subr.bf16.mxu1 %v3129_v24  ;;  %v3185_v63 = vld [vmem:[%s4524_s1 + $0x4f4] ss:$8 sps:$4 sm:$0xff]   ;;  %v3188_v1 = vld [vmem:[%s4524_s1 + $0x4f0] ss:$8 sps:$4 sm:$0xff]   ;;  %v3194_v2 = vld [vmem:[%s4524_s1 + $0x104] ss:$8 sps:$4 sm:$0xff]  }
  0x1d   : > { %2315 = vmatprep.subr.bf16.mxu0 %v3131_v25  ;;  %v3200_v3 = vld [vmem:[%s4524_s1 + $0x504] ss:$8 sps:$4 sm:$0xff]   ;;  %v3189_v4 = vld [vmem:[%s3749_s5] ss:$72 sps:$4 sm:$0xff]   ;;  %v3203_v8 = vld [vmem:[%s4524_s1 + $0x114] ss:$8 sps:$4 sm:$0xff]  }
  0x1e   : > { %v3192_v5 = vld [vmem:[%s4524_s1 + $0x100] ss:$8 sps:$4 sm:$0xff]   ;;  %v3206_v9 = vld [vmem:[%s4524_s1 + $0x514] ss:$8 sps:$4 sm:$0xff]   ;;  %v3201_v10 = vld [vmem:[%s4524_s1 + $0x110] ss:$8 sps:$4 sm:$0xff]  }
  0x1f   : > { %2112 = vmatpush1.bf16.msra.mxu1 %v3133_v26  ;;  %v3195_v6 = vld [vmem:[%s3749_s5 + $0x20] ss:$72 sps:$4 sm:$0xff]   ;;  %v3204_v11 = vld [vmem:[%s4524_s1 + $0x510] ss:$8 sps:$4 sm:$0xff]   ;;  %v3209_v12 = vld [vmem:[%s4524_s1 + $0x124] ss:$8 sps:$4 sm:$0xff]  }
  0x20   : > { %2316 = vmatpush1.bf16.msra.mxu0 %v3134_v27  ;;  %2113 = vmatprep.subr.bf16.mxu1 %v3135_v28  ;;  %v3198_v7 = vld [vmem:[%s4524_s1 + $0x500] ss:$8 sps:$4 sm:$0xff]   ;;  %v3212_v13 = vld [vmem:[%s4524_s1 + $0x524] ss:$8 sps:$4 sm:$0xff]   ;;  %v3215_v16 = vld [vmem:[%s4524_s1 + $0x134] ss:$8 sps:$4 sm:$0xff]  }
  0x21   : > { %2317 = vmatprep.subr.bf16.mxu0 %v3137_v29  ;;  %v3207_v14 = vld [vmem:[%s4524_s1 + $0x120] ss:$8 sps:$4 sm:$0xff]   ;;  %v3218_v17 = vld [vmem:[%s4524_s1 + $0x534] ss:$8 sps:$4 sm:$0xff]   ;;  %v3213_v18 = vld [vmem:[%s4524_s1 + $0x130] ss:$8 sps:$4 sm:$0xff]  }
  0x22   : > { %v3210_v15 = vld [vmem:[%s4524_s1 + $0x520] ss:$8 sps:$4 sm:$0xff]   ;;  %v3216_v19 = vld [vmem:[%s4524_s1 + $0x530] ss:$8 sps:$4 sm:$0xff]   ;;  %v3221_v20 = vld [vmem:[%s4524_s1 + $0x144] ss:$8 sps:$4 sm:$0xff]  }
  0x23   : > { %2114 = vmatpush1.bf16.msra.mxu1 %v3139_v30  ;;  %v3224_v21 = vld [vmem:[%s4524_s1 + $0x544] ss:$8 sps:$4 sm:$0xff]   ;;  %v3219_v22 = vld [vmem:[%s4524_s1 + $0x140] ss:$8 sps:$4 sm:$0xff]   ;;  %v3227_v24 = vld [vmem:[%s4524_s1 + $0x154] ss:$8 sps:$4 sm:$0xff]  }
  0x24   : > { %2318 = vmatpush1.bf16.msra.mxu0 %v3140_v31  ;;  %2115 = vmatprep.subr.bf16.mxu1 %v3141_v32  ;;  %v3222_v23 = vld [vmem:[%s4524_s1 + $0x540] ss:$8 sps:$4 sm:$0xff]   ;;  %v3230_v25 = vld [vmem:[%s4524_s1 + $0x554] ss:$8 sps:$4 sm:$0xff]   ;;  %v3225_v27 = vld [vmem:[%s4524_s1 + $0x150] ss:$8 sps:$4 sm:$0xff]  }
  0x25   : > { %2319 = vmatprep.subr.bf16.mxu0 %v3143_v33  ;;  %v197_v26 = vld [vmem:[%s3749_s5 + $0x90] sm:$0xff]  ;;  %v3233_v32 = vld [vmem:[%s4524_s1 + $0x164] ss:$8 sps:$4 sm:$0xff]  }
  0x26   : > { %v2672_v28 = vcombine.high %v197_v26, %v197_v26  ;;  %v2671_v29 = vcombine.low %v197_v26, %v197_v26  ;;  %v3228_v30 = vld [vmem:[%s4524_s1 + $0x550] ss:$8 sps:$4 sm:$0xff]   ;;  %v3236_v33 = vld [vmem:[%s4524_s1 + $0x564] ss:$8 sps:$4 sm:$0xff]   ;;  %v3251_v48 = vld [vmem:[%s4524_s1 + $0x194] ss:$8 sps:$4 sm:$0xff]  }
  0x27   : > { %2116 = vmatpush1.bf16.msra.mxu1 %v3145_v34  ;;  %v201_v31 = vld [vmem:[%s3749_s5 + $0xb0] sm:$0xff]  ;;  %v3315_v26 = vld [vmem:[%s4524_s1 + $0x224] ss:$8 sps:$4 sm:$0xff]  }
  0x28   : > { %2320 = vmatpush1.bf16.msra.mxu0 %v3146_v35  ;;  %2117 = vmatprep.subr.bf16.mxu1 %v3147_v36  ;;  %v2680_v34 = vcombine.high %v201_v31, %v201_v31  ;;  %v2679_v35 = vcombine.low %v201_v31, %v201_v31  ;;  %v3231_v36 = vld [vmem:[%s4524_s1 + $0x160] ss:$8 sps:$4 sm:$0xff]   ;;  %v3252_v51 = vld [vmem:[%s4524_s1 + $0x590] ss:$8 sps:$4 sm:$0xff]  }
  0x29   : > { %2321 = vmatprep.subr.bf16.mxu0 %v3149_v37  ;;  %v3234_v37 = vld [vmem:[%s4524_s1 + $0x560] ss:$8 sps:$4 sm:$0xff]  }
  0x2b   : > { %2118 = vmatpush1.bf16.msra.mxu1 %v3151_v38  ;;  %v3239_v38 = vld [vmem:[%s4524_s1 + $0x174] ss:$8 sps:$4 sm:$0xff]  }
  0x2c   : > { %2322 = vmatpush1.bf16.msra.mxu0 %v3152_v39  ;;  %2119 = vmatprep.subr.bf16.mxu1 %v3153_v40  ;;  %v3242_v39 = vld [vmem:[%s4524_s1 + $0x574] ss:$8 sps:$4 sm:$0xff]  }
  0x2d   : > { %2323 = vmatprep.subr.bf16.mxu0 %v3155_v41  ;;  %v3297_v40 = vld [vmem:[%s3749_s5 + $0xc] ss:$72 sps:$4 sm:$0xff]   ;;  %v3237_v41 = vld [vmem:[%s4524_s1 + $0x170] ss:$8 sps:$4 sm:$0xff]  }
  0x2f   : > { %2120 = vmatpush1.bf16.msra.mxu1 %v3157_v42  ;;  %v3240_v42 = vld [vmem:[%s4524_s1 + $0x570] ss:$8 sps:$4 sm:$0xff]  }
  0x30   : > { %2324 = vmatpush1.bf16.msra.mxu0 %v3158_v43  ;;  %2121 = vmatprep.subr.bf16.mxu1 %v3159_v44  ;;  %v3303_v43 = vld [vmem:[%s3749_s5 + $0x2c] ss:$72 sps:$4 sm:$0xff]  }
  0x31   : > { %2325 = vmatprep.subr.bf16.mxu0 %v3161_v45  ;;  %v3245_v44 = vld [vmem:[%s4524_s1 + $0x184] ss:$8 sps:$4 sm:$0xff]  }
  0x32   : > { %v3248_v45 = vld [vmem:[%s4524_s1 + $0x584] ss:$8 sps:$4 sm:$0xff]  }
  0x33   : > { %2122 = vmatpush1.bf16.msra.mxu1 %v3163_v46  ;;  %v3243_v46 = vld [vmem:[%s4524_s1 + $0x180] ss:$8 sps:$4 sm:$0xff]  }
  0x34   : > { %2326 = vmatpush1.bf16.msra.mxu0 %v3164_v47  ;;  %2123 = vmatprep.subr.bf16.mxu1 %v3165_v49  ;;  %v3246_v47 = vld [vmem:[%s4524_s1 + $0x580] ss:$8 sps:$4 sm:$0xff]   ;;  %v3254_v49 = vld [vmem:[%s4524_s1 + $0x594] ss:$8 sps:$4 sm:$0xff]  }
  0x35   : > { %2327 = vmatprep.subr.bf16.mxu0 %v3167_v50  ;;  %v3249_v50 = vld [vmem:[%s4524_s1 + $0x190] ss:$8 sps:$4 sm:$0xff]  }
  0x37   : > { %2124 = vmatpush1.bf16.msra.mxu1 %v3169_v52  ;;  %v3257_v52 = vld [vmem:[%s4524_s1 + $0x1a4] ss:$8 sps:$4 sm:$0xff]  }
  0x38   : > { %2328 = vmatpush1.bf16.msra.mxu0 %v3170_v53  ;;  %2125 = vmatprep.subr.bf16.mxu1 %v3171_v54  ;;  %v3260_v53 = vld [vmem:[%s4524_s1 + $0x5a4] ss:$8 sps:$4 sm:$0xff]   ;;  %v3255_v54 = vld [vmem:[%s4524_s1 + $0x1a0] ss:$8 sps:$4 sm:$0xff]  }
  0x39   : > { %2329 = vmatprep.subr.bf16.mxu0 %v3173_v55  ;;  %v3258_v55 = vld [vmem:[%s4524_s1 + $0x5a0] ss:$8 sps:$4 sm:$0xff]  }
  0x3b   : > { %2126 = vmatpush1.bf16.msra.mxu1 %v3175_v56  ;;  %v3263_v56 = vld [vmem:[%s4524_s1 + $0x1b4] ss:$8 sps:$4 sm:$0xff]  }
  0x3c   : > { %2330 = vmatpush1.bf16.msra.mxu0 %v3176_v57  ;;  %2127 = vmatprep.subr.bf16.mxu1 %v3177_v58  ;;  %v3266_v57 = vld [vmem:[%s4524_s1 + $0x5b4] ss:$8 sps:$4 sm:$0xff]   ;;  %v3261_v58 = vld [vmem:[%s4524_s1 + $0x1b0] ss:$8 sps:$4 sm:$0xff]  }
  0x3d   : > { %2331 = vmatprep.subr.bf16.mxu0 %v3179_v59  ;;  %v3264_v59 = vld [vmem:[%s4524_s1 + $0x5b0] ss:$8 sps:$4 sm:$0xff]  }
  0x3f   : > { %2128 = vmatpush1.bf16.msra.mxu1 %v3181_v60  ;;  %v3269_v60 = vld [vmem:[%s4524_s1 + $0x1c4] ss:$8 sps:$4 sm:$0xff]  }
  0x40   : > { %2332 = vmatpush1.bf16.msra.mxu0 %v3182_v61  ;;  %2129 = vmatprep.subr.bf16.mxu1 %v3183_v62  ;;  %v3272_v61 = vld [vmem:[%s4524_s1 + $0x5c4] ss:$8 sps:$4 sm:$0xff]   ;;  %v3267_v62 = vld [vmem:[%s4524_s1 + $0x1c0] ss:$8 sps:$4 sm:$0xff]  }
  0x41   : > { %2333 = vmatprep.subr.bf16.mxu0 %v3185_v63  ;;  %v3270_v63 = vld [vmem:[%s4524_s1 + $0x5c0] ss:$8 sps:$4 sm:$0xff]  }
  0x43   : > { %2130 = vmatpush1.bf16.msra.mxu1 %v3187_v0  ;;  %v3275_v0 = vld [vmem:[%s4524_s1 + $0x1d4] ss:$8 sps:$4 sm:$0xff]  }
  0x44   : > { %2334 = vmatpush1.bf16.msra.mxu0 %v3188_v1  ;;  %2150 = vmatprep.subr.bf16.mxu1 %v3194_v2  ;;  %v3278_v1 = vld [vmem:[%s4524_s1 + $0x5d4] ss:$8 sps:$4 sm:$0xff]   ;;  %v3273_v2 = vld [vmem:[%s4524_s1 + $0x1d0] ss:$8 sps:$4 sm:$0xff]  }
  0x45   : > { %2354 = vmatprep.subr.bf16.mxu0 %v3200_v3  ;;  %v3276_v3 = vld [vmem:[%s4524_s1 + $0x5d0] ss:$8 sps:$4 sm:$0xff]  }
  0x46   : > { %2132 = vmatmul.mubr.bf16.vlgmr.msra.gmra.mrb[0].mxu1 %v3189_v4  ;;  %v3282_v4 = vld [vmem:[%s4524_s1 + $0x1e4] ss:$8 sps:$4 sm:$0xff]  }
  0x47   : > { %2336 = vmatmul.mubr.bf16.vlgmr.msra.gmra.mrb[0].mxu0 %v3195_v6  ;;  %2151 = vmatpush1.bf16.msra.mxu1 %v3192_v5  ;;  %v3286_v5 = vld [vmem:[%s4524_s1 + $0x5e4] ss:$8 sps:$4 sm:$0xff]   ;;  %v3280_v6 = vld [vmem:[%s4524_s1 + $0x1e0] ss:$8 sps:$4 sm:$0xff]  }
  0x48   : > { %2355 = vmatpush1.bf16.msra.mxu0 %v3198_v7  ;;  %2152 = vmatprep.subr.bf16.mxu1 %v3203_v8  ;;  %v3284_v7 = vld [vmem:[%s4524_s1 + $0x5e0] ss:$8 sps:$4 sm:$0xff]   ;;  %v3291_v8 = vld [vmem:[%s4524_s1 + $0x1f4] ss:$8 sps:$4 sm:$0xff]  }
  0x49   : > { %2356 = vmatprep.subr.bf16.mxu0 %v3206_v9  ;;  %2141 = vmatprep.mubr.bf16.mxu1 %v2672_v28  ;;  %v3294_v9 = vld [vmem:[%s4524_s1 + $0x5f4] ss:$8 sps:$4 sm:$0xff]   ;;  %v3313_v28 = vld [vmem:[%s4524_s1 + $0x220] ss:$8 sps:$4 sm:$0xff]  }
  0x4a   : > { %2345 = vmatprep.mubr.bf16.mxu0 %v2680_v34  ;;  %v3403_v34 = vld [vmem:[%s3749_s5 + $0x14] ss:$72 sps:$4 sm:$0xff]  }
  0x4b   : > { %2153 = vmatpush1.bf16.msra.mxu1 %v3201_v10  ;;  %v3289_v10 = vld [vmem:[%s4524_s1 + $0x1f0] ss:$8 sps:$4 sm:$0xff]  }
  0x4c   : > { %2357 = vmatpush1.bf16.msra.mxu0 %v3204_v11  ;;  %2154 = vmatprep.subr.bf16.mxu1 %v3209_v12  ;;  %v3292_v11 = vld [vmem:[%s4524_s1 + $0x5f0] ss:$8 sps:$4 sm:$0xff]  }
  0x4d   : > { %2358 = vmatprep.subr.bf16.mxu0 %v3212_v13  ;;  %v3295_v12 = vld [vmem:[%s3749_s5 + $0x8] ss:$72 sps:$4 sm:$0xff]   ;;  %v3300_v13 = vld [vmem:[%s4524_s1 + $0x204] ss:$8 sps:$4 sm:$0xff]  }
  0x4e   : > { %2142 = vmatmul.mubr.bf16.gmra.mrb[4].mxu1 %v2671_v29  ;;  %v3316_v29 = vld [vmem:[%s4524_s1 + $0x620] ss:$8 sps:$4 sm:$0xff]  }
  0x4f   : > { %2155 = vmatpush1.bf16.msra.mxu1 %v3207_v14  ;;  %2346 = vmatmul.mubr.bf16.gmra.mrb[4].mxu0 %v2679_v35  ;;  %v3306_v14 = vld [vmem:[%s4524_s1 + $0x604] ss:$8 sps:$4 sm:$0xff]   ;;  %v3409_v35 = vld [vmem:[%s3749_s5 + $0x34] ss:$72 sps:$4 sm:$0xff]  }
  0x50   : > { %2359 = vmatpush1.bf16.msra.mxu0 %v3210_v15  ;;  %2156 = vmatprep.subr.bf16.mxu1 %v3215_v16  ;;  %v3298_v15 = vld [vmem:[%s4524_s1 + $0x200] ss:$8 sps:$4 sm:$0xff]  }
  0x51   : > { %2360 = vmatprep.subr.bf16.mxu0 %v3218_v17  ;;  %2182 = vmatprep.mubr.bf16.mxu1 %v3297_v40  ;;  %v3301_v16 = vld [vmem:[%s3749_s5 + $0x28] ss:$72 sps:$4 sm:$0xff]  }
  0x52   : > { %2386 = vmatprep.mubr.bf16.mxu0 %v3303_v43  ;;  %v3304_v17 = vld [vmem:[%s4524_s1 + $0x600] ss:$8 sps:$4 sm:$0xff]   ;;  %v3336_v43 = vld [vmem:[%s4524_s1 + $0x654] ss:$8 sps:$4 sm:$0xff]  }
  0x53   : > { %2157 = vmatpush1.bf16.msra.mxu1 %v3213_v18  ;;  %v3309_v18 = vld [vmem:[%s4524_s1 + $0x214] ss:$8 sps:$4 sm:$0xff]   ;;  %v3325_v40 = vld [vmem:[%s4524_s1 + $0x240] ss:$8 sps:$4 sm:$0xff]  }
  0x54   : > { %2361 = vmatpush1.bf16.msra.mxu0 %v3216_v19  ;;  %2158 = vmatprep.subr.bf16.mxu1 %v3221_v20  ;;  %v198_v19 = vld [vmem:[%s3749_s5 + $0x98] sm:$0xff] }
  0x55   : > { %2362 = vmatprep.subr.bf16.mxu0 %v3224_v21  ;;  %v3312_v20 = vld [vmem:[%s4524_s1 + $0x614] ss:$8 sps:$4 sm:$0xff]   ;;  %v2674_v21 = vcombine.high %v198_v19, %v198_v19 }
  0x57   : > { %2159 = vmatpush1.bf16.msra.mxu1 %v3219_v22  ;;  %v202_v22 = vld [vmem:[%s3749_s5 + $0xb8] sm:$0xff] }
  0x58   : > { %2363 = vmatpush1.bf16.msra.mxu0 %v3222_v23  ;;  %2160 = vmatprep.subr.bf16.mxu1 %v3227_v24  ;;  %v3307_v23 = vld [vmem:[%s4524_s1 + $0x210] ss:$8 sps:$4 sm:$0xff]   ;;  %v2681_v31 = vcombine.low %v202_v22, %v202_v22 }
  0x59   : > { %2364 = vmatprep.subr.bf16.mxu0 %v3230_v25  ;;  %v3310_v24 = vld [vmem:[%s4524_s1 + $0x610] ss:$8 sps:$4 sm:$0xff]   ;;  %v2682_v25 = vcombine.high %v202_v22, %v202_v22  ;;  %v3406_v22 = vld [vmem:[%s4524_s1 + $0x304] ss:$8 sps:$4 sm:$0xff]  }
  0x5b   : > { %2161 = vmatpush1.bf16.msra.mxu1 %v3225_v27  ;;  %v3318_v27 = vld [vmem:[%s4524_s1 + $0x624] ss:$8 sps:$4 sm:$0xff]  }
  0x5c   : > { %2365 = vmatpush1.bf16.msra.mxu0 %v3228_v30  ;;  %2162 = vmatprep.subr.bf16.mxu1 %v3233_v32  ;;  %v2673_v30 = vcombine.low %v198_v19, %v198_v19  ;;  %v3321_v32 = vld [vmem:[%s4524_s1 + $0x234] ss:$8 sps:$4 sm:$0xff]  }
  0x5d   : > { %2366 = vmatprep.subr.bf16.mxu0 %v3236_v33  ;;  %v3324_v33 = vld [vmem:[%s4524_s1 + $0x634] ss:$8 sps:$4 sm:$0xff]  }
  0x5e   : > { %v3400_v19 = vld [vmem:[%s4524_s1 + $0x6f4] ss:$8 sps:$4 sm:$0xff]  }
  0x5f   : > { %2163 = vmatpush1.bf16.msra.mxu1 %v3231_v36  ;;  %v3319_v36 = vld [vmem:[%s4524_s1 + $0x230] ss:$8 sps:$4 sm:$0xff]  }
  0x60   : > { %2367 = vmatpush1.bf16.msra.mxu0 %v3234_v37  ;;  %2164 = vmatprep.subr.bf16.mxu1 %v3239_v38  ;;  %v3322_v37 = vld [vmem:[%s4524_s1 + $0x630] ss:$8 sps:$4 sm:$0xff]   ;;  %v3327_v38 = vld [vmem:[%s4524_s1 + $0x244] ss:$8 sps:$4 sm:$0xff]  }
  0x61   : > { %2368 = vmatprep.subr.bf16.mxu0 %v3242_v39  ;;  %v3330_v39 = vld [vmem:[%s4524_s1 + $0x644] ss:$8 sps:$4 sm:$0xff]  }
  0x63   : > { %2165 = vmatpush1.bf16.msra.mxu1 %v3237_v41  ;;  %v3328_v41 = vld [vmem:[%s4524_s1 + $0x640] ss:$8 sps:$4 sm:$0xff]  }
  0x64   : > { %2369 = vmatpush1.bf16.msra.mxu0 %v3240_v42  ;;  %2166 = vmatprep.subr.bf16.mxu1 %v3245_v44  ;;  %v3333_v42 = vld [vmem:[%s4524_s1 + $0x254] ss:$8 sps:$4 sm:$0xff]   ;;  %v3331_v44 = vld [vmem:[%s4524_s1 + $0x250] ss:$8 sps:$4 sm:$0xff]  }
  0x65   : > { %2370 = vmatprep.subr.bf16.mxu0 %v3248_v45  ;;  %v3334_v45 = vld [vmem:[%s4524_s1 + $0x650] ss:$8 sps:$4 sm:$0xff]  }
  0x67   : > { %2167 = vmatpush1.bf16.msra.mxu1 %v3243_v46  ;;  %v3339_v46 = vld [vmem:[%s4524_s1 + $0x264] ss:$8 sps:$4 sm:$0xff]  }
  0x68   : > { %2371 = vmatpush1.bf16.msra.mxu0 %v3246_v47  ;;  %2168 = vmatprep.subr.bf16.mxu1 %v3251_v48  ;;  %v3342_v47 = vld [vmem:[%s4524_s1 + $0x664] ss:$8 sps:$4 sm:$0xff]   ;;  %v3337_v48 = vld [vmem:[%s4524_s1 + $0x260] ss:$8 sps:$4 sm:$0xff]  }
  0x69   : > { %2372 = vmatprep.subr.bf16.mxu0 %v3254_v49  ;;  %v3340_v49 = vld [vmem:[%s4524_s1 + $0x660] ss:$8 sps:$4 sm:$0xff]  }
  0x6b   : > { %2169 = vmatpush1.bf16.msra.mxu1 %v3249_v50  ;;  %v3345_v50 = vld [vmem:[%s4524_s1 + $0x274] ss:$8 sps:$4 sm:$0xff]  }
  0x6c   : > { %2373 = vmatpush1.bf16.msra.mxu0 %v3252_v51  ;;  %2170 = vmatprep.subr.bf16.mxu1 %v3257_v52  ;;  %v3348_v51 = vld [vmem:[%s4524_s1 + $0x674] ss:$8 sps:$4 sm:$0xff]   ;;  %v3343_v52 = vld [vmem:[%s4524_s1 + $0x270] ss:$8 sps:$4 sm:$0xff]  }
  0x6d   : > { %2374 = vmatprep.subr.bf16.mxu0 %v3260_v53  ;;  %v3346_v53 = vld [vmem:[%s4524_s1 + $0x670] ss:$8 sps:$4 sm:$0xff]  }
  0x6f   : > { %2171 = vmatpush1.bf16.msra.mxu1 %v3255_v54  ;;  %v3351_v54 = vld [vmem:[%s4524_s1 + $0x284] ss:$8 sps:$4 sm:$0xff]  }
  0x70   : > { %2375 = vmatpush1.bf16.msra.mxu0 %v3258_v55  ;;  %2172 = vmatprep.subr.bf16.mxu1 %v3263_v56  ;;  %v3354_v55 = vld [vmem:[%s4524_s1 + $0x684] ss:$8 sps:$4 sm:$0xff]   ;;  %v3349_v56 = vld [vmem:[%s4524_s1 + $0x280] ss:$8 sps:$4 sm:$0xff]  }
  0x71   : > { %2376 = vmatprep.subr.bf16.mxu0 %v3266_v57  ;;  %v3352_v57 = vld [vmem:[%s4524_s1 + $0x680] ss:$8 sps:$4 sm:$0xff]  }
  0x73   : > { %2173 = vmatpush1.bf16.msra.mxu1 %v3261_v58  ;;  %v3357_v58 = vld [vmem:[%s4524_s1 + $0x294] ss:$8 sps:$4 sm:$0xff]  }
  0x74   : > { %2377 = vmatpush1.bf16.msra.mxu0 %v3264_v59  ;;  %2174 = vmatprep.subr.bf16.mxu1 %v3269_v60  ;;  %v3360_v59 = vld [vmem:[%s4524_s1 + $0x694] ss:$8 sps:$4 sm:$0xff]   ;;  %v3355_v60 = vld [vmem:[%s4524_s1 + $0x290] ss:$8 sps:$4 sm:$0xff]  }
  0x75   : > { %2378 = vmatprep.subr.bf16.mxu0 %v3272_v61  ;;  %v3358_v61 = vld [vmem:[%s4524_s1 + $0x690] ss:$8 sps:$4 sm:$0xff]  }
  0x77   : > { %2175 = vmatpush1.bf16.msra.mxu1 %v3267_v62  ;;  %v3363_v62 = vld [vmem:[%s4524_s1 + $0x2a4] ss:$8 sps:$4 sm:$0xff]  }
  0x78   : > { %2379 = vmatpush1.bf16.msra.mxu0 %v3270_v63  ;;  %2176 = vmatprep.subr.bf16.mxu1 %v3275_v0  ;;  %v3366_v63 = vld [vmem:[%s4524_s1 + $0x6a4] ss:$8 sps:$4 sm:$0xff]   ;;  %v3361_v0 = vld [vmem:[%s4524_s1 + $0x2a0] ss:$8 sps:$4 sm:$0xff]  }
  0x79   : > { %2380 = vmatprep.subr.bf16.mxu0 %v3278_v1  ;;  %v3364_v1 = vld [vmem:[%s4524_s1 + $0x6a0] ss:$8 sps:$4 sm:$0xff]  }
  0x7b   : > { %2177 = vmatpush1.bf16.msra.mxu1 %v3273_v2  ;;  %v3369_v2 = vld [vmem:[%s4524_s1 + $0x2b4] ss:$8 sps:$4 sm:$0xff]  }
  0x7c   : > { %2381 = vmatpush1.bf16.msra.mxu0 %v3276_v3  ;;  %2178 = vmatprep.subr.bf16.mxu1 %v3282_v4  ;;  %v3372_v3 = vld [vmem:[%s4524_s1 + $0x6b4] ss:$8 sps:$4 sm:$0xff]   ;;  %v3367_v4 = vld [vmem:[%s4524_s1 + $0x2b0] ss:$8 sps:$4 sm:$0xff]  }
  0x7d   : > { %2382 = vmatprep.subr.bf16.mxu0 %v3286_v5  ;;  %v3370_v5 = vld [vmem:[%s4524_s1 + $0x6b0] ss:$8 sps:$4 sm:$0xff]  }
  0x7f   : > { %2179 = vmatpush1.bf16.msra.mxu1 %v3280_v6  ;;  %v3375_v6 = vld [vmem:[%s4524_s1 + $0x2c4] ss:$8 sps:$4 sm:$0xff]  }
  0x80   : > { %2383 = vmatpush1.bf16.msra.mxu0 %v3284_v7  ;;  %2180 = vmatprep.subr.bf16.mxu1 %v3291_v8  ;;  %v3378_v7 = vld [vmem:[%s4524_s1 + $0x6c4] ss:$8 sps:$4 sm:$0xff]   ;;  %v3373_v8 = vld [vmem:[%s4524_s1 + $0x2c0] ss:$8 sps:$4 sm:$0xff]  }
  0x81   : > { %2384 = vmatprep.subr.bf16.mxu0 %v3294_v9  ;;  %v3376_v9 = vld [vmem:[%s4524_s1 + $0x6c0] ss:$8 sps:$4 sm:$0xff]  }
  0x83   : > { %2181 = vmatpush1.bf16.msra.mxu1 %v3289_v10  ;;  %v3381_v10 = vld [vmem:[%s4524_s1 + $0x2d4] ss:$8 sps:$4 sm:$0xff]  }
  0x84   : > { %2385 = vmatpush1.bf16.msra.mxu0 %v3292_v11  ;;  %2201 = vmatprep.subr.bf16.mxu1 %v3300_v13  ;;  %v3384_v11 = vld [vmem:[%s4524_s1 + $0x6d4] ss:$8 sps:$4 sm:$0xff]   ;;  %v3382_v13 = vld [vmem:[%s4524_s1 + $0x6d0] ss:$8 sps:$4 sm:$0xff]  }
  0x85   : > { %2405 = vmatprep.subr.bf16.mxu0 %v3306_v14  ;;  %v3388_v14 = vld [vmem:[%s4524_s1 + $0x2e4] ss:$8 sps:$4 sm:$0xff]  }
  0x86   : > { %2183 = vmatmul.mubr.bf16.vlgmr.msra.gmra.mrb[0].mxu1 %v3295_v12  ;;  %v3379_v12 = vld [vmem:[%s4524_s1 + $0x2d0] ss:$8 sps:$4 sm:$0xff]  }
  0x87   : > { %2387 = vmatmul.mubr.bf16.vlgmr.msra.gmra.mrb[0].mxu0 %v3301_v16  ;;  %2202 = vmatpush1.bf16.msra.mxu1 %v3298_v15  ;;  %v3392_v15 = vld [vmem:[%s4524_s1 + $0x6e4] ss:$8 sps:$4 sm:$0xff]   ;;  %v3386_v16 = vld [vmem:[%s4524_s1 + $0x2e0] ss:$8 sps:$4 sm:$0xff]  }
  0x88   : > { %2406 = vmatpush1.bf16.msra.mxu0 %v3304_v17  ;;  %2203 = vmatprep.subr.bf16.mxu1 %v3309_v18  ;;  %v3390_v17 = vld [vmem:[%s4524_s1 + $0x6e0] ss:$8 sps:$4 sm:$0xff]   ;;  %v3397_v18 = vld [vmem:[%s4524_s1 + $0x2f4] ss:$8 sps:$4 sm:$0xff]  }
  0x89   : > { %2407 = vmatprep.subr.bf16.mxu0 %v3312_v20  ;;  %2192 = vmatprep.mubr.bf16.mxu1 %v2674_v21  ;;  %v3395_v20 = vld [vmem:[%s4524_s1 + $0x2f0] ss:$8 sps:$4 sm:$0xff]  }
  0x8a   : > { %2396 = vmatprep.mubr.bf16.mxu0 %v2682_v25  ;;  %v3398_v21 = vld [vmem:[%s4524_s1 + $0x6f0] ss:$8 sps:$4 sm:$0xff]   ;;  %v3404_v25 = vld [vmem:[%s4524_s1 + $0x300] ss:$8 sps:$4 sm:$0xff]  }
  0x8b   : > { %2204 = vmatpush1.bf16.msra.mxu1 %v3307_v23  ;;  %v3401_v23 = vld [vmem:[%s3749_s5 + $0x10] ss:$72 sps:$4 sm:$0xff]  }
  0x8c   : > { %2408 = vmatpush1.bf16.msra.mxu0 %v3310_v24  ;;  %2205 = vmatprep.subr.bf16.mxu1 %v3315_v26  ;;  %v3412_v24 = vld [vmem:[%s4524_s1 + $0x704] ss:$8 sps:$4 sm:$0xff]   ;;  %v3407_v26 = vld [vmem:[%s3749_s5 + $0x30] ss:$72 sps:$4 sm:$0xff]  }
  0x8d   : > { %2409 = vmatprep.subr.bf16.mxu0 %v3318_v27  ;;  %v3410_v27 = vld [vmem:[%s4524_s1 + $0x700] ss:$8 sps:$4 sm:$0xff]  }
  0x8e   : > { %2193 = vmatmul.mubr.bf16.gmra.mrb[4].mxu1 %v2673_v30  ;;  %v3415_v30 = vld [vmem:[%s4524_s1 + $0x314] ss:$8 sps:$4 sm:$0xff]  }
  0x8f   : > { %2397 = vmatmul.mubr.bf16.gmra.mrb[4].mxu0 %v2681_v31  ;;  %2206 = vmatpush1.bf16.msra.mxu1 %v3313_v28  ;;  %v199_v28 = vld [vmem:[%s3749_s5 + $0xa0] sm:$0xff]  ;;  %v3418_v31 = vld [vmem:[%s4524_s1 + $0x714] ss:$8 sps:$4 sm:$0xff]  }
  0x90   : > { %2410 = vmatpush1.bf16.msra.mxu0 %v3316_v29  ;;  %2207 = vmatprep.subr.bf16.mxu1 %v3321_v32  ;;  %v203_v29 = vld [vmem:[%s3749_s5 + $0xc0] sm:$0xff]  ;;  %v2676_v32 = vcombine.high %v199_v28, %v199_v28 }
  0x91   : > { %2411 = vmatprep.subr.bf16.mxu0 %v3324_v33  ;;  %2233 = vmatprep.mubr.bf16.mxu1 %v3403_v34  ;;  %v2684_v33 = vcombine.high %v203_v29, %v203_v29  ;;  %v3413_v34 = vld [vmem:[%s4524_s1 + $0x310] ss:$8 sps:$4 sm:$0xff]  }
  0x92   : > { %2437 = vmatprep.mubr.bf16.mxu0 %v3409_v35  ;;  %v3416_v35 = vld [vmem:[%s4524_s1 + $0x710] ss:$8 sps:$4 sm:$0xff]  }
  0x93   : > { %2208 = vmatpush1.bf16.msra.mxu1 %v3319_v36  ;;  %v3421_v36 = vld [vmem:[%s4524_s1 + $0x324] ss:$8 sps:$4 sm:$0xff]  }
  0x94   : > { %2412 = vmatpush1.bf16.msra.mxu0 %v3322_v37  ;;  %2209 = vmatprep.subr.bf16.mxu1 %v3327_v38  ;;  %v3424_v37 = vld [vmem:[%s4524_s1 + $0x724] ss:$8 sps:$4 sm:$0xff]   ;;  %v3419_v38 = vld [vmem:[%s4524_s1 + $0x320] ss:$8 sps:$4 sm:$0xff]  }
  0x95   : > { %2413 = vmatprep.subr.bf16.mxu0 %v3330_v39  ;;  %v3422_v39 = vld [vmem:[%s4524_s1 + $0x720] ss:$8 sps:$4 sm:$0xff]  }
  0x97   : > { %2210 = vmatpush1.bf16.msra.mxu1 %v3325_v40  ;;  %v2675_v40 = vcombine.low %v199_v28, %v199_v28  ;;  %v3503_v28 = vld [vmem:[%s4524_s1 + $0x3f4] ss:$8 sps:$4 sm:$0xff]  }
  0x98   : > { %2414 = vmatpush1.bf16.msra.mxu0 %v3328_v41  ;;  %2211 = vmatprep.subr.bf16.mxu1 %v3333_v42  ;;  %v2683_v41 = vcombine.low %v203_v29, %v203_v29  ;;  %v3427_v42 = vld [vmem:[%s4524_s1 + $0x334] ss:$8 sps:$4 sm:$0xff]  }
  0x99   : > { %2415 = vmatprep.subr.bf16.mxu0 %v3336_v43  ;;  %v3430_v43 = vld [vmem:[%s4524_s1 + $0x734] ss:$8 sps:$4 sm:$0xff]  }
  0x9a   : > { %v3506_v29 = vld [vmem:[%s4524_s1 + $0x7f4] ss:$8 sps:$4 sm:$0xff]  }
  0x9b   : > { %2212 = vmatpush1.bf16.msra.mxu1 %v3331_v44  ;;  %v3509_v44 = vld [vmem:[%s3749_s5 + $0x1c] ss:$72 sps:$4 sm:$0xff]  }
  0x9c   : > { %2416 = vmatpush1.bf16.msra.mxu0 %v3334_v45  ;;  %2213 = vmatprep.subr.bf16.mxu1 %v3339_v46  ;;  %v3512_v45 = vld [vmem:[%s3749_s5 + $0x3c] ss:$72 sps:$4 sm:$0xff]   ;;  %v3425_v46 = vld [vmem:[%s4524_s1 + $0x330] ss:$8 sps:$4 sm:$0xff]  }
  0x9d   : > { %2417 = vmatprep.subr.bf16.mxu0 %v3342_v47  ;;  %v3428_v47 = vld [vmem:[%s4524_s1 + $0x730] ss:$8 sps:$4 sm:$0xff]  }
  0x9f   : > { %2214 = vmatpush1.bf16.msra.mxu1 %v3337_v48  ;;  %v3433_v48 = vld [vmem:[%s4524_s1 + $0x344] ss:$8 sps:$4 sm:$0xff]  }
  0xa0   : > { %2418 = vmatpush1.bf16.msra.mxu0 %v3340_v49  ;;  %2215 = vmatprep.subr.bf16.mxu1 %v3345_v50  ;;  %v3436_v49 = vld [vmem:[%s4524_s1 + $0x744] ss:$8 sps:$4 sm:$0xff]   ;;  %v3431_v50 = vld [vmem:[%s4524_s1 + $0x340] ss:$8 sps:$4 sm:$0xff]  }
  0xa1   : > { %2419 = vmatprep.subr.bf16.mxu0 %v3348_v51  ;;  %v3434_v51 = vld [vmem:[%s4524_s1 + $0x740] ss:$8 sps:$4 sm:$0xff]  }
  0xa3   : > { %2216 = vmatpush1.bf16.msra.mxu1 %v3343_v52  ;;  %v3439_v52 = vld [vmem:[%s4524_s1 + $0x354] ss:$8 sps:$4 sm:$0xff]  }
  0xa4   : > { %2420 = vmatpush1.bf16.msra.mxu0 %v3346_v53  ;;  %2217 = vmatprep.subr.bf16.mxu1 %v3351_v54  ;;  %v3442_v53 = vld [vmem:[%s4524_s1 + $0x754] ss:$8 sps:$4 sm:$0xff]   ;;  %v3437_v54 = vld [vmem:[%s4524_s1 + $0x350] ss:$8 sps:$4 sm:$0xff]  }
  0xa5   : > { %2421 = vmatprep.subr.bf16.mxu0 %v3354_v55  ;;  %v3440_v55 = vld [vmem:[%s4524_s1 + $0x750] ss:$8 sps:$4 sm:$0xff]  }
  0xa7   : > { %2218 = vmatpush1.bf16.msra.mxu1 %v3349_v56  ;;  %v3445_v56 = vld [vmem:[%s4524_s1 + $0x364] ss:$8 sps:$4 sm:$0xff]  }
  0xa8   : > { %2422 = vmatpush1.bf16.msra.mxu0 %v3352_v57  ;;  %2219 = vmatprep.subr.bf16.mxu1 %v3357_v58  ;;  %v3448_v57 = vld [vmem:[%s4524_s1 + $0x764] ss:$8 sps:$4 sm:$0xff]   ;;  %v3443_v58 = vld [vmem:[%s4524_s1 + $0x360] ss:$8 sps:$4 sm:$0xff]  }
  0xa9   : > { %2423 = vmatprep.subr.bf16.mxu0 %v3360_v59  ;;  %v3446_v59 = vld [vmem:[%s4524_s1 + $0x760] ss:$8 sps:$4 sm:$0xff]  }
  0xab   : > { %2220 = vmatpush1.bf16.msra.mxu1 %v3355_v60  ;;  %v3451_v60 = vld [vmem:[%s4524_s1 + $0x374] ss:$8 sps:$4 sm:$0xff]  }
  0xac   : > { %2424 = vmatpush1.bf16.msra.mxu0 %v3358_v61  ;;  %2221 = vmatprep.subr.bf16.mxu1 %v3363_v62  ;;  %v3454_v61 = vld [vmem:[%s4524_s1 + $0x774] ss:$8 sps:$4 sm:$0xff]   ;;  %v3449_v62 = vld [vmem:[%s4524_s1 + $0x370] ss:$8 sps:$4 sm:$0xff]  }
  0xad   : > { %2425 = vmatprep.subr.bf16.mxu0 %v3366_v63  ;;  %v3452_v63 = vld [vmem:[%s4524_s1 + $0x770] ss:$8 sps:$4 sm:$0xff]  }
  0xaf   : > { %2222 = vmatpush1.bf16.msra.mxu1 %v3361_v0  ;;  %v3457_v0 = vld [vmem:[%s4524_s1 + $0x384] ss:$8 sps:$4 sm:$0xff]  }
  0xb0   : > { %2426 = vmatpush1.bf16.msra.mxu0 %v3364_v1  ;;  %2223 = vmatprep.subr.bf16.mxu1 %v3369_v2  ;;  %v3460_v1 = vld [vmem:[%s4524_s1 + $0x784] ss:$8 sps:$4 sm:$0xff]   ;;  %v3455_v2 = vld [vmem:[%s4524_s1 + $0x380] ss:$8 sps:$4 sm:$0xff]  }
  0xb1   : > { %2427 = vmatprep.subr.bf16.mxu0 %v3372_v3  ;;  %v3458_v3 = vld [vmem:[%s4524_s1 + $0x780] ss:$8 sps:$4 sm:$0xff]  }
  0xb3   : > { %2224 = vmatpush1.bf16.msra.mxu1 %v3367_v4  ;;  %v3463_v4 = vld [vmem:[%s4524_s1 + $0x394] ss:$8 sps:$4 sm:$0xff]  }
  0xb4   : > { %2428 = vmatpush1.bf16.msra.mxu0 %v3370_v5  ;;  %2225 = vmatprep.subr.bf16.mxu1 %v3375_v6  ;;  %v3466_v5 = vld [vmem:[%s4524_s1 + $0x794] ss:$8 sps:$4 sm:$0xff]   ;;  %v3461_v6 = vld [vmem:[%s4524_s1 + $0x390] ss:$8 sps:$4 sm:$0xff]  }
  0xb5   : > { %2429 = vmatprep.subr.bf16.mxu0 %v3378_v7  ;;  %v3464_v7 = vld [vmem:[%s4524_s1 + $0x790] ss:$8 sps:$4 sm:$0xff]  }
  0xb7   : > { %2226 = vmatpush1.bf16.msra.mxu1 %v3373_v8  ;;  %v3469_v8 = vld [vmem:[%s4524_s1 + $0x3a4] ss:$8 sps:$4 sm:$0xff]  }
  0xb8   : > { %2430 = vmatpush1.bf16.msra.mxu0 %v3376_v9  ;;  %2227 = vmatprep.subr.bf16.mxu1 %v3381_v10  ;;  %v3472_v9 = vld [vmem:[%s4524_s1 + $0x7a4] ss:$8 sps:$4 sm:$0xff]   ;;  %v3467_v10 = vld [vmem:[%s4524_s1 + $0x3a0] ss:$8 sps:$4 sm:$0xff]  }
  0xb9   : > { %2431 = vmatprep.subr.bf16.mxu0 %v3384_v11  ;;  %v3470_v11 = vld [vmem:[%s4524_s1 + $0x7a0] ss:$8 sps:$4 sm:$0xff]  }
  0xbb   : > { %2228 = vmatpush1.bf16.msra.mxu1 %v3379_v12  ;;  %v3475_v12 = vld [vmem:[%s4524_s1 + $0x3b4] ss:$8 sps:$4 sm:$0xff]  }
  0xbc   : > { %2432 = vmatpush1.bf16.msra.mxu0 %v3382_v13  ;;  %2229 = vmatprep.subr.bf16.mxu1 %v3388_v14  ;;  %v3478_v13 = vld [vmem:[%s4524_s1 + $0x7b4] ss:$8 sps:$4 sm:$0xff]   ;;  %v3473_v14 = vld [vmem:[%s4524_s1 + $0x3b0] ss:$8 sps:$4 sm:$0xff]  }
  0xbd   : > { %2433 = vmatprep.subr.bf16.mxu0 %v3392_v15  ;;  %v3476_v15 = vld [vmem:[%s4524_s1 + $0x7b0] ss:$8 sps:$4 sm:$0xff]  }
  0xbf   : > { %2230 = vmatpush1.bf16.msra.mxu1 %v3386_v16  ;;  %v3481_v16 = vld [vmem:[%s4524_s1 + $0x3c4] ss:$8 sps:$4 sm:$0xff]  }
  0xc0   : > { %2434 = vmatpush1.bf16.msra.mxu0 %v3390_v17  ;;  %2231 = vmatprep.subr.bf16.mxu1 %v3397_v18  ;;  %v3484_v17 = vld [vmem:[%s4524_s1 + $0x7c4] ss:$8 sps:$4 sm:$0xff]   ;;  %v3479_v18 = vld [vmem:[%s4524_s1 + $0x3c0] ss:$8 sps:$4 sm:$0xff]  }
  0xc1   : > { %2435 = vmatprep.subr.bf16.mxu0 %v3400_v19  ;;  %v3482_v19 = vld [vmem:[%s4524_s1 + $0x7c0] ss:$8 sps:$4 sm:$0xff]  }
  0xc3   : > { %2232 = vmatpush1.bf16.msra.mxu1 %v3395_v20  ;;  %v3487_v20 = vld [vmem:[%s4524_s1 + $0x3d4] ss:$8 sps:$4 sm:$0xff]  }
  0xc4   : > { %2436 = vmatpush1.bf16.msra.mxu0 %v3398_v21  ;;  %2252 = vmatprep.subr.bf16.mxu1 %v3406_v22  ;;  %v3490_v21 = vld [vmem:[%s4524_s1 + $0x7d4] ss:$8 sps:$4 sm:$0xff]   ;;  %v3485_v22 = vld [vmem:[%s4524_s1 + $0x3d0] ss:$8 sps:$4 sm:$0xff]  }
  0xc5   : > { %2456 = vmatprep.subr.bf16.mxu0 %v3412_v24  ;;  %v3496_v24 = vld [vmem:[%s4524_s1 + $0x3e4] ss:$8 sps:$4 sm:$0xff]  }
  0xc6   : > { %2234 = vmatmul.mubr.bf16.vlgmr.msra.gmra.mrb[0].mxu1 %v3401_v23  ;;  %v3488_v23 = vld [vmem:[%s4524_s1 + $0x7d0] ss:$8 sps:$4 sm:$0xff]  }
  0xc7   : > { %2438 = vmatmul.mubr.bf16.vlgmr.msra.gmra.mrb[0].mxu0 %v3407_v26  ;;  %2253 = vmatpush1.bf16.msra.mxu1 %v3404_v25  ;;  %v3500_v25 = vld [vmem:[%s4524_s1 + $0x7e4] ss:$8 sps:$4 sm:$0xff]   ;;  %v3494_v26 = vld [vmem:[%s4524_s1 + $0x3e0] ss:$8 sps:$4 sm:$0xff]  }
  0xc8   : > { %2457 = vmatpush1.bf16.msra.mxu0 %v3410_v27  ;;  %2254 = vmatprep.subr.bf16.mxu1 %v3415_v30  ;;  %v3498_v27 = vld [vmem:[%s4524_s1 + $0x7e0] ss:$8 sps:$4 sm:$0xff]   ;;  %v3501_v30 = vld [vmem:[%s4524_s1 + $0x3f0] ss:$8 sps:$4 sm:$0xff]  }
  0xc9   : > { %2458 = vmatprep.subr.bf16.mxu0 %v3418_v31  ;;  %2243 = vmatprep.mubr.bf16.mxu1 %v2676_v32  ;;  %v3504_v31 = vld [vmem:[%s4524_s1 + $0x7f0] ss:$8 sps:$4 sm:$0xff]   ;;  %v3515_v32 = vld [vmem:[%s4524_s1 + $0x804] ss:$8 sps:$4 sm:$0xff]  }
  0xca   : > { %2447 = vmatprep.mubr.bf16.mxu0 %v2684_v33  ;;  %v3507_v33 = vld [vmem:[%s3749_s5 + $0x18] ss:$72 sps:$4 sm:$0xff]  }
  0xcb   : > { %2255 = vmatpush1.bf16.msra.mxu1 %v3413_v34  ;;  %v3510_v34 = vld [vmem:[%s3749_s5 + $0x38] ss:$72 sps:$4 sm:$0xff]  }
  0xcc   : > { %2459 = vmatpush1.bf16.msra.mxu0 %v3416_v35  ;;  %2256 = vmatprep.subr.bf16.mxu1 %v3421_v36  ;;  %v200_v35 = vld [vmem:[%s3749_s5 + $0xa8] sm:$0xff] }
  0xcd   : > { %2460 = vmatprep.subr.bf16.mxu0 %v3424_v37  ;;  %v204_v36 = vld [vmem:[%s3749_s5 + $0xc8] sm:$0xff] }
  0xce   : > { %2244 = vmatmul.mubr.bf16.gmra.mrb[4].mxu1 %v2675_v40  ;;  %v3513_v37 = vld [vmem:[%s4524_s1 + $0x800] ss:$8 sps:$4 sm:$0xff]   ;;  %v2686_v40 = vcombine.high %v204_v36, %v204_v36 }
  0xcf   : > { %2448 = vmatmul.mubr.bf16.gmra.mrb[4].mxu0 %v2683_v41  ;;  %2257 = vmatpush1.bf16.msra.mxu1 %v3419_v38  ;;  %v3518_v38 = vld [vmem:[%s4524_s1 + $0x814] ss:$8 sps:$4 sm:$0xff]   ;;  %v3516_v41 = vld [vmem:[%s4524_s1 + $0x810] ss:$8 sps:$4 sm:$0xff]  }
  0xd0   : > { %2461 = vmatpush1.bf16.msra.mxu0 %v3422_v39  ;;  %2258 = vmatprep.subr.bf16.mxu1 %v3427_v42  ;;  %v2678_v39 = vcombine.high %v200_v35, %v200_v35  ;;  %v3525_v42 = vld [vmem:[%s4524_s1 + $0x824] ss:$8 sps:$4 sm:$0xff]  }
  0xd1   : > { %2462 = vmatprep.subr.bf16.mxu0 %v3430_v43  ;;  %2284 = vmatprep.mubr.bf16.mxu1 %v3509_v44  ;;  %v2677_v43 = vcombine.low %v200_v35, %v200_v35  ;;  %v2685_v44 = vcombine.low %v204_v36, %v204_v36 }
  0xd2   : > { %2488 = vmatprep.mubr.bf16.mxu0 %v3512_v45  ;;  %v4424_v45 = vld [vmem:[%s3749_s5 + $0xd0] sm:$0xff] }
  0xd3   : > { %2259 = vmatpush1.bf16.msra.mxu1 %v3425_v46  ;;  %v3523_v46 = vld [vmem:[%s4524_s1 + $0x820] ss:$8 sps:$4 sm:$0xff]  }
  0xd4   : > { %2463 = vmatpush1.bf16.msra.mxu0 %v3428_v47  ;;  %2260 = vmatprep.subr.bf16.mxu1 %v3433_v48  ;;  %v3528_v47 = vld [vmem:[%s4524_s1 + $0x834] ss:$8 sps:$4 sm:$0xff]   ;;  %v3567_v48 = vld [vmem:[%s3749_s5 + $0x44] ss:$72 sps:$4 sm:$0xff]  }
  0xd5   : > { %2464 = vmatprep.subr.bf16.mxu0 %v3436_v49  ;;  %v2688_v49 = vcombine.high %v4424_v45, %v4424_v45 }
  0xd7   : > { %2261 = vmatpush1.bf16.msra.mxu1 %v3431_v50  ;;  %v3526_v50 = vld [vmem:[%s4524_s1 + $0x830] ss:$8 sps:$4 sm:$0xff]  }
  0xd8   : > { %2465 = vmatpush1.bf16.msra.mxu0 %v3434_v51  ;;  %2262 = vmatprep.subr.bf16.mxu1 %v3439_v52  ;;  %v3531_v51 = vld [vmem:[%s4524_s1 + $0x844] ss:$8 sps:$4 sm:$0xff]   ;;  %v3529_v52 = vld [vmem:[%s4524_s1 + $0x840] ss:$8 sps:$4 sm:$0xff]  }
  0xd9   : > { %2466 = vmatprep.subr.bf16.mxu0 %v3442_v53  ;;  %v3534_v53 = vld [vmem:[%s4524_s1 + $0x854] ss:$8 sps:$4 sm:$0xff]  }
  0xdb   : > { %2263 = vmatpush1.bf16.msra.mxu1 %v3437_v54  ;;  %v3532_v54 = vld [vmem:[%s4524_s1 + $0x850] ss:$8 sps:$4 sm:$0xff]  }
  0xdc   : > { %2467 = vmatpush1.bf16.msra.mxu0 %v3440_v55  ;;  %2264 = vmatprep.subr.bf16.mxu1 %v3445_v56  ;;  %v3537_v55 = vld [vmem:[%s4524_s1 + $0x864] ss:$8 sps:$4 sm:$0xff]   ;;  %v3535_v56 = vld [vmem:[%s4524_s1 + $0x860] ss:$8 sps:$4 sm:$0xff]  }
  0xdd   : > { %2468 = vmatprep.subr.bf16.mxu0 %v3448_v57  ;;  %v3540_v57 = vld [vmem:[%s4524_s1 + $0x874] ss:$8 sps:$4 sm:$0xff]  }
  0xdf   : > { %2265 = vmatpush1.bf16.msra.mxu1 %v3443_v58  ;;  %v3538_v58 = vld [vmem:[%s4524_s1 + $0x870] ss:$8 sps:$4 sm:$0xff]  }
  0xe0   : > { %2469 = vmatpush1.bf16.msra.mxu0 %v3446_v59  ;;  %2266 = vmatprep.subr.bf16.mxu1 %v3451_v60  ;;  %v3543_v59 = vld [vmem:[%s4524_s1 + $0x884] ss:$8 sps:$4 sm:$0xff]   ;;  %v3541_v60 = vld [vmem:[%s4524_s1 + $0x880] ss:$8 sps:$4 sm:$0xff]  }
  0xe1   : > { %2470 = vmatprep.subr.bf16.mxu0 %v3454_v61  ;;  %v3546_v61 = vld [vmem:[%s4524_s1 + $0x894] ss:$8 sps:$4 sm:$0xff]  }
  0xe3   : > { %2267 = vmatpush1.bf16.msra.mxu1 %v3449_v62  ;;  %v3544_v62 = vld [vmem:[%s4524_s1 + $0x890] ss:$8 sps:$4 sm:$0xff]  }
  0xe4   : > { %2471 = vmatpush1.bf16.msra.mxu0 %v3452_v63  ;;  %2268 = vmatprep.subr.bf16.mxu1 %v3457_v0  ;;  %v3549_v63 = vld [vmem:[%s4524_s1 + $0x8a4] ss:$8 sps:$4 sm:$0xff]   ;;  %v3547_v0 = vld [vmem:[%s4524_s1 + $0x8a0] ss:$8 sps:$4 sm:$0xff]  }
  0xe5   : > { %2472 = vmatprep.subr.bf16.mxu0 %v3460_v1  ;;  %v3552_v1 = vld [vmem:[%s4524_s1 + $0x8b4] ss:$8 sps:$4 sm:$0xff]  }
  0xe7   : > { %2269 = vmatpush1.bf16.msra.mxu1 %v3455_v2  ;;  %v3550_v2 = vld [vmem:[%s4524_s1 + $0x8b0] ss:$8 sps:$4 sm:$0xff]  }
  0xe8   : > { %2473 = vmatpush1.bf16.msra.mxu0 %v3458_v3  ;;  %2270 = vmatprep.subr.bf16.mxu1 %v3463_v4  ;;  %v3555_v3 = vld [vmem:[%s4524_s1 + $0x8c4] ss:$8 sps:$4 sm:$0xff]   ;;  %v3553_v4 = vld [vmem:[%s4524_s1 + $0x8c0] ss:$8 sps:$4 sm:$0xff]  }
  0xe9   : > { %2474 = vmatprep.subr.bf16.mxu0 %v3466_v5  ;;  %v3558_v5 = vld [vmem:[%s4524_s1 + $0x8d4] ss:$8 sps:$4 sm:$0xff]  }
  0xeb   : > { %2271 = vmatpush1.bf16.msra.mxu1 %v3461_v6  ;;  %v3556_v6 = vld [vmem:[%s4524_s1 + $0x8d0] ss:$8 sps:$4 sm:$0xff]  }
  0xec   : > { %2475 = vmatpush1.bf16.msra.mxu0 %v3464_v7  ;;  %2272 = vmatprep.subr.bf16.mxu1 %v3469_v8  ;;  %v3561_v7 = vld [vmem:[%s4524_s1 + $0x8e4] ss:$8 sps:$4 sm:$0xff]   ;;  %v3559_v8 = vld [vmem:[%s4524_s1 + $0x8e0] ss:$8 sps:$4 sm:$0xff]  }
  0xed   : > { %2476 = vmatprep.subr.bf16.mxu0 %v3472_v9  ;;  %v3564_v9 = vld [vmem:[%s4524_s1 + $0x8f4] ss:$8 sps:$4 sm:$0xff]  }
  0xef   : > { %2273 = vmatpush1.bf16.msra.mxu1 %v3467_v10  ;;  %v3562_v10 = vld [vmem:[%s4524_s1 + $0x8f0] ss:$8 sps:$4 sm:$0xff]  }
  0xf0   : > { %2477 = vmatpush1.bf16.msra.mxu0 %v3470_v11  ;;  %2274 = vmatprep.subr.bf16.mxu1 %v3475_v12  ;;  %v3565_v11 = vld [vmem:[%s3749_s5 + $0x40] ss:$72 sps:$4 sm:$0xff]   ;;  %v2687_v12 = vcombine.low %v4424_v45, %v4424_v45  ;;  %s2982_s5 = sshll.u32 %s4528_s22, 3 }
  0xf1   : > { %2478 = vmatprep.subr.bf16.mxu0 %v3478_v13  ;;  %v496_v13 = vlaneseq  ;;  %s177_s18 = scalar_lea.vmem %s4526_s3, %s2982_s5 }
  0xf3   : > { %2275 = vmatpush1.bf16.msra.mxu1 %v3473_v14  ;;  %v497_v14 = vshrl.u32 %v496_v13, 7 }
  0xf4   : > { %2479 = vmatpush1.bf16.msra.mxu0 %v3476_v15  ;;  %2276 = vmatprep.subr.bf16.mxu1 %v3481_v16 }
  0xf5   : > { %2480 = vmatprep.subr.bf16.mxu0 %v3484_v17 }
  0xf7   : > { %2277 = vmatpush1.bf16.msra.mxu1 %v3479_v18  ;;  %v498_v18 = vsub.s32 0, %v497_v14 }
  0xf8   : > { %2481 = vmatpush1.bf16.msra.mxu0 %v3482_v19  ;;  %2278 = vmatprep.subr.bf16.mxu1 %v3487_v20  ;;  %v494_v20 = vld [vmem:[%s4525_s2] sm:$0x3] }
  0xf9   : > { %2482 = vmatprep.subr.bf16.mxu0 %v3490_v21  ;;  %v502_v21 = vsub.s32 1, %v497_v14 }
  0xfb   : > { %2279 = vmatpush1.bf16.msra.mxu1 %v3485_v22  ;;  %v499_v22 = vrot.slane %v494_v20, %v498_v18 }
  0xfc   : > { %2483 = vmatpush1.bf16.msra.mxu0 %v3488_v23  ;;  %2280 = vmatprep.subr.bf16.mxu1 %v3496_v24  ;;  %v503_v23 = vrot.slane %v494_v20, %v502_v21 }
  0xfd   : > { %2484 = vmatprep.subr.bf16.mxu0 %v3500_v25 }
  0xff   : > { %2281 = vmatpush1.bf16.msra.mxu1 %v3494_v26 }
 0x100   : > { %2485 = vmatpush1.bf16.msra.mxu0 %v3498_v27  ;;  %2282 = vmatprep.subr.bf16.mxu1 %v3503_v28 }
 0x101   : > { %2486 = vmatprep.subr.bf16.mxu0 %v3506_v29 }
 0x103   : > { %2283 = vmatpush1.bf16.msra.mxu1 %v3501_v30 }
 0x104   : > { %2487 = vmatpush1.bf16.msra.mxu0 %v3504_v31  ;;  %2986 = vmatprep.subr.bf16.mxu1 %v3515_v32 }
 0x105   : > { %2507 = vmatprep.subr.bf16.mxu0 %v3515_v32 }
 0x106   : > { %2285 = vmatmul.mubr.bf16.vlgmr.msra.gmra.mrb[0].mxu1 %v3507_v33 }
 0x107   : > { %2489 = vmatmul.mubr.bf16.vlgmr.msra.gmra.mrb[0].mxu0 %v3510_v34  ;;  %3002 = vmatpush1.bf16.msra.mxu1 %v3513_v37 }
 0x108   : > { %2508 = vmatpush1.bf16.msra.mxu0 %v3513_v37  ;;  %2987 = vmatprep.subr.bf16.mxu1 %v3518_v38 }
 0x109   : > { %2509 = vmatprep.subr.bf16.mxu0 %v3518_v38  ;;  %2294 = vmatprep.mubr.bf16.mxu1 %v2678_v39 }
 0x10a   : > { %2498 = vmatprep.mubr.bf16.mxu0 %v2686_v40 }
 0x10b   : > { %3003 = vmatpush1.bf16.msra.mxu1 %v3516_v41 }
 0x10c   : > { %2510 = vmatpush1.bf16.msra.mxu0 %v3516_v41  ;;  %2988 = vmatprep.subr.bf16.mxu1 %v3525_v42 }
 0x10d   : > { %2511 = vmatprep.subr.bf16.mxu0 %v3525_v42 }
 0x10e   : > { %2295 = vmatmul.mubr.bf16.gmra.mrb[4].mxu1 %v2677_v43 }
 0x10f   : > { %2499 = vmatmul.mubr.bf16.gmra.mrb[4].mxu0 %v2685_v44  ;;  %3004 = vmatpush1.bf16.msra.mxu1 %v3523_v46 }
 0x110   : > { %2512 = vmatpush1.bf16.msra.mxu0 %v3523_v46  ;;  %2989 = vmatprep.subr.bf16.mxu1 %v3528_v47 }
 0x111   : > { %2513 = vmatprep.subr.bf16.mxu0 %v3528_v47  ;;  %2539 = vmatprep.mubr.bf16.mxu0 %v3567_v48 }
 0x112   : > { %2549 = vmatprep.mubr.bf16.mxu1 %v2688_v49 }
 0x113   : > { %3005 = vmatpush1.bf16.msra.mxu1 %v3526_v50 }
 0x114   : > { %2514 = vmatpush1.bf16.msra.mxu0 %v3526_v50  ;;  %2990 = vmatprep.subr.bf16.mxu1 %v3531_v51 }
 0x115   : > { %2515 = vmatprep.subr.bf16.mxu0 %v3531_v51 }
 0x117   : > { %3006 = vmatpush1.bf16.msra.mxu1 %v3529_v52 }
 0x118   : > { %2516 = vmatpush1.bf16.msra.mxu0 %v3529_v52  ;;  %2991 = vmatprep.subr.bf16.mxu1 %v3534_v53 }
 0x119   : > { %2517 = vmatprep.subr.bf16.mxu0 %v3534_v53 }
 0x11b   : > { %3007 = vmatpush1.bf16.msra.mxu1 %v3532_v54 }
 0x11c   : > { %2518 = vmatpush1.bf16.msra.mxu0 %v3532_v54  ;;  %2992 = vmatprep.subr.bf16.mxu1 %v3537_v55 }
 0x11d   : > { %2519 = vmatprep.subr.bf16.mxu0 %v3537_v55 }
 0x11f   : > { %3008 = vmatpush1.bf16.msra.mxu1 %v3535_v56 }
 0x120   : > { %2520 = vmatpush1.bf16.msra.mxu0 %v3535_v56  ;;  %2993 = vmatprep.subr.bf16.mxu1 %v3540_v57 }
 0x121   : > { %2521 = vmatprep.subr.bf16.mxu0 %v3540_v57 }
 0x123   : > { %3009 = vmatpush1.bf16.msra.mxu1 %v3538_v58 }
 0x124   : > { %2522 = vmatpush1.bf16.msra.mxu0 %v3538_v58  ;;  %2994 = vmatprep.subr.bf16.mxu1 %v3543_v59 }
 0x125   : > { %2523 = vmatprep.subr.bf16.mxu0 %v3543_v59 }
 0x127   : > { %3010 = vmatpush1.bf16.msra.mxu1 %v3541_v60 }
 0x128   : > { %2524 = vmatpush1.bf16.msra.mxu0 %v3541_v60  ;;  %2995 = vmatprep.subr.bf16.mxu1 %v3546_v61 }
 0x129   : > { %2525 = vmatprep.subr.bf16.mxu0 %v3546_v61 }
 0x12b   : > { %3011 = vmatpush1.bf16.msra.mxu1 %v3544_v62 }
 0x12c   : > { %2526 = vmatpush1.bf16.msra.mxu0 %v3544_v62  ;;  %2996 = vmatprep.subr.bf16.mxu1 %v3549_v63 }
 0x12d   : > { %2527 = vmatprep.subr.bf16.mxu0 %v3549_v63 }
 0x12f   : > { %3012 = vmatpush1.bf16.msra.mxu1 %v3547_v0 }
 0x130   : > { %2528 = vmatpush1.bf16.msra.mxu0 %v3547_v0  ;;  %2997 = vmatprep.subr.bf16.mxu1 %v3552_v1 }
 0x131   : > { %2529 = vmatprep.subr.bf16.mxu0 %v3552_v1 }
 0x133   : > { %3013 = vmatpush1.bf16.msra.mxu1 %v3550_v2 }
 0x134   : > { %2530 = vmatpush1.bf16.msra.mxu0 %v3550_v2  ;;  %2998 = vmatprep.subr.bf16.mxu1 %v3555_v3 }
 0x135   : > { %2531 = vmatprep.subr.bf16.mxu0 %v3555_v3 }
 0x137   : > { %3014 = vmatpush1.bf16.msra.mxu1 %v3553_v4 }
 0x138   : > { %2532 = vmatpush1.bf16.msra.mxu0 %v3553_v4  ;;  %2999 = vmatprep.subr.bf16.mxu1 %v3558_v5 }
 0x139   : > { %2533 = vmatprep.subr.bf16.mxu0 %v3558_v5 }
 0x13b   : > { %3015 = vmatpush1.bf16.msra.mxu1 %v3556_v6 }
 0x13c   : > { %2534 = vmatpush1.bf16.msra.mxu0 %v3556_v6  ;;  %3000 = vmatprep.subr.bf16.mxu1 %v3561_v7 }
 0x13d   : > { %2535 = vmatprep.subr.bf16.mxu0 %v3561_v7 }
 0x13f   : > { %3016 = vmatpush1.bf16.msra.mxu1 %v3559_v8 }
 0x140   : > { %2536 = vmatpush1.bf16.msra.mxu0 %v3559_v8  ;;  %3001 = vmatprep.subr.bf16.mxu1 %v3564_v9 }
 0x141   : > { %2537 = vmatprep.subr.bf16.mxu0 %v3564_v9 }
 0x143   : > { %3017 = vmatpush1.bf16.msra.mxu1 %v3562_v10 }
 0x144   : > { %2538 = vmatpush1.bf16.msra.mxu0 %v3562_v10 }
 0x146   : > { %2550 = vmatmul.mubr.bf16.vlgmr.msra.gmra.mrb[8].mxu1 %v2687_v12 }
 0x147   : > { %2540 = vmatmul.mubr.bf16.vlgmr.msra.gmra.mrb[0].mxu0 %v3565_v11 }
 0x1d9   : > { %v2286_v15 = vpop.f32.mrb[0].mxu1 }
 0x1da   : > { %v2288_v16 = vpop.f32.mrb[1].mxu1  ;;  %v3018_v36 = vadd.f32 %v2286_v15, %v499_v22 }
 0x1db   : > { %v2290_v17 = vpop.f32.mrb[2].mxu1  ;;  %v3020_v37 = vadd.f32 %v2288_v16, %v503_v23 }
 0x1dc   : > { %v2292_v19 = vpop.f32.mrb[3].mxu1  ;;  %v3022_v40 = vadd.f32 %v2290_v17, %v499_v22 }
 0x1dd   : > { %v3024_v45 = vadd.f32 %v2292_v19, %v503_v23 }
 0x1e1   : > { %v2296_v24 = vpop.f32.mrb[4].mxu1 }
 0x1e2   : > { %v2500_v25 = vpop.f32.mrb[4].mxu0  ;;  %v3026_v26 = vadd.f32 %v2296_v24, %v499_v22  ;;  %v2298_v27 = vpop.f32.mrb[5].mxu1 }
 0x1e3   : > { %v2502_v28 = vpop.f32.mrb[5].mxu0  ;;  %v3029_v29 = vadd.f32 %v2298_v27, %v503_v23  ;;  %v2300_v30 = vpop.f32.mrb[6].mxu1 }
 0x1e4   : > { %v2504_v31 = vpop.f32.mrb[6].mxu0  ;;  %v3027_v32 = vadd.f32 %v3026_v26, %v2500_v25  ;;  %v2301_v33 = vpop.f32.mrb[7].mxu1 }
 0x1e5   : > { %v2505_v34 = vpop.f32.mrb[7].mxu0  ;;  %v3030_v35 = vadd.f32 %v3029_v29, %v2502_v28 }
 0x219   : > { %v2551_v39 = vpop.f32.mrb[8].mxu1 }
 0x21a   : > { %v2541_v38 = vpop.f32.mrb[0].mxu0  ;;  %v3028_v42 = vadd.f32 %v3027_v32, %v2551_v39  ;;  %v2553_v44 = vpop.f32.mrb[9].mxu1 }
 0x21b   : > { %v3019_v41 = vadd.f32 %v3018_v36, %v2541_v38  ;;  %v2543_v43 = vpop.f32.mrb[1].mxu0  ;;  %v3031_v47 = vadd.f32 %v3030_v35, %v2553_v44  ;;  %v2555_v49 = vpop.f32.mrb[10].mxu1 }
 0x21c   : > { %v3021_v46 = vadd.f32 %v3020_v37, %v2543_v43  ;;  %v2545_v48 = vpop.f32.mrb[2].mxu0  ;;  %v2562_v51 = vmax.f32 %v3028_v42, 0.0  ;;  %v2556_v54 = vpop.f32.mrb[11].mxu1 }
 0x21d   : > { %v2558_v50 = vmax.f32 %v3019_v41, 0.0  ;;  %v3023_v52 = vadd.f32 %v3022_v40, %v2545_v48  ;;  %v2547_v53 = vpop.f32.mrb[3].mxu0  ;;  %v2563_v56 = vmax.f32 %v3031_v47, 0.0 }
 0x21e   : > { %v2559_v55 = vmax.f32 %v3021_v46, 0.0  ;;  %v3025_v57 = vadd.f32 %v3024_v45, %v2547_v53 }
 0x21f   : > { %v2560_v58 = vmax.f32 %v3023_v52, 0.0  ;;  %v2985_v60 = vpack.c.bf16 %v2563_v56, %v2562_v51 }
 0x220   : > { %v2983_v59 = vpack.c.bf16 %v2559_v55, %v2558_v50  ;;  %v2561_v61 = vmax.f32 %v3025_v57, 0.0 }
 0x221   : > { %2586 = vst [vmem:[%s177_s18 + $0x10] sm:$0xff] %v2985_v60 }
 0x222   : > { %2584 = vst [vmem:[%s177_s18] sm:$0xff] %v2983_v59  ;;  %v2984_v62 = vpack.c.bf16 %v2561_v61, %v2560_v58 }
 0x224   : > { %2585 = vst [vmem:[%s177_s18 + $0x8] sm:$0xff] %v2984_v62 }
 0x225 PF: > { %s13_s12 = sadd.s32 1, %s3576_s12  }
 0x226   : > { %p10_p4 = scmp.ge.s32.totalorder %s13_s12, 4  }
 0x228   :  { %12 = sbr.rel (!%p10_p4) target bundleno = 1 (0x1), region = 62 }

// kernel: lpips_loss.13
= control target key start
LH: loop header
LB: loop body
LE: loop exit
PB: predicated region body
PF: predicated region fallthrough
CT: control target
= control target key end

     0   :  { %s1758_s12 = smov 0   ;;  %s2706_s0 = inlined_call_operand.vmem [shape: bf16[4,104,384], index: 0, kind: input, shape index: {}]   ;;  %s2707_s1 = inlined_call_operand.vmem [shape: bf16[4,104,384], index: 1, kind: input, shape index: {}]   ;;  %s2708_s2 = inlined_call_operand.vmem [shape: f32[4,384,128], index: 2, kind: input, shape index: {}]   ;;  %s2709_s3 = inlined_call_operand.vmem [shape: f32[4,8,128], index: 3, kind: output, shape index: {}]  }
   0x1 LB: > { %s1335_s13 = sadd.s32 4294967295, %s1733_s12   ;;  %p1339_p0 = scmp.ge.s32.totalorder %s1733_s12, 1  ;;  %s1733_s12 = sphi %s1758_s12, %s13_s12  }
   0x2   : > { %p157_p1 = scmp.lt.s32.totalorder %s1733_s12, 5 }
   0x4   : > { %p158_p2 = pnand %p1339_p0, %p157_p1 }
   0x6   : > { %161 = sbr.rel (%p158_p2) target bundleno = 542 (0x21e), region = 32 }
   0xd   : > { %p190_p3 = scmp.lt.s32.totalorder %s1335_s13, 3  ;;  %vm1736_vm0 = vmmov 0  }
   0xf   : > { %s2858_s13 = smov (!%p190_p3, %s1335_s13), 3 }
  0x10   : > { %s1610_s14 = smul.u32 156, %s2858_s13  ;;  %s1343_s25 = sshll.u32 %s2858_s13, 3 }
  0x11   : > { %s1611_s21 = smul.u32 384, %s2858_s13  ;;  %s208_s28 = scalar_lea.vmem %s2709_s3, %s1343_s25 }
  0x12   : > { %s1772_s17 = scalar_lea.vmem %s2706_s0, %s1610_s14  ;;  %s1777_s20 = scalar_lea.vmem %s2707_s1, %s1610_s14 }
  0x13   : > { %v211_v0 = vld [vmem:[%s1772_s17 + $0xc] sm:$0xff]  ;;  %v212_v1 = vld [vmem:[%s1772_s17 + $0x8] ss:$12 sps:$4 sm:$0xff]   ;;  %v209_v2 = vld [vmem:[%s1772_s17] sm:$0xff]  ;;  %s2090_s24 = scalar_lea.vmem %s2708_s2, %s1611_s21 }
  0x14   : > { %v1782_v3 = vunpack.c.l.bf16 %v211_v0  ;;  %v1784_v4 = vunpack.c.h.bf16 %v211_v0  ;;  %v1786_v5 = vunpack.c.h.bf16 %v212_v1  ;;  %v1788_v6 = vunpack.c.l.bf16 %v209_v2  ;;  %v276_v7 = vld [vmem:[%s1777_s20 + $0xc] sm:$0xff]  ;;  %v277_v8 = vld [vmem:[%s1777_s20 + $0x8] ss:$12 sps:$4 sm:$0xff]   ;;  %v274_v13 = vld [vmem:[%s1777_s20] sm:$0xff] }
  0x15   : > { %v1792_v9 = vunpack.c.h.bf16 %v209_v2  ;;  %v1794_v10 = vunpack.c.l.bf16 %v212_v1  ;;  %v1796_v11 = vunpack.c.l.bf16 %v276_v7  ;;  %v1798_v12 = vunpack.c.h.bf16 %v276_v7  ;;  %v278_v18 = vld [vmem:[%s1777_s20 + $0x18] sm:$0xff]  ;;  %v279_v27 = vld [vmem:[%s1777_s20 + $0x20] ss:$12 sps:$4 sm:$0xff]   ;;  %v280_v42 = vld [vmem:[%s1777_s20 + $0x24] sm:$0xff] }
  0x16   : > { %v342_v14 = vmul.f32 %v1782_v3, %v1782_v3  ;;  %v343_v15 = vmul.f32 %v1784_v4, %v1784_v4  ;;  %v344_v16 = vmul.f32 %v1786_v5, %v1786_v5  ;;  %v339_v17 = vmul.f32 %v1788_v6, %v1788_v6  ;;  %v213_v32 = vld [vmem:[%s1772_s17 + $0x18] sm:$0xff]  ;;  %v214_v37 = vld [vmem:[%s1772_s17 + $0x20] ss:$12 sps:$4 sm:$0xff]   ;;  %v215_v51 = vld [vmem:[%s1772_s17 + $0x24] sm:$0xff] }
  0x17   : > { %v340_v19 = vmul.f32 %v1792_v9, %v1792_v9  ;;  %v341_v20 = vmul.f32 %v1794_v10, %v1794_v10  ;;  %v1814_v21 = vunpack.c.h.bf16 %v277_v8  ;;  %v563_v22 = vmul.f32 %v1796_v11, %v1796_v11  ;;  %v282_v60 = vld [vmem:[%s1777_s20 + $0x30] sm:$0xff]  ;;  %v283_v1 = vld [vmem:[%s1777_s20 + $0x38] ss:$12 sps:$4 sm:$0xff]  }
  0x18   : > { %v382_v23 = vadd.f32 %v343_v15, %v342_v14  ;;  %v564_v24 = vmul.f32 %v1798_v12, %v1798_v12  ;;  %v1820_v25 = vunpack.c.l.bf16 %v274_v13  ;;  %v1822_v26 = vunpack.c.h.bf16 %v274_v13  ;;  %v217_v14 = vld [vmem:[%s1772_s17 + $0x30] sm:$0xff] }
  0x19   : > { %v378_v28 = vadd.f32 %v340_v19, %v339_v17  ;;  %v565_v29 = vmul.f32 %v1814_v21, %v1814_v21  ;;  %v1827_v30 = vunpack.c.l.bf16 %v277_v8  ;;  %v1829_v31 = vunpack.c.l.bf16 %v278_v18  ;;  %v218_v19 = vld [vmem:[%s1772_s17 + $0x38] ss:$12 sps:$4 sm:$0xff]  }
  0x1a   : > { %v383_v33 = vadd.f32 %v382_v23, %v344_v16  ;;  %v603_v34 = vadd.f32 %v564_v24, %v563_v22  ;;  %v560_v35 = vmul.f32 %v1820_v25, %v1820_v25  ;;  %v561_v36 = vmul.f32 %v1822_v26, %v1822_v26 }
  0x1b   : > { %v379_v38 = vadd.f32 %v378_v28, %v341_v20  ;;  %v562_v39 = vmul.f32 %v1827_v30, %v1827_v30  ;;  %v1839_v40 = vunpack.c.h.bf16 %v278_v18  ;;  %v1841_v41 = vunpack.c.l.bf16 %v279_v27 }
  0x1c   : > { %384 = vadd.xlane.f32.xlu1 %v383_v33  ;;  %v604_v43 = vadd.f32 %v603_v34, %v565_v29  ;;  %v599_v44 = vadd.f32 %v561_v36, %v560_v35  ;;  %v566_v45 = vmul.f32 %v1829_v31, %v1829_v31  ;;  %v1846_v46 = vunpack.c.l.bf16 %v213_v32 }
  0x1d   : > { %380 = vadd.xlane.f32.xlu0 %v379_v38  ;;  %v567_v47 = vmul.f32 %v1839_v40, %v1839_v40  ;;  %v568_v48 = vmul.f32 %v1841_v41, %v1841_v41  ;;  %v1852_v49 = vunpack.c.h.bf16 %v213_v32  ;;  %v1854_v50 = vunpack.c.l.bf16 %v214_v37  ;;  %v219_v38 = vld [vmem:[%s1772_s17 + $0x3c] sm:$0xff] }
  0x1e   : > { %v600_v52 = vadd.f32 %v599_v44, %v562_v39  ;;  %v345_v53 = vmul.f32 %v1846_v46, %v1846_v46  ;;  %v1859_v54 = vunpack.c.l.bf16 %v280_v42  ;;  %v1861_v55 = vunpack.c.h.bf16 %v280_v42 }
  0x1f   : > { %v607_v56 = vadd.f32 %v567_v47, %v566_v45  ;;  %v346_v57 = vmul.f32 %v1852_v49, %v1852_v49  ;;  %v347_v58 = vmul.f32 %v1854_v50, %v1854_v50  ;;  %v1867_v59 = vunpack.c.h.bf16 %v279_v27  ;;  %v284_v27 = vld [vmem:[%s1777_s20 + $0x3c] sm:$0xff] }
  0x20   : > { %605 = vadd.xlane.f32.xlu1 %v604_v43  ;;  %v569_v61 = vmul.f32 %v1859_v54, %v1859_v54  ;;  %v570_v62 = vmul.f32 %v1861_v55, %v1861_v55  ;;  %v1874_v63 = vunpack.c.l.bf16 %v215_v51  ;;  %v1876_v0 = vunpack.c.h.bf16 %v215_v51 }
  0x21   : > { %2761 = vst [vmem:[#allocation2_spill] sm:$0xff] %v1867_v59  ;;  %601 = vadd.xlane.f32.xlu0 %v600_v52  ;;  %v608_v2 = vadd.f32 %v607_v56, %v568_v48  ;;  %v386_v7 = vadd.f32 %v346_v57, %v345_v53  ;;  %v571_v8 = vmul.f32 %v1867_v59, %v1867_v59  ;;  %v1881_v13 = vunpack.c.h.bf16 %v214_v37  ;;  %v286_v52 = vld [vmem:[%s1777_s20 + $0x48] sm:$0xff] }
  0x22   : > { %v611_v15 = vadd.f32 %v570_v62, %v569_v61  ;;  %v348_v16 = vmul.f32 %v1874_v63, %v1874_v63  ;;  %v349_v17 = vmul.f32 %v1876_v0, %v1876_v0  ;;  %v1888_v18 = vunpack.c.l.bf16 %v282_v60 }
  0x23   : > { %2762 = vst [vmem:[#allocation3_spill] sm:$0xff] %v1881_v13  ;;  %v387_v20 = vadd.f32 %v386_v7, %v347_v58  ;;  %v350_v22 = vmul.f32 %v1881_v13, %v1881_v13  ;;  %v1893_v23 = vunpack.c.h.bf16 %v282_v60  ;;  %v1895_v24 = vunpack.c.l.bf16 %v283_v1  ;;  %v287_v60 = vld [vmem:[%s1777_s20 + $0x50] ss:$12 sps:$4 sm:$0xff]   ;;  %v221_v7 = vld [vmem:[%s1772_s17 + $0x48] sm:$0xff] }
  0x24   : > { %609 = vadd.xlane.f32.xlu1 %v608_v2  ;;  %v612_v28 = vadd.f32 %v611_v15, %v571_v8  ;;  %v390_v29 = vadd.f32 %v349_v17, %v348_v16  ;;  %v572_v32 = vmul.f32 %v1888_v18, %v1888_v18  ;;  %v1900_v33 = vunpack.c.l.bf16 %v217_v14  ;;  %v222_v17 = vld [vmem:[%s1772_s17 + $0x50] ss:$12 sps:$4 sm:$0xff]  }
  0x25   : > { %2763 = vst [vmem:[#allocation4_spill] sm:$0xff] %v1895_v24  ;;  %388 = vadd.xlane.f32.xlu0 %v387_v20  ;;  %v573_v34 = vmul.f32 %v1893_v23, %v1893_v23  ;;  %v574_v35 = vmul.f32 %v1895_v24, %v1895_v24  ;;  %v1906_v36 = vunpack.c.h.bf16 %v217_v14  ;;  %v1908_v37 = vunpack.c.l.bf16 %v218_v19  ;;  %v294_v24 = vld [vmem:[%s1777_s20 + $0x78] sm:$0xff] }
  0x26   : > { %v391_v39 = vadd.f32 %v390_v29, %v350_v22  ;;  %v351_v42 = vmul.f32 %v1900_v33, %v1900_v33  ;;  %v1913_v43 = vunpack.c.l.bf16 %v284_v27  ;;  %v1915_v44 = vunpack.c.h.bf16 %v284_v27 }
  0x27   : > { %2764 = vst [vmem:[#allocation5_spill] sm:$0xff] %v1908_v37  ;;  %v615_v45 = vadd.f32 %v573_v34, %v572_v32  ;;  %v352_v47 = vmul.f32 %v1906_v36, %v1906_v36  ;;  %v353_v48 = vmul.f32 %v1908_v37, %v1908_v37  ;;  %v1921_v51 = vunpack.c.h.bf16 %v283_v1  ;;  %v229_v37 = vld [vmem:[%s1772_s17 + $0x78] sm:$0xff] }
  0x28   : > { %613 = vadd.xlane.f32.xlu1 %v612_v28  ;;  %v575_v53 = vmul.f32 %v1913_v43, %v1913_v43  ;;  %v576_v56 = vmul.f32 %v1915_v44, %v1915_v44  ;;  %v1928_v57 = vunpack.c.l.bf16 %v219_v38  ;;  %v1930_v58 = vunpack.c.h.bf16 %v219_v38  ;;  %v288_v28 = vld [vmem:[%s1777_s20 + $0x54] sm:$0xff] }
  0x29   : > { %2765 = vst [vmem:[#allocation6_spill] sm:$0xff] %v1921_v51  ;;  %392 = vadd.xlane.f32.xlu0 %v391_v39  ;;  %v616_v61 = vadd.f32 %v615_v45, %v574_v35  ;;  %v394_v62 = vadd.f32 %v352_v47, %v351_v42  ;;  %v577_v1 = vmul.f32 %v1921_v51, %v1921_v51  ;;  %v1935_v2 = vunpack.c.h.bf16 %v218_v19  ;;  %v223_v47 = vld [vmem:[%s1772_s17 + $0x54] sm:$0xff] }
  0x2a   : > { %v619_v8 = vadd.f32 %v576_v56, %v575_v53  ;;  %v354_v14 = vmul.f32 %v1928_v57, %v1928_v57  ;;  %v355_v15 = vmul.f32 %v1930_v58, %v1930_v58  ;;  %v1942_v16 = vunpack.c.l.bf16 %v286_v52 }
  0x2b   : > { %2766 = vst [vmem:[#allocation7_spill] sm:$0xff] %v1935_v2  ;;  %v395_v20 = vadd.f32 %v394_v62, %v353_v48  ;;  %v356_v22 = vmul.f32 %v1935_v2, %v1935_v2  ;;  %v1947_v27 = vunpack.c.h.bf16 %v286_v52  ;;  %v1949_v19 = vunpack.c.l.bf16 %v287_v60  ;;  %v226_v2 = vld [vmem:[%s1772_s17 + $0x68] ss:$12 sps:$4 sm:$0xff]  }
  0x2c   : > { %2767 = vst [vmem:[#allocation8_spill] sm:$0xff] %v1942_v16  ;;  %617 = vadd.xlane.f32.xlu1 %v616_v61  ;;  %v620_v29 = vadd.f32 %v619_v8, %v577_v1  ;;  %v398_v32 = vadd.f32 %v355_v15, %v354_v14  ;;  %v578_v34 = vmul.f32 %v1942_v16, %v1942_v16  ;;  %v1954_v35 = vunpack.c.l.bf16 %v221_v7  ;;  %v290_v8 = vld [vmem:[%s1777_s20 + $0x60] sm:$0xff] }
  0x2d   : > { %2768 = vst [vmem:[#allocation9_spill] sm:$0xff] %v1947_v27  ;;  %2769 = vst [vmem:[#allocation10_spill] sm:$0xff] %v1949_v19  ;;  %396 = vadd.xlane.f32.xlu0 %v395_v20  ;;  %v579_v38 = vmul.f32 %v1947_v27, %v1947_v27  ;;  %v580_v39 = vmul.f32 %v1949_v19, %v1949_v19  ;;  %v1960_v42 = vunpack.c.h.bf16 %v221_v7  ;;  %v1962_v45 = vunpack.c.l.bf16 %v222_v17 }
  0x2e   : > { %2770 = vst [vmem:[#allocation11_spill] sm:$0xff] %v1954_v35  ;;  %v399_v48 = vadd.f32 %v398_v32, %v356_v22  ;;  %v357_v52 = vmul.f32 %v1954_v35, %v1954_v35  ;;  %v1967_v53 = vunpack.c.l.bf16 %v288_v28  ;;  %v1969_v56 = vunpack.c.h.bf16 %v288_v28  ;;  %v291_v28 = vld [vmem:[%s1777_s20 + $0x68] ss:$12 sps:$4 sm:$0xff]  }
  0x2f   : > { %2771 = vst [vmem:[#allocation12_spill] sm:$0xff] %v1962_v45  ;;  %v623_v61 = vadd.f32 %v579_v38, %v578_v34  ;;  %v358_v62 = vmul.f32 %v1960_v42, %v1960_v42  ;;  %v359_v1 = vmul.f32 %v1962_v45, %v1962_v45  ;;  %v1975_v7 = vunpack.c.h.bf16 %v287_v60  ;;  %v225_v38 = vld [vmem:[%s1772_s17 + $0x60] sm:$0xff] }
  0x30   : > { %2772 = vst [vmem:[#allocation13_spill] sm:$0xff] %v1967_v53  ;;  %2773 = vst [vmem:[#allocation14_spill] sm:$0xff] %v1969_v56  ;;  %621 = vadd.xlane.f32.xlu1 %v620_v29  ;;  %v581_v14 = vmul.f32 %v1967_v53, %v1967_v53  ;;  %v582_v15 = vmul.f32 %v1969_v56, %v1969_v56  ;;  %v1982_v20 = vunpack.c.l.bf16 %v223_v47  ;;  %v1984_v22 = vunpack.c.h.bf16 %v223_v47  ;;  %v972_v53 = vld [vmem:[%s2090_s24 + $0x118] sm:$0xff] }
  0x31   : > { %2774 = vst [vmem:[#allocation15_spill] sm:$0xff] %v1975_v7  ;;  %400 = vadd.xlane.f32.xlu0 %v399_v48  ;;  %v624_v32 = vadd.f32 %v623_v61, %v580_v39  ;;  %v402_v34 = vadd.f32 %v358_v62, %v357_v52  ;;  %v583_v60 = vmul.f32 %v1975_v7, %v1975_v7  ;;  %v1989_v29 = vunpack.c.h.bf16 %v222_v17  ;;  %v292_v61 = vld [vmem:[%s1777_s20 + $0x6c] sm:$0xff] }
  0x32   : > { %2775 = vst [vmem:[#allocation16_spill] sm:$0xff] %v1982_v20  ;;  %2776 = vst [vmem:[#allocation17_spill] sm:$0xff] %v1984_v22  ;;  %v627_v19 = vadd.f32 %v582_v15, %v581_v14  ;;  %v360_v45 = vmul.f32 %v1982_v20, %v1982_v20  ;;  %v361_v51 = vmul.f32 %v1984_v22, %v1984_v22  ;;  %v1996_v47 = vunpack.c.l.bf16 %v290_v8 }
  0x33   : > { %2777 = vst [vmem:[#allocation18_spill] sm:$0xff] %v1989_v29  ;;  %v403_v48 = vadd.f32 %v402_v34, %v359_v1  ;;  %v362_v39 = vmul.f32 %v1989_v29, %v1989_v29  ;;  %v2001_v52 = vunpack.c.h.bf16 %v290_v8  ;;  %v2003_v17 = vunpack.c.l.bf16 %v291_v28 }
  0x34   : > { %2778 = vst [vmem:[#allocation19_spill] sm:$0xff] %v1996_v47  ;;  %625 = vadd.xlane.f32.xlu1 %v624_v32  ;;  %v628_v62 = vadd.f32 %v627_v19, %v583_v60  ;;  %v406_v14 = vadd.f32 %v361_v51, %v360_v45  ;;  %v584_v15 = vmul.f32 %v1996_v47, %v1996_v47  ;;  %v2008_v7 = vunpack.c.l.bf16 %v225_v38  ;;  %v227_v19 = vld [vmem:[%s1772_s17 + $0x6c] sm:$0xff] }
  0x35   : > { %2779 = vst [vmem:[#allocation20_spill] sm:$0xff] %v2001_v52  ;;  %2780 = vst [vmem:[#allocation21_spill] sm:$0xff] %v2003_v17  ;;  %404 = vadd.xlane.f32.xlu0 %v403_v48  ;;  %v585_v1 = vmul.f32 %v2001_v52, %v2001_v52  ;;  %v586_v8 = vmul.f32 %v2003_v17, %v2003_v17  ;;  %v2014_v34 = vunpack.c.h.bf16 %v225_v38  ;;  %v2016_v29 = vunpack.c.l.bf16 %v226_v2 }
  0x36   : > { %2781 = vst [vmem:[#allocation22_spill] sm:$0xff] %v2008_v7  ;;  %v407_v51 = vadd.f32 %v406_v14, %v362_v39  ;;  %v363_v45 = vmul.f32 %v2008_v7, %v2008_v7  ;;  %v2021_v32 = vunpack.c.l.bf16 %v292_v61  ;;  %v2023_v60 = vunpack.c.h.bf16 %v292_v61 }
  0x37   : > { %2782 = vst [vmem:[#allocation23_spill] sm:$0xff] %v2014_v34  ;;  %2783 = vst [vmem:[#allocation24_spill] sm:$0xff] %v2016_v29  ;;  %v631_v48 = vadd.f32 %v585_v1, %v584_v15  ;;  %v364_v47 = vmul.f32 %v2014_v34, %v2014_v34  ;;  %v365_v38 = vmul.f32 %v2016_v29, %v2016_v29  ;;  %v2029_v17 = vunpack.c.h.bf16 %v291_v28  ;;  %v295_v1 = vld [vmem:[%s1777_s20 + $0x80] ss:$12 sps:$4 sm:$0xff]  }
  0x38   : > { %2784 = vst [vmem:[#allocation25_spill] sm:$0xff] %v2021_v32  ;;  %2785 = vst [vmem:[#allocation26_spill] sm:$0xff] %v2023_v60  ;;  %629 = vadd.xlane.f32.xlu1 %v628_v62  ;;  %v587_v39 = vmul.f32 %v2021_v32, %v2021_v32  ;;  %v588_v61 = vmul.f32 %v2023_v60, %v2023_v60  ;;  %v2036_v14 = vunpack.c.l.bf16 %v227_v19  ;;  %v2038_v15 = vunpack.c.h.bf16 %v227_v19  ;;  %v230_v34 = vld [vmem:[%s1772_s17 + $0x80] ss:$12 sps:$4 sm:$0xff]  }
  0x39   : > { %2786 = vst [vmem:[#allocation27_spill] sm:$0xff] %v2029_v17  ;;  %408 = vadd.xlane.f32.xlu0 %v407_v51  ;;  %v632_v29 = vadd.f32 %v631_v48, %v586_v8  ;;  %v410_v28 = vadd.f32 %v364_v47, %v363_v45  ;;  %v589_v62 = vmul.f32 %v2029_v17, %v2029_v17  ;;  %v2043_v7 = vunpack.c.h.bf16 %v226_v2  ;;  %v296_v45 = vld [vmem:[%s1777_s20 + $0x84] sm:$0xff] }
  0x3a   : > { %2787 = vst [vmem:[#allocation28_spill] sm:$0xff] %v2036_v14  ;;  %2788 = vst [vmem:[#allocation29_spill] sm:$0xff] %v2038_v15  ;;  %v635_v32 = vadd.f32 %v588_v61, %v587_v39  ;;  %v366_v60 = vmul.f32 %v2036_v14, %v2036_v14  ;;  %v367_v19 = vmul.f32 %v2038_v15, %v2038_v15  ;;  %v2050_v52 = vunpack.c.l.bf16 %v294_v24 }
  0x3b   : > { %2789 = vst [vmem:[#allocation30_spill] sm:$0xff] %v2043_v7  ;;  %v411_v51 = vadd.f32 %v410_v28, %v365_v38  ;;  %v368_v47 = vmul.f32 %v2043_v7, %v2043_v7  ;;  %v2055_v8 = vunpack.c.h.bf16 %v294_v24  ;;  %v2057_v2 = vunpack.c.l.bf16 %v295_v1 }
  0x3c   : > { %2790 = vst [vmem:[#allocation31_spill] sm:$0xff] %v2050_v52  ;;  %633 = vadd.xlane.f32.xlu1 %v632_v29  ;;  %v636_v48 = vadd.f32 %v635_v32, %v589_v62  ;;  %v414_v39 = vadd.f32 %v367_v19, %v366_v60  ;;  %v590_v61 = vmul.f32 %v2050_v52, %v2050_v52  ;;  %v2063_v17 = vunpack.c.l.bf16 %v229_v37  ;;  %v231_v29 = vld [vmem:[%s1772_s17 + $0x84] sm:$0xff] }
  0x3d   : > { %2791 = vst [vmem:[#allocation32_spill] sm:$0xff] %v2055_v8  ;;  %2792 = vst [vmem:[#allocation33_spill] sm:$0xff] %v2057_v2  ;;  %412 = vadd.xlane.f32.xlu0 %v411_v51  ;;  %v591_v38 = vmul.f32 %v2055_v8, %v2055_v8  ;;  %v592_v24 = vmul.f32 %v2057_v2, %v2057_v2  ;;  %v2069_v28 = vunpack.c.h.bf16 %v229_v37  ;;  %v2071_v7 = vunpack.c.l.bf16 %v230_v34  ;;  %v298_v8 = vld [vmem:[%s1777_s20 + $0x90] sm:$0xff] }
  0x3e   : > { %2793 = vst [vmem:[#allocation34_spill] sm:$0xff] %v2063_v17  ;;  %v415_v32 = vadd.f32 %v414_v39, %v368_v47  ;;  %v369_v60 = vmul.f32 %v2063_v17, %v2063_v17  ;;  %v2076_v62 = vunpack.c.l.bf16 %v296_v45  ;;  %v2078_v19 = vunpack.c.h.bf16 %v296_v45 }
  0x3f   : > { %2794 = vst [vmem:[#allocation35_spill] sm:$0xff] %v2069_v28  ;;  %2795 = vst [vmem:[#allocation36_spill] sm:$0xff] %v2071_v7  ;;  %v639_v51 = vadd.f32 %v591_v38, %v590_v61  ;;  %v370_v52 = vmul.f32 %v2069_v28, %v2069_v28  ;;  %v371_v37 = vmul.f32 %v2071_v7, %v2071_v7  ;;  %v2084_v2 = vunpack.c.h.bf16 %v295_v1  ;;  %v299_v1 = vld [vmem:[%s1777_s20 + $0x98] sm:$0xf]  ;;  %v233_v28 = vld [vmem:[%s1772_s17 + $0x90] sm:$0xff] }
  0x40   : > { %2796 = vst [vmem:[#allocation37_spill] sm:$0xff] %v2076_v62  ;;  %2797 = vst [vmem:[#allocation38_spill] sm:$0xff] %v2078_v19  ;;  %637 = vadd.xlane.f32.xlu1 %v636_v48  ;;  %v593_v47 = vmul.f32 %v2076_v62, %v2076_v62  ;;  %v594_v45 = vmul.f32 %v2078_v19, %v2078_v19  ;;  %v2096_v39 = vunpack.c.l.bf16 %v231_v29  ;;  %v2098_v61 = vunpack.c.h.bf16 %v231_v29 }
  0x41   : > { %2798 = vst [vmem:[#allocation39_spill] sm:$0xff] %v2084_v2  ;;  %416 = vadd.xlane.f32.xlu0 %v415_v32  ;;  %v640_v38 = vadd.f32 %v639_v51, %v592_v24  ;;  %v418_v7 = vadd.f32 %v370_v52, %v369_v60  ;;  %v595_v48 = vmul.f32 %v2084_v2, %v2084_v2  ;;  %v2103_v17 = vunpack.c.h.bf16 %v230_v34  ;;  %v234_v24 = vld [vmem:[%s1772_s17 + $0x98] sm:$0xf] }
  0x42   : > { %2799 = vst [vmem:[#allocation40_spill] sm:$0xff] %v2096_v39  ;;  %2800 = vst [vmem:[#allocation41_spill] sm:$0xff] %v2098_v61  ;;  %v643_v62 = vadd.f32 %v594_v45, %v593_v47  ;;  %v372_v19 = vmul.f32 %v2096_v39, %v2096_v39  ;;  %v373_v29 = vmul.f32 %v2098_v61, %v2098_v61  ;;  %v2110_v32 = vunpack.c.l.bf16 %v298_v8  ;;  %v953_v47 = vld [vmem:[%s2090_s24 + $0x80] sm:$0xff]  ;;  %v954_v45 = vld [vmem:[%s2090_s24 + $0x88] sm:$0xff] }
  0x43   : > { %2801 = vst [vmem:[#allocation42_spill] sm:$0xff] %v2103_v17  ;;  %v419_v52 = vadd.f32 %v418_v7, %v371_v37  ;;  %v374_v60 = vmul.f32 %v2103_v17, %v2103_v17  ;;  %v2115_v34 = vunpack.c.h.bf16 %v298_v8  ;;  %v2117_v51 = vunpack.c.l.bf16 %v299_v1  ;;  %v969_v37 = vld [vmem:[%s2090_s24 + $0x100] sm:$0xff]  ;;  %v970_v8 = vld [vmem:[%s2090_s24 + $0x108] sm:$0xff] }
  0x44   : > { %2802 = vst [vmem:[#allocation43_spill] sm:$0xff] %v2110_v32  ;;  %641 = vadd.xlane.f32.xlu1 %v640_v38  ;;  %v644_v2 = vadd.f32 %v643_v62, %v595_v48  ;;  %v422_v39 = vadd.f32 %v373_v29, %v372_v19  ;;  %v596_v61 = vmul.f32 %v2110_v32, %v2110_v32  ;;  %v2123_v7 = vunpack.c.l.bf16 %v233_v28  ;;  %v937_v17 = vld [vmem:[%s2090_s24] sm:$0xff]  ;;  %v938_v19 = vld [vmem:[%s2090_s24 + $0x8] sm:$0xff]  ;;  %v955_v48 = vld [vmem:[%s2090_s24 + $0x90] sm:$0xff] }
  0x45   : > { %2803 = vst [vmem:[#allocation44_spill] sm:$0xff] %v2115_v34  ;;  %2804 = vst [vmem:[#allocation45_spill] sm:$0xff] %v2117_v51  ;;  %420 = vadd.xlane.f32.xlu0 %v419_v52  ;;  %v597_v1 = vmul.f32 %v2115_v34, %v2115_v34  ;;  %v598_v14 = vmul.f32 %v2117_v51, %v2117_v51  ;;  %v2132_v38 = vunpack.c.h.bf16 %v233_v28  ;;  %v2134_v62 = vunpack.c.l.bf16 %v234_v24  ;;  %v956_v29 = vld [vmem:[%s2090_s24 + $0x98] sm:$0xff]  ;;  %v971_v34 = vld [vmem:[%s2090_s24 + $0x110] sm:$0xff] }
  0x46   : > { %2805 = vst [vmem:[#allocation46_spill] sm:$0xff] %v2123_v7  ;;  %v423_v32 = vadd.f32 %v422_v39, %v374_v60  ;;  %v375_v15 = vmul.f32 %v2123_v7, %v2123_v7  ;;  %v1517_v52 = vpack.c.bf16 %v954_v45, %v953_v47  ;;  %v2750_v51 = vmov 0.0|0.0   ;;  %v939_v39 = vld [vmem:[%s2090_s24 + $0x10] sm:$0xff]  ;;  %v940_v60 = vld [vmem:[%s2090_s24 + $0x18] sm:$0xff] }
  0x47   : > { %2806 = vst [vmem:[#allocation47_spill] sm:$0xff] %v2132_v38  ;;  %2807 = vst [vmem:[#allocation48_spill] sm:$0xff] %v2134_v62  ;;  %v647_v20 = vadd.f32 %v597_v1, %v596_v61  ;;  %v376_v28 = vmul.f32 %v2132_v38, %v2132_v38  ;;  %v377_v24 = vmul.f32 %v2134_v62, %v2134_v62  ;;  %1549 = vmatprep.subr.bf16.mxu1 %v2750_v51  ;;  %v957_v61 = vld [vmem:[%s2090_s24 + $0xa0] sm:$0xff]  ;;  %v958_v1 = vld [vmem:[%s2090_s24 + $0xa8] sm:$0xff] }
  0x48   : > { %v1550_v56 = vpack.c.bf16 %v970_v8, %v969_v37  ;;  %645 = vadd.xlane.f32.xlu1 %v644_v2  ;;  %1518 = vmatprep.subr.bf16.mxu0 %v1517_v52  ;;  %v1519_v47 = vpack.c.bf16 %v938_v19, %v937_v17  ;;  %v1521_v45 = vpack.c.bf16 %v956_v29, %v955_v48  ;;  %v2808_v37 = vmov 0.0|0.0   ;;  %v973_v38 = vld [vmem:[%s2090_s24 + $0x120] sm:$0xff]  ;;  %v974_v2 = vld [vmem:[%s2090_s24 + $0x128] sm:$0xff]  ;;  %v943_v29 = vld [vmem:[%s2090_s24 + $0x30] sm:$0xff] }
  0x49   : > { %424 = vadd.xlane.f32.xlu0 %v423_v32  ;;  %v648_v7 = vadd.f32 %v647_v20, %v598_v14  ;;  %v426_v62 = vadd.f32 %v376_v28, %v375_v15  ;;  %v1553_v51 = vpack.c.bf16 %v972_v53, %v971_v34  ;;  %v1523_v8 = vpack.c.bf16 %v940_v60, %v939_v39  ;;  %v941_v48 = vld [vmem:[%s2090_s24 + $0x20] sm:$0xff]  ;;  %v942_v32 = vld [vmem:[%s2090_s24 + $0x28] sm:$0xff]  ;;  %v960_v53 = vld [vmem:[%s2090_s24 + $0xb8] sm:$0xff] }
  0x4a   : > { %1551 = vmatpush3.bf16.msra.mxu1 %v1550_v56  ;;  %1520 = vmatpush3.bf16.msra.mxu0 %v1519_v47  ;;  %v1525_v19 = vpack.c.bf16 %v958_v1, %v957_v61  ;;  %v959_v56 = vld [vmem:[%s2090_s24 + $0xb0] sm:$0xff]  ;;  %v1556_v20 = vpack.c.bf16 %v974_v2, %v973_v38  ;;  %v1527_v14 = vpack.c.bf16 %v942_v32, %v941_v48  ;;  %v976_v34 = vld [vmem:[%s2090_s24 + $0x138] sm:$0xff]  ;;  %v962_v28 = vld [vmem:[%s2090_s24 + $0xc8] sm:$0xff] }
  0x4b   : > { %1552 = vmatprep.subr.bf16.mxu1 %v2808_v37  ;;  %v427_v17 = vadd.f32 %v426_v62, %v377_v24  ;;  %1522 = vmatprep.subr.bf16.mxu0 %v1521_v45  ;;  %v975_v15 = vld [vmem:[%s2090_s24 + $0x130] sm:$0xff]  ;;  %v1529_v62 = vpack.c.bf16 %v960_v53, %v959_v56  ;;  %v944_v52 = vld [vmem:[%s2090_s24 + $0x38] sm:$0xff]  ;;  %v977_v39 = vld [vmem:[%s2090_s24 + $0x140] sm:$0xff] }
  0x4c   : > { %649 = vadd.xlane.f32.xlu1 %v648_v7  ;;  %v961_v7 = vld [vmem:[%s2090_s24 + $0xc0] sm:$0xff]  ;;  %v1559_v38 = vpack.c.bf16 %v976_v34, %v975_v15  ;;  %v1531_v24 = vpack.c.bf16 %v944_v52, %v943_v29  ;;  %v978_v60 = vld [vmem:[%s2090_s24 + $0x148] sm:$0xff]  ;;  %v963_v1 = vld [vmem:[%s2090_s24 + $0xd0] sm:$0xff] }
  0x4d   : > { %428 = vadd.xlane.f32.xlu0 %v427_v17  ;;  %v1533_v47 = vpack.c.bf16 %v962_v28, %v961_v7  ;;  %v945_v45 = vld [vmem:[%s2090_s24 + $0x40] sm:$0xff]  ;;  %v946_v61 = vld [vmem:[%s2090_s24 + $0x48] sm:$0xff]  ;;  %v1562_v2 = vpack.c.bf16 %v978_v60, %v977_v39  ;;  %v980_v48 = vld [vmem:[%s2090_s24 + $0x158] sm:$0xff] }
  0x4e   : > { %1554 = vmatpush3.bf16.msra.mxu1 %v1553_v51  ;;  %1524 = vmatpush3.bf16.msra.mxu0 %v1523_v8  ;;  %v2753_v51 = vmov 0.0   ;;  %v964_v8 = vld [vmem:[%s2090_s24 + $0xd8] sm:$0xff]  ;;  %v1535_v17 = vpack.c.bf16 %v946_v61, %v945_v45  ;;  %v947_v56 = vld [vmem:[%s2090_s24 + $0x50] sm:$0xff]  ;;  %v982_v29 = vld [vmem:[%s2090_s24 + $0x168] sm:$0xff] }
  0x4f   : > { %1555 = vmatprep.subr.bf16.mxu1 %v2808_v37  ;;  %1526 = vmatprep.subr.bf16.mxu0 %v1525_v19  ;;  %v979_v19 = vld [vmem:[%s2090_s24 + $0x150] sm:$0xff]  ;;  %v1537_v32 = vpack.c.bf16 %v964_v8, %v963_v1  ;;  %v948_v53 = vld [vmem:[%s2090_s24 + $0x58] sm:$0xff]  ;;  %v949_v7 = vld [vmem:[%s2090_s24 + $0x60] sm:$0xff] }
  0x50   : > { %1478 = vmatprep.mubr.msk.f32.mxu1 %vm1736_vm0, %v2753_v51  ;;  %v1565_v15 = vpack.c.bf16 %v980_v48, %v979_v19  ;;  %v1539_v34 = vpack.c.bf16 %v948_v53, %v947_v56  ;;  %v950_v28 = vld [vmem:[%s2090_s24 + $0x68] sm:$0xff]  ;;  %v984_v45 = vld [vmem:[%s2090_s24 + $0x178] sm:$0xff]  ;;  %v951_v1 = vld [vmem:[%s2090_s24 + $0x70] sm:$0xff] }
  0x51   : > { %v1543_v60 = vpack.c.bf16 %v950_v28, %v949_v7  ;;  %v952_v8 = vld [vmem:[%s2090_s24 + $0x78] sm:$0xff] }
  0x52   : > { %1557 = vmatpush3.bf16.msra.mxu1 %v1556_v20  ;;  %1528 = vmatpush3.bf16.msra.mxu0 %v1527_v14  ;;  %v965_v20 = vld [vmem:[%s2090_s24 + $0xe0] sm:$0xff]  ;;  %v966_v14 = vld [vmem:[%s2090_s24 + $0xe8] sm:$0xff] }
  0x53   : > { %1558 = vmatprep.subr.bf16.mxu1 %v2808_v37  ;;  %1530 = vmatprep.subr.bf16.mxu0 %v1529_v62  ;;  %v981_v62 = vld [vmem:[%s2090_s24 + $0x160] sm:$0xff]  ;;  %v1541_v52 = vpack.c.bf16 %v966_v14, %v965_v20 }
  0x54   : > { %v1568_v39 = vpack.c.bf16 %v982_v29, %v981_v62 }
  0x56   : > { %1560 = vmatpush3.bf16.msra.mxu1 %v1559_v38  ;;  %1532 = vmatpush3.bf16.msra.mxu0 %v1531_v24  ;;  %v967_v38 = vld [vmem:[%s2090_s24 + $0xf0] sm:$0xff]  ;;  %v968_v24 = vld [vmem:[%s2090_s24 + $0xf8] sm:$0xff] }
  0x57   : > { %1561 = vmatprep.subr.bf16.mxu1 %v2808_v37  ;;  %1534 = vmatprep.subr.bf16.mxu0 %v1533_v47  ;;  %v983_v47 = vld [vmem:[%s2090_s24 + $0x170] sm:$0xff]  ;;  %v1545_v61 = vpack.c.bf16 %v968_v24, %v967_v38 }
  0x5a   : > { %1563 = vmatpush3.bf16.msra.mxu1 %v1562_v2  ;;  %1536 = vmatpush3.bf16.msra.mxu0 %v1535_v17  ;;  %v1571_v2 = vpack.c.bf16 %v984_v45, %v983_v47  ;;  %v1547_v17 = vpack.c.bf16 %v952_v8, %v951_v1 }
  0x5b   : > { %1564 = vmatprep.subr.bf16.mxu1 %v2808_v37  ;;  %1538 = vmatprep.subr.bf16.mxu0 %v1537_v32 }
  0x5e   : > { %1566 = vmatpush3.bf16.msra.mxu1 %v1565_v15  ;;  %1540 = vmatpush3.bf16.msra.mxu0 %v1539_v34 }
  0x5f   : > { %1567 = vmatprep.subr.bf16.mxu1 %v2808_v37  ;;  %1542 = vmatprep.subr.bf16.mxu0 %v1541_v52 }
  0x62   : > { %1569 = vmatpush3.bf16.msra.mxu1 %v1568_v39  ;;  %1544 = vmatpush3.bf16.msra.mxu0 %v1543_v60 }
  0x63   : > { %1570 = vmatprep.subr.bf16.mxu1 %v2808_v37  ;;  %1546 = vmatprep.subr.bf16.mxu0 %v1545_v61 }
  0x66   : > { %1572 = vmatpush3.bf16.msra.mxu1 %v1571_v2  ;;  %1548 = vmatpush3.bf16.msra.mxu0 %v1547_v17 }
  0xa9   : > { %v385_v19 = vpop.xlane.xlu1 %384 }
  0xaa   : > { %1623 = vrsqrt.f32 %v385_v19  ;;  %v381_v48 = vpop.xlane.xlu0 %380  ;;  %vm439_vm1 = vcmp.eq.f32.partialorder %v385_v19, inf  ;;  %vm441_vm2 = vcmp.eq.f32.partialorder %v385_v19, 0.0  ;;  %v442_v37 = vand.u32 2147483648, %v385_v19 }
  0xab   : > { %1625 = vrsqrt.f32 %v381_v48  ;;  %vm432_vm3 = vcmp.eq.f32.partialorder %v381_v48, inf  ;;  %vm434_vm4 = vcmp.eq.f32.partialorder %v381_v48, 0.0  ;;  %v435_v15 = vand.u32 2147483648, %v381_v48 }
  0xad   : > { %v606_v32 = vpop.xlane.xlu1 %605 }
  0xae   : > { %1627 = vrsqrt.f32 %v606_v32  ;;  %v602_v56 = vpop.xlane.xlu0 %601  ;;  %vm660_vm5 = vcmp.eq.f32.partialorder %v606_v32, inf  ;;  %vm662_vm6 = vcmp.eq.f32.partialorder %v606_v32, 0.0  ;;  %v663_v34 = vand.u32 2147483648, %v606_v32 }
  0xaf   : > { %1629 = vrsqrt.f32 %v602_v56  ;;  %vm653_vm7 = vcmp.eq.f32.partialorder %v602_v56, inf  ;;  %vm655_vm8 = vcmp.eq.f32.partialorder %v602_v56, 0.0  ;;  %v656_v52 = vand.u32 2147483648, %v602_v56 }
  0xb1   : > { %v2195_v53 = vpop.xlane.xlu1 %609 }
  0xb2   : > { %1631 = vrsqrt.f32 %v2195_v53  ;;  %v2198_v20 = vpop.xlane.xlu0 %388  ;;  %vm667_vm9 = vcmp.eq.f32.partialorder %v2195_v53, inf  ;;  %vm669_vm10 = vcmp.eq.f32.partialorder %v2195_v53, 0.0  ;;  %v670_v39 = vand.u32 2147483648, %v2195_v53 }
  0xb3   : > { %1633 = vrsqrt.f32 %v2198_v20  ;;  %vm446_vm11 = vcmp.eq.f32.partialorder %v2198_v20, inf  ;;  %vm448_vm12 = vcmp.eq.f32.partialorder %v2198_v20, 0.0  ;;  %v449_v61 = vand.u32 2147483648, %v2198_v20 }
  0xb4   : > { %v1624_v14 = vpop.eup %1623 }
  0xb5   : > { %v1626_v62 = vpop.eup %1625  ;;  %v438_v29 = vmul.f32 %v1624_v14, %v385_v19  ;;  %v2201_v7 = vpop.xlane.xlu1 %613 }
  0xb6   : > { %v431_v28 = vmul.f32 %v1626_v62, %v381_v48  ;;  %1635 = vrsqrt.f32 %v2201_v7  ;;  %v2206_v38 = vpop.xlane.xlu0 %392  ;;  %vm674_vm13 = vcmp.eq.f32.partialorder %v2201_v7, inf  ;;  %vm676_vm14 = vcmp.eq.f32.partialorder %v2201_v7, 0.0 }
  0xb7   : > { %v440_v24 = vsel %vm439_vm1, %v385_v19, %v438_v29  ;;  %1637 = vrsqrt.f32 %v2206_v38  ;;  %vm453_vm15 = vcmp.eq.f32.partialorder %v2206_v38, inf  ;;  %vm455_vm1 = vcmp.eq.f32.partialorder %v2206_v38, 0.0 }
  0xb8   : > { %v1628_v60 = vpop.eup %1627  ;;  %v443_v47 = vsel %vm441_vm2, %v442_v37, %v440_v24  ;;  %v433_v45 = vsel %vm432_vm3, %v381_v48, %v431_v28  ;;  %v677_v28 = vand.u32 2147483648, %v2201_v7 }
  0xb9   : > { %v1630_v1 = vpop.eup %1629  ;;  %v522_v8 = vadd.f32 1e-10, %v443_v47  ;;  %v436_v2 = vsel %vm434_vm4, %v435_v15, %v433_v45  ;;  %v659_v17 = vmul.f32 %v1628_v60, %v606_v32  ;;  %v2218_v14 = vpop.xlane.xlu1 %617  ;;  %v456_v60 = vand.u32 2147483648, %v2206_v38 }
  0xba   : > { %v521_v62 = vadd.f32 1e-10, %v436_v2  ;;  %v652_v29 = vmul.f32 %v1630_v1, %v602_v56  ;;  %1639 = vrsqrt.f32 %v2218_v14  ;;  %v2222_v19 = vpop.xlane.xlu0 %396  ;;  %vm681_vm2 = vcmp.eq.f32.partialorder %v2218_v14, inf }
  0xbb   : > { %v661_v37 = vsel %vm660_vm5, %v606_v32, %v659_v17  ;;  %1641 = vrcp.f32 %v522_v8  ;;  %vm683_vm3 = vcmp.eq.f32.partialorder %v2218_v14, 0.0  ;;  %vm460_vm4 = vcmp.eq.f32.partialorder %v2222_v19, inf }
  0xbc   : > { %v1632_v48 = vpop.eup %1631  ;;  %v664_v15 = vsel %vm662_vm6, %v663_v34, %v661_v37  ;;  %v654_v24 = vsel %vm653_vm7, %v602_v56, %v652_v29  ;;  %1643 = vrsqrt.f32 %v2222_v19  ;;  %v684_v34 = vand.u32 2147483648, %v2218_v14 }
  0xbd   : > { %v1634_v47 = vpop.eup %1633  ;;  %v743_v45 = vadd.f32 1e-10, %v664_v15  ;;  %v657_v1 = vsel %vm655_vm8, %v656_v52, %v654_v24  ;;  %v666_v2 = vmul.f32 %v1632_v48, %v2195_v53  ;;  %v2234_v17 = vpop.xlane.xlu1 %621  ;;  %1645 = vrcp.f32 %v521_v62 }
  0xbe   : > { %v742_v51 = vadd.f32 1e-10, %v657_v1  ;;  %v445_v8 = vmul.f32 %v1634_v47, %v2198_v20  ;;  %v2238_v32 = vpop.xlane.xlu0 %400  ;;  %vm462_vm5 = vcmp.eq.f32.partialorder %v2222_v19, 0.0  ;;  %vm688_vm6 = vcmp.eq.f32.partialorder %v2234_v17, inf }
  0xbf   : > { %1647 = vrcp.f32 %v743_v45  ;;  %v668_v56 = vsel %vm667_vm9, %v2195_v53, %v666_v2  ;;  %vm690_vm7 = vcmp.eq.f32.partialorder %v2234_v17, 0.0  ;;  %vm467_vm8 = vcmp.eq.f32.partialorder %v2238_v32, inf }
  0xc0   : > { %v1636_v52 = vpop.eup %1635  ;;  %1649 = vrcp.f32 %v742_v51  ;;  %v671_v62 = vsel %vm669_vm10, %v670_v39, %v668_v56  ;;  %v447_v29 = vsel %vm446_vm11, %v2198_v20, %v445_v8  ;;  %vm469_vm9 = vcmp.eq.f32.partialorder %v2238_v32, 0.0 }
  0xc1   : > { %v1638_v37 = vpop.eup %1637  ;;  %v744_v48 = vadd.f32 1e-10, %v671_v62  ;;  %v450_v15 = vsel %vm448_vm12, %v449_v61, %v447_v29  ;;  %v673_v24 = vmul.f32 %v1636_v52, %v2201_v7  ;;  %1651 = vrsqrt.f32 %v2234_v17  ;;  %v2255_v47 = vpop.xlane.xlu1 %625 }
  0xc2   : > { %v523_v51 = vadd.f32 1e-10, %v450_v15  ;;  %v452_v53 = vmul.f32 %v1638_v37, %v2206_v38  ;;  %1653 = vrsqrt.f32 %v2238_v32  ;;  %v2260_v39 = vpop.xlane.xlu0 %404  ;;  %v463_v61 = vand.u32 2147483648, %v2222_v19 }
  0xc3   : > { %1655 = vrcp.f32 %v744_v48  ;;  %v675_v20 = vsel %vm674_vm13, %v2201_v7, %v673_v24  ;;  %vm695_vm10 = vcmp.eq.f32.partialorder %v2255_v47, inf  ;;  %vm697_vm11 = vcmp.eq.f32.partialorder %v2255_v47, 0.0 }
  0xc4   : > { %v1640_v45 = vpop.eup %1639  ;;  %1657 = vrcp.f32 %v523_v51  ;;  %v678_v1 = vsel %vm676_vm14, %v677_v28, %v675_v20  ;;  %v454_v2 = vsel %vm453_vm15, %v2206_v38, %v452_v53  ;;  %v691_v28 = vand.u32 2147483648, %v2234_v17 }
  0xc5   : > { %v745_v8 = vadd.f32 1e-10, %v678_v1  ;;  %v457_v56 = vsel %vm455_vm1, %v456_v60, %v454_v2  ;;  %v680_v52 = vmul.f32 %v1640_v45, %v2218_v14  ;;  %1659 = vrsqrt.f32 %v2255_v47  ;;  %v2277_v62 = vpop.xlane.xlu1 %629  ;;  %v2279_v29 = vpop.eup %1641 }
  0xc6   : > { %v524_v7 = vadd.f32 1e-10, %v457_v56  ;;  %1661 = vrsqrt.f32 %v2260_v39  ;;  %v2284_v37 = vpop.xlane.xlu0 %408  ;;  %v1644_v48 = vpop.eup %1643  ;;  %v470_v60 = vand.u32 2147483648, %v2238_v32  ;;  %v698_v45 = vand.u32 2147483648, %v2255_v47 }
  0xc7   : > { %1663 = vrcp.f32 %v745_v8  ;;  %v682_v38 = vsel %vm681_vm2, %v2218_v14, %v680_v52  ;;  %v2291_v15 = vpop.eup %1645  ;;  %v459_v51 = vmul.f32 %v1644_v48, %v2222_v19  ;;  %vm474_vm12 = vcmp.eq.f32.partialorder %v2260_v39, inf }
  0xc8   : > { %1665 = vrcp.f32 %v524_v7  ;;  %v685_v24 = vsel %vm683_vm3, %v684_v34, %v682_v38  ;;  %vm476_vm13 = vcmp.eq.f32.partialorder %v2260_v39, 0.0  ;;  %v477_v52 = vand.u32 2147483648, %v2260_v39 }
  0xc9   : > { %v2297_v53 = vpop.eup %1647  ;;  %v746_v20 = vadd.f32 1e-10, %v685_v24  ;;  %1667 = vrsqrt.f32 %v2277_v62  ;;  %v2302_v1 = vpop.xlane.xlu1 %633  ;;  %v461_v14 = vsel %vm460_vm4, %v2222_v19, %v459_v51  ;;  %vm702_vm14 = vcmp.eq.f32.partialorder %v2277_v62, inf }
  0xca   : > { %v2304_v2 = vpop.eup %1649  ;;  %1669 = vrsqrt.f32 %v2284_v37  ;;  %v2312_v34 = vpop.xlane.xlu0 %412  ;;  %v464_v56 = vsel %vm462_vm5, %v463_v61, %v461_v14  ;;  %vm704_vm15 = vcmp.eq.f32.partialorder %v2277_v62, 0.0  ;;  %v705_v38 = vand.u32 2147483648, %v2277_v62 }
  0xcb   : > { %v1652_v8 = vpop.eup %1651  ;;  %1671 = vrcp.f32 %v746_v20  ;;  %v525_v51 = vadd.f32 1e-10, %v464_v56  ;;  %vm481_vm1 = vcmp.eq.f32.partialorder %v2284_v37, inf  ;;  %vm483_vm2 = vcmp.eq.f32.partialorder %v2284_v37, 0.0 }
  0xcc   : > { %v1654_v7 = vpop.eup %1653  ;;  %v687_v48 = vmul.f32 %v1652_v8, %v2234_v17  ;;  %1673 = vrsqrt.f32 %v2302_v1  ;;  %v484_v14 = vand.u32 2147483648, %v2284_v37  ;;  %vm709_vm3 = vcmp.eq.f32.partialorder %v2302_v1, inf }
  0xcd   : > { %v2322_v24 = vpop.eup %1655  ;;  %v466_v20 = vmul.f32 %v1654_v7, %v2238_v32  ;;  %1675 = vrsqrt.f32 %v2312_v34  ;;  %vm711_vm4 = vcmp.eq.f32.partialorder %v2302_v1, 0.0  ;;  %v712_v22 = vand.u32 2147483648, %v2302_v1 }
  0xce   : > { %v2327_v19 = vpop.eup %1657  ;;  %v689_v61 = vsel %vm688_vm6, %v2234_v17, %v687_v48  ;;  %v782_v48 = vmul.f32 %v2291_v15, %v1792_v9  ;;  %v821_v17 = vmul.f32 %v2304_v2, %v1822_v26  ;;  %1677 = vrcp.f32 %v525_v51 }
  0xcf   : > { %v1660_v8 = vpop.eup %1659  ;;  %v692_v56 = vsel %vm690_vm7, %v691_v28, %v689_v61  ;;  %v468_v7 = vsel %vm467_vm8, %v2238_v32, %v466_v20  ;;  %v783_v61 = vmul.f32 %v2291_v15, %v1794_v10  ;;  %v822_v9 = vmul.f32 %v2304_v2, %v1827_v30 }
  0xd0   : > { %v1662_v16 = vpop.eup %1661  ;;  %v747_v35 = vadd.f32 1e-10, %v692_v56  ;;  %v471_v59 = vsel %vm469_vm9, %v470_v60, %v468_v7  ;;  %v694_v13 = vmul.f32 %v1660_v8, %v2255_v47  ;;  %vm488_vm5 = vcmp.eq.f32.partialorder %v2312_v34, inf  ;;  %v2362_v8 = vpop.xlane.xlu1 %637 }
  0xd1   : > { %v2349_v28 = vpop.eup %1663  ;;  %v473_v20 = vmul.f32 %v1662_v16, %v2260_v39  ;;  %v526_v32 = vadd.f32 1e-10, %v471_v59  ;;  %v860_v26 = vsub.f32 %v782_v48, %v821_v17  ;;  %v861_v16 = vsub.f32 %v783_v61, %v822_v9  ;;  %v2381_v61 = vpop.xlane.xlu0 %416 }
  0xd2   : > { %v2356_v56 = vpop.eup %1665  ;;  %v696_v60 = vsel %vm695_vm10, %v2255_v47, %v694_v13  ;;  %1679 = vrcp.f32 %v747_v35  ;;  %vm490_vm6 = vcmp.eq.f32.partialorder %v2312_v34, 0.0  ;;  %vm716_vm7 = vcmp.eq.f32.partialorder %v2362_v8, inf }
  0xd3   : > { %v1668_v51 = vpop.eup %1667  ;;  %v699_v10 = vsel %vm697_vm11, %v698_v45, %v696_v60  ;;  %v475_v30 = vsel %vm474_vm12, %v2260_v39, %v473_v20  ;;  %v899_v48 = vmul.f32 %v860_v26, %v860_v26  ;;  %v900_v47 = vmul.f32 %v861_v16, %v861_v16 }
  0xd4   : > { %v1670_v59 = vpop.eup %1669  ;;  %v748_v7 = vadd.f32 1e-10, %v699_v10  ;;  %v478_v13 = vsel %vm476_vm13, %v477_v52, %v475_v30  ;;  %v701_v27 = vmul.f32 %v1668_v51, %v2277_v62  ;;  %1681 = vrsqrt.f32 %v2362_v8 }
  0xd5   : > { %v2372_v17 = vpop.eup %1671  ;;  %v480_v35 = vmul.f32 %v1670_v59, %v2284_v37  ;;  %1683 = vrcp.f32 %v526_v32  ;;  %v527_v20 = vadd.f32 1e-10, %v478_v13  ;;  %v491_v52 = vand.u32 2147483648, %v2312_v34  ;;  %1049 = vmatprep.mubr.f32.mxu0 %v899_v48  ;;  %1479 = vmatmul.mubr.f32.vlgmr.msra.gmra.mrb[0].mxu1 %v900_v47  ;;  %v2414_v48 = vpop.xlane.xlu0 %420 }
  0xd6   : > { %v1674_v45 = vpop.eup %1673  ;;  %v703_v39 = vsel %vm702_vm14, %v2277_v62, %v701_v27  ;;  %1685 = vrcp.f32 %v748_v7  ;;  %v781_v30 = vmul.f32 %v2291_v15, %v1788_v6  ;;  %v2809_v16 = vmov 0.0  }
  0xd7   : > { %v1676_v9 = vpop.eup %1675  ;;  %v706_v60 = vsel %vm704_vm15, %v705_v38, %v703_v39  ;;  %v482_v26 = vsel %vm481_vm1, %v2284_v37, %v480_v35  ;;  %v708_v32 = vmul.f32 %v1674_v45, %v2302_v1  ;;  %1481 = vmatprep.mubr.msk.f32.mxu1 %vm1736_vm0, %v2809_v16  ;;  %v820_v59 = vmul.f32 %v2304_v2, %v1820_v25  ;;  %v2402_v37 = vpop.xlane.xlu1 %641 }
  0xd8   : > { %v749_v51 = vadd.f32 1e-10, %v706_v60  ;;  %v485_v27 = vsel %vm483_vm2, %v484_v14, %v482_v26  ;;  %v487_v10 = vmul.f32 %v1676_v9, %v2312_v34  ;;  %1687 = vrsqrt.f32 %v2381_v61  ;;  %v2409_v15 = vpop.eup %1677 }
  0xd9   : > { %v528_v62 = vadd.f32 1e-10, %v485_v27  ;;  %v710_v38 = vsel %vm709_vm3, %v2302_v1, %v708_v32  ;;  %1689 = vrcp.f32 %v527_v20  ;;  %v859_v25 = vsub.f32 %v781_v30, %v820_v59 }
  0xda   : > { %v713_v14 = vsel %vm711_vm4, %v712_v22, %v710_v38  ;;  %v489_v6 = vsel %vm488_vm5, %v2312_v34, %v487_v10  ;;  %1691 = vrcp.f32 %v749_v51  ;;  %v785_v35 = vmul.f32 %v2279_v29, %v1784_v4 }
  0xdb   : > { %v750_v7 = vadd.f32 1e-10, %v713_v14  ;;  %v492_v13 = vsel %vm490_vm6, %v491_v52, %v489_v6  ;;  %1693 = vrcp.f32 %v528_v62  ;;  %v898_v22 = vmul.f32 %v859_v25, %v859_v25  ;;  %v2430_v52 = vpop.xlane.xlu1 %645  ;;  %v2454_v62 = vpop.xlane.xlu0 %424 }
  0xdc   : > { %v529_v2 = vadd.f32 1e-10, %v492_v13  ;;  %v2416_v1 = vpop.eup %1679  ;;  %v824_v47 = vmul.f32 %v2297_v53, %v1798_v12  ;;  %vm718_vm8 = vcmp.eq.f32.partialorder %v2362_v8, 0.0  ;;  %v719_v34 = vand.u32 2147483648, %v2362_v8 }
  0xdd   : > { %1695 = vrcp.f32 %v750_v7  ;;  %vm495_vm9 = vcmp.eq.f32.partialorder %v2381_v61, inf  ;;  %1050 = vmatmul.mubr.f32.vlgmr.msra.gmra.mrb[0].mxu0 %v898_v22  ;;  %v784_v39 = vmul.f32 %v2279_v29, %v1782_v3  ;;  %v823_v4 = vmul.f32 %v2297_v53, %v1796_v11 }
  0xde   : > { %1697 = vrcp.f32 %v529_v2  ;;  %v1682_v45 = vpop.eup %1681  ;;  %v863_v20 = vsub.f32 %v785_v35, %v824_v47  ;;  %vm497_vm10 = vcmp.eq.f32.partialorder %v2381_v61, 0.0  ;;  %v498_v60 = vand.u32 2147483648, %v2381_v61 }
  0xdf   : > { %1699 = vrsqrt.f32 %v2402_v37  ;;  %v2432_v12 = vpop.eup %1683  ;;  %v715_v9 = vmul.f32 %v1682_v45, %v2362_v8  ;;  %vm723_vm11 = vcmp.eq.f32.partialorder %v2402_v37, inf  ;;  %v862_v3 = vsub.f32 %v784_v39, %v823_v4  ;;  %v2477_v47 = vpop.xlane.xlu1 %649 }
  0xe0   : > { %1701 = vrsqrt.f32 %v2414_v48  ;;  %v2438_v26 = vpop.eup %1685  ;;  %v902_v32 = vmul.f32 %v863_v20, %v863_v20  ;;  %v788_v11 = vmul.f32 %v2327_v19, %v1852_v49  ;;  %v827_v51 = vmul.f32 %v2322_v24, %v1839_v40 }
  0xe1   : > { %v717_v27 = vsel %vm716_vm7, %v2362_v8, %v715_v9  ;;  %vm725_vm12 = vcmp.eq.f32.partialorder %v2402_v37, 0.0  ;;  %v786_v10 = vmul.f32 %v2279_v29, %v1786_v5  ;;  %v825_v30 = vmul.f32 %v2297_v53, %v1814_v21  ;;  %v2491_v9 = vpop.xlane.xlu0 %428 }
  0xe2   : > { %1703 = vrsqrt.f32 %v2430_v52  ;;  %v1688_v49 = vpop.eup %1687  ;;  %v720_v40 = vsel %vm718_vm8, %v719_v34, %v717_v27  ;;  %1054 = vmatprep.mubr.f32.mxu0 %v902_v32  ;;  %v726_v38 = vand.u32 2147483648, %v2402_v37  ;;  %v901_v59 = vmul.f32 %v862_v3, %v862_v3 }
  0xe3   : > { %v866_v14 = vsub.f32 %v788_v11, %v827_v51  ;;  %v2459_v6 = vpop.eup %1689  ;;  %v751_v7 = vadd.f32 1e-10, %v720_v40  ;;  %v494_v5 = vmul.f32 %v1688_v49, %v2381_v61  ;;  %vm502_vm13 = vcmp.eq.f32.partialorder %v2414_v48, inf }
  0xe4   : > { %v864_v21 = vsub.f32 %v786_v10, %v825_v30  ;;  %v2463_v29 = vpop.eup %1691  ;;  %1055 = vmatmul.mubr.f32.gmra.mrb[2].mxu0 %v901_v59  ;;  %vm504_vm14 = vcmp.eq.f32.partialorder %v2414_v48, 0.0  ;;  %v787_v8 = vmul.f32 %v2327_v19, %v1846_v46  ;;  %v826_v13 = vmul.f32 %v2322_v24, %v1829_v31 }
  0xe5   : > { %v905_v53 = vmul.f32 %v866_v14, %v866_v14  ;;  %v2470_v25 = vpop.eup %1693  ;;  %v496_v2 = vsel %vm495_vm9, %v2381_v61, %v494_v5  ;;  %v505_v22 = vand.u32 2147483648, %v2414_v48  ;;  %vm730_vm15 = vcmp.eq.f32.partialorder %v2430_v52, inf }
  0xe6   : > { %v903_v35 = vmul.f32 %v864_v21, %v864_v21  ;;  %v499_v46 = vsel %vm497_vm10, %v498_v60, %v496_v2  ;;  %vm732_vm1 = vcmp.eq.f32.partialorder %v2430_v52, 0.0  ;;  %v865_v31 = vsub.f32 %v787_v8, %v826_v13 }
  0xe7   : > { %v2479_v34 = vpop.eup %1695  ;;  %1059 = vmatprep.mubr.f32.mxu0 %v905_v53  ;;  %1705 = vrsqrt.f32 %v2454_v62  ;;  %v530_v20 = vadd.f32 1e-10, %v499_v46  ;;  %v791_v39 = vmul.f32 %v2356_v56, %v1876_v0  ;;  %v830_v4 = vmul.f32 %v2349_v28, %v1861_v55 }
  0xe8   : > { %v2485_v45 = vpop.eup %1697  ;;  %1707 = vrcp.f32 %v751_v7  ;;  %1482 = vmatmul.mubr.f32.gmra.mrb[0].mxu1 %v903_v35  ;;  %v733_v60 = vand.u32 2147483648, %v2430_v52  ;;  %v904_v32 = vmul.f32 %v865_v31, %v865_v31  ;;  %vm509_vm2 = vcmp.eq.f32.partialorder %v2454_v62, inf }
  0xe9   : > { %v1700_v61 = vpop.eup %1699  ;;  %1709 = vrsqrt.f32 %v2477_v47  ;;  %1484 = vmatprep.mubr.msk.f32.mxu1 %vm1736_vm0, %v2809_v16  ;;  %vm511_vm3 = vcmp.eq.f32.partialorder %v2454_v62, 0.0  ;;  %v512_v55 = vand.u32 2147483648, %v2454_v62  ;;  %v869_v0 = vsub.f32 %v791_v39, %v830_v4 }
  0xea   : > { %v1702_v3 = vpop.eup %1701  ;;  %v722_v11 = vmul.f32 %v1700_v61, %v2402_v37  ;;  %1060 = vmatmul.mubr.f32.gmra.mrb[4].mxu0 %v904_v32  ;;  %vm737_vm4 = vcmp.eq.f32.partialorder %v2477_v47, inf  ;;  %v790_v27 = vmul.f32 %v2356_v56, %v1874_v63  ;;  %v829_v10 = vmul.f32 %v2349_v28, %v1859_v54 }
  0xeb   : > { %v501_v51 = vmul.f32 %v1702_v3, %v2414_v48  ;;  %1711 = vrsqrt.f32 %v2491_v9  ;;  %v908_v40 = vmul.f32 %v869_v0, %v869_v0  ;;  %vm739_vm5 = vcmp.eq.f32.partialorder %v2477_v47, 0.0 }
  0xec   : > { %v1704_v30 = vpop.eup %1703  ;;  %1713 = vrcp.f32 %v530_v20  ;;  %v724_v49 = vsel %vm723_vm11, %v2402_v37, %v722_v11  ;;  %v740_v59 = vand.u32 2147483648, %v2477_v47  ;;  %v868_v7 = vsub.f32 %v790_v27, %v829_v10 }
  0xed   : > { %v727_v14 = vsel %vm725_vm12, %v726_v38, %v724_v49  ;;  %v503_v54 = vsel %vm502_vm13, %v2414_v48, %v501_v51  ;;  %v729_v63 = vmul.f32 %v1704_v30, %v2430_v52  ;;  %vm516_vm6 = vcmp.eq.f32.partialorder %v2491_v9, inf  ;;  %1064 = vmatprep.mubr.f32.mxu0 %v908_v40 }
  0xee   : > { %v752_v5 = vadd.f32 1e-10, %v727_v14  ;;  %v506_v21 = vsel %vm504_vm14, %v505_v22, %v503_v54  ;;  %vm518_vm7 = vcmp.eq.f32.partialorder %v2491_v9, 0.0  ;;  %v519_v53 = vand.u32 2147483648, %v2491_v9  ;;  %v2811_v54 = vld [vmem:[#allocation3_spill] sm:$0xff] }
  0xef   : > { %v794_v37 = vmul.f32 %v2409_v15, %v1906_v36  ;;  %v531_v38 = vadd.f32 1e-10, %v506_v21  ;;  %v731_v8 = vsel %vm730_vm15, %v2430_v52, %v729_v63  ;;  %v907_v13 = vmul.f32 %v868_v7, %v868_v7 }
  0xf0   : > { %v833_v2 = vmul.f32 %v2372_v17, %v1893_v23  ;;  %1715 = vrcp.f32 %v752_v5  ;;  %v734_v48 = vsel %vm732_vm1, %v733_v60, %v731_v8  ;;  %v789_v22 = vmul.f32 %v2327_v19, %v1854_v50  ;;  %v2812_v5 = vld [vmem:[#allocation2_spill] sm:$0xff]  ;;  %v2813_v8 = vld [vmem:[#allocation11_spill] sm:$0xff] }
  0xf1   : > { %v828_v35 = vmul.f32 %v2322_v24, %v1841_v41  ;;  %v1706_v36 = vpop.eup %1705  ;;  %1717 = vrcp.f32 %v531_v38  ;;  %v753_v46 = vadd.f32 1e-10, %v734_v48  ;;  %1065 = vmatmul.mubr.f32.gmra.mrb[6].mxu0 %v907_v13  ;;  %v793_v20 = vmul.f32 %v2409_v15, %v1900_v33 }
  0xf2   : > { %v872_v31 = vsub.f32 %v794_v37, %v833_v2  ;;  %v2539_v39 = vpop.eup %1707  ;;  %v508_v23 = vmul.f32 %v1706_v36, %v2454_v62  ;;  %v832_v4 = vmul.f32 %v2372_v17, %v1888_v18  ;;  %v797_v50 = vmul.f32 %v2432_v12, %v1930_v58  ;;  %v2814_v2 = vld [vmem:[#allocation8_spill] sm:$0xff]  ;;  %v2816_v36 = vld [vmem:[#allocation14_spill] sm:$0xff] }
  0xf3   : > { %v867_v52 = vsub.f32 %v789_v22, %v828_v35  ;;  %v1710_v41 = vpop.eup %1709  ;;  %1719 = vrcp.f32 %v753_v46  ;;  %v836_v19 = vmul.f32 %v2416_v1, %v1915_v44  ;;  %v796_v33 = vmul.f32 %v2432_v12, %v1928_v57  ;;  %v2815_v22 = vld [vmem:[#allocation17_spill] sm:$0xff] }
  0xf4   : > { %v911_v24 = vmul.f32 %v872_v31, %v872_v31  ;;  %v510_v61 = vsel %vm509_vm2, %v2454_v62, %v508_v23  ;;  %v736_v60 = vmul.f32 %v1710_v41, %v2477_v47  ;;  %v871_v18 = vsub.f32 %v793_v20, %v832_v4  ;;  %v2817_v31 = vld [vmem:[#allocation16_spill] sm:$0xff]  ;;  %v2818_v23 = vld [vmem:[#allocation13_spill] sm:$0xff] }
  0xf5   : > { %v906_v32 = vmul.f32 %v867_v52, %v867_v52  ;;  %v1712_v3 = vpop.eup %1711  ;;  %v513_v58 = vsel %vm511_vm3, %v512_v55, %v510_v61  ;;  %v875_v11 = vsub.f32 %v797_v50, %v836_v19  ;;  %v835_v44 = vmul.f32 %v2416_v1, %v1913_v43  ;;  %v2810_v43 = vld [vmem:[#allocation9_spill] sm:$0xff] }
  0xf6   : > { %1069 = vmatprep.mubr.f32.mxu0 %v911_v24  ;;  %v800_v57 = vmul.f32 %v2459_v6, %v1960_v42  ;;  %v2560_v0 = vpop.eup %1713  ;;  %v532_v51 = vadd.f32 1e-10, %v513_v58  ;;  %v738_v27 = vsel %vm737_vm4, %v2477_v47, %v736_v60  ;;  %v515_v10 = vmul.f32 %v1712_v3, %v2491_v9  ;;  %v2819_v24 = vld [vmem:[#allocation23_spill] sm:$0xff]  ;;  %v2822_v58 = vld [vmem:[#allocation4_spill] sm:$0xff] }
  0xf7   : > { %1485 = vmatmul.mubr.f32.gmra.mrb[0].mxu1 %v906_v32  ;;  %v910_v62 = vmul.f32 %v871_v18, %v871_v18  ;;  %v741_v55 = vsel %vm739_vm5, %v740_v59, %v738_v27  ;;  %v914_v30 = vmul.f32 %v875_v11, %v875_v11  ;;  %v874_v49 = vsub.f32 %v796_v33, %v835_v44  ;;  %v2820_v33 = vld [vmem:[#allocation20_spill] sm:$0xff]  ;;  %v2821_v18 = vld [vmem:[#allocation5_spill] sm:$0xff] }
  0xf8   : > { %1487 = vmatprep.mubr.msk.f32.mxu1 %vm1736_vm0, %v2809_v16  ;;  %v839_v42 = vmul.f32 %v2438_v26, %v2810_v43  ;;  %1721 = vrcp.f32 %v532_v51  ;;  %v754_v40 = vadd.f32 1e-10, %v741_v55  ;;  %v517_v14 = vsel %vm516_vm6, %v2491_v9, %v515_v10  ;;  %v2823_v51 = vld [vmem:[#allocation22_spill] sm:$0xff]  ;;  %v2824_v10 = vld [vmem:[#allocation19_spill] sm:$0xff] }
  0xf9   : > { %1070 = vmatmul.mubr.f32.gmra.mrb[8].mxu0 %v910_v62  ;;  %v792_v63 = vmul.f32 %v2356_v56, %v2811_v54  ;;  %v520_v47 = vsel %vm518_vm7, %v519_v53, %v517_v14  ;;  %v913_v59 = vmul.f32 %v874_v49, %v874_v49  ;;  %v831_v21 = vmul.f32 %v2349_v28, %v2812_v5  ;;  %v2825_v49 = vld [vmem:[#allocation29_spill] sm:$0xff]  ;;  %v2827_v14 = vld [vmem:[#allocation28_spill] sm:$0xff] }
  0xfa   : > { %1074 = vmatprep.mubr.f32.mxu0 %v914_v30  ;;  %v878_v7 = vsub.f32 %v800_v57, %v839_v42  ;;  %v2581_v37 = vpop.eup %1715  ;;  %1723 = vrcp.f32 %v754_v40  ;;  %v533_v38 = vadd.f32 1e-10, %v520_v47  ;;  %v799_v13 = vmul.f32 %v2459_v6, %v2813_v8  ;;  %v2826_v42 = vld [vmem:[#allocation26_spill] sm:$0xff]  ;;  %v2828_v47 = vld [vmem:[#allocation25_spill] sm:$0xff] }
  0xfb   : > { %v838_v48 = vmul.f32 %v2438_v26, %v2814_v2  ;;  %v2587_v56 = vpop.eup %1717  ;;  %v870_v53 = vsub.f32 %v792_v63, %v831_v21  ;;  %v803_v35 = vmul.f32 %v2470_v25, %v2815_v22  ;;  %v842_v28 = vmul.f32 %v2463_v29, %v2816_v36  ;;  %v2830_v21 = vld [vmem:[#allocation32_spill] sm:$0xff]  ;;  %v2831_v2 = vld [vmem:[#allocation7_spill] sm:$0xff] }
  0xfc   : > { %v917_v9 = vmul.f32 %v878_v7, %v878_v7  ;;  %1725 = vrcp.f32 %v533_v38  ;;  %v802_v20 = vmul.f32 %v2470_v25, %v2817_v31  ;;  %v841_v52 = vmul.f32 %v2463_v29, %v2818_v23  ;;  %v2829_v7 = vld [vmem:[#allocation35_spill] sm:$0xff] }
  0xfd   : > { %1075 = vmatmul.mubr.f32.gmra.mrb[10].mxu0 %v913_v59  ;;  %v877_v46 = vsub.f32 %v799_v13, %v838_v48  ;;  %v2597_v4 = vpop.eup %1719  ;;  %v909_v50 = vmul.f32 %v870_v53, %v870_v53  ;;  %v881_v41 = vsub.f32 %v803_v35, %v842_v28  ;;  %v806_v19 = vmul.f32 %v2485_v45, %v2819_v24  ;;  %v2833_v28 = vld [vmem:[#allocation34_spill] sm:$0xff]  ;;  %v2834_v31 = vld [vmem:[#allocation31_spill] sm:$0xff] }
  0xfe   : > { %1079 = vmatprep.mubr.f32.mxu0 %v917_v9  ;;  %v845_v61 = vmul.f32 %v2479_v34, %v2820_v33  ;;  %v880_v32 = vsub.f32 %v802_v20, %v841_v52  ;;  %v795_v3 = vmul.f32 %v2409_v15, %v2821_v18  ;;  %v834_v11 = vmul.f32 %v2372_v17, %v2822_v58  ;;  %v2832_v9 = vld [vmem:[#allocation6_spill] sm:$0xff]  ;;  %v2838_v18 = vld [vmem:[#allocation37_spill] sm:$0xff] }
  0xff   : > { %v916_v60 = vmul.f32 %v877_v46, %v877_v46  ;;  %1488 = vmatmul.mubr.f32.gmra.mrb[0].mxu1 %v909_v50  ;;  %v920_v44 = vmul.f32 %v881_v41, %v881_v41  ;;  %v805_v27 = vmul.f32 %v2485_v45, %v2823_v51  ;;  %v844_v62 = vmul.f32 %v2479_v34, %v2824_v10  ;;  %v2835_v50 = vld [vmem:[#allocation41_spill] sm:$0xff]  ;;  %v2836_v41 = vld [vmem:[#allocation38_spill] sm:$0xff]  ;;  %v2840_v51 = vld [vmem:[#allocation44_spill] sm:$0xff] }
 0x100   : > { %v884_v57 = vsub.f32 %v806_v19, %v845_v61  ;;  %v919_v55 = vmul.f32 %v880_v32, %v880_v32  ;;  %1490 = vmatprep.mubr.msk.f32.mxu1 %vm1736_vm0, %v2809_v16  ;;  %v873_v30 = vsub.f32 %v795_v3, %v834_v11  ;;  %v809_v15 = vmul.f32 %v2560_v0, %v2825_v49 }
 0x101   : > { %1080 = vmatmul.mubr.f32.gmra.mrb[12].mxu0 %v916_v60  ;;  %v883_v43 = vsub.f32 %v805_v27, %v844_v62  ;;  %v848_v40 = vmul.f32 %v2539_v39, %v2826_v42  ;;  %v808_v54 = vmul.f32 %v2560_v0, %v2827_v14  ;;  %v847_v59 = vmul.f32 %v2539_v39, %v2828_v47  ;;  %v2837_v60 = vld [vmem:[#allocation40_spill] sm:$0xff] }
 0x102   : > { %1084 = vmatprep.mubr.f32.mxu0 %v920_v44  ;;  %v923_v17 = vmul.f32 %v884_v57, %v884_v57  ;;  %v2619_v63 = vpop.eup %1721  ;;  %v812_v5 = vmul.f32 %v2587_v56, %v2829_v7  ;;  %v851_v38 = vmul.f32 %v2581_v37, %v2830_v21  ;;  %v912_v8 = vmul.f32 %v873_v30, %v873_v30  ;;  %v2839_v44 = vld [vmem:[#allocation47_spill] sm:$0xff]  ;;  %v2841_v30 = vld [vmem:[#allocation46_spill] sm:$0xff] }
 0x103   : > { %v887_v13 = vsub.f32 %v809_v15, %v848_v40  ;;  %v798_v48 = vmul.f32 %v2432_v12, %v2831_v2  ;;  %v837_v53 = vmul.f32 %v2416_v1, %v2832_v9  ;;  %v922_v35 = vmul.f32 %v883_v43, %v883_v43  ;;  %v2842_v15 = vld [vmem:[#allocation43_spill] sm:$0xff]  ;;  %v2843_v40 = vld [vmem:[#allocation12_spill] sm:$0xff] }
 0x104   : > { %v2631_v22 = vpop.eup %1723  ;;  %v886_v36 = vsub.f32 %v808_v54, %v847_v59  ;;  %v811_v46 = vmul.f32 %v2587_v56, %v2833_v28  ;;  %v850_v20 = vmul.f32 %v2581_v37, %v2834_v31  ;;  %v890_v52 = vsub.f32 %v812_v5, %v851_v38  ;;  %v2844_v54 = vld [vmem:[#allocation10_spill] sm:$0xff]  ;;  %v2846_v2 = vld [vmem:[#allocation15_spill] sm:$0xff] }
 0x105   : > { %1085 = vmatmul.mubr.f32.gmra.mrb[14].mxu0 %v919_v55  ;;  %v926_v23 = vmul.f32 %v887_v13, %v887_v13  ;;  %v815_v12 = vmul.f32 %v2619_v63, %v2835_v50  ;;  %v854_v1 = vmul.f32 %v2597_v4, %v2836_v41  ;;  %v876_v33 = vsub.f32 %v798_v48, %v837_v53  ;;  %v2845_v13 = vld [vmem:[#allocation18_spill] sm:$0xff]  ;;  %v2847_v53 = vld [vmem:[#allocation24_spill] sm:$0xff] }
 0x106   : > { %1089 = vmatprep.mubr.f32.mxu0 %v923_v17  ;;  %v2641_v24 = vpop.eup %1725  ;;  %v925_v19 = vmul.f32 %v886_v36, %v886_v36  ;;  %v889_v61 = vsub.f32 %v811_v46, %v850_v20  ;;  %v814_v32 = vmul.f32 %v2619_v63, %v2837_v60  ;;  %v853_v3 = vmul.f32 %v2597_v4, %v2838_v18  ;;  %v2848_v36 = vld [vmem:[#allocation21_spill] sm:$0xff]  ;;  %v2850_v20 = vld [vmem:[#allocation27_spill] sm:$0xff]  ;;  %v2851_v50 = vld [vmem:[#allocation36_spill] sm:$0xff] }
 0x107   : > { %1491 = vmatmul.mubr.f32.gmra.mrb[0].mxu1 %v912_v8  ;;  %v929_v58 = vmul.f32 %v890_v52, %v890_v52  ;;  %v893_v11 = vsub.f32 %v815_v12, %v854_v1  ;;  %v818_v57 = vmul.f32 %v2641_v24, %v2839_v44  ;;  %v857_v27 = vmul.f32 %v2631_v22, %v2840_v51  ;;  %v2852_v12 = vld [vmem:[#allocation33_spill] sm:$0xff] }
 0x108   : > { %1493 = vmatprep.mubr.msk.f32.mxu1 %vm1736_vm0, %v2809_v16  ;;  %v915_v10 = vmul.f32 %v876_v33, %v876_v33  ;;  %v928_v62 = vmul.f32 %v889_v61, %v889_v61  ;;  %v892_v55 = vsub.f32 %v814_v32, %v853_v3  ;;  %v817_v49 = vmul.f32 %v2641_v24, %v2841_v30  ;;  %v2854_v33 = vld [vmem:[#allocation39_spill] sm:$0xff]  ;;  %v2855_v32 = vld [vmem:[#allocation48_spill] sm:$0xff]  ;;  %v2856_v18 = vld [vmem:[#allocation45_spill] sm:$0xff] }
 0x109   : > { %1090 = vmatmul.mubr.f32.gmra.mrb[16].mxu0 %v922_v35  ;;  %v856_v17 = vmul.f32 %v2631_v22, %v2842_v15  ;;  %v932_v43 = vmul.f32 %v893_v11, %v893_v11  ;;  %v896_v42 = vsub.f32 %v818_v57, %v857_v27  ;;  %v801_v14 = vmul.f32 %v2459_v6, %v2843_v40 }
 0x10a   : > { %1094 = vmatprep.mubr.f32.mxu0 %v926_v23  ;;  %v840_v47 = vmul.f32 %v2438_v26, %v2844_v54  ;;  %v931_v59 = vmul.f32 %v892_v55, %v892_v55  ;;  %v804_v6 = vmul.f32 %v2470_v25, %v2845_v13  ;;  %v843_v26 = vmul.f32 %v2463_v29, %v2846_v2  ;;  %v2849_v29 = vld [vmem:[#allocation30_spill] sm:$0xff] }
 0x10b   : > { %v895_v7 = vsub.f32 %v817_v49, %v856_v17  ;;  %v935_v5 = vmul.f32 %v896_v42, %v896_v42  ;;  %v807_v35 = vmul.f32 %v2485_v45, %v2847_v53  ;;  %v846_v28 = vmul.f32 %v2479_v34, %v2848_v36 }
 0x10c   : > { %v879_v21 = vsub.f32 %v801_v14, %v840_v47  ;;  %v882_v48 = vsub.f32 %v804_v6, %v843_v26  ;;  %v810_v31 = vmul.f32 %v2560_v0, %v2849_v29  ;;  %v849_v23 = vmul.f32 %v2539_v39, %v2850_v20 }
 0x10d   : > { %1095 = vmatmul.mubr.f32.gmra.mrb[18].mxu0 %v925_v19  ;;  %v934_v38 = vmul.f32 %v895_v7, %v895_v7  ;;  %v885_v25 = vsub.f32 %v807_v35, %v846_v28  ;;  %v813_v34 = vmul.f32 %v2587_v56, %v2851_v50  ;;  %v852_v41 = vmul.f32 %v2581_v37, %v2852_v12  ;;  %v2853_v19 = vld [vmem:[#allocation42_spill] sm:$0xff] }
 0x10e   : > { %1099 = vmatprep.mubr.f32.mxu0 %v929_v58  ;;  %v918_v8 = vmul.f32 %v879_v21, %v879_v21  ;;  %v921_v9 = vmul.f32 %v882_v48, %v882_v48  ;;  %v888_v45 = vsub.f32 %v810_v31, %v849_v23  ;;  %v816_v39 = vmul.f32 %v2619_v63, %v2853_v19 }
 0x10f   : > { %1494 = vmatmul.mubr.f32.gmra.mrb[0].mxu1 %v915_v10  ;;  %v924_v46 = vmul.f32 %v885_v25, %v885_v25  ;;  %v891_v0 = vsub.f32 %v813_v34, %v852_v41  ;;  %v855_v61 = vmul.f32 %v2597_v4, %v2854_v33  ;;  %v819_v37 = vmul.f32 %v2641_v24, %v2855_v32 }
 0x110   : > { %1496 = vmatprep.mubr.msk.f32.mxu1 %vm1736_vm0, %v2809_v16  ;;  %v927_v52 = vmul.f32 %v888_v45, %v888_v45  ;;  %v858_v3 = vmul.f32 %v2631_v22, %v2856_v18 }
 0x111   : > { %1100 = vmatmul.mubr.f32.gmra.mrb[20].mxu0 %v928_v62  ;;  %v930_v1 = vmul.f32 %v891_v0, %v891_v0  ;;  %v894_v56 = vsub.f32 %v816_v39, %v855_v61 }
 0x112   : > { %1104 = vmatprep.mubr.f32.mxu0 %v932_v43  ;;  %v897_v63 = vsub.f32 %v819_v37, %v858_v3 }
 0x113   : > { %v933_v60 = vmul.f32 %v894_v56, %v894_v56 }
 0x114   : > { %v936_v58 = vmul.f32 %v897_v63, %v897_v63 }
 0x115   : > { %1105 = vmatmul.mubr.f32.gmra.mrb[22].mxu0 %v931_v59 }
 0x116   : > { %1109 = vmatprep.mubr.f32.mxu0 %v935_v5 }
 0x117   : > { %1497 = vmatmul.mubr.f32.gmra.mrb[0].mxu1 %v918_v8 }
 0x118   : > { %1499 = vmatprep.mubr.msk.f32.mxu1 %vm1736_vm0, %v2809_v16 }
 0x119   : > { %1110 = vmatmul.mubr.f32.gmra.mrb[24].mxu0 %v934_v38 }
 0x11f   : > { %1500 = vmatmul.mubr.f32.gmra.mrb[0].mxu1 %v921_v9 }
 0x120   : > { %1502 = vmatprep.mubr.msk.f32.mxu1 %vm1736_vm0, %v2809_v16 }
 0x127   : > { %1503 = vmatmul.mubr.f32.gmra.mrb[0].mxu1 %v924_v46 }
 0x128   : > { %1505 = vmatprep.mubr.msk.f32.mxu1 %vm1736_vm0, %v2809_v16 }
 0x12f   : > { %1506 = vmatmul.mubr.f32.gmra.mrb[0].mxu1 %v927_v52 }
 0x130   : > { %1508 = vmatprep.mubr.msk.f32.mxu1 %vm1736_vm0, %v2809_v16 }
 0x137   : > { %1509 = vmatmul.mubr.f32.gmra.mrb[0].mxu1 %v930_v1 }
 0x138   : > { %1511 = vmatprep.mubr.msk.f32.mxu1 %vm1736_vm0, %v2809_v16 }
 0x13f   : > { %1512 = vmatmul.mubr.f32.gmra.mrb[0].mxu1 %v933_v60 }
 0x140   : > { %1514 = vmatprep.mubr.msk.f32.mxu1 %vm1736_vm0, %v2809_v16 }
 0x147   : > { %1515 = vmatmul.mubr.f32.gmra.mrb[0].mxu1 %v936_v58 }
 0x1b0   : > { %v1378_v4 = vpop.f32.mrb[0].mxu0 }
 0x1b1   : > { %v1379_v11 = vpop.f32.mrb[1].mxu0 }
 0x1b2   : > { %v1380_v44 = vadd.f32 %v1379_v11, %v1378_v4 }
 0x1b7   : > { %v1381_v57 = vpop.f32.mrb[2].mxu0 }
 0x1b8   : > { %v1382_v51 = vpop.f32.mrb[3].mxu0 }
 0x1b9   : > { %v1383_v27 = vadd.f32 %v1382_v51, %v1381_v57 }
 0x1bb   : > { %v1573_v10 = vadd.f32 %v1383_v27, %v1380_v44 }
 0x1bd   : > { %v1384_v62 = vpop.f32.mrb[4].mxu0 }
 0x1be   : > { %v1385_v55 = vpop.f32.mrb[5].mxu0 }
 0x1bf   : > { %v1386_v24 = vadd.f32 %v1385_v55, %v1384_v62 }
 0x1c1   : > { %v1574_v30 = vadd.f32 %v1573_v10, %v1386_v24 }
 0x1c4   : > { %v1387_v49 = vpop.f32.mrb[6].mxu0 }
 0x1c5   : > { %v1388_v22 = vpop.f32.mrb[7].mxu0 }
 0x1c6   : > { %v1389_v15 = vadd.f32 %v1388_v22, %v1387_v49 }
 0x1c8   : > { %v1575_v17 = vadd.f32 %v1574_v30, %v1389_v15 }
 0x1cc   : > { %v1390_v43 = vpop.f32.mrb[8].mxu0 }
 0x1cd   : > { %v1391_v16 = vpop.f32.mrb[9].mxu0 }
 0x1ce   : > { %v1392_v42 = vadd.f32 %v1391_v16, %v1390_v43 }
 0x1d0   : > { %v1576_v40 = vadd.f32 %v1575_v17, %v1392_v42  ;;  %v1393_v14 = vpop.f32.mrb[10].mxu0 }
 0x1d1   : > { %v1394_v54 = vpop.f32.mrb[11].mxu0 }
 0x1d2   : > { %v1395_v47 = vadd.f32 %v1394_v54, %v1393_v14 }
 0x1d4   : > { %v1577_v59 = vadd.f32 %v1576_v40, %v1395_v47  ;;  %v1396_v7 = vpop.f32.mrb[12].mxu0 }
 0x1d5   : > { %v1397_v5 = vpop.f32.mrb[13].mxu0 }
 0x1d6   : > { %v1398_v21 = vadd.f32 %v1397_v5, %v1396_v7 }
 0x1d8   : > { %v1578_v38 = vadd.f32 %v1577_v59, %v1398_v21  ;;  %v1399_v8 = vpop.f32.mrb[14].mxu0 }
 0x1d9   : > { %v1400_v13 = vpop.f32.mrb[15].mxu0 }
 0x1da   : > { %v1401_v6 = vadd.f32 %v1400_v13, %v1399_v8 }
 0x1dc   : > { %v1579_v2 = vadd.f32 %v1578_v38, %v1401_v6  ;;  %v1402_v26 = vpop.f32.mrb[16].mxu0 }
 0x1dd   : > { %v1403_v48 = vpop.f32.mrb[17].mxu0 }
 0x1de   : > { %v1404_v9 = vadd.f32 %v1403_v48, %v1402_v26 }
 0x1e0   : > { %v1580_v53 = vadd.f32 %v1579_v2, %v1404_v9  ;;  %v1405_v35 = vpop.f32.mrb[18].mxu0 }
 0x1e1   : > { %v1406_v36 = vpop.f32.mrb[19].mxu0 }
 0x1e2   : > { %v1407_v28 = vadd.f32 %v1406_v36, %v1405_v35 }
 0x1e4   : > { %v1581_v25 = vadd.f32 %v1580_v53, %v1407_v28  ;;  %v1408_v46 = vpop.f32.mrb[20].mxu0 }
 0x1e5   : > { %v1409_v29 = vpop.f32.mrb[21].mxu0 }
 0x1e6   : > { %v1410_v31 = vadd.f32 %v1409_v29, %v1408_v46 }
 0x1e8   : > { %v1582_v20 = vadd.f32 %v1581_v25, %v1410_v31  ;;  %v1411_v23 = vpop.f32.mrb[22].mxu0 }
 0x1e9   : > { %v1412_v45 = vpop.f32.mrb[23].mxu0 }
 0x1ea   : > { %v1413_v52 = vadd.f32 %v1412_v45, %v1411_v23 }
 0x1ec   : > { %v1583_v50 = vadd.f32 %v1582_v20, %v1413_v52  ;;  %v1414_v34 = vpop.f32.mrb[24].mxu0 }
 0x1ed   : > { %v1415_v12 = vpop.f32.mrb[25].mxu0 }
 0x1ee   : > { %v1416_v41 = vadd.f32 %v1415_v12, %v1414_v34 }
 0x1f0   : > { %v1584_v0 = vadd.f32 %v1583_v50, %v1416_v41 }
 0x21a   : > { %v1241_v1 = vpop.f32.mrb[0].mxu1 }
 0x21b   : > { %v1585_v19 = vadd.f32 %v1584_v0, %v1241_v1  ;;  %v1516_v39 = vpop.f32.mrb[1].mxu1 }
 0x21d   : > { %1257 = vst [vmem:[%s208_s28] sm:$0xff] %v1585_v19 }
 0x21e PF: > { %s13_s12 = sadd.s32 1, %s1733_s12  }
 0x21f   : > { %p10_p4 = scmp.ge.s32.totalorder %s13_s12, 6  }
 0x221   :  { %12 = sbr.rel (!%p10_p4) target bundleno = 1 (0x1), region = 68 }

// kernel: lpips_loss.12
= control target key start
LH: loop header
LB: loop body
LE: loop exit
PB: predicated region body
PF: predicated region fallthrough
CT: control target
= control target key end

     0   :  { %s2266_s12 = smov 0   ;;  %s3556_s0 = inlined_call_operand.vmem [shape: bf16[1024,128], index: 0, kind: input, shape index: {}, may-alias: {0,1}]   ;;  %s3557_s1 = inlined_call_operand.vmem [shape: bf16[1024,128], index: 1, kind: input, shape index: {}, may-alias: {0,1}]   ;;  %s3558_s2 = inlined_call_operand.vmem [shape: f32[128,128], index: 2, kind: input, shape index: {}]   ;;  %s3559_s3 = inlined_call_operand.vmem [shape: f32[2,8,128], index: 3, kind: output, shape index: {}]  }
   0x1 LB: > { %s2272_s13 = sadd.s32 4294967295, %s2244_s12   ;;  %p1630_p0 = scmp.ge.s32.totalorder %s2244_s12, 1  ;;  %s2244_s12 = sphi %s2266_s12, %s13_s12  }
   0x2   : > { %p153_p1 = scmp.lt.s32.totalorder %s2244_s12, 3 }
   0x4   : > { %p154_p2 = pnand %p1630_p0, %p153_p1 }
   0x6   : > { %157 = sbr.rel (%p154_p2) target bundleno = 584 (0x248), region = 32 }
   0xd   : > { %s1631_s14 = sshll.u32 %s2272_s13, 5  ;;  %v1288_v48 = vld [vmem:[%s3558_s2] sm:$0xff]  ;;  %v1289_v49 = vld [vmem:[%s3558_s2 + $0x8] sm:$0xff]  ;;  %v1290_v57 = vld [vmem:[%s3558_s2 + $0x10] sm:$0xff]  ;;  %p196_p5 = scmp.lt.s32.totalorder %s2272_s13, 1 }
   0xe   : > { %p183_p3 = scmp.lt.s32.totalorder %s1631_s14, 127  ;;  %s1639_s15 = sadd.s32 64, %s1631_s14  ;;  %v1926_v52 = vpack.c.bf16 %v1289_v49, %v1288_v48  ;;  %v1291_v58 = vld [vmem:[%s3558_s2 + $0x18] sm:$0xff] }
   0xf   : > { %p190_p4 = scmp.lt.s32.totalorder %s1639_s15, 127  ;;  %v1930_v59 = vpack.c.bf16 %v1291_v58, %v1290_v57  ;;  %v1301_v57 = vld [vmem:[%s3558_s2 + $0x68] sm:$0xff]  ;;  %s3676_s13 = smov (!%p196_p5, %s2272_s13), 1 }
  0x10   : > { %s3672_s14 = smov (!%p183_p3, %s1631_s14), 127  ;;  %1927 = vmatprep.subr.bf16.mxu0 %v1926_v52  ;;  %1958 = vmatprep.subr.bf16.mxu1 %v1926_v52 }
  0x11   : > { %s3674_s15 = smov (!%p190_p4, %s1639_s15), 127  ;;  %s1632_s16 = sshll.u32 %s3672_s14, 2  ;;  %1929 = vmatpush3.bf16.msra.mxu0 %v1926_v52  ;;  %1966 = vmatpush3.bf16.msra.mxu1 %v1926_v52 }
  0x12   : > { %s2280_s19 = scalar_lea.vmem %s3556_s0, %s1632_s16  ;;  %s1634_s20 = sshll.u32 %s3674_s15, 2  ;;  %1931 = vmatprep.subr.bf16.mxu0 %v1930_v59  ;;  %1959 = vmatprep.subr.bf16.mxu1 %v1930_v59 }
  0x13   : > { %v1641_v0 = vld [vmem:[%s2280_s19] sm:$0xff]   ;;  %s2286_s23 = scalar_lea.vmem %s3557_s1, %s1634_s20  ;;  %v1768_v1 = vld [vmem:[%s2280_s19 + $0x8] sm:$0xff]   ;;  %v1769_v19 = vld [vmem:[%s2280_s19 + $0x10] sm:$0xff]  }
  0x14   : > { %v2289_v2 = vunpack.c.h.bf16 %v1641_v0  ;;  %v2291_v3 = vunpack.c.l.bf16 %v1641_v0  ;;  %v1705_v4 = vld [vmem:[%s2286_s23] sm:$0xff]   ;;  %v2294_v5 = vunpack.c.l.bf16 %v1768_v1  ;;  %v1783_v7 = vld [vmem:[%s2286_s23 + $0x8] sm:$0xff]   ;;  %v2309_v13 = vunpack.c.h.bf16 %v1768_v1  ;;  %v1784_v18 = vld [vmem:[%s2286_s23 + $0x10] sm:$0xff]  }
  0x15   : > { %v2296_v6 = vunpack.c.h.bf16 %v1705_v4  ;;  %v2307_v12 = vunpack.c.l.bf16 %v1783_v7  ;;  %v2315_v16 = vunpack.c.h.bf16 %v1783_v7  ;;  %v2317_v17 = vunpack.c.l.bf16 %v1705_v4  ;;  %v1785_v28 = vld [vmem:[%s2286_s23 + $0x18] sm:$0xff]   ;;  %v1786_v38 = vld [vmem:[%s2286_s23 + $0x20] sm:$0xff]   ;;  %v1787_v50 = vld [vmem:[%s2286_s23 + $0x28] sm:$0xff]   ;;  %1933 = vmatpush3.bf16.msra.mxu0 %v1930_v59  ;;  %1967 = vmatpush3.bf16.msra.mxu1 %v1930_v59 }
  0x16   : > { %v329_v8 = vmul.f32 %v2289_v2, %v2289_v2  ;;  %v328_v9 = vmul.f32 %v2291_v3, %v2291_v3  ;;  %v330_v11 = vmul.f32 %v2294_v5, %v2294_v5  ;;  %v331_v15 = vmul.f32 %v2309_v13, %v2309_v13  ;;  %v1770_v29 = vld [vmem:[%s2280_s19 + $0x18] sm:$0xff]   ;;  %v1771_v39 = vld [vmem:[%s2280_s19 + $0x20] sm:$0xff]   ;;  %v1772_v51 = vld [vmem:[%s2280_s19 + $0x28] sm:$0xff]  }
  0x17   : > { %v745_v10 = vmul.f32 %v2296_v6, %v2296_v6  ;;  %v746_v14 = vmul.f32 %v2307_v12, %v2307_v12  ;;  %v747_v20 = vmul.f32 %v2315_v16, %v2315_v16  ;;  %v744_v21 = vmul.f32 %v2317_v17, %v2317_v17  ;;  %v1788_v0 = vld [vmem:[%s2286_s23 + $0x30] sm:$0xff]   ;;  %v1292_v4 = vld [vmem:[%s3558_s2 + $0x20] sm:$0xff]  ;;  %v1293_v7 = vld [vmem:[%s3558_s2 + $0x28] sm:$0xff] }
  0x18   : > { %362 = vadd.xlane.f32.xlu1 %v329_v8  ;;  %360 = vadd.xlane.f32.xlu0 %v328_v9  ;;  %v2325_v22 = vunpack.c.l.bf16 %v1784_v18  ;;  %v2327_v23 = vunpack.c.l.bf16 %v1769_v19  ;;  %v2333_v26 = vunpack.c.h.bf16 %v1784_v18  ;;  %v2335_v27 = vunpack.c.h.bf16 %v1769_v19  ;;  %v1773_v1 = vld [vmem:[%s2280_s19 + $0x30] sm:$0xff]   ;;  %v1295_v18 = vld [vmem:[%s3558_s2 + $0x38] sm:$0xff]  ;;  %v1790_v52 = vld [vmem:[%s2286_s23 + $0x40] sm:$0xff]  }
  0x19   : > { %v2343_v32 = vunpack.c.l.bf16 %v1785_v28  ;;  %v2345_v33 = vunpack.c.l.bf16 %v1770_v29  ;;  %v2351_v36 = vunpack.c.h.bf16 %v1785_v28  ;;  %v2353_v37 = vunpack.c.h.bf16 %v1770_v29  ;;  %v1789_v28 = vld [vmem:[%s2286_s23 + $0x38] sm:$0xff]  }
  0x1a   : > { %v748_v24 = vmul.f32 %v2325_v22, %v2325_v22  ;;  %v332_v25 = vmul.f32 %v2327_v23, %v2327_v23  ;;  %v749_v30 = vmul.f32 %v2333_v26, %v2333_v26  ;;  %v333_v31 = vmul.f32 %v2335_v27, %v2335_v27  ;;  %v1774_v29 = vld [vmem:[%s2280_s19 + $0x38] sm:$0xff]  }
  0x1b   : > { %v750_v34 = vmul.f32 %v2343_v32, %v2343_v32  ;;  %v334_v35 = vmul.f32 %v2345_v33, %v2345_v33  ;;  %v751_v40 = vmul.f32 %v2351_v36, %v2351_v36  ;;  %v335_v41 = vmul.f32 %v2353_v37, %v2353_v37 }
  0x1c   : > { %778 = vadd.xlane.f32.xlu1 %v745_v10  ;;  %364 = vadd.xlane.f32.xlu0 %v330_v11  ;;  %v2361_v42 = vunpack.c.l.bf16 %v1786_v38  ;;  %v2363_v43 = vunpack.c.l.bf16 %v1771_v39  ;;  %v2369_v46 = vunpack.c.h.bf16 %v1786_v38  ;;  %v2371_v47 = vunpack.c.h.bf16 %v1771_v39 }
  0x1d   : > { %v2385_v55 = vunpack.c.l.bf16 %v1787_v50  ;;  %v2387_v56 = vunpack.c.l.bf16 %v1772_v51  ;;  %v2399_v62 = vunpack.c.h.bf16 %v1787_v50  ;;  %v2401_v63 = vunpack.c.h.bf16 %v1772_v51 }
  0x1e   : > { %v752_v44 = vmul.f32 %v2361_v42, %v2361_v42  ;;  %v336_v45 = vmul.f32 %v2363_v43, %v2363_v43  ;;  %v753_v53 = vmul.f32 %v2369_v46, %v2369_v46  ;;  %v337_v54 = vmul.f32 %v2371_v47, %v2371_v47 }
  0x1f   : > { %v754_v60 = vmul.f32 %v2385_v55, %v2385_v55  ;;  %v338_v61 = vmul.f32 %v2387_v56, %v2387_v56  ;;  %v1934_v8 = vpack.c.bf16 %v1293_v7, %v1292_v4  ;;  %v755_v9 = vmul.f32 %v2399_v62, %v2399_v62 }
  0x20   : > { %780 = vadd.xlane.f32.xlu1 %v746_v14  ;;  %366 = vadd.xlane.f32.xlu0 %v331_v15  ;;  %v339_v10 = vmul.f32 %v2401_v63, %v2401_v63  ;;  %v2415_v11 = vunpack.c.l.bf16 %v1788_v0  ;;  %v2417_v14 = vunpack.c.l.bf16 %v1773_v1  ;;  %v1294_v15 = vld [vmem:[%s3558_s2 + $0x30] sm:$0xff]  ;;  %v2445_v39 = vunpack.c.l.bf16 %v1789_v28 }
  0x21   : > { %1935 = vmatprep.subr.bf16.mxu0 %v1934_v8  ;;  %1960 = vmatprep.subr.bf16.mxu1 %v1934_v8  ;;  %v1938_v19 = vpack.c.bf16 %v1295_v18, %v1294_v15  ;;  %v2459_v50 = vunpack.c.h.bf16 %v1789_v28  ;;  %v2461_v51 = vunpack.c.h.bf16 %v1774_v29  ;;  %v2483_v7 = vunpack.c.h.bf16 %v1790_v52  ;;  %v1791_v15 = vld [vmem:[%s2286_s23 + $0x48] sm:$0xff]  }
  0x22   : > { %1937 = vmatpush3.bf16.msra.mxu0 %v1934_v8  ;;  %1968 = vmatpush3.bf16.msra.mxu1 %v1934_v8  ;;  %3598 = vst [vmem:[#allocation3_spill] sm:$0xff] %v2445_v39  ;;  %v758_v48 = vmul.f32 %v2445_v39, %v2445_v39  ;;  %v1776_v18 = vld [vmem:[%s2280_s19 + $0x48] sm:$0xff]   ;;  %v2499_v28 = vunpack.c.l.bf16 %v1791_v15 }
  0x23   : > { %1939 = vmatprep.subr.bf16.mxu0 %v1938_v19  ;;  %1961 = vmatprep.subr.bf16.mxu1 %v1938_v19  ;;  %3600 = vst [vmem:[#allocation5_spill] sm:$0xff] %v2459_v50  ;;  %3601 = vst [vmem:[#allocation6_spill] sm:$0xff] %v2461_v51  ;;  %v759_v59 = vmul.f32 %v2459_v50, %v2459_v50 }
  0x24   : > { %782 = vadd.xlane.f32.xlu1 %v747_v20  ;;  %776 = vadd.xlane.f32.xlu0 %v744_v21  ;;  %v756_v20 = vmul.f32 %v2415_v11, %v2415_v11  ;;  %v340_v21 = vmul.f32 %v2417_v14, %v2417_v14  ;;  %3604 = vst [vmem:[#allocation9_spill] sm:$0xff] %v2483_v7  ;;  %3606 = vst [vmem:[#allocation11_spill] sm:$0xff] %v2499_v28 }
  0x26   : > { %1941 = vmatpush3.bf16.msra.mxu0 %v1938_v19  ;;  %1969 = vmatpush3.bf16.msra.mxu1 %v1938_v19 }
  0x28   : > { %784 = vadd.xlane.f32.xlu1 %v748_v24  ;;  %368 = vadd.xlane.f32.xlu0 %v332_v25  ;;  %v2429_v24 = vunpack.c.h.bf16 %v1788_v0  ;;  %v2431_v25 = vunpack.c.h.bf16 %v1773_v1 }
  0x2a   : > { %3597 = vst [vmem:[#allocation2_spill] sm:$0xff] %v2429_v24  ;;  %v341_v38 = vmul.f32 %v2431_v25, %v2431_v25 }
  0x2c   : > { %786 = vadd.xlane.f32.xlu1 %v749_v30  ;;  %370 = vadd.xlane.f32.xlu0 %v333_v31  ;;  %v1296_v30 = vld [vmem:[%s3558_s2 + $0x40] sm:$0xff]  ;;  %v1297_v31 = vld [vmem:[%s3558_s2 + $0x48] sm:$0xff] }
  0x30   : > { %788 = vadd.xlane.f32.xlu1 %v750_v34  ;;  %372 = vadd.xlane.f32.xlu0 %v334_v35  ;;  %v1942_v34 = vpack.c.bf16 %v1297_v31, %v1296_v30  ;;  %v757_v35 = vmul.f32 %v2429_v24, %v2429_v24  ;;  %v762_v30 = vmul.f32 %v2499_v28, %v2499_v28 }
  0x32   : > { %1943 = vmatprep.subr.bf16.mxu0 %v1942_v34  ;;  %1962 = vmatprep.subr.bf16.mxu1 %v1942_v34 }
  0x33   : > { %1945 = vmatpush3.bf16.msra.mxu0 %v1942_v34  ;;  %1970 = vmatpush3.bf16.msra.mxu1 %v1942_v34  ;;  %v2507_v34 = vunpack.c.h.bf16 %v1791_v15 }
  0x34   : > { %790 = vadd.xlane.f32.xlu1 %v751_v40  ;;  %374 = vadd.xlane.f32.xlu0 %v335_v41  ;;  %v2447_v40 = vunpack.c.l.bf16 %v1774_v29  ;;  %v1298_v41 = vld [vmem:[%s3558_s2 + $0x50] sm:$0xff]  ;;  %v2501_v29 = vunpack.c.l.bf16 %v1776_v18 }
  0x35   : > { %3608 = vst [vmem:[#allocation13_spill] sm:$0xff] %v2507_v34 }
  0x36   : > { %3599 = vst [vmem:[#allocation4_spill] sm:$0xff] %v2447_v40  ;;  %v342_v49 = vmul.f32 %v2447_v40, %v2447_v40  ;;  %3607 = vst [vmem:[#allocation12_spill] sm:$0xff] %v2501_v29  ;;  %v346_v31 = vmul.f32 %v2501_v29, %v2501_v29 }
  0x38   : > { %792 = vadd.xlane.f32.xlu1 %v752_v44  ;;  %376 = vadd.xlane.f32.xlu0 %v336_v45  ;;  %v1299_v44 = vld [vmem:[%s3558_s2 + $0x58] sm:$0xff] }
  0x39   : > { %v1946_v45 = vpack.c.bf16 %v1299_v44, %v1298_v41  ;;  %v1777_v41 = vld [vmem:[%s2280_s19 + $0x50] sm:$0xff]   ;;  %v763_v44 = vmul.f32 %v2507_v34, %v2507_v34 }
  0x3b   : > { %1947 = vmatprep.subr.bf16.mxu0 %v1946_v45  ;;  %1963 = vmatprep.subr.bf16.mxu1 %v1946_v45 }
  0x3c   : > { %794 = vadd.xlane.f32.xlu1 %v753_v53  ;;  %378 = vadd.xlane.f32.xlu0 %v337_v54  ;;  %v1775_v53 = vld [vmem:[%s2280_s19 + $0x40] sm:$0xff]  }
  0x3d   : > { %1949 = vmatpush3.bf16.msra.mxu0 %v1946_v45  ;;  %v1300_v54 = vld [vmem:[%s3558_s2 + $0x60] sm:$0xff]  ;;  %1971 = vmatpush3.bf16.msra.mxu1 %v1946_v45  ;;  %v2477_v0 = vunpack.c.l.bf16 %v1775_v53  ;;  %v2485_v8 = vunpack.c.h.bf16 %v1775_v53 }
  0x3e   : > { %v1950_v58 = vpack.c.bf16 %v1301_v57, %v1300_v54  ;;  %v2527_v57 = vunpack.c.h.bf16 %v1777_v41 }
  0x3f   : > { %3603 = vst [vmem:[#allocation8_spill] sm:$0xff] %v2477_v0  ;;  %v344_v4 = vmul.f32 %v2477_v0, %v2477_v0  ;;  %3605 = vst [vmem:[#allocation10_spill] sm:$0xff] %v2485_v8 }
  0x40   : > { %796 = vadd.xlane.f32.xlu1 %v754_v60  ;;  %380 = vadd.xlane.f32.xlu0 %v338_v61  ;;  %v343_v60 = vmul.f32 %v2461_v51, %v2461_v51  ;;  %v2475_v61 = vunpack.c.l.bf16 %v1790_v52  ;;  %3613 = vst [vmem:[#allocation18_spill] sm:$0xff] %v2527_v57 }
  0x41   : > { %1951 = vmatprep.subr.bf16.mxu0 %v1950_v58  ;;  %1964 = vmatprep.subr.bf16.mxu1 %v1950_v58 }
  0x42   : > { %3602 = vst [vmem:[#allocation7_spill] sm:$0xff] %v2475_v61  ;;  %1953 = vmatpush3.bf16.msra.mxu0 %v1950_v58  ;;  %1972 = vmatpush3.bf16.msra.mxu1 %v1950_v58  ;;  %v760_v1 = vmul.f32 %v2475_v61, %v2475_v61  ;;  %v1793_v58 = vld [vmem:[%s2286_s23 + $0x58] sm:$0xff]  }
  0x44   : > { %798 = vadd.xlane.f32.xlu1 %v755_v9  ;;  %382 = vadd.xlane.f32.xlu0 %v339_v10  ;;  %v1302_v9 = vld [vmem:[%s3558_s2 + $0x70] sm:$0xff]  ;;  %v1303_v10 = vld [vmem:[%s3558_s2 + $0x78] sm:$0xff] }
  0x45   : > { %v1954_v19 = vpack.c.bf16 %v1303_v10, %v1302_v9 }
  0x47   : > { %1955 = vmatprep.subr.bf16.mxu0 %v1954_v19  ;;  %1965 = vmatprep.subr.bf16.mxu1 %v1954_v19 }
  0x48   : > { %800 = vadd.xlane.f32.xlu1 %v756_v20  ;;  %384 = vadd.xlane.f32.xlu0 %v340_v21  ;;  %v761_v20 = vmul.f32 %v2483_v7, %v2483_v7  ;;  %v345_v21 = vmul.f32 %v2485_v8, %v2485_v8 }
  0x49   : > { %1957 = vmatpush3.bf16.msra.mxu0 %v1954_v19  ;;  %1973 = vmatpush3.bf16.msra.mxu1 %v1954_v19 }
  0x4c   : > { %802 = vadd.xlane.f32.xlu1 %v757_v35  ;;  %386 = vadd.xlane.f32.xlu0 %v341_v38  ;;  %v2509_v35 = vunpack.c.h.bf16 %v1776_v18  ;;  %v1792_v38 = vld [vmem:[%s2286_s23 + $0x50] sm:$0xff]   ;;  %v2543_v18 = vunpack.c.h.bf16 %v1793_v58 }
  0x4d   : > { %v2525_v54 = vunpack.c.h.bf16 %v1792_v38 }
  0x4e   : > { %3609 = vst [vmem:[#allocation14_spill] sm:$0xff] %v2509_v35  ;;  %v347_v45 = vmul.f32 %v2509_v35, %v2509_v35  ;;  %3616 = vst [vmem:[#allocation21_spill] sm:$0xff] %v2543_v18 }
  0x4f   : > { %3612 = vst [vmem:[#allocation17_spill] sm:$0xff] %v2525_v54 }
  0x50   : > { %804 = vadd.xlane.f32.xlu1 %v758_v48  ;;  %388 = vadd.xlane.f32.xlu0 %v342_v49  ;;  %v2517_v48 = vunpack.c.l.bf16 %v1792_v38  ;;  %v2519_v49 = vunpack.c.l.bf16 %v1777_v41 }
  0x52   : > { %3610 = vst [vmem:[#allocation15_spill] sm:$0xff] %v2517_v48  ;;  %3611 = vst [vmem:[#allocation16_spill] sm:$0xff] %v2519_v49  ;;  %v764_v52 = vmul.f32 %v2517_v48, %v2517_v48  ;;  %v348_v53 = vmul.f32 %v2519_v49, %v2519_v49 }
  0x54   : > { %806 = vadd.xlane.f32.xlu1 %v759_v59  ;;  %390 = vadd.xlane.f32.xlu0 %v343_v60  ;;  %v1778_v59 = vld [vmem:[%s2280_s19 + $0x58] sm:$0xff]   ;;  %v765_v60 = vmul.f32 %v2525_v54, %v2525_v54 }
  0x55   : > { %v2537_v9 = vunpack.c.l.bf16 %v1778_v59  ;;  %v2545_v19 = vunpack.c.h.bf16 %v1778_v59  ;;  %v1780_v59 = vld [vmem:[%s2280_s19 + $0x68] sm:$0xff]  }
  0x57   : > { %3615 = vst [vmem:[#allocation20_spill] sm:$0xff] %v2537_v9  ;;  %v350_v15 = vmul.f32 %v2537_v9, %v2537_v9  ;;  %3617 = vst [vmem:[#allocation22_spill] sm:$0xff] %v2545_v19 }
  0x58   : > { %808 = vadd.xlane.f32.xlu1 %v760_v1  ;;  %392 = vadd.xlane.f32.xlu0 %v344_v4  ;;  %v349_v1 = vmul.f32 %v2527_v57, %v2527_v57  ;;  %v2535_v4 = vunpack.c.l.bf16 %v1793_v58  ;;  %v1795_v58 = vld [vmem:[%s2286_s23 + $0x68] sm:$0xff]  }
  0x5a   : > { %3614 = vst [vmem:[#allocation19_spill] sm:$0xff] %v2535_v4  ;;  %v766_v10 = vmul.f32 %v2535_v4, %v2535_v4 }
  0x5c   : > { %810 = vadd.xlane.f32.xlu1 %v761_v20  ;;  %394 = vadd.xlane.f32.xlu0 %v345_v21  ;;  %v1794_v20 = vld [vmem:[%s2286_s23 + $0x60] sm:$0xff]  }
  0x5d   : > { %v1779_v21 = vld [vmem:[%s2280_s19 + $0x60] sm:$0xff]   ;;  %v2553_v38 = vunpack.c.l.bf16 %v1794_v20 }
  0x5e   : > { %v2555_v41 = vunpack.c.l.bf16 %v1779_v21 }
  0x5f   : > { %3618 = vst [vmem:[#allocation23_spill] sm:$0xff] %v2553_v38 }
  0x60   : > { %812 = vadd.xlane.f32.xlu1 %v762_v30  ;;  %396 = vadd.xlane.f32.xlu0 %v346_v31  ;;  %v767_v30 = vmul.f32 %v2543_v18, %v2543_v18  ;;  %v351_v31 = vmul.f32 %v2545_v19, %v2545_v19  ;;  %3619 = vst [vmem:[#allocation24_spill] sm:$0xff] %v2555_v41 }
  0x64   : > { %814 = vadd.xlane.f32.xlu1 %v763_v44  ;;  %398 = vadd.xlane.f32.xlu0 %v347_v45  ;;  %v768_v44 = vmul.f32 %v2553_v38, %v2553_v38  ;;  %v352_v45 = vmul.f32 %v2555_v41, %v2555_v41 }
  0x68   : > { %816 = vadd.xlane.f32.xlu1 %v764_v52  ;;  %400 = vadd.xlane.f32.xlu0 %v348_v53  ;;  %v2561_v52 = vunpack.c.h.bf16 %v1794_v20  ;;  %v2563_v53 = vunpack.c.h.bf16 %v1779_v21 }
  0x6a   : > { %3620 = vst [vmem:[#allocation25_spill] sm:$0xff] %v2561_v52  ;;  %3621 = vst [vmem:[#allocation26_spill] sm:$0xff] %v2563_v53 }
  0x6c   : > { %818 = vadd.xlane.f32.xlu1 %v765_v60  ;;  %402 = vadd.xlane.f32.xlu0 %v349_v1  ;;  %v769_v60 = vmul.f32 %v2561_v52, %v2561_v52  ;;  %v353_v1 = vmul.f32 %v2563_v53, %v2563_v53 }
  0x70   : > { %820 = vadd.xlane.f32.xlu1 %v766_v10  ;;  %404 = vadd.xlane.f32.xlu0 %v350_v15  ;;  %v2571_v10 = vunpack.c.l.bf16 %v1795_v58  ;;  %v2573_v15 = vunpack.c.l.bf16 %v1780_v59 }
  0x72   : > { %3622 = vst [vmem:[#allocation27_spill] sm:$0xff] %v2571_v10  ;;  %3623 = vst [vmem:[#allocation28_spill] sm:$0xff] %v2573_v15  ;;  %v770_v20 = vmul.f32 %v2571_v10, %v2571_v10  ;;  %v354_v21 = vmul.f32 %v2573_v15, %v2573_v15  ;;  %v1782_v15 = vld [vmem:[%s2280_s19 + $0x78] sm:$0xff]  }
  0x74   : > { %822 = vadd.xlane.f32.xlu1 %v767_v30  ;;  %406 = vadd.xlane.f32.xlu0 %v351_v31  ;;  %v2579_v30 = vunpack.c.h.bf16 %v1795_v58  ;;  %v2581_v31 = vunpack.c.h.bf16 %v1780_v59 }
  0x76   : > { %3624 = vst [vmem:[#allocation29_spill] sm:$0xff] %v2579_v30  ;;  %3625 = vst [vmem:[#allocation30_spill] sm:$0xff] %v2581_v31 }
  0x78   : > { %824 = vadd.xlane.f32.xlu1 %v768_v44  ;;  %408 = vadd.xlane.f32.xlu0 %v352_v45  ;;  %v1796_v44 = vld [vmem:[%s2286_s23 + $0x70] sm:$0xff]  }
  0x79   : > { %v1781_v45 = vld [vmem:[%s2280_s19 + $0x70] sm:$0xff]   ;;  %v2589_v10 = vunpack.c.l.bf16 %v1796_v44  ;;  %s1635_s19 = sshll.u32 %s3676_s13, 3 }
  0x7a   : > { %v2591_v52 = vunpack.c.l.bf16 %v1781_v45  ;;  %s199_s7 = scalar_lea.vmem %s3559_s3, %s1635_s19 }
  0x7b   : > { %3626 = vst [vmem:[#allocation31_spill] sm:$0xff] %v2589_v10  ;;  %v772_v58 = vmul.f32 %v2589_v10, %v2589_v10  ;;  %v2609_v10 = vunpack.c.l.bf16 %v1782_v15 }
  0x7c   : > { %826 = vadd.xlane.f32.xlu1 %v769_v60  ;;  %410 = vadd.xlane.f32.xlu0 %v353_v1  ;;  %v771_v60 = vmul.f32 %v2579_v30, %v2579_v30  ;;  %v355_v1 = vmul.f32 %v2581_v31, %v2581_v31  ;;  %3627 = vst [vmem:[#allocation32_spill] sm:$0xff] %v2591_v52  ;;  %v1797_v30 = vld [vmem:[%s2286_s23 + $0x78] sm:$0xff]  }
  0x7d   : > { %v356_v59 = vmul.f32 %v2591_v52, %v2591_v52  ;;  %3631 = vst [vmem:[#allocation36_spill] sm:$0xff] %v2609_v10 }
  0x80   : > { %828 = vadd.xlane.f32.xlu1 %v770_v20  ;;  %412 = vadd.xlane.f32.xlu0 %v354_v21  ;;  %v2597_v20 = vunpack.c.h.bf16 %v1796_v44  ;;  %v2599_v21 = vunpack.c.h.bf16 %v1781_v45  ;;  %v358_v45 = vmul.f32 %v2609_v10, %v2609_v10 }
  0x82   : > { %3628 = vst [vmem:[#allocation33_spill] sm:$0xff] %v2597_v20  ;;  %3629 = vst [vmem:[#allocation34_spill] sm:$0xff] %v2599_v21  ;;  %v773_v31 = vmul.f32 %v2597_v20, %v2597_v20 }
  0x84   : > { %830 = vadd.xlane.f32.xlu1 %v771_v60  ;;  %414 = vadd.xlane.f32.xlu0 %v355_v1  ;;  %v357_v60 = vmul.f32 %v2599_v21, %v2599_v21  ;;  %v2607_v1 = vunpack.c.l.bf16 %v1797_v30 }
  0x86   : > { %3630 = vst [vmem:[#allocation35_spill] sm:$0xff] %v2607_v1  ;;  %v774_v44 = vmul.f32 %v2607_v1, %v2607_v1 }
  0x88   : > { %832 = vadd.xlane.f32.xlu1 %v772_v58  ;;  %416 = vadd.xlane.f32.xlu0 %v356_v59  ;;  %v2615_v58 = vunpack.c.h.bf16 %v1797_v30  ;;  %v2617_v59 = vunpack.c.h.bf16 %v1782_v15 }
  0x8a   : > { %3632 = vst [vmem:[#allocation37_spill] sm:$0xff] %v2615_v58  ;;  %3633 = vst [vmem:[#allocation38_spill] sm:$0xff] %v2617_v59  ;;  %v775_v21 = vmul.f32 %v2615_v58, %v2615_v58  ;;  %v359_v20 = vmul.f32 %v2617_v59, %v2617_v59 }
  0x8c   : > { %834 = vadd.xlane.f32.xlu1 %v773_v31  ;;  %418 = vadd.xlane.f32.xlu0 %v357_v60 }
  0x90   : > { %836 = vadd.xlane.f32.xlu1 %v774_v44  ;;  %420 = vadd.xlane.f32.xlu0 %v358_v45 }
  0x94   : > { %838 = vadd.xlane.f32.xlu1 %v775_v21  ;;  %422 = vadd.xlane.f32.xlu0 %v359_v20 }
  0xa5   : > { %v363_v31 = vpop.xlane.xlu1 %362  ;;  %v2623_v60 = vpop.xlane.xlu0 %360 }
  0xa6   : > { %1982 = vrsqrt.f32 %v363_v31  ;;  %vm433_vm0 = vcmp.eq.f32.partialorder %v363_v31, inf  ;;  %vm435_vm1 = vcmp.eq.f32.partialorder %v363_v31, 0.0  ;;  %v436_v59 = vand.u32 2147483648, %v363_v31 }
  0xa7   : > { %1984 = vrsqrt.f32 %v2623_v60  ;;  %vm426_vm2 = vcmp.eq.f32.partialorder %v2623_v60, inf  ;;  %vm428_vm3 = vcmp.eq.f32.partialorder %v2623_v60, 0.0  ;;  %v429_v52 = vand.u32 2147483648, %v2623_v60 }
  0xa9   : > { %v779_v30 = vpop.xlane.xlu1 %778  ;;  %v365_v10 = vpop.xlane.xlu0 %364 }
  0xaa   : > { %1986 = vrsqrt.f32 %v779_v30  ;;  %vm849_vm4 = vcmp.eq.f32.partialorder %v779_v30, inf  ;;  %vm851_vm5 = vcmp.eq.f32.partialorder %v779_v30, 0.0  ;;  %v852_v41 = vand.u32 2147483648, %v779_v30 }
  0xab   : > { %1988 = vrsqrt.f32 %v365_v10  ;;  %vm440_vm6 = vcmp.eq.f32.partialorder %v365_v10, inf  ;;  %vm442_vm7 = vcmp.eq.f32.partialorder %v365_v10, 0.0  ;;  %v443_v9 = vand.u32 2147483648, %v365_v10 }
  0xad   : > { %v2626_v15 = vpop.xlane.xlu1 %780  ;;  %v2628_v44 = vpop.xlane.xlu0 %366 }
  0xae   : > { %1990 = vrsqrt.f32 %v2626_v15  ;;  %vm856_vm8 = vcmp.eq.f32.partialorder %v2626_v15, inf  ;;  %vm858_vm9 = vcmp.eq.f32.partialorder %v2626_v15, 0.0  ;;  %v859_v57 = vand.u32 2147483648, %v2626_v15 }
  0xaf   : > { %1992 = vrsqrt.f32 %v2628_v44  ;;  %vm447_vm10 = vcmp.eq.f32.partialorder %v2628_v44, inf  ;;  %vm449_vm11 = vcmp.eq.f32.partialorder %v2628_v44, 0.0 }
  0xb0   : > { %v1983_v21 = vpop.eup %1982 }
  0xb1   : > { %v1985_v20 = vpop.eup %1984  ;;  %v432_v45 = vmul.f32 %v1983_v21, %v363_v31  ;;  %v2632_v58 = vpop.xlane.xlu1 %782 }
  0xb2   : > { %v2634_v1 = vpop.xlane.xlu0 %776  ;;  %1994 = vrsqrt.f32 %v2632_v58  ;;  %v425_v38 = vmul.f32 %v1985_v20, %v2623_v60  ;;  %vm863_vm12 = vcmp.eq.f32.partialorder %v2632_v58, inf  ;;  %vm865_vm13 = vcmp.eq.f32.partialorder %v2632_v58, 0.0 }
  0xb3   : > { %v434_v53 = vsel %vm433_vm0, %v363_v31, %v432_v45  ;;  %1996 = vrsqrt.f32 %v2634_v1  ;;  %vm842_vm14 = vcmp.eq.f32.partialorder %v2634_v1, inf }
  0xb4   : > { %v1987_v21 = vpop.eup %1986  ;;  %v437_v19 = vsel %vm435_vm1, %v436_v59, %v434_v53  ;;  %v427_v31 = vsel %vm426_vm2, %v2623_v60, %v425_v38  ;;  %v450_v38 = vand.u32 2147483648, %v2628_v44  ;;  %vm844_vm1 = vcmp.eq.f32.partialorder %v2634_v1, 0.0 }
  0xb5   : > { %v1989_v18 = vpop.eup %1988  ;;  %v848_v4 = vmul.f32 %v1987_v21, %v779_v30  ;;  %v2644_v54 = vpop.xlane.xlu1 %784  ;;  %v649_v21 = vadd.f32 1e-10, %v437_v19 }
  0xb6   : > { %v2646_v45 = vpop.xlane.xlu0 %368  ;;  %v439_v20 = vmul.f32 %v1989_v18, %v365_v10  ;;  %1998 = vrsqrt.f32 %v2644_v54  ;;  %vm870_vm15 = vcmp.eq.f32.partialorder %v2644_v54, inf  ;;  %vm872_vm0 = vcmp.eq.f32.partialorder %v2644_v54, 0.0 }
  0xb7   : > { %v850_v53 = vsel %vm849_vm4, %v779_v30, %v848_v4  ;;  %2000 = vrsqrt.f32 %v2646_v45  ;;  %v845_v30 = vand.u32 2147483648, %v2634_v1  ;;  %vm454_vm2 = vcmp.eq.f32.partialorder %v2646_v45, inf }
  0xb8   : > { %v1991_v59 = vpop.eup %1990  ;;  %v853_v18 = vsel %vm851_vm5, %v852_v41, %v850_v53  ;;  %v441_v48 = vsel %vm440_vm6, %v365_v10, %v439_v20  ;;  %v866_v41 = vand.u32 2147483648, %v2632_v58 }
  0xb9   : > { %v1993_v49 = vpop.eup %1992  ;;  %v444_v34 = vsel %vm442_vm7, %v443_v9, %v441_v48  ;;  %v855_v35 = vmul.f32 %v1991_v59, %v2626_v15  ;;  %v2664_v4 = vpop.xlane.xlu1 %786  ;;  %v2674_v48 = vsel %vm428_vm3, %v429_v52, %v427_v31  ;;  %v1065_v9 = vadd.f32 1e-10, %v853_v18 }
  0xba   : > { %v2666_v28 = vpop.xlane.xlu0 %370  ;;  %v446_v19 = vmul.f32 %v1993_v49, %v2628_v44  ;;  %2002 = vrsqrt.f32 %v2664_v4  ;;  %v650_v20 = vadd.f32 1e-10, %v444_v34  ;;  %v873_v34 = vand.u32 2147483648, %v2644_v54 }
  0xbb   : > { %v857_v10 = vsel %vm856_vm8, %v2626_v15, %v855_v35  ;;  %2004 = vrcp.f32 %v649_v21  ;;  %vm456_vm3 = vcmp.eq.f32.partialorder %v2646_v45, 0.0  ;;  %vm877_vm4 = vcmp.eq.f32.partialorder %v2664_v4, inf }
  0xbc   : > { %v1995_v49 = vpop.eup %1994  ;;  %v860_v53 = vsel %vm858_vm9, %v859_v57, %v857_v10  ;;  %v448_v52 = vsel %vm447_vm10, %v2628_v44, %v446_v19  ;;  %2006 = vrsqrt.f32 %v2666_v28  ;;  %v457_v57 = vand.u32 2147483648, %v2646_v45 }
  0xbd   : > { %v1997_v60 = vpop.eup %1996  ;;  %v862_v31 = vmul.f32 %v1995_v49, %v2632_v58  ;;  %v2690_v35 = vpop.xlane.xlu1 %788  ;;  %2008 = vrcp.f32 %v1065_v9  ;;  %v1066_v15 = vadd.f32 1e-10, %v860_v53  ;;  %v451_v21 = vsel %vm449_vm11, %v450_v38, %v448_v52 }
  0xbe   : > { %v2692_v59 = vpop.xlane.xlu0 %372  ;;  %2010 = vrcp.f32 %v650_v20  ;;  %v841_v49 = vmul.f32 %v1997_v60, %v2634_v1  ;;  %vm879_vm5 = vcmp.eq.f32.partialorder %v2664_v4, 0.0  ;;  %v880_v44 = vand.u32 2147483648, %v2664_v4 }
  0xbf   : > { %v864_v18 = vsel %vm863_vm12, %v2632_v58, %v862_v31  ;;  %2012 = vrsqrt.f32 %v2690_v35  ;;  %v651_v53 = vadd.f32 1e-10, %v451_v21  ;;  %vm461_vm6 = vcmp.eq.f32.partialorder %v2666_v28, inf }
  0xc0   : > { %v1999_v19 = vpop.eup %1998  ;;  %v867_v10 = vsel %vm865_vm13, %v866_v41, %v864_v18  ;;  %vm463_vm7 = vcmp.eq.f32.partialorder %v2666_v28, 0.0  ;;  %2014 = vrsqrt.f32 %v2692_v59  ;;  %v843_v31 = vsel %vm842_vm14, %v2634_v1, %v841_v49 }
  0xc1   : > { %v869_v29 = vmul.f32 %v1999_v19, %v2644_v54  ;;  %v2712_v38 = vpop.xlane.xlu1 %790  ;;  %v2001_v20 = vpop.eup %2000  ;;  %2016 = vrcp.f32 %v1066_v15  ;;  %v1067_v58 = vadd.f32 1e-10, %v867_v10  ;;  %v464_v18 = vand.u32 2147483648, %v2666_v28 }
  0xc2   : > { %v2714_v9 = vpop.xlane.xlu0 %374  ;;  %v453_v52 = vmul.f32 %v2001_v20, %v2646_v45  ;;  %2018 = vrsqrt.f32 %v2712_v38  ;;  %vm884_vm8 = vcmp.eq.f32.partialorder %v2690_v35, inf  ;;  %vm886_vm9 = vcmp.eq.f32.partialorder %v2690_v35, 0.0 }
  0xc3   : > { %v871_v41 = vsel %vm870_vm15, %v2644_v54, %v869_v29  ;;  %2020 = vrsqrt.f32 %v2714_v9  ;;  %v887_v20 = vand.u32 2147483648, %v2690_v35  ;;  %vm468_vm10 = vcmp.eq.f32.partialorder %v2692_v59, inf }
  0xc4   : > { %v2003_v60 = vpop.eup %2002  ;;  %v874_v21 = vsel %vm872_vm0, %v873_v34, %v871_v41  ;;  %v455_v19 = vsel %vm454_vm2, %v2646_v45, %v453_v52  ;;  %2022 = vrcp.f32 %v651_v53  ;;  %v2748_v52 = vsel %vm844_vm1, %v845_v30, %v843_v31 }
  0xc5   : > { %v1068_v15 = vadd.f32 1e-10, %v874_v21  ;;  %v876_v29 = vmul.f32 %v2003_v60, %v2664_v4  ;;  %v2736_v10 = vpop.xlane.xlu1 %792  ;;  %v2740_v54 = vpop.eup %2004  ;;  %v458_v34 = vsel %vm456_vm3, %v457_v57, %v455_v19  ;;  %2024 = vrcp.f32 %v1067_v58 }
  0xc6   : > { %v2738_v49 = vpop.xlane.xlu0 %376  ;;  %v2007_v41 = vpop.eup %2006  ;;  %v652_v60 = vadd.f32 1e-10, %v458_v34  ;;  %vm470_vm11 = vcmp.eq.f32.partialorder %v2692_v59, 0.0  ;;  %2026 = vrsqrt.f32 %v2736_v10  ;;  %v471_v30 = vand.u32 2147483648, %v2692_v59 }
  0xc7   : > { %v878_v21 = vsel %vm877_vm4, %v2664_v4, %v876_v29  ;;  %v460_v53 = vmul.f32 %v2007_v41, %v2666_v28  ;;  %v2757_v45 = vpop.eup %2008  ;;  %2028 = vrcp.f32 %v1068_v15  ;;  %vm891_vm12 = vcmp.eq.f32.partialorder %v2712_v38, inf }
  0xc8   : > { %v881_v1 = vsel %vm879_vm5, %v880_v44, %v878_v21  ;;  %v2767_v31 = vpop.eup %2010  ;;  %vm893_vm13 = vcmp.eq.f32.partialorder %v2712_v38, 0.0  ;;  %v894_v15 = vand.u32 2147483648, %v2712_v38  ;;  %2030 = vrsqrt.f32 %v2738_v49 }
  0xc9   : > { %v2763_v57 = vpop.xlane.xlu1 %794  ;;  %v462_v19 = vsel %vm461_vm6, %v2666_v28, %v460_v53  ;;  %v2013_v4 = vpop.eup %2012  ;;  %2032 = vrcp.f32 %v652_v60  ;;  %vm475_vm14 = vcmp.eq.f32.partialorder %v2714_v9, inf  ;;  %vm477_vm15 = vcmp.eq.f32.partialorder %v2714_v9, 0.0 }
  0xca   : > { %v2765_v58 = vpop.xlane.xlu0 %378  ;;  %v465_v44 = vsel %vm463_vm7, %v464_v18, %v462_v19  ;;  %v2015_v29 = vpop.eup %2014  ;;  %v1069_v34 = vadd.f32 1e-10, %v881_v1  ;;  %v883_v41 = vmul.f32 %v2013_v4, %v2690_v35  ;;  %v478_v21 = vand.u32 2147483648, %v2714_v9 }
  0xcb   : > { %2034 = vrsqrt.f32 %v2763_v57  ;;  %v2782_v53 = vpop.eup %2016  ;;  %v467_v61 = vmul.f32 %v2015_v29, %v2692_v59  ;;  %vm898_vm0 = vcmp.eq.f32.partialorder %v2736_v10, inf  ;;  %vm900_vm1 = vcmp.eq.f32.partialorder %v2736_v10, 0.0 }
  0xcc   : > { %2036 = vrsqrt.f32 %v2765_v58  ;;  %v2019_v60 = vpop.eup %2018  ;;  %v653_v1 = vadd.f32 1e-10, %v465_v44  ;;  %v885_v19 = vsel %vm884_vm8, %v2690_v35, %v883_v41  ;;  %v901_v4 = vand.u32 2147483648, %v2736_v10 }
  0xcd   : > { %v2788_v28 = vpop.xlane.xlu1 %796  ;;  %vm482_vm2 = vcmp.eq.f32.partialorder %v2738_v49, inf  ;;  %v2021_v29 = vpop.eup %2020  ;;  %v888_v0 = vsel %vm886_vm9, %v887_v20, %v885_v19  ;;  %v469_v7 = vsel %vm468_vm10, %v2692_v59, %v467_v61  ;;  %v890_v8 = vmul.f32 %v2019_v60, %v2712_v38 }
  0xce   : > { %v2790_v18 = vpop.xlane.xlu0 %380  ;;  %2038 = vrsqrt.f32 %v2788_v28  ;;  %v2804_v44 = vpop.eup %2022  ;;  %v472_v41 = vsel %vm470_vm11, %v471_v30, %v469_v7  ;;  %v474_v50 = vmul.f32 %v2021_v29, %v2714_v9  ;;  %vm484_vm3 = vcmp.eq.f32.partialorder %v2738_v49, 0.0 }
  0xcf   : > { %2040 = vrcp.f32 %v1069_v34  ;;  %v2810_v35 = vpop.eup %2024  ;;  %v1070_v20 = vadd.f32 1e-10, %v888_v0  ;;  %v892_v61 = vsel %vm891_vm12, %v2712_v38, %v890_v8  ;;  %v485_v60 = vand.u32 2147483648, %v2738_v49 }
  0xd0   : > { %2042 = vrsqrt.f32 %v2790_v18  ;;  %v2027_v7 = vpop.eup %2026  ;;  %v654_v59 = vadd.f32 1e-10, %v472_v41  ;;  %v895_v30 = vsel %vm893_vm13, %v894_v15, %v892_v61  ;;  %v476_v0 = vsel %vm475_vm14, %v2714_v9, %v474_v50 }
  0xd1   : > { %v2817_v19 = vpop.xlane.xlu1 %798  ;;  %vm905_vm4 = vcmp.eq.f32.partialorder %v2763_v57, inf  ;;  %v2827_v8 = vpop.eup %2028  ;;  %2044 = vrcp.f32 %v653_v1  ;;  %v479_v29 = vsel %vm477_vm15, %v478_v21, %v476_v0  ;;  %v897_v51 = vmul.f32 %v2027_v7, %v2736_v10 }
  0xd2   : > { %v2819_v34 = vpop.xlane.xlu0 %382  ;;  %vm907_vm5 = vcmp.eq.f32.partialorder %v2763_v57, 0.0  ;;  %v2031_v41 = vpop.eup %2030  ;;  %v1071_v39 = vadd.f32 1e-10, %v895_v30  ;;  %v908_v38 = vand.u32 2147483648, %v2763_v57  ;;  %vm489_vm6 = vcmp.eq.f32.partialorder %v2765_v58, inf }
  0xd3   : > { %2046 = vrsqrt.f32 %v2817_v19  ;;  %v2836_v50 = vpop.eup %2032  ;;  %v655_v15 = vadd.f32 1e-10, %v479_v29  ;;  %v899_v9 = vsel %vm898_vm0, %v2736_v10, %v897_v51  ;;  %v481_v21 = vmul.f32 %v2031_v41, %v2738_v49 }
  0xd4   : > { %2048 = vrcp.f32 %v1070_v20  ;;  %v902_v7 = vsel %vm900_vm1, %v901_v4, %v899_v9  ;;  %vm491_vm7 = vcmp.eq.f32.partialorder %v2765_v58, 0.0  ;;  %v492_v30 = vand.u32 2147483648, %v2765_v58 }
  0xd5   : > { %v2842_v1 = vpop.xlane.xlu1 %800  ;;  %v2035_v61 = vpop.eup %2034  ;;  %2050 = vrcp.f32 %v654_v59  ;;  %v1072_v29 = vadd.f32 1e-10, %v902_v7  ;;  %v483_v51 = vsel %vm482_vm2, %v2738_v49, %v481_v21  ;;  %vm912_vm8 = vcmp.eq.f32.partialorder %v2788_v28, inf }
  0xd6   : > { %v2848_v0 = vpop.xlane.xlu0 %384  ;;  %v2037_v20 = vpop.eup %2036  ;;  %v904_v41 = vmul.f32 %v2035_v61, %v2763_v57  ;;  %2052 = vrsqrt.f32 %v2819_v34  ;;  %v486_v10 = vsel %vm484_vm3, %v485_v60, %v483_v51  ;;  %v915_v21 = vand.u32 2147483648, %v2788_v28 }
  0xd7   : > { %2054 = vrcp.f32 %v1071_v39  ;;  %v488_v4 = vmul.f32 %v2037_v20, %v2765_v58  ;;  %v656_v9 = vadd.f32 1e-10, %v486_v10  ;;  %v1064_v10 = vadd.f32 1e-10, %v2748_v52 }
  0xd8   : > { %v2039_v59 = vpop.eup %2038  ;;  %2056 = vrcp.f32 %v655_v15  ;;  %v906_v7 = vsel %vm905_vm4, %v2763_v57, %v904_v41  ;;  %v648_v15 = vadd.f32 1e-10, %v2674_v48  ;;  %vm914_vm9 = vcmp.eq.f32.partialorder %v2788_v28, 0.0 }
  0xd9   : > { %v2863_v61 = vpop.xlane.xlu1 %802  ;;  %v2865_v40 = vpop.eup %2040  ;;  %v909_v39 = vsel %vm907_vm5, %v908_v38, %v906_v7  ;;  %v490_v49 = vsel %vm489_vm6, %v2765_v58, %v488_v4  ;;  %v911_v60 = vmul.f32 %v2039_v59, %v2788_v28  ;;  %2058 = vrcp.f32 %v1072_v29 }
  0xda   : > { %v2043_v20 = vpop.eup %2042  ;;  %v1073_v51 = vadd.f32 1e-10, %v909_v39  ;;  %v493_v41 = vsel %vm491_vm7, %v492_v30, %v490_v49  ;;  %2060 = vrcp.f32 %v656_v9  ;;  %v2881_v4 = vpop.xlane.xlu0 %386  ;;  %vm496_vm10 = vcmp.eq.f32.partialorder %v2790_v18, inf }
  0xdb   : > { %v657_v24 = vadd.f32 1e-10, %v493_v41  ;;  %v913_v57 = vsel %vm912_vm8, %v2788_v28, %v911_v60  ;;  %v495_v38 = vmul.f32 %v2043_v20, %v2790_v18  ;;  %v2883_v59 = vpop.eup %2044  ;;  %v499_v48 = vand.u32 2147483648, %v2790_v18 }
  0xdc   : > { %2062 = vrcp.f32 %v648_v15  ;;  %v916_v58 = vsel %vm914_vm9, %v915_v21, %v913_v57  ;;  %vm498_vm11 = vcmp.eq.f32.partialorder %v2790_v18, 0.0  ;;  %vm919_vm12 = vcmp.eq.f32.partialorder %v2817_v19, inf }
  0xdd   : > { %v2047_v52 = vpop.eup %2046  ;;  %2064 = vrcp.f32 %v1073_v51  ;;  %v497_v30 = vsel %vm496_vm10, %v2790_v18, %v495_v38  ;;  %v2893_v39 = vpop.xlane.xlu1 %804  ;;  %v922_v49 = vand.u32 2147483648, %v2817_v19  ;;  %v1193_v21 = vmul.f32 %v2757_v45, %v2296_v6 }
  0xde   : > { %v2890_v29 = vpop.eup %2048  ;;  %v500_v9 = vsel %vm498_vm11, %v499_v48, %v497_v30  ;;  %v918_v7 = vmul.f32 %v2047_v52, %v2817_v19  ;;  %2066 = vrcp.f32 %v1064_v10  ;;  %v1074_v18 = vadd.f32 1e-10, %v916_v58  ;;  %v2909_v57 = vpop.xlane.xlu0 %388 }
  0xdf   : > { %v2895_v28 = vpop.eup %2050  ;;  %2068 = vrcp.f32 %v657_v24  ;;  %vm921_vm13 = vcmp.eq.f32.partialorder %v2817_v19, 0.0  ;;  %v658_v51 = vadd.f32 1e-10, %v500_v9  ;;  %v1161_v10 = vmul.f32 %v2740_v54, %v2289_v2 }
  0xe0   : > { %v2053_v60 = vpop.eup %2052  ;;  %v920_v15 = vsel %vm919_vm12, %v2817_v19, %v918_v7  ;;  %2070 = vrsqrt.f32 %v2842_v1  ;;  %vm503_vm14 = vcmp.eq.f32.partialorder %v2819_v34, inf  ;;  %v506_v45 = vand.u32 2147483648, %v2819_v34 }
  0xe1   : > { %v2904_v20 = vpop.eup %2054  ;;  %v923_v41 = vsel %vm921_vm13, %v922_v49, %v920_v15  ;;  %v502_v24 = vmul.f32 %v2053_v60, %v2819_v34  ;;  %2072 = vrsqrt.f32 %v2848_v0  ;;  %v1194_v19 = vmul.f32 %v2782_v53, %v2307_v12  ;;  %v2925_v58 = vpop.xlane.xlu1 %806 }
  0xe2   : > { %v2911_v6 = vpop.eup %2056  ;;  %v1075_v38 = vadd.f32 1e-10, %v923_v41  ;;  %v1225_v52 = vsub.f32 %v1161_v10, %v1193_v21  ;;  %2074 = vrsqrt.f32 %v2863_v61  ;;  %vm505_vm15 = vcmp.eq.f32.partialorder %v2819_v34, 0.0  ;;  %v2937_v49 = vpop.xlane.xlu0 %390 }
  0xe3   : > { %v504_v48 = vsel %vm503_vm14, %v2819_v34, %v502_v24  ;;  %v2920_v2 = vpop.eup %2058  ;;  %2076 = vrcp.f32 %v1074_v18  ;;  %v1162_v54 = vmul.f32 %v2767_v31, %v2294_v5  ;;  %vm926_vm0 = vcmp.eq.f32.partialorder %v2842_v1, inf }
  0xe4   : > { %v2927_v30 = vpop.eup %2060  ;;  %2078 = vrcp.f32 %v658_v51  ;;  %v507_v12 = vsel %vm505_vm15, %v506_v45, %v504_v48  ;;  %vm928_vm1 = vcmp.eq.f32.partialorder %v2842_v1, 0.0  ;;  %v929_v9 = vand.u32 2147483648, %v2842_v1 }
  0xe5   : > { %v1226_v7 = vsub.f32 %v1162_v54, %v1194_v19  ;;  %2080 = vrsqrt.f32 %v2881_v4  ;;  %v1257_v5 = vmul.f32 %v1225_v52, %v1225_v52  ;;  %vm510_vm2 = vcmp.eq.f32.partialorder %v2848_v0, inf }
  0xe6   : > { %v2063_v53 = vpop.eup %2062  ;;  %2082 = vrcp.f32 %v1075_v38  ;;  %v513_v31 = vand.u32 2147483648, %v2848_v0  ;;  %v659_v60 = vadd.f32 1e-10, %v507_v12  ;;  %vm512_vm3 = vcmp.eq.f32.partialorder %v2848_v0, 0.0 }
  0xe7   : > { %v2933_v34 = vpop.eup %2064  ;;  %vm933_vm4 = vcmp.eq.f32.partialorder %v2863_v61, inf  ;;  %v1195_v18 = vmul.f32 %v2810_v35, %v2315_v16  ;;  %2084 = vrsqrt.f32 %v2893_v39  ;;  %v1160_v51 = vmul.f32 %v2063_v53, %v2291_v3  ;;  %v2957_v3 = vpop.xlane.xlu1 %808 }
  0xe8   : > { %v2067_v21 = vpop.eup %2066  ;;  %v936_v24 = vand.u32 2147483648, %v2863_v61  ;;  %v1163_v10 = vmul.f32 %v2804_v44, %v2309_v13  ;;  %v1258_v19 = vmul.f32 %v1226_v7, %v1226_v7  ;;  %vm935_vm5 = vcmp.eq.f32.partialorder %v2863_v61, 0.0 }
  0xe9   : > { %v2944_v15 = vpop.eup %2068  ;;  %v1192_v41 = vmul.f32 %v2067_v21, %v2317_v17  ;;  %v1164_v16 = vmul.f32 %v2836_v50, %v2327_v23  ;;  %v1196_v35 = vmul.f32 %v2827_v8, %v2325_v22  ;;  %2086 = vrsqrt.f32 %v2909_v57 }
  0xea   : > { %v2071_v45 = vpop.eup %2070  ;;  %v1165_v13 = vmul.f32 %v2883_v59, %v2335_v27  ;;  %v1197_v44 = vmul.f32 %v2865_v40, %v2333_v26  ;;  %2088 = vrcp.f32 %v659_v60  ;;  %v1227_v52 = vsub.f32 %v1163_v10, %v1195_v18  ;;  %v2973_v26 = vpop.xlane.xlu0 %392 }
  0xeb   : > { %v1224_v17 = vsub.f32 %v1160_v51, %v1192_v41  ;;  %v925_v38 = vmul.f32 %v2071_v45, %v2842_v1  ;;  %v2073_v48 = vpop.eup %2072  ;;  %vm517_vm6 = vcmp.eq.f32.partialorder %v2881_v4, inf  ;;  %v1166_v22 = vmul.f32 %v2895_v28, %v2345_v33  ;;  %v2992_v60 = vpop.xlane.xlu1 %810 }
  0xec   : > { %v2075_v23 = vpop.eup %2074  ;;  %v509_v54 = vmul.f32 %v2073_v48, %v2848_v0  ;;  %v1198_v27 = vmul.f32 %v2890_v29, %v2343_v32  ;;  %v1228_v28 = vsub.f32 %v1164_v16, %v1196_v35  ;;  %2090 = vrsqrt.f32 %v2925_v58 }
  0xed   : > { %v1256_v8 = vmul.f32 %v1224_v17, %v1224_v17  ;;  %v927_v50 = vsel %vm926_vm0, %v2842_v1, %v925_v38  ;;  %v2975_v40 = vpop.eup %2076  ;;  %v932_v33 = vmul.f32 %v2075_v23, %v2863_v61  ;;  %vm519_vm7 = vcmp.eq.f32.partialorder %v2881_v4, 0.0 }
  0xee   : > { %v930_v59 = vsel %vm928_vm1, %v929_v9, %v927_v50  ;;  %v2981_v12 = vpop.eup %2078  ;;  %v511_v53 = vsel %vm510_vm2, %v2848_v0, %v509_v54  ;;  %v520_v32 = vand.u32 2147483648, %v2881_v4  ;;  %v1229_v29 = vsub.f32 %v1165_v13, %v1197_v44  ;;  %v3009_v17 = vpop.xlane.xlu0 %394 }
  0xef   : > { %1878 = vmatprep.mubr.f32.mxu0 %v1256_v8  ;;  %v2081_v7 = vpop.eup %2080  ;;  %v1076_v1 = vadd.f32 1e-10, %v930_v59  ;;  %v934_v9 = vsel %vm933_vm4, %v2863_v61, %v932_v33  ;;  %v1259_v21 = vmul.f32 %v1227_v52, %v1227_v52  ;;  %vm940_vm8 = vcmp.eq.f32.partialorder %v2893_v39, inf }
  0xf0   : > { %1879 = vmatmul.mubr.f32.vlgmr.msra.gmra.mrb[0].mxu0 %v1257_v5  ;;  %v2994_v18 = vpop.eup %2082  ;;  %v514_v51 = vsel %vm512_vm3, %v513_v31, %v511_v53  ;;  %v516_v41 = vmul.f32 %v2081_v7, %v2881_v4  ;;  %vm942_vm9 = vcmp.eq.f32.partialorder %v2893_v39, 0.0  ;;  %v1230_v5 = vsub.f32 %v1166_v22, %v1198_v27 }
  0xf1   : > { %1881 = vmatprep.mubr.f32.mxu0 %v1258_v19  ;;  %v2085_v10 = vpop.eup %2084  ;;  %v1260_v45 = vmul.f32 %v1228_v28, %v1228_v28  ;;  %v943_v16 = vand.u32 2147483648, %v2893_v39  ;;  %vm524_vm10 = vcmp.eq.f32.partialorder %v2909_v57, inf  ;;  %2092 = vrsqrt.f32 %v2937_v49 }
  0xf2   : > { %v937_v35 = vsel %vm935_vm5, %v936_v24, %v934_v9  ;;  %v518_v0 = vsel %vm517_vm6, %v2881_v4, %v516_v41  ;;  %v939_v31 = vmul.f32 %v2085_v10, %v2893_v39  ;;  %v1261_v19 = vmul.f32 %v1229_v29, %v1229_v29  ;;  %v3038_v28 = vpop.xlane.xlu0 %396 }
  0xf3   : > { %v2087_v38 = vpop.eup %2086  ;;  %2094 = vrcp.f32 %v1076_v1  ;;  %v660_v13 = vadd.f32 1e-10, %v514_v51  ;;  %v521_v44 = vsel %vm519_vm7, %v520_v32, %v518_v0  ;;  %v1167_v61 = vmul.f32 %v2911_v6, %v2353_v37  ;;  %v3026_v37 = vpop.xlane.xlu1 %812 }
  0xf4   : > { %1882 = vmatmul.mubr.f32.gmra.mrb[2].mxu0 %v1259_v21  ;;  %v941_v24 = vsel %vm940_vm8, %v2893_v39, %v939_v31  ;;  %v523_v48 = vmul.f32 %v2087_v38, %v2909_v57  ;;  %v1262_v52 = vmul.f32 %v1230_v5, %v1230_v5  ;;  %v1199_v22 = vmul.f32 %v2904_v20, %v2351_v36  ;;  %v3021_v23 = vpop.eup %2088 }
  0xf5   : > { %1884 = vmatprep.mubr.f32.mxu0 %v1260_v45  ;;  %v1077_v8 = vadd.f32 1e-10, %v937_v35  ;;  %vm526_vm11 = vcmp.eq.f32.partialorder %v2909_v57, 0.0  ;;  %v527_v4 = vand.u32 2147483648, %v2909_v57  ;;  %2096 = vrsqrt.f32 %v2957_v3 }
  0xf6   : > { %v661_v6 = vadd.f32 1e-10, %v521_v44  ;;  %v944_v50 = vsel %vm942_vm9, %v943_v16, %v941_v24  ;;  %v525_v54 = vsel %vm524_vm10, %v2909_v57, %v523_v48  ;;  %v1231_v36 = vsub.f32 %v1167_v61, %v1199_v22  ;;  %v2091_v20 = vpop.eup %2090  ;;  %v3067_v16 = vpop.xlane.xlu0 %398 }
  0xf7   : > { %v528_v27 = vsel %vm526_vm11, %v527_v4, %v525_v54  ;;  %vm947_vm12 = vcmp.eq.f32.partialorder %v2925_v58, inf  ;;  %vm949_vm13 = vcmp.eq.f32.partialorder %v2925_v58, 0.0  ;;  %2098 = vrsqrt.f32 %v2973_v26 }
  0xf8   : > { %1885 = vmatmul.mubr.f32.gmra.mrb[4].mxu0 %v1261_v19  ;;  %2100 = vrcp.f32 %v660_v13  ;;  %v946_v59 = vmul.f32 %v2091_v20, %v2925_v58  ;;  %v950_v39 = vand.u32 2147483648, %v2925_v58  ;;  %v1263_v33 = vmul.f32 %v1231_v36, %v1231_v36 }
  0xf9   : > { %1887 = vmatprep.mubr.f32.mxu0 %v1262_v52  ;;  %2102 = vrcp.f32 %v1077_v8  ;;  %v1078_v57 = vadd.f32 1e-10, %v944_v50  ;;  %v1168_v53 = vmul.f32 %v2927_v30, %v2363_v43  ;;  %v1200_v32 = vmul.f32 %v2920_v2, %v2361_v42  ;;  %v3050_v43 = vpop.xlane.xlu1 %814 }
  0xfa   : > { %2104 = vrcp.f32 %v661_v6  ;;  %v662_v29 = vadd.f32 1e-10, %v528_v27  ;;  %v948_v7 = vsel %vm947_vm12, %v2925_v58, %v946_v59  ;;  %vm531_vm14 = vcmp.eq.f32.partialorder %v2937_v49, inf  ;;  %v3102_v8 = vpop.xlane.xlu0 %400 }
  0xfb   : > { %v2093_v1 = vpop.eup %2092  ;;  %v951_v9 = vsel %vm949_vm13, %v950_v39, %v948_v7  ;;  %vm533_vm15 = vcmp.eq.f32.partialorder %v2937_v49, 0.0  ;;  %v1232_v21 = vsub.f32 %v1168_v53, %v1200_v32  ;;  %2106 = vrsqrt.f32 %v2992_v60 }
  0xfc   : > { %1888 = vmatmul.mubr.f32.gmra.mrb[6].mxu0 %v1263_v33  ;;  %v530_v42 = vmul.f32 %v2093_v1, %v2937_v49  ;;  %v534_v2 = vand.u32 2147483648, %v2937_v49  ;;  %vm954_vm0 = vcmp.eq.f32.partialorder %v2957_v3, inf  ;;  %2108 = vrsqrt.f32 %v3009_v17 }
  0xfd   : > { %v3056_v30 = vpop.eup %2094  ;;  %2110 = vrcp.f32 %v1078_v57  ;;  %v957_v58 = vand.u32 2147483648, %v2957_v3  ;;  %v1264_v51 = vmul.f32 %v1232_v21, %v1232_v21  ;;  %v1169_v41 = vmul.f32 %v2944_v15, %v2371_v47  ;;  %v3082_v19 = vpop.xlane.xlu1 %816 }
  0xfe   : > { %2112 = vrcp.f32 %v662_v29  ;;  %v1079_v5 = vadd.f32 1e-10, %v951_v9  ;;  %v532_v10 = vsel %vm531_vm14, %v2937_v49, %v530_v42  ;;  %vm956_vm1 = vcmp.eq.f32.partialorder %v2957_v3, 0.0  ;;  %v3141_v21 = vpop.xlane.xlu0 %402 }
  0xff   : > { %v1201_v45 = vmul.f32 %v2933_v34, %v2369_v46  ;;  %v2097_v35 = vpop.eup %2096  ;;  %v535_v0 = vsel %vm533_vm15, %v534_v2, %v532_v10  ;;  %vm538_vm2 = vcmp.eq.f32.partialorder %v2973_v26, inf  ;;  %v541_v47 = vand.u32 2147483648, %v2973_v26  ;;  %1890 = vmatprep.mubr.f32.mxu0 %v1264_v51 }
 0x100   : > { %2114 = vrsqrt.f32 %v3026_v37  ;;  %v953_v15 = vmul.f32 %v2097_v35, %v2957_v3  ;;  %vm961_vm3 = vcmp.eq.f32.partialorder %v2992_v60, inf  ;;  %vm963_vm4 = vcmp.eq.f32.partialorder %v2992_v60, 0.0 }
 0x101   : > { %v1233_v31 = vsub.f32 %v1169_v41, %v1201_v45  ;;  %2116 = vrsqrt.f32 %v3038_v28  ;;  %v2099_v46 = vpop.eup %2098  ;;  %v964_v34 = vand.u32 2147483648, %v2992_v60  ;;  %vm545_vm5 = vcmp.eq.f32.partialorder %v3009_v17, inf  ;;  %v3120_v33 = vpop.xlane.xlu1 %818 }
 0x102   : > { %v1170_v49 = vmul.f32 %v2981_v12, %v2387_v56  ;;  %v2101_v38 = vpop.eup %2100  ;;  %2118 = vrcp.f32 %v1079_v5  ;;  %v663_v13 = vadd.f32 1e-10, %v535_v0  ;;  %vm540_vm6 = vcmp.eq.f32.partialorder %v2973_v26, 0.0 }
 0x103   : > { %vm547_vm7 = vcmp.eq.f32.partialorder %v3009_v17, 0.0  ;;  %v1265_v44 = vmul.f32 %v1233_v31, %v1233_v31  ;;  %v3086_v61 = vpop.eup %2102  ;;  %v548_v24 = vand.u32 2147483648, %v3009_v17  ;;  %vm968_vm8 = vcmp.eq.f32.partialorder %v3026_v37, inf }
 0x104   : > { %v1202_v48 = vmul.f32 %v2975_v40, %v2385_v55  ;;  %2120 = vrsqrt.f32 %v3050_v43  ;;  %v3093_v56 = vpop.eup %2104  ;;  %v955_v12 = vsel %vm954_vm0, %v2957_v3, %v953_v15  ;;  %v537_v52 = vmul.f32 %v2099_v46, %v2973_v26 }
 0x105   : > { %1891 = vmatmul.mubr.f32.gmra.mrb[8].mxu0 %v1265_v44  ;;  %vm970_vm9 = vcmp.eq.f32.partialorder %v3026_v37, 0.0  ;;  %v971_v22 = vand.u32 2147483648, %v3026_v37  ;;  %2122 = vrsqrt.f32 %v3067_v16  ;;  %v2107_v55 = vpop.eup %2106  ;;  %vm552_vm10 = vcmp.eq.f32.partialorder %v3038_v28, inf  ;;  %v3166_v35 = vpop.xlane.xlu1 %820 }
 0x106   : > { %vm554_vm11 = vcmp.eq.f32.partialorder %v3038_v28, 0.0  ;;  %v555_v40 = vand.u32 2147483648, %v3038_v28  ;;  %v1234_v4 = vsub.f32 %v1170_v49, %v1202_v48  ;;  %v2109_v6 = vpop.eup %2108  ;;  %2124 = vrcp.f32 %v663_v13  ;;  %v3180_v49 = vpop.xlane.xlu0 %404 }
 0x107   : > { %v960_v50 = vmul.f32 %v2107_v55, %v2992_v60  ;;  %v1171_v54 = vmul.f32 %v3021_v23, %v2401_v63  ;;  %v1203_v36 = vmul.f32 %v2994_v18, %v2399_v62  ;;  %v3112_v20 = vpop.eup %2110  ;;  %v3116_v27 = vsel %vm956_vm1, %v957_v58, %v955_v12 }
 0x108   : > { %v544_v59 = vmul.f32 %v2109_v6, %v3009_v17  ;;  %v1266_v39 = vmul.f32 %v1234_v4, %v1234_v4  ;;  %2126 = vrsqrt.f32 %v3082_v19  ;;  %v3122_v57 = vpop.eup %2112  ;;  %v539_v63 = vsel %vm538_vm2, %v2973_v26, %v537_v52  ;;  %v3634_v6 = vld [vmem:[#allocation2_spill] sm:$0xff] }
 0x109   : > { %v962_v62 = vsel %vm961_vm3, %v2992_v60, %v960_v50  ;;  %vm975_vm12 = vcmp.eq.f32.partialorder %v3050_v43, inf  ;;  %v1235_v3 = vsub.f32 %v1171_v54, %v1203_v36  ;;  %vm977_vm13 = vcmp.eq.f32.partialorder %v3050_v43, 0.0  ;;  %v3196_v55 = vpop.xlane.xlu1 %822 }
 0x10a   : > { %v2115_v18 = vpop.eup %2114  ;;  %v965_v23 = vsel %vm963_vm4, %v964_v34, %v962_v62  ;;  %v546_v53 = vsel %vm545_vm5, %v3009_v17, %v544_v59  ;;  %1893 = vmatprep.mubr.f32.mxu0 %v1266_v39  ;;  %2128 = vrsqrt.f32 %v3102_v8  ;;  %v3147_v60 = vsel %vm540_vm6, %v541_v47, %v539_v63  ;;  %v3210_v39 = vpop.xlane.xlu0 %406 }
 0x10b   : > { %v2117_v32 = vpop.eup %2116  ;;  %v1081_v29 = vadd.f32 1e-10, %v965_v23  ;;  %v549_v7 = vsel %vm547_vm7, %v548_v24, %v546_v53  ;;  %v967_v1 = vmul.f32 %v2115_v18, %v3026_v37  ;;  %v1267_v9 = vmul.f32 %v1235_v3, %v1235_v3  ;;  %v3635_v18 = vld [vmem:[#allocation4_spill] sm:$0xff]  ;;  %v3636_v53 = vld [vmem:[#allocation3_spill] sm:$0xff] }
 0x10c   : > { %v551_v42 = vmul.f32 %v2117_v32, %v3038_v28  ;;  %v978_v2 = vand.u32 2147483648, %v3050_v43  ;;  %vm559_vm14 = vcmp.eq.f32.partialorder %v3067_v16, inf  ;;  %v3152_v58 = vpop.eup %2118  ;;  %v665_v17 = vadd.f32 1e-10, %v549_v7 }
 0x10d   : > { %v969_v51 = vsel %vm968_vm8, %v3026_v37, %v967_v1  ;;  %1894 = vmatmul.mubr.f32.gmra.mrb[10].mxu0 %v1267_v9  ;;  %v1172_v41 = vmul.f32 %v2101_v38, %v2417_v14  ;;  %v1204_v26 = vmul.f32 %v3056_v30, %v2415_v11  ;;  %2130 = vrcp.f32 %v1081_v29  ;;  %v3224_v29 = vpop.xlane.xlu1 %824 }
 0x10e   : > { %v2121_v5 = vpop.eup %2120  ;;  %v972_v10 = vsel %vm970_vm9, %v971_v22, %v969_v51  ;;  %v553_v45 = vsel %vm552_vm10, %v3038_v28, %v551_v42  ;;  %vm561_vm15 = vcmp.eq.f32.partialorder %v3067_v16, 0.0  ;;  %v562_v31 = vand.u32 2147483648, %v3067_v16 }
 0x10f   : > { %v2123_v0 = vpop.eup %2122  ;;  %v1082_v47 = vadd.f32 1e-10, %v972_v10  ;;  %v556_v14 = vsel %vm554_vm11, %v555_v40, %v553_v45  ;;  %v974_v11 = vmul.f32 %v2121_v5, %v3050_v43  ;;  %v1236_v30 = vsub.f32 %v1172_v41, %v1204_v26  ;;  %v3240_v41 = vpop.xlane.xlu0 %408 }
 0x110   : > { %v666_v15 = vadd.f32 1e-10, %v556_v14  ;;  %v558_v37 = vmul.f32 %v2123_v0, %v3067_v16  ;;  %2132 = vrsqrt.f32 %v3120_v33  ;;  %v3174_v46 = vpop.eup %2124  ;;  %vm982_vm0 = vcmp.eq.f32.partialorder %v3082_v19, inf  ;;  %v3638_v0 = vld [vmem:[#allocation5_spill] sm:$0xff] }
 0x111   : > { %2134 = vrcp.f32 %v665_v17  ;;  %v976_v34 = vsel %vm975_vm12, %v3050_v43, %v974_v11  ;;  %v1268_v28 = vmul.f32 %v1236_v30, %v1236_v30  ;;  %vm984_vm1 = vcmp.eq.f32.partialorder %v3082_v19, 0.0  ;;  %v3637_v17 = vld [vmem:[#allocation6_spill] sm:$0xff] }
 0x112   : > { %v2127_v38 = vpop.eup %2126  ;;  %2136 = vrcp.f32 %v1082_v47  ;;  %v979_v13 = vsel %vm977_vm13, %v978_v2, %v976_v34  ;;  %v560_v44 = vsel %vm559_vm14, %v3067_v16, %v558_v37  ;;  %v985_v43 = vand.u32 2147483648, %v3082_v19 }
 0x113   : > { %v1083_v24 = vadd.f32 1e-10, %v979_v13  ;;  %v563_v48 = vsel %vm561_vm15, %v562_v31, %v560_v44  ;;  %v981_v12 = vmul.f32 %v2127_v38, %v3082_v19  ;;  %1896 = vmatprep.mubr.f32.mxu0 %v1268_v28  ;;  %2138 = vrsqrt.f32 %v3141_v21 }
 0x114   : > { %v2129_v52 = vpop.eup %2128  ;;  %2140 = vrcp.f32 %v666_v15  ;;  %vm566_vm2 = vcmp.eq.f32.partialorder %v3102_v8, inf  ;;  %v1173_v22 = vmul.f32 %v3093_v56, %v2431_v25  ;;  %v667_v40 = vadd.f32 1e-10, %v563_v48 }
 0x115   : > { %v983_v16 = vsel %vm982_vm0, %v3082_v19, %v981_v12  ;;  %v565_v4 = vmul.f32 %v2129_v52, %v3102_v8  ;;  %v1205_v50 = vmul.f32 %v3086_v61, %v3634_v6  ;;  %2142 = vrcp.f32 %v1083_v24  ;;  %v3278_v12 = vpop.xlane.xlu0 %410 }
 0x116   : > { %v986_v54 = vsel %vm984_vm1, %v985_v43, %v983_v16  ;;  %vm568_vm3 = vcmp.eq.f32.partialorder %v3102_v8, 0.0  ;;  %v569_v25 = vand.u32 2147483648, %v3102_v8  ;;  %2144 = vrsqrt.f32 %v3166_v35 }
 0x117   : > { %v1084_v56 = vadd.f32 1e-10, %v986_v54  ;;  %v567_v36 = vsel %vm566_vm2, %v3102_v8, %v565_v4  ;;  %v1237_v59 = vsub.f32 %v1173_v22, %v1205_v50  ;;  %v3212_v63 = vpop.eup %2130  ;;  %vm989_vm4 = vcmp.eq.f32.partialorder %v3120_v33, inf }
 0x118   : > { %v570_v62 = vsel %vm568_vm3, %v569_v25, %v567_v36  ;;  %vm991_vm5 = vcmp.eq.f32.partialorder %v3120_v33, 0.0  ;;  %2146 = vrsqrt.f32 %v3180_v49  ;;  %v992_v61 = vand.u32 2147483648, %v3120_v33 }
 0x119   : > { %2148 = vrcp.f32 %v667_v40  ;;  %v668_v19 = vadd.f32 1e-10, %v570_v62  ;;  %v1269_v3 = vmul.f32 %v1237_v59, %v1237_v59  ;;  %vm573_vm6 = vcmp.eq.f32.partialorder %v3141_v21, inf }
 0x11a   : > { %v2133_v8 = vpop.eup %2132  ;;  %v1174_v23 = vmul.f32 %v3122_v57, %v3635_v18  ;;  %v1206_v32 = vmul.f32 %v3112_v20, %v3636_v53  ;;  %2150 = vrsqrt.f32 %v3196_v55  ;;  %vm575_vm7 = vcmp.eq.f32.partialorder %v3141_v21, 0.0 }
 0x11b   : > { %v3226_v7 = vpop.eup %2134  ;;  %2152 = vrcp.f32 %v1084_v56  ;;  %v988_v1 = vmul.f32 %v2133_v8, %v3120_v33  ;;  %v576_v9 = vand.u32 2147483648, %v3141_v21  ;;  %1897 = vmatmul.mubr.f32.gmra.mrb[12].mxu0 %v1269_v3  ;;  %vm996_vm8 = vcmp.eq.f32.partialorder %v3166_v35, inf  ;;  %v3313_v8 = vpop.xlane.xlu0 %412 }
 0x11c   : > { %v3231_v42 = vpop.eup %2136  ;;  %vm998_vm9 = vcmp.eq.f32.partialorder %v3166_v35, 0.0  ;;  %v1238_v20 = vsub.f32 %v1174_v23, %v1206_v32  ;;  %2154 = vrsqrt.f32 %v3210_v39  ;;  %v999_v2 = vand.u32 2147483648, %v3166_v35 }
 0x11d   : > { %v2139_v57 = vpop.eup %2138  ;;  %2156 = vrcp.f32 %v668_v19  ;;  %vm580_vm10 = vcmp.eq.f32.partialorder %v3180_v49, inf  ;;  %v1175_v51 = vmul.f32 %v3174_v46, %v3637_v17  ;;  %v990_v5 = vsel %vm989_vm4, %v3120_v33, %v988_v1  ;;  %v3639_v1 = vld [vmem:[#allocation10_spill] sm:$0xff] }
 0x11e   : > { %v3242_v26 = vpop.eup %2140  ;;  %v572_v10 = vmul.f32 %v2139_v57, %v3141_v21  ;;  %v1270_v45 = vmul.f32 %v1238_v20, %v1238_v20  ;;  %v1207_v47 = vmul.f32 %v3152_v58, %v3638_v0  ;;  %vm582_vm11 = vcmp.eq.f32.partialorder %v3180_v49, 0.0  ;;  %v3261_v58 = vpop.xlane.xlu1 %826  ;;  %v3640_v20 = vld [vmem:[#allocation9_spill] sm:$0xff] }
 0x11f   : > { %v583_v14 = vand.u32 2147483648, %v3180_v49  ;;  %vm1003_vm12 = vcmp.eq.f32.partialorder %v3196_v55, inf  ;;  %2158 = vrsqrt.f32 %v3224_v29  ;;  %v3254_v11 = vpop.eup %2142  ;;  %vm1005_vm13 = vcmp.eq.f32.partialorder %v3196_v55, 0.0 }
 0x120   : > { %v574_v30 = vsel %vm573_vm6, %v3141_v21, %v572_v10  ;;  %1899 = vmatprep.mubr.f32.mxu0 %v1270_v45  ;;  %v1239_v15 = vsub.f32 %v1175_v51, %v1207_v47  ;;  %2160 = vrsqrt.f32 %v3240_v41  ;;  %v2145_v37 = vpop.eup %2144  ;;  %v993_v31 = vsel %vm991_vm5, %v992_v61, %v990_v5 }
 0x121   : > { %v577_v46 = vsel %vm575_vm7, %v576_v9, %v574_v30  ;;  %v1006_v34 = vand.u32 2147483648, %v3196_v55  ;;  %vm587_vm14 = vcmp.eq.f32.partialorder %v3210_v39, inf  ;;  %v995_v38 = vmul.f32 %v2145_v37, %v3166_v35  ;;  %v3641_v37 = vld [vmem:[#allocation8_spill] sm:$0xff] }
 0x122   : > { %v2147_v28 = vpop.eup %2146  ;;  %vm589_vm15 = vcmp.eq.f32.partialorder %v3210_v39, 0.0  ;;  %v590_v13 = vand.u32 2147483648, %v3210_v39  ;;  %v1271_v44 = vmul.f32 %v1239_v15, %v1239_v15  ;;  %v664_v48 = vadd.f32 1e-10, %v3147_v60  ;;  %v3296_v25 = vpop.xlane.xlu1 %828 }
 0x123   : > { %v3272_v24 = vpop.eup %2148  ;;  %v579_v33 = vmul.f32 %v2147_v28, %v3180_v49  ;;  %v1080_v21 = vadd.f32 1e-10, %v3116_v27  ;;  %2162 = vrsqrt.f32 %v3261_v58  ;;  %v1085_v43 = vadd.f32 1e-10, %v993_v31 }
 0x124   : > { %v2151_v52 = vpop.eup %2150  ;;  %v669_v22 = vadd.f32 1e-10, %v577_v46  ;;  %v997_v40 = vsel %vm996_vm8, %v3166_v35, %v995_v38  ;;  %1900 = vmatmul.mubr.f32.gmra.mrb[14].mxu0 %v1271_v44  ;;  %vm1010_vm0 = vcmp.eq.f32.partialorder %v3224_v29, inf  ;;  %2164 = vrcp.f32 %v664_v48 }
 0x125   : > { %v3284_v16 = vpop.eup %2152  ;;  %v1000_v60 = vsel %vm998_vm9, %v999_v2, %v997_v40  ;;  %v581_v27 = vsel %vm580_vm10, %v3180_v49, %v579_v33  ;;  %v1002_v4 = vmul.f32 %v2151_v52, %v3196_v55  ;;  %vm1012_vm1 = vcmp.eq.f32.partialorder %v3224_v29, 0.0  ;;  %v3644_v52 = vld [vmem:[#allocation11_spill] sm:$0xff] }
 0x126   : > { %v2155_v6 = vpop.eup %2154  ;;  %v584_v50 = vsel %vm582_vm11, %v583_v14, %v581_v27  ;;  %v1013_v54 = vand.u32 2147483648, %v3224_v29  ;;  %2166 = vrcp.f32 %v1080_v21  ;;  %v1086_v56 = vadd.f32 1e-10, %v1000_v60  ;;  %v3330_v17 = vpop.xlane.xlu1 %830 }
 0x127   : > { %v3298_v35 = vpop.eup %2156  ;;  %v1004_v36 = vsel %vm1003_vm12, %v3196_v55, %v1002_v4  ;;  %v586_v59 = vmul.f32 %v2155_v6, %v3210_v39  ;;  %2168 = vrsqrt.f32 %v3278_v12  ;;  %vm594_vm2 = vcmp.eq.f32.partialorder %v3240_v41, inf }
 0x128   : > { %2170 = vrcp.f32 %v1085_v43  ;;  %v1007_v49 = vsel %vm1005_vm13, %v1006_v34, %v1004_v36  ;;  %vm596_vm3 = vcmp.eq.f32.partialorder %v3240_v41, 0.0  ;;  %v670_v19 = vadd.f32 1e-10, %v584_v50 }
 0x129   : > { %v2159_v62 = vpop.eup %2158  ;;  %2172 = vrcp.f32 %v669_v22  ;;  %v588_v61 = vsel %vm587_vm14, %v3210_v39, %v586_v59  ;;  %v597_v3 = vand.u32 2147483648, %v3240_v41  ;;  %v1087_v23 = vadd.f32 1e-10, %v1007_v49 }
 0x12a   : > { %v2161_v18 = vpop.eup %2160  ;;  %v591_v55 = vsel %vm589_vm15, %v590_v13, %v588_v61  ;;  %v1009_v53 = vmul.f32 %v2159_v62, %v3224_v29  ;;  %vm1017_vm4 = vcmp.eq.f32.partialorder %v3261_v58, inf  ;;  %2174 = vrcp.f32 %v1086_v56  ;;  %v3643_v13 = vld [vmem:[#allocation12_spill] sm:$0xff]  ;;  %v3363_v22 = vpop.xlane.xlu1 %832  ;;  %v3645_v62 = vld [vmem:[#allocation14_spill] sm:$0xff] }
 0x12b   : > { %v593_v32 = vmul.f32 %v2161_v18, %v3240_v41  ;;  %v1177_v9 = vmul.f32 %v3226_v7, %v3639_v1  ;;  %v1209_v57 = vmul.f32 %v3212_v63, %v3640_v20  ;;  %vm1019_vm5 = vcmp.eq.f32.partialorder %v3261_v58, 0.0 }
 0x12c   : > { %v1011_v2 = vsel %vm1010_vm0, %v3224_v29, %v1009_v53  ;;  %v1020_v39 = vand.u32 2147483648, %v3261_v58  ;;  %2176 = vrsqrt.f32 %v3296_v25  ;;  %v671_v5 = vadd.f32 1e-10, %v591_v55  ;;  %v3344_v29 = vpop.xlane.xlu0 %414 }
 0x12d   : > { %v2163_v51 = vpop.eup %2162  ;;  %2178 = vrcp.f32 %v670_v19  ;;  %v1014_v7 = vsel %vm1012_vm1, %v1013_v54, %v1011_v2  ;;  %v595_v63 = vsel %vm594_vm2, %v3240_v41, %v593_v32  ;;  %vm601_vm6 = vcmp.eq.f32.partialorder %v3278_v12, inf  ;;  %v3642_v41 = vld [vmem:[#allocation7_spill] sm:$0xff]  ;;  %v3647_v2 = vld [vmem:[#allocation16_spill] sm:$0xff] }
 0x12e   : > { %2180 = vrcp.f32 %v1087_v23  ;;  %v1016_v10 = vmul.f32 %v2163_v51, %v3261_v58  ;;  %vm603_vm7 = vcmp.eq.f32.partialorder %v3278_v12, 0.0  ;;  %v2165_v45 = vpop.eup %2164  ;;  %v598_v0 = vsel %vm596_vm3, %v597_v3, %v595_v63  ;;  %v3646_v3 = vld [vmem:[#allocation13_spill] sm:$0xff]  ;;  %v3394_v53 = vpop.xlane.xlu1 %834  ;;  %v3648_v63 = vld [vmem:[#allocation15_spill] sm:$0xff] }
 0x12f   : > { %v604_v47 = vand.u32 2147483648, %v3278_v12  ;;  %v1241_v14 = vsub.f32 %v1177_v9, %v1209_v57  ;;  %2182 = vrsqrt.f32 %v3313_v8  ;;  %v1088_v15 = vadd.f32 1e-10, %v1014_v7 }
 0x130   : > { %v2167_v30 = vpop.eup %2166  ;;  %v1176_v31 = vmul.f32 %v2165_v45, %v3641_v37  ;;  %v1018_v46 = vsel %vm1017_vm4, %v3261_v58, %v1016_v10  ;;  %vm1024_vm8 = vcmp.eq.f32.partialorder %v3296_v25, inf  ;;  %2184 = vrcp.f32 %v671_v5  ;;  %v3378_v56 = vpop.xlane.xlu0 %416 }
 0x131   : > { %v2169_v34 = vpop.eup %2168  ;;  %v1208_v28 = vmul.f32 %v2167_v30, %v3642_v41  ;;  %v1021_v38 = vsel %vm1019_vm5, %v1020_v39, %v1018_v46  ;;  %vm1026_vm9 = vcmp.eq.f32.partialorder %v3296_v25, 0.0  ;;  %v1178_v44 = vmul.f32 %v3242_v26, %v3643_v13  ;;  %v3649_v41 = vld [vmem:[#allocation18_spill] sm:$0xff] }
 0x132   : > { %v3357_v33 = vpop.eup %2170  ;;  %v672_v48 = vadd.f32 1e-10, %v598_v0  ;;  %v600_v21 = vmul.f32 %v2169_v34, %v3278_v12  ;;  %v1210_v43 = vmul.f32 %v3231_v42, %v3644_v52  ;;  %2186 = vrsqrt.f32 %v3330_v17 }
 0x133   : > { %v3365_v40 = vpop.eup %2172  ;;  %v1240_v58 = vsub.f32 %v1176_v31, %v1208_v28  ;;  %v1273_v60 = vmul.f32 %v1241_v14, %v1241_v14  ;;  %v1027_v27 = vand.u32 2147483648, %v3296_v25  ;;  %vm608_vm10 = vcmp.eq.f32.partialorder %v3313_v8, inf  ;;  %v3430_v31 = vpop.xlane.xlu1 %836 }
 0x134   : > { %2188 = vrcp.f32 %v1088_v15  ;;  %v1089_v26 = vadd.f32 1e-10, %v1021_v38  ;;  %v602_v4 = vsel %vm601_vm6, %v3278_v12, %v600_v21  ;;  %v1242_v6 = vsub.f32 %v1178_v44, %v1210_v43  ;;  %v3372_v42 = vpop.eup %2174 }
 0x135   : > { %v1272_v50 = vmul.f32 %v1240_v58, %v1240_v58  ;;  %v605_v54 = vsel %vm603_vm7, %v604_v47, %v602_v4  ;;  %vm610_vm11 = vcmp.eq.f32.partialorder %v3313_v8, 0.0  ;;  %2190 = vrsqrt.f32 %v3344_v29 }
 0x136   : > { %v2177_v36 = vpop.eup %2176  ;;  %2192 = vrcp.f32 %v672_v48  ;;  %v611_v59 = vand.u32 2147483648, %v3313_v8  ;;  %v1274_v49 = vmul.f32 %v1242_v6, %v1242_v6  ;;  %v1179_v19 = vmul.f32 %v3272_v24, %v3645_v62  ;;  %v3650_v48 = vld [vmem:[#allocation17_spill] sm:$0xff] }
 0x137   : > { %v3383_v61 = vpop.eup %2178  ;;  %1902 = vmatprep.mubr.f32.mxu1 %v1272_v50  ;;  %v1023_v12 = vmul.f32 %v2177_v36, %v3296_v25  ;;  %vm1031_vm12 = vcmp.eq.f32.partialorder %v3330_v17, inf  ;;  %v1211_v18 = vmul.f32 %v3254_v11, %v3646_v3  ;;  %2194 = vrsqrt.f32 %v3363_v22 }
 0x138   : > { %v3390_v23 = vpop.eup %2180  ;;  %2196 = vrcp.f32 %v1089_v26  ;;  %v673_v55 = vadd.f32 1e-10, %v605_v54  ;;  %1903 = vmatmul.mubr.f32.vlgmr.msra.gmra.mrb[0].mxu1 %v1273_v60  ;;  %vm1033_vm13 = vcmp.eq.f32.partialorder %v3330_v17, 0.0  ;;  %v1034_v24 = vand.u32 2147483648, %v3330_v17 }
 0x139   : > { %v2183_v32 = vpop.eup %2182  ;;  %v1025_v1 = vsel %vm1024_vm8, %v3296_v25, %v1023_v12  ;;  %1905 = vmatprep.mubr.f32.mxu1 %v1274_v49  ;;  %vm615_vm14 = vcmp.eq.f32.partialorder %v3344_v29, inf  ;;  %v1243_v11 = vsub.f32 %v1179_v19, %v1211_v18  ;;  %2198 = vrsqrt.f32 %v3378_v56  ;;  %v3414_v25 = vpop.xlane.xlu0 %418 }
 0x13a   : > { %v1028_v9 = vsel %vm1026_vm9, %v1027_v27, %v1025_v1  ;;  %v607_v20 = vmul.f32 %v2183_v32, %v3313_v8  ;;  %vm617_vm15 = vcmp.eq.f32.partialorder %v3344_v29, 0.0  ;;  %v618_v57 = vand.u32 2147483648, %v3344_v29  ;;  %v3408_v51 = vpop.eup %2184  ;;  %v3465_v49 = vpop.xlane.xlu1 %838  ;;  %v3652_v32 = vld [vmem:[#allocation19_spill] sm:$0xff] }
 0x13b   : > { %v1180_v39 = vmul.f32 %v3298_v35, %v3647_v2  ;;  %v1090_v5 = vadd.f32 1e-10, %v1028_v9  ;;  %v1275_v7 = vmul.f32 %v1243_v11, %v1243_v11  ;;  %vm1038_vm0 = vcmp.eq.f32.partialorder %v3363_v22, inf }
 0x13c   : > { %v1212_v10 = vmul.f32 %v3284_v16, %v3648_v63  ;;  %2200 = vrsqrt.f32 %v3394_v53  ;;  %v2187_v45 = vpop.eup %2186  ;;  %v609_v0 = vsel %vm608_vm10, %v3313_v8, %v607_v20  ;;  %vm1040_vm1 = vcmp.eq.f32.partialorder %v3363_v22, 0.0 }
 0x13d   : > { %2202 = vrcp.f32 %v673_v55  ;;  %v1041_v35 = vand.u32 2147483648, %v3363_v22  ;;  %v612_v47 = vsel %vm610_vm11, %v611_v59, %v609_v0  ;;  %v1030_v14 = vmul.f32 %v2187_v45, %v3330_v17  ;;  %1906 = vmatmul.mubr.f32.gmra.mrb[2].mxu1 %v1275_v7  ;;  %v3455_v27 = vpop.xlane.xlu0 %420 }
 0x13e   : > { %vm622_vm2 = vcmp.eq.f32.partialorder %v3378_v56, inf  ;;  %v1244_v16 = vsub.f32 %v1180_v39, %v1212_v10  ;;  %v3425_v30 = vpop.eup %2188  ;;  %v674_v15 = vadd.f32 1e-10, %v612_v47  ;;  %vm624_vm3 = vcmp.eq.f32.partialorder %v3378_v56, 0.0 }
 0x13f   : > { %v625_v37 = vand.u32 2147483648, %v3378_v56  ;;  %2204 = vrsqrt.f32 %v3414_v25  ;;  %v2191_v46 = vpop.eup %2190  ;;  %v1032_v8 = vsel %vm1031_vm12, %v3330_v17, %v1030_v14  ;;  %vm1045_vm4 = vcmp.eq.f32.partialorder %v3394_v53, inf  ;;  %v3653_v14 = vld [vmem:[#allocation22_spill] sm:$0xff] }
 0x140   : > { %2206 = vrcp.f32 %v1090_v5  ;;  %v1276_v34 = vmul.f32 %v1244_v16, %v1244_v16  ;;  %v1181_v28 = vmul.f32 %v3365_v40, %v3649_v41  ;;  %v3438_v38 = vpop.eup %2192  ;;  %v1035_v13 = vsel %vm1033_vm13, %v1034_v24, %v1032_v8 }
 0x141   : > { %2208 = vrcp.f32 %v674_v15  ;;  %v614_v44 = vmul.f32 %v2191_v46, %v3344_v29  ;;  %v1213_v21 = vmul.f32 %v3357_v33, %v3650_v48  ;;  %v2195_v52 = vpop.eup %2194  ;;  %v1091_v43 = vadd.f32 1e-10, %v1035_v13  ;;  %v3654_v46 = vld [vmem:[#allocation21_spill] sm:$0xff] }
 0x142   : > { %1908 = vmatprep.mubr.f32.mxu1 %v1276_v34  ;;  %vm1047_vm5 = vcmp.eq.f32.partialorder %v3394_v53, 0.0  ;;  %v1048_v58 = vand.u32 2147483648, %v3394_v53  ;;  %2210 = vrsqrt.f32 %v3430_v31  ;;  %v3448_v40 = vpop.eup %2196  ;;  %v1037_v60 = vmul.f32 %v2195_v52, %v3363_v22  ;;  %v3655_v34 = vld [vmem:[#allocation24_spill] sm:$0xff] }
 0x143   : > { %v616_v17 = vsel %vm615_vm14, %v3344_v29, %v614_v44  ;;  %vm629_vm6 = vcmp.eq.f32.partialorder %v3414_v25, inf  ;;  %v1245_v33 = vsub.f32 %v1181_v28, %v1213_v21  ;;  %v2199_v26 = vpop.eup %2198  ;;  %2212 = vrcp.f32 %v1091_v43  ;;  %v3651_v29 = vld [vmem:[#allocation20_spill] sm:$0xff]  ;;  %v3656_v28 = vld [vmem:[#allocation23_spill] sm:$0xff]  ;;  %v3657_v44 = vld [vmem:[#allocation26_spill] sm:$0xff] }
 0x144   : > { %v619_v4 = vsel %vm617_vm15, %v618_v57, %v616_v17  ;;  %vm631_vm7 = vcmp.eq.f32.partialorder %v3414_v25, 0.0  ;;  %v632_v6 = vand.u32 2147483648, %v3414_v25  ;;  %v1039_v54 = vsel %vm1038_vm0, %v3363_v22, %v1037_v60  ;;  %v3487_v57 = vpop.xlane.xlu0 %422  ;;  %v3658_v21 = vld [vmem:[#allocation25_spill] sm:$0xff]  ;;  %v3659_v52 = vld [vmem:[#allocation28_spill] sm:$0xff] }
 0x145   : > { %v675_v50 = vadd.f32 1e-10, %v619_v4  ;;  %v621_v36 = vmul.f32 %v2199_v26, %v3378_v56  ;;  %v1277_v59 = vmul.f32 %v1245_v33, %v1245_v33  ;;  %v1042_v19 = vsel %vm1040_vm1, %v1041_v35, %v1039_v54  ;;  %v3660_v4 = vld [vmem:[#allocation27_spill] sm:$0xff] }
 0x146   : > { %v2201_v62 = vpop.eup %2200  ;;  %vm1052_vm8 = vcmp.eq.f32.partialorder %v3430_v31, inf  ;;  %2214 = vrsqrt.f32 %v3455_v27  ;;  %v1182_v12 = vmul.f32 %v3383_v61, %v3651_v29  ;;  %v1092_v18 = vadd.f32 1e-10, %v1042_v19 }
 0x147   : > { %v2203_v3 = vpop.eup %2202  ;;  %2216 = vrcp.f32 %v675_v50  ;;  %v623_v55 = vsel %vm622_vm2, %v3378_v56, %v621_v36  ;;  %v1044_v24 = vmul.f32 %v2201_v62, %v3394_v53  ;;  %1909 = vmatmul.mubr.f32.gmra.mrb[4].mxu1 %v1277_v59  ;;  %vm1054_vm9 = vcmp.eq.f32.partialorder %v3430_v31, 0.0  ;;  %v3662_v62 = vld [vmem:[#allocation29_spill] sm:$0xff] }
 0x148   : > { %v626_v22 = vsel %vm624_vm3, %v625_v37, %v623_v55  ;;  %v1214_v1 = vmul.f32 %v3372_v42, %v3652_v32  ;;  %2218 = vrsqrt.f32 %v3465_v49  ;;  %v1055_v20 = vand.u32 2147483648, %v3430_v31 }
 0x149   : > { %v2205_v61 = vpop.eup %2204  ;;  %2220 = vrcp.f32 %v1092_v18  ;;  %v676_v11 = vadd.f32 1e-10, %v626_v22  ;;  %v1046_v9 = vsel %vm1045_vm4, %v3394_v53, %v1044_v24  ;;  %vm636_vm10 = vcmp.eq.f32.partialorder %v3455_v27, inf  ;;  %v3663_v22 = vld [vmem:[#allocation31_spill] sm:$0xff] }
 0x14a   : > { %v2207_v56 = vpop.eup %2206  ;;  %v1049_v2 = vsel %vm1047_vm5, %v1048_v58, %v1046_v9  ;;  %v628_v39 = vmul.f32 %v2205_v61, %v3414_v25  ;;  %v1246_v42 = vsub.f32 %v1182_v12, %v1214_v1  ;;  %vm638_vm11 = vcmp.eq.f32.partialorder %v3455_v27, 0.0 }
 0x14b   : > { %v2209_v5 = vpop.eup %2208  ;;  %2222 = vrcp.f32 %v676_v11  ;;  %v1093_v7 = vadd.f32 1e-10, %v1049_v2  ;;  %v639_v63 = vand.u32 2147483648, %v3455_v27  ;;  %vm1059_vm12 = vcmp.eq.f32.partialorder %v3465_v49, inf  ;;  %v3664_v2 = vld [vmem:[#allocation32_spill] sm:$0xff] }
 0x14c   : > { %v2211_v10 = vpop.eup %2210  ;;  %v630_v45 = vsel %vm629_vm6, %v3414_v25, %v628_v39  ;;  %v1278_v0 = vmul.f32 %v1246_v42, %v1246_v42  ;;  %v1062_v53 = vand.u32 2147483648, %v3465_v49  ;;  %2224 = vrsqrt.f32 %v3487_v57 }
 0x14d   : > { %2226 = vrcp.f32 %v1093_v7  ;;  %v633_v35 = vsel %vm631_vm7, %v632_v6, %v630_v45  ;;  %v1051_v47 = vmul.f32 %v2211_v10, %v3430_v31  ;;  %v1183_v16 = vmul.f32 %v3408_v51, %v3653_v14  ;;  %v2213_v15 = vpop.eup %2212  ;;  %v3665_v45 = vld [vmem:[#allocation33_spill] sm:$0xff] }
 0x14e   : > { %v677_v37 = vadd.f32 1e-10, %v633_v35  ;;  %1911 = vmatprep.mubr.f32.mxu1 %v1278_v0  ;;  %v1215_v8 = vmul.f32 %v3390_v23, %v3654_v46  ;;  %v1184_v41 = vmul.f32 %v3438_v38, %v3655_v34  ;;  %v1216_v13 = vmul.f32 %v3425_v30, %v3656_v28  ;;  %v3667_v34 = vld [vmem:[#allocation35_spill] sm:$0xff] }
 0x14f   : > { %v1053_v25 = vsel %vm1052_vm8, %v3430_v31, %v1051_v47  ;;  %v1185_v48 = vmul.f32 %v2203_v3, %v3657_v44  ;;  %v1217_v51 = vmul.f32 %v3448_v40, %v3658_v21  ;;  %v1186_v43 = vmul.f32 %v2209_v5, %v3659_v52  ;;  %v3661_v40 = vld [vmem:[#allocation30_spill] sm:$0xff]  ;;  %v3669_v21 = vld [vmem:[#allocation37_spill] sm:$0xff] }
 0x150   : > { %v2215_v58 = vpop.eup %2214  ;;  %2228 = vrcp.f32 %v677_v37  ;;  %v1056_v23 = vsel %vm1054_vm9, %v1055_v20, %v1053_v25  ;;  %v1247_v38 = vsub.f32 %v1183_v16, %v1215_v8  ;;  %v1248_v17 = vsub.f32 %v1184_v41, %v1216_v13  ;;  %v3666_v16 = vld [vmem:[#allocation34_spill] sm:$0xff] }
 0x151   : > { %v2217_v60 = vpop.eup %2216  ;;  %v1094_v30 = vadd.f32 1e-10, %v1056_v23  ;;  %v635_v33 = vmul.f32 %v2215_v58, %v3455_v27  ;;  %v1249_v26 = vsub.f32 %v1185_v48, %v1217_v51  ;;  %v1218_v6 = vmul.f32 %v2207_v56, %v3660_v4 }
 0x152   : > { %v2219_v50 = vpop.eup %2218  ;;  %v1279_v54 = vmul.f32 %v1247_v38, %v1247_v38  ;;  %v1280_v36 = vmul.f32 %v1248_v17, %v1248_v17  ;;  %v1187_v59 = vmul.f32 %v2217_v60, %v3661_v40  ;;  %v1219_v19 = vmul.f32 %v2213_v15, %v3662_v62 }
 0x153   : > { %v2221_v29 = vpop.eup %2220  ;;  %2230 = vrcp.f32 %v1094_v30  ;;  %v637_v31 = vsel %vm636_vm10, %v3455_v27, %v635_v33  ;;  %v1058_v12 = vmul.f32 %v2219_v50, %v3465_v49  ;;  %v1281_v3 = vmul.f32 %v1249_v26, %v1249_v26 }
 0x154   : > { %v640_v18 = vsel %vm638_vm11, %v639_v63, %v637_v31  ;;  %1912 = vmatmul.mubr.f32.gmra.mrb[6].mxu1 %v1279_v54  ;;  %v1250_v55 = vsub.f32 %v1186_v43, %v1218_v6  ;;  %v1251_v24 = vsub.f32 %v1187_v59, %v1219_v19  ;;  %v1220_v32 = vmul.f32 %v2221_v29, %v3663_v22  ;;  %v3670_v43 = vld [vmem:[#allocation38_spill] sm:$0xff] }
 0x155   : > { %v2223_v1 = vpop.eup %2222  ;;  %v678_v61 = vadd.f32 1e-10, %v640_v18  ;;  %v1060_v11 = vsel %vm1059_vm12, %v3465_v49, %v1058_v12  ;;  %vm1061_vm13 = vcmp.eq.f32.partialorder %v3465_v49, 0.0  ;;  %1914 = vmatprep.mubr.f32.mxu1 %v1280_v36  ;;  %vm643_vm14 = vcmp.eq.f32.partialorder %v3487_v57, inf }
 0x156   : > { %v2225_v9 = vpop.eup %2224  ;;  %v1063_v20 = vsel %vm1061_vm13, %v1062_v53, %v1060_v11  ;;  %v1282_v56 = vmul.f32 %v1250_v55, %v1250_v55  ;;  %v1188_v27 = vmul.f32 %v2223_v1, %v3664_v2  ;;  %v646_v7 = vand.u32 2147483648, %v3487_v57 }
 0x157   : > { %v2227_v39 = vpop.eup %2226  ;;  %2232 = vrcp.f32 %v678_v61  ;;  %v1095_v42 = vadd.f32 1e-10, %v1063_v20  ;;  %v642_v5 = vmul.f32 %v2225_v9, %v3487_v57  ;;  %v1283_v63 = vmul.f32 %v1251_v24, %v1251_v24 }
 0x158   : > { %1915 = vmatmul.mubr.f32.gmra.mrb[8].mxu1 %v1281_v3  ;;  %v1252_v10 = vsub.f32 %v1188_v27, %v1220_v32  ;;  %vm645_vm15 = vcmp.eq.f32.partialorder %v3487_v57, 0.0  ;;  %v1221_v0 = vmul.f32 %v2227_v39, %v3665_v45 }
 0x159   : > { %2234 = vrcp.f32 %v1095_v42  ;;  %v644_v49 = vsel %vm643_vm14, %v3487_v57, %v642_v5  ;;  %1917 = vmatprep.mubr.f32.mxu1 %v1282_v56  ;;  %v3668_v57 = vld [vmem:[#allocation36_spill] sm:$0xff] }
 0x15a   : > { %v2229_v53 = vpop.eup %2228  ;;  %v647_v35 = vsel %vm645_vm15, %v646_v7, %v644_v49  ;;  %v1284_v47 = vmul.f32 %v1252_v10, %v1252_v10 }
 0x15b   : > { %v679_v14 = vadd.f32 1e-10, %v647_v35  ;;  %v1189_v15 = vmul.f32 %v2229_v53, %v3666_v16 }
 0x15c   : > { %1918 = vmatmul.mubr.f32.gmra.mrb[10].mxu1 %v1283_v63 }
 0x15d   : > { %v2231_v37 = vpop.eup %2230  ;;  %2236 = vrcp.f32 %v679_v14  ;;  %1920 = vmatprep.mubr.f32.mxu1 %v1284_v47  ;;  %v1253_v46 = vsub.f32 %v1189_v15, %v1221_v0 }
 0x15e   : > { %v1222_v41 = vmul.f32 %v2231_v37, %v3667_v34 }
 0x15f   : > { %v1285_v8 = vmul.f32 %v1253_v46, %v1253_v46 }
 0x161   : > { %v2233_v28 = vpop.eup %2232  ;;  %1921 = vmatmul.mubr.f32.gmra.mrb[12].mxu1 %v1285_v8 }
 0x162   : > { %v1190_v13 = vmul.f32 %v2233_v28, %v3668_v57 }
 0x163   : > { %v2235_v25 = vpop.eup %2234 }
 0x164   : > { %v1254_v44 = vsub.f32 %v1190_v13, %v1222_v41  ;;  %v1223_v51 = vmul.f32 %v2235_v25, %v3669_v21 }
 0x166   : > { %v1286_v48 = vmul.f32 %v1254_v44, %v1254_v44 }
 0x167   : > { %v2237_v52 = vpop.eup %2236 }
 0x168   : > { %1923 = vmatprep.mubr.f32.mxu1 %v1286_v48  ;;  %v1191_v58 = vmul.f32 %v2237_v52, %v3670_v43 }
 0x16a   : > { %v1255_v23 = vsub.f32 %v1191_v58, %v1223_v51 }
 0x16c   : > { %v1287_v38 = vmul.f32 %v1255_v23, %v1255_v23 }
 0x16e   : > { %1924 = vmatmul.mubr.f32.gmra.mrb[14].mxu1 %v1287_v38 }
 0x1c3   : > { %v1880_v17 = vpop.f32.mrb[0].mxu0 }
 0x1c4   : > { %v1370_v60 = vpop.f32.mrb[1].mxu0 }
 0x1c5   : > { %v1529_v30 = vadd.f32 %v1880_v17, %v1370_v60 }
 0x1c7   : > { %v1883_v33 = vpop.f32.mrb[2].mxu0 }
 0x1c8   : > { %v1380_v26 = vpop.f32.mrb[3].mxu0 }
 0x1c9   : > { %v1530_v4 = vadd.f32 %v1529_v30, %v1380_v26 }
 0x1cb   : > { %v1886_v6 = vpop.f32.mrb[4].mxu0  ;;  %v1531_v50 = vadd.f32 %v1883_v33, %v1530_v4 }
 0x1cc   : > { %v1390_v54 = vpop.f32.mrb[5].mxu0 }
 0x1cd   : > { %v1532_v36 = vadd.f32 %v1531_v50, %v1390_v54 }
 0x1cf   : > { %v1889_v40 = vpop.f32.mrb[6].mxu0  ;;  %v1533_v59 = vadd.f32 %v1886_v6, %v1532_v36 }
 0x1d0   : > { %v1400_v62 = vpop.f32.mrb[7].mxu0 }
 0x1d1   : > { %v1534_v19 = vadd.f32 %v1533_v59, %v1400_v62 }
 0x1d3   : > { %v1535_v29 = vadd.f32 %v1889_v40, %v1534_v19 }
 0x1d8   : > { %v1892_v31 = vpop.f32.mrb[8].mxu0 }
 0x1d9   : > { %v1410_v12 = vpop.f32.mrb[9].mxu0 }
 0x1da   : > { %v1536_v3 = vadd.f32 %v1535_v29, %v1410_v12 }
 0x1dc   : > { %v1537_v18 = vadd.f32 %v1892_v31, %v1536_v3 }
 0x1e0   : > { %v1895_v55 = vpop.f32.mrb[10].mxu0 }
 0x1e1   : > { %v1420_v24 = vpop.f32.mrb[11].mxu0 }
 0x1e2   : > { %v1538_v22 = vadd.f32 %v1537_v18, %v1420_v24 }
 0x1e4   : > { %v1539_v32 = vadd.f32 %v1895_v55, %v1538_v22 }
 0x1ee   : > { %v1898_v1 = vpop.f32.mrb[12].mxu0 }
 0x1ef   : > { %v1430_v61 = vpop.f32.mrb[13].mxu0 }
 0x1f0   : > { %v1540_v11 = vadd.f32 %v1539_v32, %v1430_v61 }
 0x1f2   : > { %v1541_v9 = vadd.f32 %v1898_v1, %v1540_v11 }
 0x1f7   : > { %v1901_v20 = vpop.f32.mrb[14].mxu0 }
 0x1f8   : > { %v1440_v56 = vpop.f32.mrb[15].mxu0 }
 0x1f9   : > { %v1542_v2 = vadd.f32 %v1541_v9, %v1440_v56 }
 0x1fb   : > { %v1543_v27 = vadd.f32 %v1901_v20, %v1542_v2 }
 0x20b   : > { %v1904_v39 = vpop.f32.mrb[0].mxu1 }
 0x20c   : > { %v1450_v42 = vpop.f32.mrb[1].mxu1 }
 0x20d   : > { %v1544_v5 = vadd.f32 %v1543_v27, %v1450_v42 }
 0x20f   : > { %v1545_v7 = vadd.f32 %v1904_v39, %v1544_v5 }
 0x210   : > { %v1907_v63 = vpop.f32.mrb[2].mxu1 }
 0x211   : > { %v1460_v10 = vpop.f32.mrb[3].mxu1 }
 0x212   : > { %v1546_v49 = vadd.f32 %v1545_v7, %v1460_v10 }
 0x214   : > { %v1547_v45 = vadd.f32 %v1907_v63, %v1546_v49 }
 0x21a   : > { %v1910_v0 = vpop.f32.mrb[4].mxu1 }
 0x21b   : > { %v1470_v53 = vpop.f32.mrb[5].mxu1 }
 0x21c   : > { %v1548_v35 = vadd.f32 %v1547_v45, %v1470_v53 }
 0x21e   : > { %v1549_v47 = vadd.f32 %v1910_v0, %v1548_v35 }
 0x227   : > { %v1913_v14 = vpop.f32.mrb[6].mxu1 }
 0x228   : > { %v1480_v16 = vpop.f32.mrb[7].mxu1 }
 0x229   : > { %v1550_v15 = vadd.f32 %v1549_v47, %v1480_v16 }
 0x22b   : > { %v1916_v37 = vpop.f32.mrb[8].mxu1  ;;  %v1551_v46 = vadd.f32 %v1913_v14, %v1550_v15 }
 0x22c   : > { %v1490_v8 = vpop.f32.mrb[9].mxu1 }
 0x22d   : > { %v1552_v34 = vadd.f32 %v1551_v46, %v1490_v8 }
 0x22f   : > { %v1919_v41 = vpop.f32.mrb[10].mxu1  ;;  %v1553_v28 = vadd.f32 %v1916_v37, %v1552_v34 }
 0x230   : > { %v1500_v57 = vpop.f32.mrb[11].mxu1 }
 0x231   : > { %v1554_v13 = vadd.f32 %v1553_v28, %v1500_v57 }
 0x233   : > { %v1555_v25 = vadd.f32 %v1919_v41, %v1554_v13 }
 0x234   : > { %v1922_v44 = vpop.f32.mrb[12].mxu1 }
 0x235   : > { %v1510_v48 = vpop.f32.mrb[13].mxu1 }
 0x236   : > { %v1556_v21 = vadd.f32 %v1555_v25, %v1510_v48 }
 0x238   : > { %v1557_v51 = vadd.f32 %v1922_v44, %v1556_v21 }
 0x241   : > { %v1925_v52 = vpop.f32.mrb[14].mxu1 }
 0x242   : > { %v1520_v43 = vpop.f32.mrb[15].mxu1 }
 0x243   : > { %v1558_v58 = vadd.f32 %v1557_v51, %v1520_v43 }
 0x245   : > { %v1559_v23 = vadd.f32 %v1925_v52, %v1558_v58 }
 0x247   : > { %1560 = vst [vmem:[%s199_s7] sm:$0xff] %v1559_v23 }
 0x248 PF: > { %s13_s12 = sadd.s32 1, %s2244_s12  }
 0x249   : > { %p10_p6 = scmp.ge.s32.totalorder %s13_s12, 4  }
 0x24b   :  { %12 = sbr.rel (!%p10_p6) target bundleno = 1 (0x1), region = 65 }

</bundles_post_ra>
